<compile_context>
chip_gen: v5e
topology: v5e:2x2
jax: 0.10.0
libtpu: 0.0.40
codegen_flags: <defaults>
</compile_context>

<pallas_src>
import functools

import jax
import jax.numpy as jnp
from jax.experimental import pallas as pl
from jax.experimental.pallas import tpu as pltpu

_LANE = 128
_SUBLANE = 8


def _pad_up(n, m):
    return ((n + m - 1) // m) * m


def _critic_fused_kernel(
    x_ref, w1_ref, b1_ref, w2_ref, b2_ref, w3_ref, b3_ref, w4_ref, b4_ref,
    o_ref, h1_ref, h2_ref, *, tn2,
):
    """Whole Critic forward in one kernel.

    Grid: a single "arbitrary" axis over fc2's output-column tiles (the only
    weight worth streaming).  Everything else — x, W1/W3/W4, biases, the
    output block and the h1/h2 activation scratch — is resident in VMEM for
    the entire call.
    """
    j = pl.program_id(0)

    # --- fc1 + ReLU (once; all resident operands are in VMEM by step 0) ---
    @pl.when(j == 0)
    def _():
        h1_ref[...] = jnp.maximum(
            jnp.dot(x_ref[...], w1_ref[...], preferred_element_type=jnp.float32)
            + b1_ref[...],
            0.0,
        )

    # --- fc2 + ReLU on this streamed column tile ---
    col = pl.multiple_of(j * tn2, tn2)
    h2_ref[:, pl.ds(col, tn2)] = jnp.maximum(
        jnp.dot(h1_ref[...], w2_ref[...], preferred_element_type=jnp.float32)
        + b2_ref[...],
        0.0,
    )

    # --- fc3 + ReLU and fc4 (lane-padded) once all of h2 is available ---
    @pl.when(j == pl.num_programs(0) - 1)
    def _():
        h3 = jnp.maximum(
            jnp.dot(h2_ref[...], w3_ref[...], preferred_element_type=jnp.float32)
            + b3_ref[...],
            0.0,
        )
        o_ref[...] = (
            jnp.dot(h3, w4_ref[...], preferred_element_type=jnp.float32)
            + b4_ref[...]
        ).astype(o_ref.dtype)


def critic_forward(params, x, *, vmem_limit_bytes=48 * 1024 * 1024):
    """x: (B, input_size) f32 -> (B, output_size) f32."""
    (w1, b1), (w2, b2), (w3, b3), (w4, b4) = params
    B, K1 = x.shape
    assert w1.shape[0] == K1
    H1 = w1.shape[1]            # 2048
    H2 = w2.shape[1]            # 1024
    H3 = w3.shape[1]            # 1024
    N_out = w4.shape[1]         # output_size

    # Pad batch to a sublane multiple and fc4's narrow output to a full lane
    # width (128) so the output stores are unmasked / lane dense.
    Bp = max(_SUBLANE, _pad_up(B, _SUBLANE))
    Np = max(_LANE, _pad_up(N_out, _LANE))

    xp = x if Bp == B else jnp.pad(x, ((0, Bp - B), (0, 0)))
    w4p = w4 if Np == N_out else jnp.pad(w4, ((0, 0), (0, Np - N_out)))
    b4p = b4 if Np == N_out else jnp.pad(b4, ((0, Np - N_out),))

    # Stream only fc2's (largest) weight in 512-wide column tiles.
    tn2 = 512 if H2 % 512 == 0 else H2
    n_steps = H2 // tn2

    kernel = functools.partial(_critic_fused_kernel, tn2=tn2)

    out_p = pl.pallas_call(
        kernel,
        out_shape=jax.ShapeDtypeStruct((Bp, Np), jnp.float32),
        grid_spec=pltpu.PrefetchScalarGridSpec(
            num_scalar_prefetch=0,
            grid=(n_steps,),
            in_specs=[
                pl.BlockSpec((Bp, K1), lambda j: (0, 0)),    # x      (resident)
                pl.BlockSpec((K1, H1), lambda j: (0, 0)),    # W1     (resident)
                pl.BlockSpec((1, H1), lambda j: (0, 0)),     # b1
                pl.BlockSpec((H1, tn2), lambda j: (0, j)),   # W2     (streamed)
                pl.BlockSpec((1, tn2), lambda j: (0, j)),    # b2
                pl.BlockSpec((H2, H3), lambda j: (0, 0)),    # W3     (resident)
                pl.BlockSpec((1, H3), lambda j: (0, 0)),     # b3
                pl.BlockSpec((H3, Np), lambda j: (0, 0)),    # W4 pad (resident)
                pl.BlockSpec((1, Np), lambda j: (0, 0)),     # b4 pad
            ],
            out_specs=pl.BlockSpec((Bp, Np), lambda j: (0, 0)),
            scratch_shapes=[
                pltpu.VMEM((Bp, H1), jnp.float32),  # h1 = relu(fc1(x))
                pltpu.VMEM((Bp, H2), jnp.float32),  # h2 = relu(fc2(h1))
            ],
        ),
        compiler_params=pltpu.CompilerParams(
            dimension_semantics=("arbitrary",),
            vmem_limit_bytes=vmem_limit_bytes,
        ),
    )(
        xp,
        w1, b1.reshape(1, H1),
        w2, b2.reshape(1, H2),
        w3, b3.reshape(1, H3),
        w4p, b4p.reshape(1, Np),
    )

    return out_p[:B, :N_out]


def init_critic_params(key, input_size, output_size):
    """Deterministic synthetic parameters matching the torch module shapes."""
    dims = [(input_size, 2048), (2048, 1024), (1024, 1024), (1024, output_size)]
    params = []
    for fan_in, fan_out in dims:
        kw, kb, key = jax.random.split(key, 3)
        scale = 1.0 / jnp.sqrt(jnp.float32(fan_in))
        # torch stores W as (out, in); we keep the transposed (in, out) layout.
        w_t = jax.random.uniform(
            kw, (fan_in, fan_out), jnp.float32, minval=-scale, maxval=scale
        )
        b = jax.random.uniform(
            kb, (fan_out,), jnp.float32, minval=-scale, maxval=scale
        )
        params.append((w_t, b))
    return params


if __name__ == "__main__":
    key = jax.random.PRNGKey(0)
    batch = 8
    input_size = 32
    output_size = 4

    kx, kp = jax.random.split(key)
    x = jax.random.normal(kx, (batch, input_size), jnp.float32)
    params = init_critic_params(kp, input_size, output_size)

    out = critic_forward(params, x)
    jax.block_until_ready(out)

    # Reference check in plain JAX (same math as the torch forward).
    ref = x
    for i, (w_t, b) in enumerate(params):
        ref = ref @ w_t + b
        if i < 3:
            ref = jnp.maximum(ref, 0.0)

    assert out.shape == (batch, output_size)
    assert jnp.allclose(out, ref, atol=1e-3, rtol=1e-3), (
        float(jnp.max(jnp.abs(out - ref)))
    )

    print("KERNEL_OK")
</pallas_src>

<mosaic_0001>
module attributes {stable_mosaic.version = 11 : i64} {
  func.func @_critic_fused_kernel(%arg0: i32, %arg1: memref<8x32xf32, #tpu.memory_space<vmem>>, %arg2: memref<32x2048xf32, #tpu.memory_space<vmem>>, %arg3: memref<1x2048xf32, #tpu.memory_space<vmem>>, %arg4: memref<2048x512xf32, #tpu.memory_space<vmem>>, %arg5: memref<1x512xf32, #tpu.memory_space<vmem>>, %arg6: memref<1024x1024xf32, #tpu.memory_space<vmem>>, %arg7: memref<1x1024xf32, #tpu.memory_space<vmem>>, %arg8: memref<1024x128xf32, #tpu.memory_space<vmem>>, %arg9: memref<1x128xf32, #tpu.memory_space<vmem>>, %arg10: memref<8x128xf32, #tpu.memory_space<vmem>>, %arg11: memref<8x2048xf32, #tpu.memory_space<vmem>>, %arg12: memref<8x1024xf32, #tpu.memory_space<vmem>>) attributes {dimension_semantics = [#tpu.dimension_semantics<arbitrary>], iteration_bounds = array<i64: 2>, scalar_prefetch = 0 : i64, scratch_operands = 2 : i64, tpu.core_type = #tpu.core_type<tc>, window_params = [{pipeline_mode = #tpu.pipeline_mode<synchronous>, transform_indices = @transform_0, window_bounds = array<i64: 8, 32>}, {pipeline_mode = #tpu.pipeline_mode<synchronous>, transform_indices = @transform_1, window_bounds = array<i64: 32, 2048>}, {pipeline_mode = #tpu.pipeline_mode<synchronous>, transform_indices = @transform_2, window_bounds = array<i64: 1, 2048>}, {transform_indices = @transform_3, window_bounds = array<i64: 2048, 512>}, {transform_indices = @transform_4, window_bounds = array<i64: 1, 512>}, {pipeline_mode = #tpu.pipeline_mode<synchronous>, transform_indices = @transform_5, window_bounds = array<i64: 1024, 1024>}, {pipeline_mode = #tpu.pipeline_mode<synchronous>, transform_indices = @transform_6, window_bounds = array<i64: 1, 1024>}, {pipeline_mode = #tpu.pipeline_mode<synchronous>, transform_indices = @transform_7, window_bounds = array<i64: 1024, 128>}, {pipeline_mode = #tpu.pipeline_mode<synchronous>, transform_indices = @transform_8, window_bounds = array<i64: 1, 128>}, {pipeline_mode = #tpu.pipeline_mode<synchronous>, transform_indices = @transform_9, window_bounds = array<i64: 8, 128>}]} {
    %c0_i32 = arith.constant 0 : i32
    %0 = arith.cmpi eq, %arg0, %c0_i32 : i32
    %1 = arith.extui %0 : i1 to i32
    %c0_i32_0 = arith.constant 0 : i32
    %2 = arith.cmpi ne, %1, %c0_i32_0 : i32
    scf.if %2 {
      %c0_9 = arith.constant 0 : index
      %c0_10 = arith.constant 0 : index
      %18 = vector.load %arg1[%c0_9, %c0_10] : memref<8x32xf32, #tpu.memory_space<vmem>>, vector<8x32xf32>
      %c0_11 = arith.constant 0 : index
      %c0_12 = arith.constant 0 : index
      %19 = vector.load %arg2[%c0_11, %c0_12] : memref<32x2048xf32, #tpu.memory_space<vmem>>, vector<32x2048xf32>
      %cst_13 = arith.constant dense<0.000000e+00> : vector<8x2048xf32>
      %20 = tpu.matmul %18, %19, %cst_13 {dimension_numbers = #tpu.dot_dimension_numbers<[1], [0], [0], [1], [0, 0, 1, 1], [], []>} : vector<8x32xf32>, vector<32x2048xf32>, vector<8x2048xf32> -> vector<8x2048xf32>
      %c0_14 = arith.constant 0 : index
      %c0_15 = arith.constant 0 : index
      %21 = vector.load %arg3[%c0_14, %c0_15] : memref<1x2048xf32, #tpu.memory_space<vmem>>, vector<1x2048xf32>
      %22 = vector.broadcast %21 : vector<1x2048xf32> to vector<8x2048xf32>
      %23 = arith.addf %20, %22 : vector<8x2048xf32>
      %cst_16 = arith.constant 0.000000e+00 : f32
      %24 = vector.broadcast %cst_16 : f32 to vector<8x2048xf32>
      %25 = arith.maximumf %23, %24 : vector<8x2048xf32>
      %c0_17 = arith.constant 0 : index
      %c0_18 = arith.constant 0 : index
      %26 = vector.load %arg11[%c0_17, %c0_18] : memref<8x2048xf32, #tpu.memory_space<vmem>>, vector<8x2048xf32>
      tpu.vector_store %arg11[%c0_17, %c0_18], %25 {strides = array<i32>} : memref<8x2048xf32, #tpu.memory_space<vmem>>, vector<8x2048xf32>,
    } else {
    }
    %c512_i32 = arith.constant 512 : i32
    %3 = arith.muli %arg0, %c512_i32 : i32
    %4 = tpu.assume_multiple %3, 512 : i32
    %c0 = arith.constant 0 : index
    %c0_1 = arith.constant 0 : index
    %5 = vector.load %arg11[%c0, %c0_1] : memref<8x2048xf32, #tpu.memory_space<vmem>>, vector<8x2048xf32>
    %c0_2 = arith.constant 0 : index
    %c0_3 = arith.constant 0 : index
    %6 = vector.load %arg4[%c0_2, %c0_3] : memref<2048x512xf32, #tpu.memory_space<vmem>>, vector<2048x512xf32>
    %cst = arith.constant dense<0.000000e+00> : vector<8x512xf32>
    %7 = tpu.matmul %5, %6, %cst {dimension_numbers = #tpu.dot_dimension_numbers<[1], [0], [0], [1], [0, 0, 1, 1], [], []>} : vector<8x2048xf32>, vector<2048x512xf32>, vector<8x512xf32> -> vector<8x512xf32>
    %c0_4 = arith.constant 0 : index
    %c0_5 = arith.constant 0 : index
    %8 = vector.load %arg5[%c0_4, %c0_5] : memref<1x512xf32, #tpu.memory_space<vmem>>, vector<1x512xf32>
    %9 = vector.broadcast %8 : vector<1x512xf32> to vector<8x512xf32>
    %10 = arith.addf %7, %9 : vector<8x512xf32>
    %cst_6 = arith.constant 0.000000e+00 : f32
    %11 = vector.broadcast %cst_6 : f32 to vector<8x512xf32>
    %12 = arith.maximumf %10, %11 : vector<8x512xf32>
    %c0_7 = arith.constant 0 : index
    %13 = arith.index_cast %4 : i32 to index
    %14 = vector.load %arg12[%c0_7, %13] : memref<8x1024xf32, #tpu.memory_space<vmem>>, vector<8x512xf32>
    tpu.vector_store %arg12[%c0_7, %13], %12 {strides = array<i32>} : memref<8x1024xf32, #tpu.memory_space<vmem>>, vector<8x512xf32>,
    %c1_i32 = arith.constant 1 : i32
    %15 = arith.cmpi eq, %arg0, %c1_i32 : i32
    %16 = arith.extui %15 : i1 to i32
    %c0_i32_8 = arith.constant 0 : i32
    %17 = arith.cmpi ne, %16, %c0_i32_8 : i32
    scf.if %17 {
      %c0_9 = arith.constant 0 : index
      %c0_10 = arith.constant 0 : index
      %18 = vector.load %arg12[%c0_9, %c0_10] : memref<8x1024xf32, #tpu.memory_space<vmem>>, vector<8x1024xf32>
      %c0_11 = arith.constant 0 : index
      %c0_12 = arith.constant 0 : index
      %19 = vector.load %arg6[%c0_11, %c0_12] : memref<1024x1024xf32, #tpu.memory_space<vmem>>, vector<1024x1024xf32>
      %cst_13 = arith.constant dense<0.000000e+00> : vector<8x1024xf32>
      %20 = tpu.matmul %18, %19, %cst_13 {dimension_numbers = #tpu.dot_dimension_numbers<[1], [0], [0], [1], [0, 0, 1, 1], [], []>} : vector<8x1024xf32>, vector<1024x1024xf32>, vector<8x1024xf32> -> vector<8x1024xf32>
      %c0_14 = arith.constant 0 : index
      %c0_15 = arith.constant 0 : index
      %21 = vector.load %arg7[%c0_14, %c0_15] : memref<1x1024xf32, #tpu.memory_space<vmem>>, vector<1x1024xf32>
      %22 = vector.broadcast %21 : vector<1x1024xf32> to vector<8x1024xf32>
      %23 = arith.addf %20, %22 : vector<8x1024xf32>
      %cst_16 = arith.constant 0.000000e+00 : f32
      %24 = vector.broadcast %cst_16 : f32 to vector<8x1024xf32>
      %25 = arith.maximumf %23, %24 : vector<8x1024xf32>
      %c0_17 = arith.constant 0 : index
      %c0_18 = arith.constant 0 : index
      %26 = vector.load %arg8[%c0_17, %c0_18] : memref<1024x128xf32, #tpu.memory_space<vmem>>, vector<1024x128xf32>
      %cst_19 = arith.constant dense<0.000000e+00> : vector<8x128xf32>
      %27 = tpu.matmul %25, %26, %cst_19 {dimension_numbers = #tpu.dot_dimension_numbers<[1], [0], [0], [1], [0, 0, 1, 1], [], []>} : vector<8x1024xf32>, vector<1024x128xf32>, vector<8x128xf32> -> vector<8x128xf32>
      %c0_20 = arith.constant 0 : index
      %c0_21 = arith.constant 0 : index
      %28 = vector.load %arg9[%c0_20, %c0_21] : memref<1x128xf32, #tpu.memory_space<vmem>>, vector<1x128xf32>
      %29 = vector.broadcast %28 : vector<1x128xf32> to vector<8x128xf32>
      %30 = arith.addf %27, %29 : vector<8x128xf32>
      %c0_22 = arith.constant 0 : index
      %c0_23 = arith.constant 0 : index
      %31 = vector.load %arg10[%c0_22, %c0_23] : memref<8x128xf32, #tpu.memory_space<vmem>>, vector<8x128xf32>
      tpu.vector_store %arg10[%c0_22, %c0_23], %30 {strides = array<i32>} : memref<8x128xf32, #tpu.memory_space<vmem>>, vector<8x128xf32>,
    } else {
    }
    return
  }
  func.func @transform_0(%arg0: i32) -> (i32, i32) {
    %c0_i32 = arith.constant 0 : i32
    %c0_i32_0 = arith.constant 0 : i32
    %c0_i32_1 = arith.constant 0 : i32
    return %c0_i32, %c0_i32_0 : i32, i32
  }
  func.func @transform_1(%arg0: i32) -> (i32, i32) {
    %c0_i32 = arith.constant 0 : i32
    %c0_i32_0 = arith.constant 0 : i32
    %c0_i32_1 = arith.constant 0 : i32
    return %c0_i32, %c0_i32_0 : i32, i32
  }
  func.func @transform_2(%arg0: i32) -> (i32, i32) {
    %c0_i32 = arith.constant 0 : i32
    %c0_i32_0 = arith.constant 0 : i32
    %c0_i32_1 = arith.constant 0 : i32
    return %c0_i32, %c0_i32_0 : i32, i32
  }
  func.func @transform_3(%arg0: i32) -> (i32, i32) {
    %c0_i32 = arith.constant 0 : i32
    %c0_i32_0 = arith.constant 0 : i32
    return %c0_i32, %arg0 : i32, i32
  }
  func.func @transform_4(%arg0: i32) -> (i32, i32) {
    %c0_i32 = arith.constant 0 : i32
    %c0_i32_0 = arith.constant 0 : i32
    return %c0_i32, %arg0 : i32, i32
  }
  func.func @transform_5(%arg0: i32) -> (i32, i32) {
    %c0_i32 = arith.constant 0 : i32
    %c0_i32_0 = arith.constant 0 : i32
    %c0_i32_1 = arith.constant 0 : i32
    return %c0_i32, %c0_i32_0 : i32, i32
  }
  func.func @transform_6(%arg0: i32) -> (i32, i32) {
    %c0_i32 = arith.constant 0 : i32
    %c0_i32_0 = arith.constant 0 : i32
    %c0_i32_1 = arith.constant 0 : i32
    return %c0_i32, %c0_i32_0 : i32, i32
  }
  func.func @transform_7(%arg0: i32) -> (i32, i32) {
    %c0_i32 = arith.constant 0 : i32
    %c0_i32_0 = arith.constant 0 : i32
    %c0_i32_1 = arith.constant 0 : i32
    return %c0_i32, %c0_i32_0 : i32, i32
  }
  func.func @transform_8(%arg0: i32) -> (i32, i32) {
    %c0_i32 = arith.constant 0 : i32
    %c0_i32_0 = arith.constant 0 : i32
    %c0_i32_1 = arith.constant 0 : i32
    return %c0_i32, %c0_i32_0 : i32, i32
  }
  func.func @transform_9(%arg0: i32) -> (i32, i32) {
    %c0_i32 = arith.constant 0 : i32
    %c0_i32_0 = arith.constant 0 : i32
    %c0_i32_1 = arith.constant 0 : i32
    return %c0_i32, %c0_i32_0 : i32, i32
  }
}

</mosaic_0001>

<bundles_post_ra>
// kernel: tpu_custom_call.1
= control target key start
LH: loop header
LB: loop body
LE: loop exit
PB: predicated region body
PF: predicated region fallthrough
CT: control target
= control target key end

     0   :  { %s8248_s0 = inlined_call_operand.hbm [shape: f32[8,32], index: 0, kind: input, shape index: {}]   ;;  %s8249_s1 = inlined_call_operand.hbm [shape: f32[32,2048], index: 1, kind: input, shape index: {}]   ;;  %s8250_s2 = inlined_call_operand.hbm [shape: f32[1,2048], index: 2, kind: input, shape index: {}]   ;;  %s8251_s3 = inlined_call_operand.hbm [shape: f32[2048,1024], index: 3, kind: input, shape index: {}]   ;;  %s8252_s4 = inlined_call_operand.hbm [shape: f32[1,1024], index: 4, kind: input, shape index: {}]   ;;  %s8253_s5 = inlined_call_operand.hbm [shape: f32[1024,1024], index: 5, kind: input, shape index: {}]   ;;  %s8254_s6 = inlined_call_operand.hbm [shape: f32[1,1024], index: 6, kind: input, shape index: {}]   ;;  %s8255_s7 = inlined_call_operand.hbm [shape: f32[1024,128], index: 7, kind: input, shape index: {}]   ;;  %s8256_s8 = inlined_call_operand.hbm [shape: f32[1,128], index: 8, kind: input, shape index: {}]   ;;  %s8257_s9 = inlined_call_operand.hbm [shape: f32[8,128], index: 9, kind: output, shape index: {}]  }
   0x1   :  { %8260 = sst [smem:[#allocation27_spill]] %s8248_s0 }
   0x2   :  { %8261 = sst [smem:[#allocation28_spill]] %s8249_s1 }
   0x3   :  { %8262 = sst [smem:[#allocation29_spill]] %s8253_s5 }
   0x4   :  { %8263 = sst [smem:[#allocation30_spill]] %s8255_s7 }
   0x5   :  { %14 = vsyncpa [#allocation5], 0 }
   0x6   :  { %15 = vsyncpa [#allocation8], 0 }
   0x7   :  { %16 = vsyncpa [#allocation11], 0 }
   0x8   :  { %18 = vsyncpa [#allocation11 + $0x1], 0 }
   0x9   :  { %19 = vsyncpa [#allocation14], 0 }
   0xa   :  { %20 = vsyncpa [#allocation17], 0 }
   0xb   :  { %21 = vsyncpa [#allocation6], 0  ;;  %s6749_s30 = smov 0   ;;  %s6751_s10 = smov 0  }
   0xc   :  { %s6753_s11 = smov 0   ;;  %s6755_s12 = smov 0  }
   0xd LB: > { %s8264_s1 = sld [smem:[#allocation28_spill]]  ;;  %s6773_s16 = sadd.s32 4294967295, %s6682_s12   ;;  %s6682_s12 = sphi %s6755_s12, %s8279_s12   ;;  %s6678_s11 = sphi %s6753_s11, %s8278_s11   ;;  %s6674_s10 = sphi %s6751_s10, %s8277_s10   ;;  %s6670_s30 = sphi %s6749_s30, %s8276_s30  }
   0xe   : > { %p6077_p0 = scmp.ge.s32.totalorder %s6682_s12, 1  ;;  %p111_p1 = scmp.eq.s32.totalorder %s6773_s16, 0 }
   0xf   : > { %p252_p2 = scmp.lt.s32.totalorder %s6682_s12, 3  ;;  %p6078_p3 = scmp.ne.s32.totalorder %s6773_s16, 0 }
  0x10   : > { %s6684_s18 = smov [#allocation7]   ;;  %s8266_s5 = sld [smem:[#allocation29_spill]] }
  0x11   : > { %p6779_p4 = pnand %p6077_p0, %p252_p2  ;;  %s277_s19 = sshll.u32 %s6684_s18, 4  ;;  %s278_s19 = int_to_ptr.vmem [resolvable:$true] %s277_s19 }
  0x12   : > { %s6685_s24 = smov [#allocation13]   ;;  %s6686_s26 = smov 2048  }
  0x13   : > { %s275_s15 = sshll.u32 %s8264_s1, 4  ;;  %p6162_p5 = pneg %p6779_p4  ;;  %s276_s15 = int_to_ptr.hbm [resolvable:$true] %s275_s15 }
  0x14   : > { %s303_s25 = sshll.u32 %s6685_s24, 4  ;;  %s6687_s27 = smov 128   ;;  %s304_s25 = int_to_ptr.vmem [resolvable:$true] %s303_s25 }
  0x15   : > { %p6790_p6 = pnand %p6162_p5, %p111_p1  ;;  %s8258_s28 = smov 1024  }
  0x16   : > { %s301_s22 = sshll.u32 %s8266_s5, 4  ;;  %s6689_s29 = smov 64   ;;  %s302_s22 = int_to_ptr.hbm [resolvable:$true] %s301_s22 }
  0x17   : > { %6168 = dma.hbm_to_vmem [thread:$0]  (!%p6790_p6), %s276_s15, 8192, %s278_s19, [#allocation8], %s6686_s26, %s6686_s26, %s6687_s27  }
  0x18   : > { %6174 = dma.hbm_to_vmem [thread:$0]  (!%p6790_p6), %s302_s22, 131072, %s304_s25, [#allocation14], %s8258_s28, %s8258_s28, %s6689_s29  }
  0x19   : > { %s8268_s7 = sld [smem:[#allocation30_spill]]  ;;  %s6690_s20 = smov [#allocation16]  }
  0x1a   : > { %s329_s15 = sshll.u32 %s6690_s20, 4  ;;  %s6691_s19 = smov 8   ;;  %s330_s15 = int_to_ptr.vmem [resolvable:$true] %s329_s15 }
  0x1b   : > { %s6806_s21 = sadd.s32 1, %s6682_s12   ;;  %s97_s22 = sadd.s32 1, %s6678_s11 }
  0x1c   : > { %s94_s24 = ssub.s32 %s6682_s12, %s6806_s21  ;;  %p104_p7 = scmp.ne.s32.totalorder %s6678_s11, %s6674_s10 }
  0x1d   : > { %p95_p8 = scmp.eq.s32.totalorder %s94_s24, 0  ;;  %p105_p9 = scmp.eq.s32.totalorder %s6682_s12, 0 }
  0x1e   : > { %p110_p10 = scmp.ne.s32.totalorder %s6674_s10, %s6670_s30  ;;  %p6198_p11 = scmp.lt.s32.totalorder %s6682_s12, 2 }
  0x1f   : > { %s327_s18 = sshll.u32 %s8268_s7, 4  ;;  %p106_p12 = por %p105_p9, %p104_p7  ;;  %s328_s18 = int_to_ptr.hbm [resolvable:$true] %s327_s18 }
  0x20   : > { %6180 = dma.hbm_to_vmem [thread:$0]  (!%p6790_p6), %s328_s18, 16384, %s330_s15, [#allocation17], %s6687_s27, %s6687_s27, %s6691_s19  }
  0x21   : > { %s6818_s25 = scalar_select %p95_p8, %s6678_s11, %s97_s22  }
  0x22   : > { %p6822_p13 = por %p111_p1, %p110_p10  ;;  %s355_s27 = sand.u32 1, %s6682_s12  }
  0x23   : > { %8269 = sst [smem:[#allocation26_spill]] %s6818_s25  ;;  %s8259_s29 = sand.u32 1, %s6678_s11  }
  0x24   : > { %s6086_s13 = sshll.u32 %s8259_s29, 13  ;;  %s6125_s14 = sshll.u32 %s6682_s12, 5 }
  0x25   : > { %s364_s15 = scalar_lea.hbm %s8251_s3, %s6125_s14  ;;  %s359_s19 = scalar_lea.vmem [#allocation10], %s6086_s13 }
  0x26   : > { %s367_s30 = sshll.u32 %s359_s19, 4  ;;  %s365_s24 = sshll.u32 %s364_s15, 4  ;;  %s368_s30 = int_to_ptr.vmem [resolvable:$true] %s367_s30  ;;  %s366_s24 = int_to_ptr.hbm [resolvable:$true] %s365_s24 }
  0x27   : > { %p6836_p0 = pnand %p6198_p11, %p106_p12  ;;  %s8272_s0 = sld [smem:[#allocation27_spill]] }
  0x28   : > { %s6843_s5 = scalar_lea.sflag [#allocation11], %s355_s27  ;;  %s6420_s18 = sshra.s32 %s366_s24, 4  ;;  %s6421_s18 = int_to_ptr.hbm [resolvable:$true] %s6420_s18 }
  0x29   : > { %s6422_s13 = scalar_lea.hbm %s6421_s18, 8192  ;;  %p6424_p5 = pneg %p6836_p0 }
  0x2a   : > { %p6423_p2 = scmp.ne.s32.totalorder %s6421_s18, %s6422_s13  ;;  %s6427_s15 = scalar_lea.hbm %s8251_s3, 16384 }
  0x2b   : > { %p6428_p9 = scmp.lt.s32.totalorder %s6421_s18, %s8251_s3  ;;  %p6429_p10 = scmp.lt.s32.totalorder %s6427_s15, %s6422_s13 }
  0x2c   : > { %p6425_p7 = pnand %p6424_p5, %p6423_p2 }
  0x2d   : > { %s264_s29 = sshll.u32 %s8272_s0, 4  ;;  %p6430_p11 = por %p6429_p10, %p6428_p9  ;;  %s265_s29 = int_to_ptr.hbm [resolvable:$true] %s264_s29 }
  0x2e   : > { %p6426_p8 = pneg %p6425_p7 }
  0x30   : > { %p6431_p12 = pnand %p6430_p11, %p6426_p8 }
  0x32   : > { %6434 = shalt.err (!%p6431_p12)
}
  0x33   : > { %s6692_s27 = smov 512   ;;  %s6693_s19 = smov 32  }
  0x34   : > { %s8273_s0 = smov 1024   ;;  %s6694_s14 = smov [#allocation4]  }
  0x35   : > { %6187 = dma.hbm_to_vmem [thread:$0]  (!%p6836_p0), %s366_s24, 131072, %s368_s30, %s6843_s5, %s8273_s0, %s6692_s27, %s6693_s19  }
  0x36   : > { %s266_s20 = sshll.u32 %s6694_s14, 4  ;;  %s290_s18 = sshll.u32 %s8250_s2, 4  ;;  %s267_s20 = int_to_ptr.vmem [resolvable:$true] %s266_s20  ;;  %s291_s18 = int_to_ptr.hbm [resolvable:$true] %s290_s18 }
  0x37   : > { %6165 = dma.hbm_to_vmem [thread:$0]  (!%p6790_p6), %s265_s29, 128, %s267_s20, [#allocation5]  }
  0x38   : > { %s316_s1 = sshll.u32 %s8254_s6, 4  ;;  %s6695_s28 = smov [#allocation9]   ;;  %s317_s1 = int_to_ptr.hbm [resolvable:$true] %s316_s1 }
  0x39   : > { %s292_s0 = sshll.u32 %s6695_s28, 4  ;;  %s6696_s7 = smov [#allocation15]   ;;  %s293_s0 = int_to_ptr.vmem [resolvable:$true] %s292_s0 }
  0x3a   : > { %6171 = dma.hbm_to_vmem [thread:$0]  (!%p6790_p6), %s291_s18, 256, %s293_s0, [#allocation8]  }
  0x3b   : > { %s318_s25 = sshll.u32 %s6696_s7, 4  ;;  %s342_s27 = sshll.u32 %s8256_s8, 4  ;;  %s319_s25 = int_to_ptr.vmem [resolvable:$true] %s318_s25  ;;  %s343_s27 = int_to_ptr.hbm [resolvable:$true] %s342_s27 }
  0x3c   : > { %6177 = dma.hbm_to_vmem [thread:$0]  (!%p6790_p6), %s317_s1, 128, %s319_s25, [#allocation14]  }
  0x3d   : > { %s8274_s29 = sand.u32 1, %s6678_s11   ;;  %s6697_s14 = smov [#allocation18]  }
  0x3e   : > { %s6089_s19 = sshll.u32 %s8274_s29, 2  ;;  %s344_s20 = sshll.u32 %s6697_s14, 4  ;;  %s345_s20 = int_to_ptr.vmem [resolvable:$true] %s344_s20 }
  0x3f   : > { %s6090_s13 = sshll.u32 %s6682_s12, 2  ;;  %s381_s0 = scalar_lea.vmem [#allocation12], %s6089_s19 }
  0x40   : > { %6183 = dma.hbm_to_vmem [thread:$0]  (!%p6790_p6), %s343_s27, 16, %s345_s20, [#allocation17]  }
  0x41   : > { %s385_s28 = scalar_lea.hbm %s8252_s4, %s6090_s13  ;;  %s389_s7 = sshll.u32 %s381_s0, 4  ;;  %s390_s7 = int_to_ptr.vmem [resolvable:$true] %s389_s7 }
  0x42   : > { %s387_s30 = sshll.u32 %s385_s28, 4  ;;  %s6577_s25 = scalar_lea.hbm %s8252_s4, 8  ;;  %s388_s30 = int_to_ptr.hbm [resolvable:$true] %s387_s30 }
  0x43   : > { %s6570_s24 = sshra.s32 %s388_s30, 4  ;;  %s6571_s24 = int_to_ptr.hbm [resolvable:$true] %s6570_s24 }
  0x44   : > { %s6572_s1 = scalar_lea.hbm %s6571_s24, 4  ;;  %p6578_p6 = scmp.lt.s32.totalorder %s6571_s24, %s8252_s4 }
  0x45   : > { %p6573_p2 = scmp.ne.s32.totalorder %s6571_s24, %s6572_s1  ;;  %p6579_p9 = scmp.lt.s32.totalorder %s6577_s25, %s6572_s1 }
  0x47   : > { %p6575_p7 = pnand %p6573_p2, %p6424_p5  ;;  %p6580_p10 = por %p6579_p9, %p6578_p6 }
  0x49   : > { %p6576_p8 = pneg %p6575_p7 }
  0x4b   : > { %p6581_p11 = pnand %p6580_p10, %p6576_p8 }
  0x4d   : > { %6584 = shalt.err (!%p6581_p11)
}
  0x4e   : > { %6190 = dma.hbm_to_vmem [thread:$0]  (!%p6836_p0), %s388_s30, 64, %s390_s7, %s6843_s5  }
  0x4f   : > { %398 = sbr.rel (%p6779_p4) target bundleno = 2259 (0x8d3), region = 56 }
  0x54   : > { %6645 = dma.done.wait (%p111_p1), [#allocation5], 128  }
  0x55   : > { %6647 = vsyncadd (%p111_p1), [#allocation5], 4294967168 }
  0x56   : > { %6649 = dma.done.wait (%p111_p1), [#allocation8], 8448  }
  0x57   : > { %6651 = vsyncadd (%p111_p1), [#allocation8], 4294958848  ;;  %s415_s22 = sand.u32 1, %s6773_s16   ;;  %s417_s5 = sand.u32 1, %s6674_s10  }
  0x58   : > { %s6095_s19 = sshll.u32 %s417_s5, 13  ;;  %s416_s17 = scalar_lea.sflag [#allocation11], %s415_s22 }
  0x59   : > { %s6907_s14 = scalar_lea.vmem [#allocation10], %s6095_s19 }
  0x5a   : > { %6653 = dma.done.wait (%p6822_p13), %s416_s17, 131136  }
  0x5b   : > { %6655 = vsyncadd (%p6822_p13), %s416_s17, 4294836160  ;;  %s6096_s20 = sshll.u32 %s417_s5, 2 }
  0x5c   : > { %s6913_s13 = scalar_lea.vmem [#allocation12], %s6096_s20 }
  0x5d   : > { %6657 = dma.done.wait (%p111_p1), [#allocation14], 131200  }
  0x5e   : > { %6659 = vsyncadd (%p111_p1), [#allocation14], 4294836096 }
  0x5f   : > { %6661 = dma.done.wait (%p111_p1), [#allocation17], 16400  }
  0x60   : > { %6663 = vsyncadd (%p111_p1), [#allocation17], 4294950896  ;;  %490 = sbr.rel (%p6078_p3) target bundleno = 276 (0x114), region = 96 }
  0x65   : > { %v542_v0 = vld [vmem:[#allocation7 + $0x190] sm:$0xff]  ;;  %v543_v1 = vld [vmem:[#allocation7 + $0x198] sm:$0xff]  ;;  %v540_v6 = vld [vmem:[#allocation7 + $0x180] sm:$0xff]  ;;  %vm592_vm0 = vcmask 261120  }
  0x66   : > { %v526_v2 = vld [vmem:[#allocation7 + $0x110] sm:$0xff]  ;;  %648 = vmatpush.msra.mxu2 %v542_v0  ;;  %668 = vmatpush.msra.mxu3 %v543_v1  ;;  %v527_v3 = vld [vmem:[#allocation7 + $0x118] sm:$0xff]  ;;  %v541_v7 = vld [vmem:[#allocation7 + $0x188] sm:$0xff] }
  0x67   : > { %v510_v4 = vld [vmem:[#allocation7 + $0x90] sm:$0xff]  ;;  %v511_v5 = vld [vmem:[#allocation7 + $0x98] sm:$0xff]  ;;  %608 = vmatpush.msra.mxu0 %v540_v6  ;;  %628 = vmatpush.msra.mxu1 %v541_v7  ;;  %v524_v10 = vld [vmem:[#allocation7 + $0x100] sm:$0xff] }
  0x68   : > { %649 = vmatpush.msra.mxu2 %v526_v2  ;;  %669 = vmatpush.msra.mxu3 %v527_v3  ;;  %v494_v8 = vld [vmem:[#allocation7 + $0x10] sm:$0xff]  ;;  %v495_v9 = vld [vmem:[#allocation7 + $0x18] sm:$0xff]  ;;  %v525_v11 = vld [vmem:[#allocation7 + $0x108] sm:$0xff] }
  0x69   : > { %v6925_v12 = vld [vmem:[#allocation4] sm:$0xff]  ;;  %v546_v13 = vld [vmem:[#allocation7 + $0x1b0] sm:$0xff]  ;;  %609 = vmatpush.msra.mxu0 %v524_v10  ;;  %629 = vmatpush.msra.mxu1 %v525_v11  ;;  %v508_v15 = vld [vmem:[#allocation7 + $0x80] sm:$0xff] }
  0x6a   : > { %650 = vmatpush.msra.mxu2 %v510_v4  ;;  %670 = vmatpush.msra.mxu3 %v511_v5  ;;  %v547_v14 = vld [vmem:[#allocation7 + $0x1b8] sm:$0xff]  ;;  %v509_v16 = vld [vmem:[#allocation7 + $0x88] sm:$0xff]  ;;  %v530_v17 = vld [vmem:[#allocation7 + $0x130] sm:$0xff] }
  0x6b   : > { %v531_v18 = vld [vmem:[#allocation7 + $0x138] sm:$0xff]  ;;  %v492_v19 = vld [vmem:[#allocation7] sm:$0xff]  ;;  %v493_v20 = vld [vmem:[#allocation7 + $0x8] sm:$0xff]  ;;  %610 = vmatpush.msra.mxu0 %v508_v15  ;;  %630 = vmatpush.msra.mxu1 %v509_v16 }
  0x6c   : > { %651 = vmatpush.msra.mxu2 %v494_v8  ;;  %671 = vmatpush.msra.mxu3 %v495_v9  ;;  %v514_v21 = vld [vmem:[#allocation7 + $0xb0] sm:$0xff]  ;;  %v515_v22 = vld [vmem:[#allocation7 + $0xb8] sm:$0xff]  ;;  %v544_v23 = vld [vmem:[#allocation7 + $0x1a0] sm:$0xff] }
  0x6d   : > { %6104 = vmatmul.msk.f32.vlgmr.msra.gmra.mxu2 %vm592_vm0, %v6925_v12  ;;  %6105 = vmatmul.msk.f32.vlgmr.msra.gmra.mxu3 %vm592_vm0, %v6925_v12  ;;  %v545_v24 = vld [vmem:[#allocation7 + $0x1a8] sm:$0xff]  ;;  %v498_v25 = vld [vmem:[#allocation7 + $0x30] sm:$0xff]  ;;  %v499_v26 = vld [vmem:[#allocation7 + $0x38] sm:$0xff] }
  0x6e   : > { %728 = vmatpush.msrb.mxu2 %v546_v13  ;;  %748 = vmatpush.msrb.mxu3 %v547_v14  ;;  %v528_v27 = vld [vmem:[#allocation7 + $0x120] sm:$0xff]  ;;  %v529_v28 = vld [vmem:[#allocation7 + $0x128] sm:$0xff]  ;;  %v550_v29 = vld [vmem:[#allocation7 + $0x1d0] sm:$0xff] }
  0x6f   : > { %611 = vmatpush.msra.mxu0 %v492_v19  ;;  %631 = vmatpush.msra.mxu1 %v493_v20  ;;  %v551_v30 = vld [vmem:[#allocation7 + $0x1d8] sm:$0xff]  ;;  %v512_v31 = vld [vmem:[#allocation7 + $0xa0] sm:$0xff]  ;;  %v513_v32 = vld [vmem:[#allocation7 + $0xa8] sm:$0xff] }
  0x70   : > { %729 = vmatpush.msrb.mxu2 %v530_v17  ;;  %749 = vmatpush.msrb.mxu3 %v531_v18  ;;  %v534_v33 = vld [vmem:[#allocation7 + $0x150] sm:$0xff]  ;;  %v535_v34 = vld [vmem:[#allocation7 + $0x158] sm:$0xff]  ;;  %v496_v35 = vld [vmem:[#allocation7 + $0x20] sm:$0xff] }
  0x71   : > { %6102 = vmatmul.msk.f32.vlgmr.msra.gmra.mxu0 %vm592_vm0, %v6925_v12  ;;  %6103 = vmatmul.msk.f32.vlgmr.msra.gmra.mxu1 %vm592_vm0, %v6925_v12  ;;  %v497_v36 = vld [vmem:[#allocation7 + $0x28] sm:$0xff]  ;;  %v518_v37 = vld [vmem:[#allocation7 + $0xd0] sm:$0xff]  ;;  %v519_v38 = vld [vmem:[#allocation7 + $0xd8] sm:$0xff] }
  0x72   : > { %730 = vmatpush.msrb.mxu2 %v514_v21  ;;  %750 = vmatpush.msrb.mxu3 %v515_v22  ;;  %v548_v39 = vld [vmem:[#allocation7 + $0x1c0] sm:$0xff]  ;;  %v549_v40 = vld [vmem:[#allocation7 + $0x1c8] sm:$0xff]  ;;  %v502_v41 = vld [vmem:[#allocation7 + $0x50] sm:$0xff] }
  0x73   : > { %688 = vmatpush.msrb.mxu0 %v544_v23  ;;  %708 = vmatpush.msrb.mxu1 %v545_v24  ;;  %v503_v42 = vld [vmem:[#allocation7 + $0x58] sm:$0xff]  ;;  %v532_v43 = vld [vmem:[#allocation7 + $0x140] sm:$0xff]  ;;  %v533_v44 = vld [vmem:[#allocation7 + $0x148] sm:$0xff] }
  0x74   : > { %731 = vmatpush.msrb.mxu2 %v498_v25  ;;  %751 = vmatpush.msrb.mxu3 %v499_v26  ;;  %v554_v45 = vld [vmem:[#allocation7 + $0x1f0] sm:$0xff]  ;;  %v555_v46 = vld [vmem:[#allocation7 + $0x1f8] sm:$0xff]  ;;  %v516_v47 = vld [vmem:[#allocation7 + $0xc0] sm:$0xff] }
  0x75   : > { %689 = vmatpush.msrb.mxu0 %v528_v27  ;;  %709 = vmatpush.msrb.mxu1 %v529_v28  ;;  %v517_v48 = vld [vmem:[#allocation7 + $0xc8] sm:$0xff]  ;;  %v538_v49 = vld [vmem:[#allocation7 + $0x170] sm:$0xff]  ;;  %v539_v50 = vld [vmem:[#allocation7 + $0x178] sm:$0xff] }
  0x76   : > { %6108 = vmatmul.msk.f32.vlgmr.msrb.gmra.mxu2 %vm592_vm0, %v6925_v12  ;;  %6109 = vmatmul.msk.f32.vlgmr.msrb.gmra.mxu3 %vm592_vm0, %v6925_v12  ;;  %v500_v51 = vld [vmem:[#allocation7 + $0x40] sm:$0xff]  ;;  %v501_v52 = vld [vmem:[#allocation7 + $0x48] sm:$0xff]  ;;  %v522_v53 = vld [vmem:[#allocation7 + $0xf0] sm:$0xff] }
  0x77   : > { %808 = vmatpush.msra.mxu2 %v550_v29  ;;  %828 = vmatpush.msra.mxu3 %v551_v30  ;;  %v523_v54 = vld [vmem:[#allocation7 + $0xf8] sm:$0xff]  ;;  %v552_v55 = vld [vmem:[#allocation7 + $0x1e0] sm:$0xff]  ;;  %v553_v56 = vld [vmem:[#allocation7 + $0x1e8] sm:$0xff] }
  0x78   : > { %690 = vmatpush.msrb.mxu0 %v512_v31  ;;  %710 = vmatpush.msrb.mxu1 %v513_v32  ;;  %v506_v57 = vld [vmem:[#allocation7 + $0x70] sm:$0xff]  ;;  %v507_v58 = vld [vmem:[#allocation7 + $0x78] sm:$0xff]  ;;  %v536_v59 = vld [vmem:[#allocation7 + $0x160] sm:$0xff] }
  0x79   : > { %809 = vmatpush.msra.mxu2 %v534_v33  ;;  %829 = vmatpush.msra.mxu3 %v535_v34  ;;  %v537_v60 = vld [vmem:[#allocation7 + $0x168] sm:$0xff]  ;;  %v520_v61 = vld [vmem:[#allocation7 + $0xe0] sm:$0xff] }
  0x7a   : > { %691 = vmatpush.msrb.mxu0 %v496_v35  ;;  %711 = vmatpush.msrb.mxu1 %v497_v36  ;;  %v521_v62 = vld [vmem:[#allocation7 + $0xe8] sm:$0xff]  ;;  %v504_v63 = vld [vmem:[#allocation7 + $0x60] sm:$0xff] }
  0x7b   : > { %810 = vmatpush.msra.mxu2 %v518_v37  ;;  %830 = vmatpush.msra.mxu3 %v519_v38  ;;  %v505_v0 = vld [vmem:[#allocation7 + $0x68] sm:$0xff]  ;;  %v556_v1 = vld [vmem:[#allocation9] sm:$0xff] }
  0x7c   : > { %6106 = vmatmul.msk.f32.vlgmr.msrb.gmra.mxu0 %vm592_vm0, %v6925_v12  ;;  %6107 = vmatmul.msk.f32.vlgmr.msrb.gmra.mxu1 %vm592_vm0, %v6925_v12  ;;  %v560_v2 = vperm.slane %v556_v1, 0  ;;  %v561_v3 = vperm.slane %v556_v1, 1  ;;  %v562_v4 = vperm.slane %v556_v1, 2  ;;  %v563_v5 = vperm.slane %v556_v1, 3  ;;  %v557_v34 = vld [vmem:[#allocation9 + $0x8] sm:$0xff] }
  0x7d   : > { %768 = vmatpush.msra.mxu0 %v548_v39  ;;  %788 = vmatpush.msra.mxu1 %v549_v40  ;;  %v565_v19 = vperm.slane %v556_v1, 5  ;;  %v566_v20 = vperm.slane %v556_v1, 6  ;;  %v567_v21 = vperm.slane %v556_v1, 7  ;;  %v568_v35 = vperm.slane %v557_v34, 0 }
  0x7e   : > { %811 = vmatpush.msra.mxu2 %v502_v41  ;;  %831 = vmatpush.msra.mxu3 %v503_v42  ;;  %v569_v36 = vperm.slane %v557_v34, 1  ;;  %v570_v37 = vperm.slane %v557_v34, 2  ;;  %v571_v38 = vperm.slane %v557_v34, 3 }
  0x7f   : > { %769 = vmatpush.msra.mxu0 %v532_v43  ;;  %789 = vmatpush.msra.mxu1 %v533_v44 }
  0x80   : > { %6112 = vmatmul.msk.f32.vlgmr.msra.gmra.mxu2 %vm592_vm0, %v6925_v12  ;;  %6113 = vmatmul.msk.f32.vlgmr.msra.gmra.mxu3 %vm592_vm0, %v6925_v12 }
  0x81   : > { %888 = vmatpush.msrb.mxu2 %v554_v45  ;;  %908 = vmatpush.msrb.mxu3 %v555_v46 }
  0x82   : > { %770 = vmatpush.msra.mxu0 %v516_v47  ;;  %790 = vmatpush.msra.mxu1 %v517_v48 }
  0x83   : > { %889 = vmatpush.msrb.mxu2 %v538_v49  ;;  %909 = vmatpush.msrb.mxu3 %v539_v50 }
  0x84   : > { %771 = vmatpush.msra.mxu0 %v500_v51  ;;  %791 = vmatpush.msra.mxu1 %v501_v52  ;;  %v572_v51 = vperm.slane %v557_v34, 4  ;;  %v573_v52 = vperm.slane %v557_v34, 5 }
  0x85   : > { %890 = vmatpush.msrb.mxu2 %v522_v53  ;;  %910 = vmatpush.msrb.mxu3 %v523_v54  ;;  %v574_v53 = vperm.slane %v557_v34, 6  ;;  %v575_v54 = vperm.slane %v557_v34, 7 }
  0x86   : > { %6110 = vmatmul.msk.f32.vlgmr.msra.gmra.mxu0 %vm592_vm0, %v6925_v12  ;;  %6111 = vmatmul.msk.f32.vlgmr.msra.gmra.mxu1 %vm592_vm0, %v6925_v12 }
  0x87   : > { %848 = vmatpush.msrb.mxu0 %v552_v55  ;;  %868 = vmatpush.msrb.mxu1 %v553_v56 }
  0x88   : > { %891 = vmatpush.msrb.mxu2 %v506_v57  ;;  %911 = vmatpush.msrb.mxu3 %v507_v58 }
  0x89   : > { %849 = vmatpush.msrb.mxu0 %v536_v59  ;;  %869 = vmatpush.msrb.mxu1 %v537_v60 }
  0x8a   : > { %6116 = vmatmul.msk.f32.vlgmr.msrb.gmra.mxu2 %vm592_vm0, %v6925_v12  ;;  %6117 = vmatmul.msk.f32.vlgmr.msrb.gmra.mxu3 %vm592_vm0, %v6925_v12 }
  0x8b   : > { %850 = vmatpush.msrb.mxu0 %v520_v61  ;;  %870 = vmatpush.msrb.mxu1 %v521_v62 }
  0x8d   : > { %851 = vmatpush.msrb.mxu0 %v504_v63  ;;  %871 = vmatpush.msrb.mxu1 %v505_v0 }
  0x8e   : > { %6114 = vmatmul.msk.f32.vlgmr.msrb.gmra.mxu0 %vm592_vm0, %v6925_v12  ;;  %6115 = vmatmul.msk.f32.vlgmr.msrb.gmra.mxu1 %vm592_vm0, %v6925_v12  ;;  %v564_v12 = vperm.slane %v556_v1, 4 }
  0xee   : > { %v613_v6 = vpop.f32.mrf.mxu0  ;;  %v633_v7 = vpop.f32.mrf.mxu1 }
  0xef   : > { %v614_v8 = vadd.f32 %v613_v6, %v560_v2  ;;  %v634_v9 = vadd.f32 %v633_v7, %v561_v3 }
  0xf0   : > { %v653_v10 = vpop.f32.mrf.mxu2  ;;  %v673_v11 = vpop.f32.mrf.mxu3 }
  0xf1   : > { %v654_v13 = vadd.f32 %v653_v10, %v562_v4  ;;  %v674_v14 = vadd.f32 %v673_v11, %v563_v5  ;;  %v916_v15 = vmax.f32 %v614_v8, 0.0  ;;  %v917_v16 = vmax.f32 %v634_v9, 0.0 }
  0xf3   : > { %v918_v17 = vmax.f32 %v654_v13, 0.0  ;;  %v919_v18 = vmax.f32 %v674_v14, 0.0  ;;  %932 = vst [vmem:[#allocation2 + $0x30] sm:$0xff] %v916_v15 }
  0xf4   : > { %933 = vst [vmem:[#allocation2] sm:$0xff] %v917_v16 }
  0xf5   : > { %934 = vst [vmem:[#allocation2 + $0x58] sm:$0xff] %v918_v17 }
  0xf6   : > { %935 = vst [vmem:[#allocation2 + $0x18] sm:$0xff] %v919_v18 }
  0xf9   : > { %v693_v22 = vpop.f32.mrf.mxu0  ;;  %v713_v23 = vpop.f32.mrf.mxu1 }
  0xfa   : > { %v694_v24 = vadd.f32 %v693_v22, %v564_v12  ;;  %v714_v25 = vadd.f32 %v713_v23, %v565_v19  ;;  %v733_v26 = vpop.f32.mrf.mxu2  ;;  %v753_v27 = vpop.f32.mrf.mxu3 }
  0xfb   : > { %v734_v28 = vadd.f32 %v733_v26, %v566_v20  ;;  %v754_v29 = vadd.f32 %v753_v27, %v567_v21 }
  0xfc   : > { %v920_v30 = vmax.f32 %v694_v24, 0.0  ;;  %v921_v31 = vmax.f32 %v714_v25, 0.0 }
  0xfd   : > { %v922_v32 = vmax.f32 %v734_v28, 0.0  ;;  %v923_v33 = vmax.f32 %v754_v29, 0.0 }
  0xfe   : > { %936 = vst [vmem:[#allocation2 + $0x50] sm:$0xff] %v920_v30 }
  0xff   : > { %937 = vst [vmem:[#allocation2 + $0x68] sm:$0xff] %v921_v31 }
 0x100   : > { %938 = vst [vmem:[#allocation2 + $0x8] sm:$0xff] %v922_v32 }
 0x101   : > { %939 = vst [vmem:[#allocation2 + $0x48] sm:$0xff] %v923_v33 }
 0x103   : > { %v773_v39 = vpop.f32.mrf.mxu0  ;;  %v793_v40 = vpop.f32.mrf.mxu1 }
 0x104   : > { %v774_v41 = vadd.f32 %v773_v39, %v568_v35  ;;  %v794_v42 = vadd.f32 %v793_v40, %v569_v36  ;;  %v813_v43 = vpop.f32.mrf.mxu2  ;;  %v833_v44 = vpop.f32.mrf.mxu3 }
 0x105   : > { %v814_v45 = vadd.f32 %v813_v43, %v570_v37  ;;  %v834_v46 = vadd.f32 %v833_v44, %v571_v38 }
 0x106   : > { %v924_v47 = vmax.f32 %v774_v41, 0.0  ;;  %v925_v48 = vmax.f32 %v794_v42, 0.0 }
 0x107   : > { %v926_v49 = vmax.f32 %v814_v45, 0.0  ;;  %v927_v50 = vmax.f32 %v834_v46, 0.0 }
 0x108   : > { %940 = vst [vmem:[#allocation2 + $0x40] sm:$0xff] %v924_v47 }
 0x109   : > { %941 = vst [vmem:[#allocation2 + $0x20] sm:$0xff] %v925_v48 }
 0x10a   : > { %942 = vst [vmem:[#allocation2 + $0x10] sm:$0xff] %v926_v49 }
 0x10b   : > { %943 = vst [vmem:[#allocation2 + $0x38] sm:$0xff] %v927_v50  ;;  %v853_v55 = vpop.f32.mrf.mxu0  ;;  %v873_v56 = vpop.f32.mrf.mxu1 }
 0x10c   : > { %v854_v57 = vadd.f32 %v853_v55, %v572_v51  ;;  %v874_v58 = vadd.f32 %v873_v56, %v573_v52 }
 0x10d   : > { %v893_v59 = vpop.f32.mrf.mxu2  ;;  %v913_v60 = vpop.f32.mrf.mxu3 }
 0x10e   : > { %v928_v61 = vmax.f32 %v854_v57, 0.0  ;;  %v929_v62 = vmax.f32 %v874_v58, 0.0  ;;  %v894_v63 = vadd.f32 %v893_v59, %v574_v53  ;;  %v914_v0 = vadd.f32 %v913_v60, %v575_v54 }
 0x110   : > { %944 = vst [vmem:[#allocation2 + $0x60] sm:$0xff] %v928_v61  ;;  %v930_v1 = vmax.f32 %v894_v63, 0.0  ;;  %v931_v2 = vmax.f32 %v914_v0, 0.0 }
 0x111   : > { %945 = vst [vmem:[#allocation2 + $0x70] sm:$0xff] %v929_v62 }
 0x112   : > { %946 = vst [vmem:[#allocation2 + $0x78] sm:$0xff] %v930_v1 }
 0x113   : > { %947 = vst [vmem:[#allocation2 + $0x28] sm:$0xff] %v931_v2 }
 0x114 PF: > { %v1025_v3 = vld [vmem:[%s6907_s14 + $0x1e0] sm:$0xff]  ;;  %s6118_s26 = sshll.u32 %s6773_s16, 9  ;;  %p6120_p1 = scmp.ne.s32.totalorder %s6773_s16, 1 }
 0x115   : > { %v1153_v4 = vld [vmem:[%s6907_s14 + $0x5e0] sm:$0xff]  ;;  %1999 = vmatpush.msra.mxu0 %v1025_v3  ;;  %s7467_s18 = sshra.s32 %s6118_s26, 7 }
 0x116   : > { %v1021_v5 = vld [vmem:[%s6907_s14 + $0x1c0] sm:$0xff]  ;;  %2039 = vmatpush.msra.mxu2 %v1153_v4  ;;  %s6119_s15 = sshll.u32 %s7467_s18, 3 }
 0x117   : > { %v1089_v6 = vld [vmem:[%s6907_s14 + $0x3e0] sm:$0xff]  ;;  %2000 = vmatpush.msra.mxu0 %v1021_v5  ;;  %s7486_s28 = scalar_lea.vmem [#allocation3], %s6119_s15 }
 0x118   : > { %v1149_v7 = vld [vmem:[%s6907_s14 + $0x5c0] sm:$0xff]  ;;  %2019 = vmatpush.msra.mxu1 %v1089_v6 }
 0x119   : > { %v1217_v8 = vld [vmem:[%s6907_s14 + $0x7e0] sm:$0xff]  ;;  %2040 = vmatpush.msra.mxu2 %v1149_v7 }
 0x11a   : > { %2059 = vmatpush.msra.mxu3 %v1217_v8  ;;  %v1017_v9 = vld [vmem:[%s6907_s14 + $0x1a0] sm:$0xff] }
 0x11b   : > { %v1085_v10 = vld [vmem:[%s6907_s14 + $0x3c0] sm:$0xff]  ;;  %2001 = vmatpush.msra.mxu0 %v1017_v9 }
 0x11c   : > { %v1145_v11 = vld [vmem:[%s6907_s14 + $0x5a0] sm:$0xff]  ;;  %2020 = vmatpush.msra.mxu1 %v1085_v10 }
 0x11d   : > { %v1213_v13 = vld [vmem:[%s6907_s14 + $0x7c0] sm:$0xff]  ;;  %2041 = vmatpush.msra.mxu2 %v1145_v11 }
 0x11e   : > { %v1081_v14 = vld [vmem:[%s6907_s14 + $0x3a0] sm:$0xff]  ;;  %2060 = vmatpush.msra.mxu3 %v1213_v13 }
 0x11f   : > { %v1013_v15 = vld [vmem:[%s6907_s14 + $0x180] sm:$0xff]  ;;  %2021 = vmatpush.msra.mxu1 %v1081_v14 }
 0x120   : > { %v1141_v16 = vld [vmem:[%s6907_s14 + $0x580] sm:$0xff]  ;;  %2002 = vmatpush.msra.mxu0 %v1013_v15 }
 0x121   : > { %v1209_v17 = vld [vmem:[%s6907_s14 + $0x7a0] sm:$0xff]  ;;  %2042 = vmatpush.msra.mxu2 %v1141_v16 }
 0x122   : > { %v1077_v18 = vld [vmem:[%s6907_s14 + $0x380] sm:$0xff]  ;;  %2061 = vmatpush.msra.mxu3 %v1209_v17 }
 0x123   : > { %v1205_v12 = vld [vmem:[%s6907_s14 + $0x780] sm:$0xff]  ;;  %2022 = vmatpush.msra.mxu1 %v1077_v18 }
 0x124   : > { %v1009_v19 = vld [vmem:[%s6907_s14 + $0x160] sm:$0xff]  ;;  %2062 = vmatpush.msra.mxu3 %v1205_v12 }
 0x125   : > { %v1137_v20 = vld [vmem:[%s6907_s14 + $0x560] sm:$0xff]  ;;  %2003 = vmatpush.msra.mxu0 %v1009_v19 }
 0x126   : > { %v1073_v21 = vld [vmem:[%s6907_s14 + $0x360] sm:$0xff]  ;;  %2043 = vmatpush.msra.mxu2 %v1137_v20 }
 0x127   : > { %v1201_v22 = vld [vmem:[%s6907_s14 + $0x760] sm:$0xff]  ;;  %2023 = vmatpush.msra.mxu1 %v1073_v21 }
 0x128   : > { %v1005_v23 = vld [vmem:[%s6907_s14 + $0x140] sm:$0xff]  ;;  %2063 = vmatpush.msra.mxu3 %v1201_v22 }
 0x129   : > { %v1133_v24 = vld [vmem:[%s6907_s14 + $0x540] sm:$0xff]  ;;  %2004 = vmatpush.msra.mxu0 %v1005_v23 }
 0x12a   : > { %v1069_v25 = vld [vmem:[%s6907_s14 + $0x340] sm:$0xff]  ;;  %2044 = vmatpush.msra.mxu2 %v1133_v24 }
 0x12b   : > { %v1197_v26 = vld [vmem:[%s6907_s14 + $0x740] sm:$0xff]  ;;  %2024 = vmatpush.msra.mxu1 %v1069_v25 }
 0x12c   : > { %v1001_v27 = vld [vmem:[%s6907_s14 + $0x120] sm:$0xff]  ;;  %2064 = vmatpush.msra.mxu3 %v1197_v26 }
 0x12d   : > { %v1129_v28 = vld [vmem:[%s6907_s14 + $0x520] sm:$0xff]  ;;  %2005 = vmatpush.msra.mxu0 %v1001_v27 }
 0x12e   : > { %v1065_v29 = vld [vmem:[%s6907_s14 + $0x320] sm:$0xff]  ;;  %2045 = vmatpush.msra.mxu2 %v1129_v28 }
 0x12f   : > { %v1193_v30 = vld [vmem:[%s6907_s14 + $0x720] sm:$0xff]  ;;  %2025 = vmatpush.msra.mxu1 %v1065_v29 }
 0x130   : > { %v997_v31 = vld [vmem:[%s6907_s14 + $0x100] sm:$0xff]  ;;  %2065 = vmatpush.msra.mxu3 %v1193_v30 }
 0x131   : > { %v1125_v32 = vld [vmem:[%s6907_s14 + $0x500] sm:$0xff]  ;;  %2006 = vmatpush.msra.mxu0 %v997_v31 }
 0x132   : > { %v1061_v33 = vld [vmem:[%s6907_s14 + $0x300] sm:$0xff]  ;;  %2046 = vmatpush.msra.mxu2 %v1125_v32 }
 0x133   : > { %v1189_v34 = vld [vmem:[%s6907_s14 + $0x700] sm:$0xff]  ;;  %2026 = vmatpush.msra.mxu1 %v1061_v33 }
 0x134   : > { %v993_v35 = vld [vmem:[%s6907_s14 + $0xe0] sm:$0xff]  ;;  %2066 = vmatpush.msra.mxu3 %v1189_v34 }
 0x135   : > { %v1121_v36 = vld [vmem:[%s6907_s14 + $0x4e0] sm:$0xff]  ;;  %2007 = vmatpush.msra.mxu0 %v993_v35 }
 0x136   : > { %v1057_v37 = vld [vmem:[%s6907_s14 + $0x2e0] sm:$0xff]  ;;  %2047 = vmatpush.msra.mxu2 %v1121_v36 }
 0x137   : > { %v1185_v38 = vld [vmem:[%s6907_s14 + $0x6e0] sm:$0xff]  ;;  %2027 = vmatpush.msra.mxu1 %v1057_v37 }
 0x138   : > { %v989_v39 = vld [vmem:[%s6907_s14 + $0xc0] sm:$0xff]  ;;  %2067 = vmatpush.msra.mxu3 %v1185_v38 }
 0x139   : > { %v1117_v40 = vld [vmem:[%s6907_s14 + $0x4c0] sm:$0xff]  ;;  %2008 = vmatpush.msra.mxu0 %v989_v39 }
 0x13a   : > { %v1053_v41 = vld [vmem:[%s6907_s14 + $0x2c0] sm:$0xff]  ;;  %2048 = vmatpush.msra.mxu2 %v1117_v40 }
 0x13b   : > { %v1181_v42 = vld [vmem:[%s6907_s14 + $0x6c0] sm:$0xff]  ;;  %2028 = vmatpush.msra.mxu1 %v1053_v41 }
 0x13c   : > { %v985_v43 = vld [vmem:[%s6907_s14 + $0xa0] sm:$0xff]  ;;  %2068 = vmatpush.msra.mxu3 %v1181_v42 }
 0x13d   : > { %v1113_v44 = vld [vmem:[%s6907_s14 + $0x4a0] sm:$0xff]  ;;  %2009 = vmatpush.msra.mxu0 %v985_v43 }
 0x13e   : > { %v1049_v45 = vld [vmem:[%s6907_s14 + $0x2a0] sm:$0xff]  ;;  %2049 = vmatpush.msra.mxu2 %v1113_v44 }
 0x13f   : > { %v1177_v46 = vld [vmem:[%s6907_s14 + $0x6a0] sm:$0xff]  ;;  %2029 = vmatpush.msra.mxu1 %v1049_v45 }
 0x140   : > { %v981_v47 = vld [vmem:[%s6907_s14 + $0x80] sm:$0xff]  ;;  %2069 = vmatpush.msra.mxu3 %v1177_v46 }
 0x141   : > { %v1109_v48 = vld [vmem:[%s6907_s14 + $0x480] sm:$0xff]  ;;  %2010 = vmatpush.msra.mxu0 %v981_v47 }
 0x142   : > { %v1045_v49 = vld [vmem:[%s6907_s14 + $0x280] sm:$0xff]  ;;  %2050 = vmatpush.msra.mxu2 %v1109_v48 }
 0x143   : > { %v1173_v50 = vld [vmem:[%s6907_s14 + $0x680] sm:$0xff]  ;;  %2030 = vmatpush.msra.mxu1 %v1045_v49 }
 0x144   : > { %v977_v51 = vld [vmem:[%s6907_s14 + $0x60] sm:$0xff]  ;;  %2070 = vmatpush.msra.mxu3 %v1173_v50 }
 0x145   : > { %v1105_v52 = vld [vmem:[%s6907_s14 + $0x460] sm:$0xff]  ;;  %2011 = vmatpush.msra.mxu0 %v977_v51 }
 0x146   : > { %v1041_v53 = vld [vmem:[%s6907_s14 + $0x260] sm:$0xff]  ;;  %2051 = vmatpush.msra.mxu2 %v1105_v52 }
 0x147   : > { %v1169_v54 = vld [vmem:[%s6907_s14 + $0x660] sm:$0xff]  ;;  %2031 = vmatpush.msra.mxu1 %v1041_v53 }
 0x148   : > { %v973_v55 = vld [vmem:[%s6907_s14 + $0x40] sm:$0xff]  ;;  %2071 = vmatpush.msra.mxu3 %v1169_v54 }
 0x149   : > { %v1101_v56 = vld [vmem:[%s6907_s14 + $0x440] sm:$0xff]  ;;  %2012 = vmatpush.msra.mxu0 %v973_v55 }
 0x14a   : > { %v1037_v57 = vld [vmem:[%s6907_s14 + $0x240] sm:$0xff]  ;;  %2052 = vmatpush.msra.mxu2 %v1101_v56 }
 0x14b   : > { %v1165_v58 = vld [vmem:[%s6907_s14 + $0x640] sm:$0xff]  ;;  %2032 = vmatpush.msra.mxu1 %v1037_v57 }
 0x14c   : > { %v969_v59 = vld [vmem:[%s6907_s14 + $0x20] sm:$0xff]  ;;  %2072 = vmatpush.msra.mxu3 %v1165_v58 }
 0x14d   : > { %v1097_v60 = vld [vmem:[%s6907_s14 + $0x420] sm:$0xff]  ;;  %2013 = vmatpush.msra.mxu0 %v969_v59 }
 0x14e   : > { %v1033_v61 = vld [vmem:[%s6907_s14 + $0x220] sm:$0xff]  ;;  %2053 = vmatpush.msra.mxu2 %v1097_v60 }
 0x14f   : > { %v1161_v62 = vld [vmem:[%s6907_s14 + $0x620] sm:$0xff]  ;;  %2033 = vmatpush.msra.mxu1 %v1033_v61 }
 0x150   : > { %v965_v63 = vld [vmem:[%s6907_s14] sm:$0xff]  ;;  %2073 = vmatpush.msra.mxu3 %v1161_v62 }
 0x151   : > { %v1093_v0 = vld [vmem:[%s6907_s14 + $0x400] sm:$0xff]  ;;  %2014 = vmatpush.msra.mxu0 %v965_v63 }
 0x152   : > { %v1281_v1 = vld [vmem:[%s6907_s14 + $0x9e0] sm:$0xff]  ;;  %2054 = vmatpush.msra.mxu2 %v1093_v0 }
 0x153   : > { %v1409_v2 = vld [vmem:[%s6907_s14 + $0xde0] sm:$0xff]  ;;  %2079 = vmatpush.msrb.mxu0 %v1281_v1  ;;  %v949_v1 = vld [vmem:[#allocation2 + $0x30] sm:$0xff] }
 0x154   : > { %v1029_v3 = vld [vmem:[%s6907_s14 + $0x200] sm:$0xff]  ;;  %2119 = vmatpush.msrb.mxu2 %v1409_v2  ;;  %2015 = vmatmul.f32.vlgmr.msra.gmra.mxu0 %v949_v1 }
 0x155   : > { %v1157_v4 = vld [vmem:[%s6907_s14 + $0x600] sm:$0xff]  ;;  %2034 = vmatpush.msra.mxu1 %v1029_v3 }
 0x156   : > { %v1277_v5 = vld [vmem:[%s6907_s14 + $0x9c0] sm:$0xff]  ;;  %2074 = vmatpush.msra.mxu3 %v1157_v4 }
 0x157   : > { %v1345_v6 = vld [vmem:[%s6907_s14 + $0xbe0] sm:$0xff]  ;;  %2080 = vmatpush.msrb.mxu0 %v1277_v5 }
 0x158   : > { %v1405_v7 = vld [vmem:[%s6907_s14 + $0xdc0] sm:$0xff]  ;;  %2099 = vmatpush.msrb.mxu1 %v1345_v6 }
 0x159   : > { %v1473_v8 = vld [vmem:[%s6907_s14 + $0xfe0] sm:$0xff]  ;;  %2120 = vmatpush.msrb.mxu2 %v1405_v7  ;;  %v950_v7 = vld [vmem:[#allocation2] sm:$0xff] }
 0x15a   : > { %v1273_v9 = vld [vmem:[%s6907_s14 + $0x9a0] sm:$0xff]  ;;  %2139 = vmatpush.msrb.mxu3 %v1473_v8  ;;  %2035 = vmatmul.f32.vlgmr.msra.gmra.mxu1 %v950_v7 }
 0x15b   : > { %v1341_v10 = vld [vmem:[%s6907_s14 + $0xbc0] sm:$0xff]  ;;  %2081 = vmatpush.msrb.mxu0 %v1273_v9 }
 0x15c   : > { %v1401_v11 = vld [vmem:[%s6907_s14 + $0xda0] sm:$0xff]  ;;  %2100 = vmatpush.msrb.mxu1 %v1341_v10 }
 0x15d   : > { %v1469_v13 = vld [vmem:[%s6907_s14 + $0xfc0] sm:$0xff]  ;;  %2121 = vmatpush.msrb.mxu2 %v1401_v11 }
 0x15e   : > { %v1269_v14 = vld [vmem:[%s6907_s14 + $0x980] sm:$0xff]  ;;  %2140 = vmatpush.msrb.mxu3 %v1469_v13 }
 0x15f   : > { %v1337_v15 = vld [vmem:[%s6907_s14 + $0xba0] sm:$0xff]  ;;  %2082 = vmatpush.msrb.mxu0 %v1269_v14 }
 0x160   : > { %v1397_v16 = vld [vmem:[%s6907_s14 + $0xd80] sm:$0xff]  ;;  %2101 = vmatpush.msrb.mxu1 %v1337_v15 }
 0x161   : > { %v1465_v17 = vld [vmem:[%s6907_s14 + $0xfa0] sm:$0xff]  ;;  %2122 = vmatpush.msrb.mxu2 %v1397_v16 }
 0x162   : > { %v1265_v18 = vld [vmem:[%s6907_s14 + $0x960] sm:$0xff]  ;;  %2141 = vmatpush.msrb.mxu3 %v1465_v17 }
 0x163   : > { %v1333_v12 = vld [vmem:[%s6907_s14 + $0xb80] sm:$0xff]  ;;  %2083 = vmatpush.msrb.mxu0 %v1265_v18 }
 0x164   : > { %v1393_v19 = vld [vmem:[%s6907_s14 + $0xd60] sm:$0xff]  ;;  %2102 = vmatpush.msrb.mxu1 %v1333_v12 }
 0x165   : > { %v1461_v20 = vld [vmem:[%s6907_s14 + $0xf80] sm:$0xff]  ;;  %2123 = vmatpush.msrb.mxu2 %v1393_v19 }
 0x166   : > { %v1261_v21 = vld [vmem:[%s6907_s14 + $0x940] sm:$0xff]  ;;  %2142 = vmatpush.msrb.mxu3 %v1461_v20 }
 0x167   : > { %v1329_v22 = vld [vmem:[%s6907_s14 + $0xb60] sm:$0xff]  ;;  %2084 = vmatpush.msrb.mxu0 %v1261_v21  ;;  %v955_v21 = vld [vmem:[#allocation2 + $0x8] sm:$0xff] }
 0x168   : > { %v1389_v23 = vld [vmem:[%s6907_s14 + $0xd40] sm:$0xff]  ;;  %2103 = vmatpush.msrb.mxu1 %v1329_v22 }
 0x169   : > { %v1457_v24 = vld [vmem:[%s6907_s14 + $0xf60] sm:$0xff]  ;;  %2124 = vmatpush.msrb.mxu2 %v1389_v23 }
 0x16a   : > { %v1257_v25 = vld [vmem:[%s6907_s14 + $0x920] sm:$0xff]  ;;  %2143 = vmatpush.msrb.mxu3 %v1457_v24 }
 0x16b   : > { %v1325_v26 = vld [vmem:[%s6907_s14 + $0xb40] sm:$0xff]  ;;  %2085 = vmatpush.msrb.mxu0 %v1257_v25 }
 0x16c   : > { %v1385_v27 = vld [vmem:[%s6907_s14 + $0xd20] sm:$0xff]  ;;  %2104 = vmatpush.msrb.mxu1 %v1325_v26  ;;  %v953_v26 = vld [vmem:[#allocation2 + $0x50] sm:$0xff] }
 0x16d   : > { %v1453_v28 = vld [vmem:[%s6907_s14 + $0xf40] sm:$0xff]  ;;  %2125 = vmatpush.msrb.mxu2 %v1385_v27  ;;  %v956_v27 = vld [vmem:[#allocation2 + $0x48] sm:$0xff] }
 0x16e   : > { %v1253_v29 = vld [vmem:[%s6907_s14 + $0x900] sm:$0xff]  ;;  %2144 = vmatpush.msrb.mxu3 %v1453_v28 }
 0x16f   : > { %v1321_v30 = vld [vmem:[%s6907_s14 + $0xb20] sm:$0xff]  ;;  %2086 = vmatpush.msrb.mxu0 %v1253_v29 }
 0x170   : > { %v1381_v31 = vld [vmem:[%s6907_s14 + $0xd00] sm:$0xff]  ;;  %2105 = vmatpush.msrb.mxu1 %v1321_v30 }
 0x171   : > { %v1449_v32 = vld [vmem:[%s6907_s14 + $0xf20] sm:$0xff]  ;;  %2126 = vmatpush.msrb.mxu2 %v1381_v31 }
 0x172   : > { %v1249_v33 = vld [vmem:[%s6907_s14 + $0x8e0] sm:$0xff]  ;;  %2145 = vmatpush.msrb.mxu3 %v1449_v32  ;;  %v954_v32 = vld [vmem:[#allocation2 + $0x68] sm:$0xff] }
 0x173   : > { %v1317_v34 = vld [vmem:[%s6907_s14 + $0xb00] sm:$0xff]  ;;  %2087 = vmatpush.msrb.mxu0 %v1249_v33 }
 0x174   : > { %v1377_v35 = vld [vmem:[%s6907_s14 + $0xce0] sm:$0xff]  ;;  %2106 = vmatpush.msrb.mxu1 %v1317_v34 }
 0x175   : > { %v1445_v36 = vld [vmem:[%s6907_s14 + $0xf00] sm:$0xff]  ;;  %2127 = vmatpush.msrb.mxu2 %v1377_v35 }
 0x176   : > { %v1245_v37 = vld [vmem:[%s6907_s14 + $0x8c0] sm:$0xff]  ;;  %2146 = vmatpush.msrb.mxu3 %v1445_v36 }
 0x177   : > { %v1313_v38 = vld [vmem:[%s6907_s14 + $0xae0] sm:$0xff]  ;;  %2088 = vmatpush.msrb.mxu0 %v1245_v37 }
 0x178   : > { %v1373_v39 = vld [vmem:[%s6907_s14 + $0xcc0] sm:$0xff]  ;;  %2107 = vmatpush.msrb.mxu1 %v1313_v38 }
 0x179   : > { %v1441_v40 = vld [vmem:[%s6907_s14 + $0xee0] sm:$0xff]  ;;  %2128 = vmatpush.msrb.mxu2 %v1373_v39 }
 0x17a   : > { %v1241_v41 = vld [vmem:[%s6907_s14 + $0x8a0] sm:$0xff]  ;;  %2147 = vmatpush.msrb.mxu3 %v1441_v40 }
 0x17b   : > { %v1309_v42 = vld [vmem:[%s6907_s14 + $0xac0] sm:$0xff]  ;;  %2089 = vmatpush.msrb.mxu0 %v1241_v41 }
 0x17c   : > { %v1369_v43 = vld [vmem:[%s6907_s14 + $0xca0] sm:$0xff]  ;;  %2108 = vmatpush.msrb.mxu1 %v1309_v42 }
 0x17d   : > { %v1437_v44 = vld [vmem:[%s6907_s14 + $0xec0] sm:$0xff]  ;;  %2129 = vmatpush.msrb.mxu2 %v1369_v43 }
 0x17e   : > { %v1237_v45 = vld [vmem:[%s6907_s14 + $0x880] sm:$0xff]  ;;  %2148 = vmatpush.msrb.mxu3 %v1437_v44 }
 0x17f   : > { %v1305_v46 = vld [vmem:[%s6907_s14 + $0xaa0] sm:$0xff]  ;;  %2090 = vmatpush.msrb.mxu0 %v1237_v45 }
 0x180   : > { %v1365_v47 = vld [vmem:[%s6907_s14 + $0xc80] sm:$0xff]  ;;  %2109 = vmatpush.msrb.mxu1 %v1305_v46 }
 0x181   : > { %v1433_v48 = vld [vmem:[%s6907_s14 + $0xea0] sm:$0xff]  ;;  %2130 = vmatpush.msrb.mxu2 %v1365_v47 }
 0x182   : > { %v1233_v49 = vld [vmem:[%s6907_s14 + $0x860] sm:$0xff]  ;;  %2149 = vmatpush.msrb.mxu3 %v1433_v48 }
 0x183   : > { %v1301_v50 = vld [vmem:[%s6907_s14 + $0xa80] sm:$0xff]  ;;  %2091 = vmatpush.msrb.mxu0 %v1233_v49 }
 0x184   : > { %v1361_v51 = vld [vmem:[%s6907_s14 + $0xc60] sm:$0xff]  ;;  %2110 = vmatpush.msrb.mxu1 %v1301_v50 }
 0x185   : > { %v1429_v52 = vld [vmem:[%s6907_s14 + $0xe80] sm:$0xff]  ;;  %2131 = vmatpush.msrb.mxu2 %v1361_v51 }
 0x186   : > { %v1229_v53 = vld [vmem:[%s6907_s14 + $0x840] sm:$0xff]  ;;  %2150 = vmatpush.msrb.mxu3 %v1429_v52 }
 0x187   : > { %v1297_v54 = vld [vmem:[%s6907_s14 + $0xa60] sm:$0xff]  ;;  %2092 = vmatpush.msrb.mxu0 %v1229_v53 }
 0x188   : > { %v1357_v55 = vld [vmem:[%s6907_s14 + $0xc40] sm:$0xff]  ;;  %2111 = vmatpush.msrb.mxu1 %v1297_v54 }
 0x189   : > { %v1425_v56 = vld [vmem:[%s6907_s14 + $0xe60] sm:$0xff]  ;;  %2132 = vmatpush.msrb.mxu2 %v1357_v55 }
 0x18a   : > { %v1225_v57 = vld [vmem:[%s6907_s14 + $0x820] sm:$0xff]  ;;  %2151 = vmatpush.msrb.mxu3 %v1425_v56 }
 0x18b   : > { %v1293_v58 = vld [vmem:[%s6907_s14 + $0xa40] sm:$0xff]  ;;  %2093 = vmatpush.msrb.mxu0 %v1225_v57 }
 0x18c   : > { %v1353_v59 = vld [vmem:[%s6907_s14 + $0xc20] sm:$0xff]  ;;  %2112 = vmatpush.msrb.mxu1 %v1293_v58 }
 0x18d   : > { %v1421_v60 = vld [vmem:[%s6907_s14 + $0xe40] sm:$0xff]  ;;  %2133 = vmatpush.msrb.mxu2 %v1353_v59 }
 0x18e   : > { %v1221_v61 = vld [vmem:[%s6907_s14 + $0x800] sm:$0xff]  ;;  %2152 = vmatpush.msrb.mxu3 %v1421_v60 }
 0x18f   : > { %v1289_v62 = vld [vmem:[%s6907_s14 + $0xa20] sm:$0xff]  ;;  %2094 = vmatpush.msrb.mxu0 %v1221_v61 }
 0x190   : > { %v1349_v63 = vld [vmem:[%s6907_s14 + $0xc00] sm:$0xff]  ;;  %2113 = vmatpush.msrb.mxu1 %v1289_v62  ;;  %2095 = vmatmul.f32.vlgmr.msrb.gmra.mxu0 %v953_v26 }
 0x191   : > { %v1417_v0 = vld [vmem:[%s6907_s14 + $0xe20] sm:$0xff]  ;;  %2134 = vmatpush.msrb.mxu2 %v1349_v63 }
 0x192   : > { %v951_v2 = vld [vmem:[#allocation2 + $0x58] sm:$0xff]  ;;  %2153 = vmatpush.msrb.mxu3 %v1417_v0 }
 0x193   : > { %v1537_v3 = vld [vmem:[%s6907_s14 + $0x11e0] sm:$0xff]  ;;  %2055 = vmatmul.f32.vlgmr.msra.gmra.mxu2 %v951_v2 }
 0x194   : > { %v1665_v4 = vld [vmem:[%s6907_s14 + $0x15e0] sm:$0xff]  ;;  %2159 = vmatpush.msra.mxu0 %v1537_v3 }
 0x195   : > { %v1285_v5 = vld [vmem:[%s6907_s14 + $0xa00] sm:$0xff]  ;;  %2199 = vmatpush.msra.mxu2 %v1665_v4 }
 0x196   : > { %v1413_v6 = vld [vmem:[%s6907_s14 + $0xe00] sm:$0xff]  ;;  %2114 = vmatpush.msrb.mxu1 %v1285_v5 }
 0x197   : > { %v952_v8 = vld [vmem:[#allocation2 + $0x18] sm:$0xff]  ;;  %2154 = vmatpush.msrb.mxu3 %v1413_v6  ;;  %2115 = vmatmul.f32.vlgmr.msrb.gmra.mxu1 %v954_v32 }
 0x198   : > { %v1533_v9 = vld [vmem:[%s6907_s14 + $0x11c0] sm:$0xff]  ;;  %2075 = vmatmul.f32.vlgmr.msra.gmra.mxu3 %v952_v8 }
 0x199   : > { %v1601_v10 = vld [vmem:[%s6907_s14 + $0x13e0] sm:$0xff]  ;;  %2160 = vmatpush.msra.mxu0 %v1533_v9  ;;  %v957_v9 = vld [vmem:[#allocation2 + $0x40] sm:$0xff] }
 0x19a   : > { %v1661_v11 = vld [vmem:[%s6907_s14 + $0x15c0] sm:$0xff]  ;;  %2179 = vmatpush.msra.mxu1 %v1601_v10  ;;  %v959_v10 = vld [vmem:[#allocation2 + $0x10] sm:$0xff] }
 0x19b   : > { %v1729_v13 = vld [vmem:[%s6907_s14 + $0x17e0] sm:$0xff]  ;;  %2200 = vmatpush.msra.mxu2 %v1661_v11 }
 0x19c   : > { %v1529_v14 = vld [vmem:[%s6907_s14 + $0x11a0] sm:$0xff]  ;;  %2219 = vmatpush.msra.mxu3 %v1729_v13  ;;  %2135 = vmatmul.f32.vlgmr.msrb.gmra.mxu2 %v955_v21 }
 0x19d   : > { %v1597_v15 = vld [vmem:[%s6907_s14 + $0x13c0] sm:$0xff]  ;;  %2161 = vmatpush.msra.mxu0 %v1529_v14 }
 0x19e   : > { %v1657_v16 = vld [vmem:[%s6907_s14 + $0x15a0] sm:$0xff]  ;;  %2180 = vmatpush.msra.mxu1 %v1597_v15 }
 0x19f   : > { %v1725_v17 = vld [vmem:[%s6907_s14 + $0x17c0] sm:$0xff]  ;;  %2201 = vmatpush.msra.mxu2 %v1657_v16  ;;  %v958_v16 = vld [vmem:[#allocation2 + $0x20] sm:$0xff] }
 0x1a0   : > { %v1525_v18 = vld [vmem:[%s6907_s14 + $0x1180] sm:$0xff]  ;;  %2220 = vmatpush.msra.mxu3 %v1725_v17 }
 0x1a1   : > { %v1593_v12 = vld [vmem:[%s6907_s14 + $0x13a0] sm:$0xff]  ;;  %2162 = vmatpush.msra.mxu0 %v1525_v18  ;;  %2155 = vmatmul.f32.vlgmr.msrb.gmra.mxu3 %v956_v27 }
 0x1a2   : > { %v1653_v19 = vld [vmem:[%s6907_s14 + $0x1580] sm:$0xff]  ;;  %2181 = vmatpush.msra.mxu1 %v1593_v12 }
 0x1a3   : > { %v1721_v20 = vld [vmem:[%s6907_s14 + $0x17a0] sm:$0xff]  ;;  %2202 = vmatpush.msra.mxu2 %v1653_v19 }
 0x1a4   : > { %v1521_v22 = vld [vmem:[%s6907_s14 + $0x1160] sm:$0xff]  ;;  %2221 = vmatpush.msra.mxu3 %v1721_v20 }
 0x1a5   : > { %v1589_v23 = vld [vmem:[%s6907_s14 + $0x1380] sm:$0xff]  ;;  %2163 = vmatpush.msra.mxu0 %v1521_v22 }
 0x1a6   : > { %v1649_v24 = vld [vmem:[%s6907_s14 + $0x1560] sm:$0xff]  ;;  %2182 = vmatpush.msra.mxu1 %v1589_v23 }
 0x1a7   : > { %v1717_v25 = vld [vmem:[%s6907_s14 + $0x1780] sm:$0xff]  ;;  %2203 = vmatpush.msra.mxu2 %v1649_v24 }
 0x1a8   : > { %v1517_v28 = vld [vmem:[%s6907_s14 + $0x1140] sm:$0xff]  ;;  %2222 = vmatpush.msra.mxu3 %v1717_v25 }
 0x1a9   : > { %v1585_v29 = vld [vmem:[%s6907_s14 + $0x1360] sm:$0xff]  ;;  %2164 = vmatpush.msra.mxu0 %v1517_v28 }
 0x1aa   : > { %v1645_v30 = vld [vmem:[%s6907_s14 + $0x1540] sm:$0xff]  ;;  %2183 = vmatpush.msra.mxu1 %v1585_v29 }
 0x1ab   : > { %v1713_v31 = vld [vmem:[%s6907_s14 + $0x1760] sm:$0xff]  ;;  %2204 = vmatpush.msra.mxu2 %v1645_v30 }
 0x1ac   : > { %v1513_v33 = vld [vmem:[%s6907_s14 + $0x1120] sm:$0xff]  ;;  %2223 = vmatpush.msra.mxu3 %v1713_v31 }
 0x1ad   : > { %v1581_v34 = vld [vmem:[%s6907_s14 + $0x1340] sm:$0xff]  ;;  %2165 = vmatpush.msra.mxu0 %v1513_v33 }
 0x1ae   : > { %v1641_v35 = vld [vmem:[%s6907_s14 + $0x1520] sm:$0xff]  ;;  %2184 = vmatpush.msra.mxu1 %v1581_v34 }
 0x1af   : > { %v1709_v36 = vld [vmem:[%s6907_s14 + $0x1740] sm:$0xff]  ;;  %2205 = vmatpush.msra.mxu2 %v1641_v35 }
 0x1b0   : > { %v1509_v37 = vld [vmem:[%s6907_s14 + $0x1100] sm:$0xff]  ;;  %2224 = vmatpush.msra.mxu3 %v1709_v36 }
 0x1b1   : > { %v1577_v38 = vld [vmem:[%s6907_s14 + $0x1320] sm:$0xff]  ;;  %2166 = vmatpush.msra.mxu0 %v1509_v37 }
 0x1b2   : > { %v1637_v39 = vld [vmem:[%s6907_s14 + $0x1500] sm:$0xff]  ;;  %2185 = vmatpush.msra.mxu1 %v1577_v38 }
 0x1b3   : > { %v1705_v40 = vld [vmem:[%s6907_s14 + $0x1720] sm:$0xff]  ;;  %2206 = vmatpush.msra.mxu2 %v1637_v39 }
 0x1b4   : > { %v1505_v41 = vld [vmem:[%s6907_s14 + $0x10e0] sm:$0xff]  ;;  %2225 = vmatpush.msra.mxu3 %v1705_v40 }
 0x1b5   : > { %v1573_v42 = vld [vmem:[%s6907_s14 + $0x1300] sm:$0xff]  ;;  %2167 = vmatpush.msra.mxu0 %v1505_v41 }
 0x1b6   : > { %v1633_v43 = vld [vmem:[%s6907_s14 + $0x14e0] sm:$0xff]  ;;  %2186 = vmatpush.msra.mxu1 %v1573_v42 }
 0x1b7   : > { %v1701_v44 = vld [vmem:[%s6907_s14 + $0x1700] sm:$0xff]  ;;  %2207 = vmatpush.msra.mxu2 %v1633_v43 }
 0x1b8   : > { %v1501_v45 = vld [vmem:[%s6907_s14 + $0x10c0] sm:$0xff]  ;;  %2226 = vmatpush.msra.mxu3 %v1701_v44 }
 0x1b9   : > { %v1569_v46 = vld [vmem:[%s6907_s14 + $0x12e0] sm:$0xff]  ;;  %2168 = vmatpush.msra.mxu0 %v1501_v45 }
 0x1ba   : > { %v1629_v47 = vld [vmem:[%s6907_s14 + $0x14c0] sm:$0xff]  ;;  %2187 = vmatpush.msra.mxu1 %v1569_v46 }
 0x1bb   : > { %v1697_v48 = vld [vmem:[%s6907_s14 + $0x16e0] sm:$0xff]  ;;  %2208 = vmatpush.msra.mxu2 %v1629_v47 }
 0x1bc   : > { %v1497_v49 = vld [vmem:[%s6907_s14 + $0x10a0] sm:$0xff]  ;;  %2227 = vmatpush.msra.mxu3 %v1697_v48 }
 0x1bd   : > { %v1565_v50 = vld [vmem:[%s6907_s14 + $0x12c0] sm:$0xff]  ;;  %2169 = vmatpush.msra.mxu0 %v1497_v49 }
 0x1be   : > { %v1625_v51 = vld [vmem:[%s6907_s14 + $0x14a0] sm:$0xff]  ;;  %2188 = vmatpush.msra.mxu1 %v1565_v50 }
 0x1bf   : > { %v1693_v52 = vld [vmem:[%s6907_s14 + $0x16c0] sm:$0xff]  ;;  %2209 = vmatpush.msra.mxu2 %v1625_v51 }
 0x1c0   : > { %v1493_v53 = vld [vmem:[%s6907_s14 + $0x1080] sm:$0xff]  ;;  %2228 = vmatpush.msra.mxu3 %v1693_v52 }
 0x1c1   : > { %v1561_v54 = vld [vmem:[%s6907_s14 + $0x12a0] sm:$0xff]  ;;  %2170 = vmatpush.msra.mxu0 %v1493_v53 }
 0x1c2   : > { %v1621_v55 = vld [vmem:[%s6907_s14 + $0x1480] sm:$0xff]  ;;  %2189 = vmatpush.msra.mxu1 %v1561_v54 }
 0x1c3   : > { %v1689_v56 = vld [vmem:[%s6907_s14 + $0x16a0] sm:$0xff]  ;;  %2210 = vmatpush.msra.mxu2 %v1621_v55 }
 0x1c4   : > { %v1489_v57 = vld [vmem:[%s6907_s14 + $0x1060] sm:$0xff]  ;;  %2229 = vmatpush.msra.mxu3 %v1689_v56 }
 0x1c5   : > { %v1557_v58 = vld [vmem:[%s6907_s14 + $0x1280] sm:$0xff]  ;;  %2171 = vmatpush.msra.mxu0 %v1489_v57 }
 0x1c6   : > { %v1617_v59 = vld [vmem:[%s6907_s14 + $0x1460] sm:$0xff]  ;;  %2190 = vmatpush.msra.mxu1 %v1557_v58 }
 0x1c7   : > { %v1685_v60 = vld [vmem:[%s6907_s14 + $0x1680] sm:$0xff]  ;;  %2211 = vmatpush.msra.mxu2 %v1617_v59 }
 0x1c8   : > { %v1485_v61 = vld [vmem:[%s6907_s14 + $0x1040] sm:$0xff]  ;;  %2230 = vmatpush.msra.mxu3 %v1685_v60 }
 0x1c9   : > { %v1553_v62 = vld [vmem:[%s6907_s14 + $0x1260] sm:$0xff]  ;;  %2172 = vmatpush.msra.mxu0 %v1485_v61 }
 0x1ca   : > { %v1613_v63 = vld [vmem:[%s6907_s14 + $0x1440] sm:$0xff]  ;;  %2191 = vmatpush.msra.mxu1 %v1553_v62 }
 0x1cb   : > { %v1681_v0 = vld [vmem:[%s6907_s14 + $0x1660] sm:$0xff]  ;;  %2212 = vmatpush.msra.mxu2 %v1613_v63 }
 0x1cc   : > { %v1481_v1 = vld [vmem:[%s6907_s14 + $0x1020] sm:$0xff]  ;;  %2231 = vmatpush.msra.mxu3 %v1681_v0 }
 0x1cd   : > { %v1549_v2 = vld [vmem:[%s6907_s14 + $0x1240] sm:$0xff]  ;;  %2173 = vmatpush.msra.mxu0 %v1481_v1 }
 0x1ce   : > { %v1609_v3 = vld [vmem:[%s6907_s14 + $0x1420] sm:$0xff]  ;;  %2192 = vmatpush.msra.mxu1 %v1549_v2 }
 0x1cf   : > { %v1677_v4 = vld [vmem:[%s6907_s14 + $0x1640] sm:$0xff]  ;;  %2213 = vmatpush.msra.mxu2 %v1609_v3 }
 0x1d0   : > { %v1477_v5 = vld [vmem:[%s6907_s14 + $0x1000] sm:$0xff]  ;;  %2232 = vmatpush.msra.mxu3 %v1677_v4 }
 0x1d1   : > { %v1545_v6 = vld [vmem:[%s6907_s14 + $0x1220] sm:$0xff]  ;;  %2174 = vmatpush.msra.mxu0 %v1477_v5 }
 0x1d2   : > { %v1605_v7 = vld [vmem:[%s6907_s14 + $0x1400] sm:$0xff]  ;;  %2193 = vmatpush.msra.mxu1 %v1545_v6  ;;  %2175 = vmatmul.f32.vlgmr.msra.gmra.mxu0 %v957_v9 }
 0x1d3   : > { %v1673_v8 = vld [vmem:[%s6907_s14 + $0x1620] sm:$0xff]  ;;  %2214 = vmatpush.msra.mxu2 %v1605_v7 }
 0x1d4   : > { %v1793_v11 = vld [vmem:[%s6907_s14 + $0x19e0] sm:$0xff]  ;;  %2233 = vmatpush.msra.mxu3 %v1673_v8  ;;  %2215 = vmatmul.f32.vlgmr.msra.gmra.mxu2 %v959_v10 }
 0x1d5   : > { %v1921_v13 = vld [vmem:[%s6907_s14 + $0x1de0] sm:$0xff]  ;;  %2239 = vmatpush.msrb.mxu0 %v1793_v11 }
 0x1d6   : > { %v1541_v14 = vld [vmem:[%s6907_s14 + $0x1200] sm:$0xff]  ;;  %2279 = vmatpush.msrb.mxu2 %v1921_v13 }
 0x1d7   : > { %v1669_v15 = vld [vmem:[%s6907_s14 + $0x1600] sm:$0xff]  ;;  %2194 = vmatpush.msra.mxu1 %v1541_v14  ;;  %v961_v14 = vld [vmem:[#allocation2 + $0x60] sm:$0xff] }
 0x1d8   : > { %v960_v17 = vld [vmem:[#allocation2 + $0x38] sm:$0xff]  ;;  %2234 = vmatpush.msra.mxu3 %v1669_v15  ;;  %2195 = vmatmul.f32.vlgmr.msra.gmra.mxu1 %v958_v16  ;;  %v1026_v16 = vld [vmem:[%s6907_s14 + $0x1e8] sm:$0xff] }
 0x1d9   : > { %v1789_v18 = vld [vmem:[%s6907_s14 + $0x19c0] sm:$0xff]  ;;  %2235 = vmatmul.f32.vlgmr.msra.gmra.mxu3 %v960_v17  ;;  %v1154_v17 = vld [vmem:[%s6907_s14 + $0x5e8] sm:$0xff] }
 0x1da   : > { %v1857_v12 = vld [vmem:[%s6907_s14 + $0x1be0] sm:$0xff]  ;;  %2240 = vmatpush.msrb.mxu0 %v1789_v18 }
 0x1db   : > { %v1917_v19 = vld [vmem:[%s6907_s14 + $0x1dc0] sm:$0xff]  ;;  %2259 = vmatpush.msrb.mxu1 %v1857_v12 }
 0x1dc   : > { %v1985_v20 = vld [vmem:[%s6907_s14 + $0x1fe0] sm:$0xff]  ;;  %2280 = vmatpush.msrb.mxu2 %v1917_v19  ;;  %v962_v19 = vld [vmem:[#allocation2 + $0x70] sm:$0xff] }
 0x1dd   : > { %v1785_v21 = vld [vmem:[%s6907_s14 + $0x19a0] sm:$0xff]  ;;  %2299 = vmatpush.msrb.mxu3 %v1985_v20  ;;  %v964_v20 = vld [vmem:[#allocation2 + $0x28] sm:$0xff] }
 0x1de   : > { %v1853_v22 = vld [vmem:[%s6907_s14 + $0x1bc0] sm:$0xff]  ;;  %2241 = vmatpush.msrb.mxu0 %v1785_v21  ;;  %v1022_v21 = vld [vmem:[%s6907_s14 + $0x1c8] sm:$0xff] }
 0x1df   : > { %v1913_v23 = vld [vmem:[%s6907_s14 + $0x1da0] sm:$0xff]  ;;  %2260 = vmatpush.msrb.mxu1 %v1853_v22  ;;  %v1090_v22 = vld [vmem:[%s6907_s14 + $0x3e8] sm:$0xff] }
 0x1e0   : > { %v1981_v24 = vld [vmem:[%s6907_s14 + $0x1fc0] sm:$0xff]  ;;  %2281 = vmatpush.msrb.mxu2 %v1913_v23  ;;  %v1150_v23 = vld [vmem:[%s6907_s14 + $0x5c8] sm:$0xff] }
 0x1e1   : > { %v1781_v25 = vld [vmem:[%s6907_s14 + $0x1980] sm:$0xff]  ;;  %2300 = vmatpush.msrb.mxu3 %v1981_v24  ;;  %v1218_v24 = vld [vmem:[%s6907_s14 + $0x7e8] sm:$0xff] }
 0x1e2   : > { %v1849_v26 = vld [vmem:[%s6907_s14 + $0x1ba0] sm:$0xff]  ;;  %2242 = vmatpush.msrb.mxu0 %v1781_v25  ;;  %v1018_v25 = vld [vmem:[%s6907_s14 + $0x1a8] sm:$0xff] }
 0x1e3   : > { %v1909_v27 = vld [vmem:[%s6907_s14 + $0x1d80] sm:$0xff]  ;;  %2261 = vmatpush.msrb.mxu1 %v1849_v26  ;;  %v1086_v26 = vld [vmem:[%s6907_s14 + $0x3c8] sm:$0xff] }
 0x1e4   : > { %v1977_v28 = vld [vmem:[%s6907_s14 + $0x1fa0] sm:$0xff]  ;;  %2282 = vmatpush.msrb.mxu2 %v1909_v27  ;;  %v1146_v27 = vld [vmem:[%s6907_s14 + $0x5a8] sm:$0xff] }
 0x1e5   : > { %v1777_v29 = vld [vmem:[%s6907_s14 + $0x1960] sm:$0xff]  ;;  %2301 = vmatpush.msrb.mxu3 %v1977_v28  ;;  %v1214_v28 = vld [vmem:[%s6907_s14 + $0x7c8] sm:$0xff] }
 0x1e6   : > { %v1845_v30 = vld [vmem:[%s6907_s14 + $0x1b80] sm:$0xff]  ;;  %2243 = vmatpush.msrb.mxu0 %v1777_v29  ;;  %v1014_v29 = vld [vmem:[%s6907_s14 + $0x188] sm:$0xff] }
 0x1e7   : > { %v1905_v31 = vld [vmem:[%s6907_s14 + $0x1d60] sm:$0xff]  ;;  %2262 = vmatpush.msrb.mxu1 %v1845_v30  ;;  %v1082_v30 = vld [vmem:[%s6907_s14 + $0x3a8] sm:$0xff] }
 0x1e8   : > { %v1973_v32 = vld [vmem:[%s6907_s14 + $0x1f80] sm:$0xff]  ;;  %2283 = vmatpush.msrb.mxu2 %v1905_v31  ;;  %v1142_v31 = vld [vmem:[%s6907_s14 + $0x588] sm:$0xff] }
 0x1e9   : > { %v1773_v33 = vld [vmem:[%s6907_s14 + $0x1940] sm:$0xff]  ;;  %2302 = vmatpush.msrb.mxu3 %v1973_v32  ;;  %v1210_v32 = vld [vmem:[%s6907_s14 + $0x7a8] sm:$0xff] }
 0x1ea   : > { %v1841_v34 = vld [vmem:[%s6907_s14 + $0x1b60] sm:$0xff]  ;;  %2244 = vmatpush.msrb.mxu0 %v1773_v33  ;;  %v1010_v33 = vld [vmem:[%s6907_s14 + $0x168] sm:$0xff] }
 0x1eb   : > { %v1901_v35 = vld [vmem:[%s6907_s14 + $0x1d40] sm:$0xff]  ;;  %2263 = vmatpush.msrb.mxu1 %v1841_v34  ;;  %v1078_v34 = vld [vmem:[%s6907_s14 + $0x388] sm:$0xff] }
 0x1ec   : > { %v1969_v36 = vld [vmem:[%s6907_s14 + $0x1f60] sm:$0xff]  ;;  %2284 = vmatpush.msrb.mxu2 %v1901_v35  ;;  %v1138_v35 = vld [vmem:[%s6907_s14 + $0x568] sm:$0xff] }
 0x1ed   : > { %v1769_v37 = vld [vmem:[%s6907_s14 + $0x1920] sm:$0xff]  ;;  %2303 = vmatpush.msrb.mxu3 %v1969_v36  ;;  %v1206_v36 = vld [vmem:[%s6907_s14 + $0x788] sm:$0xff] }
 0x1ee   : > { %v1837_v38 = vld [vmem:[%s6907_s14 + $0x1b40] sm:$0xff]  ;;  %2245 = vmatpush.msrb.mxu0 %v1769_v37  ;;  %v1006_v37 = vld [vmem:[%s6907_s14 + $0x148] sm:$0xff] }
 0x1ef   : > { %v1897_v39 = vld [vmem:[%s6907_s14 + $0x1d20] sm:$0xff]  ;;  %2264 = vmatpush.msrb.mxu1 %v1837_v38  ;;  %v1074_v38 = vld [vmem:[%s6907_s14 + $0x368] sm:$0xff] }
 0x1f0   : > { %v1965_v40 = vld [vmem:[%s6907_s14 + $0x1f40] sm:$0xff]  ;;  %2285 = vmatpush.msrb.mxu2 %v1897_v39  ;;  %v1134_v39 = vld [vmem:[%s6907_s14 + $0x548] sm:$0xff] }
 0x1f1   : > { %v1765_v41 = vld [vmem:[%s6907_s14 + $0x1900] sm:$0xff]  ;;  %2304 = vmatpush.msrb.mxu3 %v1965_v40  ;;  %v1202_v40 = vld [vmem:[%s6907_s14 + $0x768] sm:$0xff] }
 0x1f2   : > { %v1833_v42 = vld [vmem:[%s6907_s14 + $0x1b20] sm:$0xff]  ;;  %2246 = vmatpush.msrb.mxu0 %v1765_v41  ;;  %v1002_v41 = vld [vmem:[%s6907_s14 + $0x128] sm:$0xff] }
 0x1f3   : > { %v1893_v43 = vld [vmem:[%s6907_s14 + $0x1d00] sm:$0xff]  ;;  %2265 = vmatpush.msrb.mxu1 %v1833_v42  ;;  %v1070_v42 = vld [vmem:[%s6907_s14 + $0x348] sm:$0xff] }
 0x1f4   : > { %v1961_v44 = vld [vmem:[%s6907_s14 + $0x1f20] sm:$0xff]  ;;  %2286 = vmatpush.msrb.mxu2 %v1893_v43  ;;  %v1130_v43 = vld [vmem:[%s6907_s14 + $0x528] sm:$0xff] }
 0x1f5   : > { %v1761_v45 = vld [vmem:[%s6907_s14 + $0x18e0] sm:$0xff]  ;;  %2305 = vmatpush.msrb.mxu3 %v1961_v44  ;;  %v1198_v44 = vld [vmem:[%s6907_s14 + $0x748] sm:$0xff] }
 0x1f6   : > { %v1829_v46 = vld [vmem:[%s6907_s14 + $0x1b00] sm:$0xff]  ;;  %2247 = vmatpush.msrb.mxu0 %v1761_v45  ;;  %v998_v45 = vld [vmem:[%s6907_s14 + $0x108] sm:$0xff] }
 0x1f7   : > { %v1889_v47 = vld [vmem:[%s6907_s14 + $0x1ce0] sm:$0xff]  ;;  %2266 = vmatpush.msrb.mxu1 %v1829_v46  ;;  %v1066_v46 = vld [vmem:[%s6907_s14 + $0x328] sm:$0xff] }
 0x1f8   : > { %v1957_v48 = vld [vmem:[%s6907_s14 + $0x1f00] sm:$0xff]  ;;  %2287 = vmatpush.msrb.mxu2 %v1889_v47  ;;  %v1126_v47 = vld [vmem:[%s6907_s14 + $0x508] sm:$0xff] }
 0x1f9   : > { %v1757_v49 = vld [vmem:[%s6907_s14 + $0x18c0] sm:$0xff]  ;;  %2306 = vmatpush.msrb.mxu3 %v1957_v48  ;;  %v1194_v48 = vld [vmem:[%s6907_s14 + $0x728] sm:$0xff] }
 0x1fa   : > { %v1825_v50 = vld [vmem:[%s6907_s14 + $0x1ae0] sm:$0xff]  ;;  %2248 = vmatpush.msrb.mxu0 %v1757_v49  ;;  %v994_v49 = vld [vmem:[%s6907_s14 + $0xe8] sm:$0xff] }
 0x1fb   : > { %v1885_v51 = vld [vmem:[%s6907_s14 + $0x1cc0] sm:$0xff]  ;;  %2267 = vmatpush.msrb.mxu1 %v1825_v50  ;;  %v1062_v50 = vld [vmem:[%s6907_s14 + $0x308] sm:$0xff] }
 0x1fc   : > { %v1953_v52 = vld [vmem:[%s6907_s14 + $0x1ee0] sm:$0xff]  ;;  %2288 = vmatpush.msrb.mxu2 %v1885_v51  ;;  %v1122_v51 = vld [vmem:[%s6907_s14 + $0x4e8] sm:$0xff] }
 0x1fd   : > { %v1753_v53 = vld [vmem:[%s6907_s14 + $0x18a0] sm:$0xff]  ;;  %2307 = vmatpush.msrb.mxu3 %v1953_v52  ;;  %v1190_v52 = vld [vmem:[%s6907_s14 + $0x708] sm:$0xff] }
 0x1fe   : > { %v1821_v54 = vld [vmem:[%s6907_s14 + $0x1ac0] sm:$0xff]  ;;  %2249 = vmatpush.msrb.mxu0 %v1753_v53  ;;  %v990_v53 = vld [vmem:[%s6907_s14 + $0xc8] sm:$0xff] }
 0x1ff   : > { %v1881_v55 = vld [vmem:[%s6907_s14 + $0x1ca0] sm:$0xff]  ;;  %2268 = vmatpush.msrb.mxu1 %v1821_v54  ;;  %v1058_v54 = vld [vmem:[%s6907_s14 + $0x2e8] sm:$0xff] }
 0x200   : > { %v1949_v56 = vld [vmem:[%s6907_s14 + $0x1ec0] sm:$0xff]  ;;  %2289 = vmatpush.msrb.mxu2 %v1881_v55  ;;  %v1118_v55 = vld [vmem:[%s6907_s14 + $0x4c8] sm:$0xff] }
 0x201   : > { %v1749_v57 = vld [vmem:[%s6907_s14 + $0x1880] sm:$0xff]  ;;  %2308 = vmatpush.msrb.mxu3 %v1949_v56  ;;  %v1186_v56 = vld [vmem:[%s6907_s14 + $0x6e8] sm:$0xff] }
 0x202   : > { %v1817_v58 = vld [vmem:[%s6907_s14 + $0x1aa0] sm:$0xff]  ;;  %2250 = vmatpush.msrb.mxu0 %v1749_v57  ;;  %v986_v57 = vld [vmem:[%s6907_s14 + $0xa8] sm:$0xff] }
 0x203   : > { %v1877_v59 = vld [vmem:[%s6907_s14 + $0x1c80] sm:$0xff]  ;;  %2269 = vmatpush.msrb.mxu1 %v1817_v58  ;;  %v1054_v58 = vld [vmem:[%s6907_s14 + $0x2c8] sm:$0xff] }
 0x204   : > { %v1945_v60 = vld [vmem:[%s6907_s14 + $0x1ea0] sm:$0xff]  ;;  %2290 = vmatpush.msrb.mxu2 %v1877_v59  ;;  %v1114_v59 = vld [vmem:[%s6907_s14 + $0x4a8] sm:$0xff] }
 0x205   : > { %v1745_v61 = vld [vmem:[%s6907_s14 + $0x1860] sm:$0xff]  ;;  %2309 = vmatpush.msrb.mxu3 %v1945_v60  ;;  %v1182_v60 = vld [vmem:[%s6907_s14 + $0x6c8] sm:$0xff] }
 0x206   : > { %v1813_v62 = vld [vmem:[%s6907_s14 + $0x1a80] sm:$0xff]  ;;  %2251 = vmatpush.msrb.mxu0 %v1745_v61  ;;  %v982_v61 = vld [vmem:[%s6907_s14 + $0x88] sm:$0xff] }
 0x207   : > { %v1873_v63 = vld [vmem:[%s6907_s14 + $0x1c60] sm:$0xff]  ;;  %2270 = vmatpush.msrb.mxu1 %v1813_v62  ;;  %v1050_v62 = vld [vmem:[%s6907_s14 + $0x2a8] sm:$0xff] }
 0x208   : > { %v1941_v0 = vld [vmem:[%s6907_s14 + $0x1e80] sm:$0xff]  ;;  %2291 = vmatpush.msrb.mxu2 %v1873_v63  ;;  %v1110_v63 = vld [vmem:[%s6907_s14 + $0x488] sm:$0xff] }
 0x209   : > { %v1741_v1 = vld [vmem:[%s6907_s14 + $0x1840] sm:$0xff]  ;;  %2310 = vmatpush.msrb.mxu3 %v1941_v0  ;;  %v1178_v0 = vld [vmem:[%s6907_s14 + $0x6a8] sm:$0xff] }
 0x20a   : > { %v1809_v2 = vld [vmem:[%s6907_s14 + $0x1a60] sm:$0xff]  ;;  %2252 = vmatpush.msrb.mxu0 %v1741_v1  ;;  %v978_v1 = vld [vmem:[%s6907_s14 + $0x68] sm:$0xff] }
 0x20b   : > { %v1869_v3 = vld [vmem:[%s6907_s14 + $0x1c40] sm:$0xff]  ;;  %2271 = vmatpush.msrb.mxu1 %v1809_v2  ;;  %v1046_v2 = vld [vmem:[%s6907_s14 + $0x288] sm:$0xff] }
 0x20c   : > { %v1937_v4 = vld [vmem:[%s6907_s14 + $0x1e60] sm:$0xff]  ;;  %2292 = vmatpush.msrb.mxu2 %v1869_v3  ;;  %v1106_v3 = vld [vmem:[%s6907_s14 + $0x468] sm:$0xff] }
 0x20d   : > { %v1737_v5 = vld [vmem:[%s6907_s14 + $0x1820] sm:$0xff]  ;;  %2311 = vmatpush.msrb.mxu3 %v1937_v4  ;;  %v1174_v4 = vld [vmem:[%s6907_s14 + $0x688] sm:$0xff] }
 0x20e   : > { %v1805_v6 = vld [vmem:[%s6907_s14 + $0x1a40] sm:$0xff]  ;;  %2253 = vmatpush.msrb.mxu0 %v1737_v5  ;;  %v974_v5 = vld [vmem:[%s6907_s14 + $0x48] sm:$0xff] }
 0x20f   : > { %v1865_v7 = vld [vmem:[%s6907_s14 + $0x1c20] sm:$0xff]  ;;  %2272 = vmatpush.msrb.mxu1 %v1805_v6  ;;  %v1042_v6 = vld [vmem:[%s6907_s14 + $0x268] sm:$0xff] }
 0x210   : > { %v1933_v8 = vld [vmem:[%s6907_s14 + $0x1e40] sm:$0xff]  ;;  %2293 = vmatpush.msrb.mxu2 %v1865_v7  ;;  %v1102_v7 = vld [vmem:[%s6907_s14 + $0x448] sm:$0xff] }
 0x211   : > { %v1733_v9 = vld [vmem:[%s6907_s14 + $0x1800] sm:$0xff]  ;;  %2312 = vmatpush.msrb.mxu3 %v1933_v8  ;;  %v1170_v8 = vld [vmem:[%s6907_s14 + $0x668] sm:$0xff] }
 0x212   : > { %v1801_v10 = vld [vmem:[%s6907_s14 + $0x1a20] sm:$0xff]  ;;  %2254 = vmatpush.msrb.mxu0 %v1733_v9  ;;  %v970_v9 = vld [vmem:[%s6907_s14 + $0x28] sm:$0xff] }
 0x213   : > { %v1861_v11 = vld [vmem:[%s6907_s14 + $0x1c00] sm:$0xff]  ;;  %2273 = vmatpush.msrb.mxu1 %v1801_v10  ;;  %2255 = vmatmul.f32.vlgmr.msrb.gmra.mxu0 %v961_v14  ;;  %v1038_v10 = vld [vmem:[%s6907_s14 + $0x248] sm:$0xff] }
 0x214   : > { %v1929_v13 = vld [vmem:[%s6907_s14 + $0x1e20] sm:$0xff]  ;;  %2294 = vmatpush.msrb.mxu2 %v1861_v11  ;;  %2319 = vmatpush.msra.mxu0 %v1026_v16  ;;  %v1098_v11 = vld [vmem:[%s6907_s14 + $0x428] sm:$0xff] }
 0x215   : > { %v963_v15 = vld [vmem:[#allocation2 + $0x78] sm:$0xff]  ;;  %2313 = vmatpush.msrb.mxu3 %v1929_v13  ;;  %v1166_v13 = vld [vmem:[%s6907_s14 + $0x648] sm:$0xff] }
 0x216   : > { %v1797_v18 = vld [vmem:[%s6907_s14 + $0x1a00] sm:$0xff]  ;;  %2295 = vmatmul.f32.vlgmr.msrb.gmra.mxu2 %v963_v15  ;;  %2320 = vmatpush.msra.mxu0 %v1022_v21  ;;  %v966_v14 = vld [vmem:[%s6907_s14 + $0x8] sm:$0xff] }
 0x217   : > { %v1925_v12 = vld [vmem:[%s6907_s14 + $0x1e00] sm:$0xff]  ;;  %2359 = vmatpush.msra.mxu2 %v1154_v17  ;;  %2274 = vmatpush.msrb.mxu1 %v1797_v18  ;;  %v1034_v15 = vld [vmem:[%s6907_s14 + $0x228] sm:$0xff] }
 0x218   : > { %2314 = vmatpush.msrb.mxu3 %v1925_v12  ;;  %2275 = vmatmul.f32.vlgmr.msrb.gmra.mxu1 %v962_v19  ;;  %v1094_v16 = vld [vmem:[%s6907_s14 + $0x408] sm:$0xff] }
 0x219   : > { %2315 = vmatmul.f32.vlgmr.msrb.gmra.mxu3 %v964_v20  ;;  %2339 = vmatpush.msra.mxu1 %v1090_v22  ;;  %v1162_v17 = vld [vmem:[%s6907_s14 + $0x628] sm:$0xff] }
 0x21a   : > { %2360 = vmatpush.msra.mxu2 %v1150_v23  ;;  %2379 = vmatpush.msra.mxu3 %v1218_v24  ;;  %v1282_v18 = vld [vmem:[%s6907_s14 + $0x9e8] sm:$0xff] }
 0x21b   : > { %2321 = vmatpush.msra.mxu0 %v1018_v25  ;;  %2340 = vmatpush.msra.mxu1 %v1086_v26  ;;  %v1410_v12 = vld [vmem:[%s6907_s14 + $0xde8] sm:$0xff] }
 0x21c   : > { %2361 = vmatpush.msra.mxu2 %v1146_v27  ;;  %2380 = vmatpush.msra.mxu3 %v1214_v28  ;;  %v1030_v19 = vld [vmem:[%s6907_s14 + $0x208] sm:$0xff] }
 0x21d   : > { %2322 = vmatpush.msra.mxu0 %v1014_v29  ;;  %2341 = vmatpush.msra.mxu1 %v1082_v30  ;;  %v1158_v20 = vld [vmem:[%s6907_s14 + $0x608] sm:$0xff] }
 0x21e   : > { %2362 = vmatpush.msra.mxu2 %v1142_v31  ;;  %2381 = vmatpush.msra.mxu3 %v1210_v32  ;;  %v1278_v21 = vld [vmem:[%s6907_s14 + $0x9c8] sm:$0xff] }
 0x21f   : > { %2323 = vmatpush.msra.mxu0 %v1010_v33  ;;  %2342 = vmatpush.msra.mxu1 %v1078_v34  ;;  %v1346_v22 = vld [vmem:[%s6907_s14 + $0xbe8] sm:$0xff] }
 0x220   : > { %2363 = vmatpush.msra.mxu2 %v1138_v35  ;;  %2382 = vmatpush.msra.mxu3 %v1206_v36  ;;  %v1406_v23 = vld [vmem:[%s6907_s14 + $0xdc8] sm:$0xff] }
 0x221   : > { %2324 = vmatpush.msra.mxu0 %v1006_v37  ;;  %2343 = vmatpush.msra.mxu1 %v1074_v38  ;;  %v1474_v24 = vld [vmem:[%s6907_s14 + $0xfe8] sm:$0xff] }
 0x222   : > { %2364 = vmatpush.msra.mxu2 %v1134_v39  ;;  %2383 = vmatpush.msra.mxu3 %v1202_v40  ;;  %v1274_v25 = vld [vmem:[%s6907_s14 + $0x9a8] sm:$0xff] }
 0x223   : > { %2325 = vmatpush.msra.mxu0 %v1002_v41  ;;  %2344 = vmatpush.msra.mxu1 %v1070_v42  ;;  %v1342_v26 = vld [vmem:[%s6907_s14 + $0xbc8] sm:$0xff] }
 0x224   : > { %2365 = vmatpush.msra.mxu2 %v1130_v43  ;;  %2384 = vmatpush.msra.mxu3 %v1198_v44  ;;  %v1402_v27 = vld [vmem:[%s6907_s14 + $0xda8] sm:$0xff] }
 0x225   : > { %2326 = vmatpush.msra.mxu0 %v998_v45  ;;  %2345 = vmatpush.msra.mxu1 %v1066_v46  ;;  %v1470_v28 = vld [vmem:[%s6907_s14 + $0xfc8] sm:$0xff] }
 0x226   : > { %2366 = vmatpush.msra.mxu2 %v1126_v47  ;;  %2385 = vmatpush.msra.mxu3 %v1194_v48  ;;  %v1270_v29 = vld [vmem:[%s6907_s14 + $0x988] sm:$0xff] }
 0x227   : > { %2327 = vmatpush.msra.mxu0 %v994_v49  ;;  %2346 = vmatpush.msra.mxu1 %v1062_v50  ;;  %v1338_v30 = vld [vmem:[%s6907_s14 + $0xba8] sm:$0xff] }
 0x228   : > { %2367 = vmatpush.msra.mxu2 %v1122_v51  ;;  %2386 = vmatpush.msra.mxu3 %v1190_v52  ;;  %v1398_v31 = vld [vmem:[%s6907_s14 + $0xd88] sm:$0xff] }
 0x229   : > { %2328 = vmatpush.msra.mxu0 %v990_v53  ;;  %2347 = vmatpush.msra.mxu1 %v1058_v54  ;;  %v1466_v32 = vld [vmem:[%s6907_s14 + $0xfa8] sm:$0xff] }
 0x22a   : > { %2368 = vmatpush.msra.mxu2 %v1118_v55  ;;  %2387 = vmatpush.msra.mxu3 %v1186_v56  ;;  %v1266_v33 = vld [vmem:[%s6907_s14 + $0x968] sm:$0xff] }
 0x22b   : > { %2329 = vmatpush.msra.mxu0 %v986_v57  ;;  %2348 = vmatpush.msra.mxu1 %v1054_v58  ;;  %v1334_v34 = vld [vmem:[%s6907_s14 + $0xb88] sm:$0xff] }
 0x22c   : > { %2369 = vmatpush.msra.mxu2 %v1114_v59  ;;  %2388 = vmatpush.msra.mxu3 %v1182_v60  ;;  %v1394_v35 = vld [vmem:[%s6907_s14 + $0xd68] sm:$0xff] }
 0x22d   : > { %2330 = vmatpush.msra.mxu0 %v982_v61  ;;  %2349 = vmatpush.msra.mxu1 %v1050_v62  ;;  %v1462_v36 = vld [vmem:[%s6907_s14 + $0xf88] sm:$0xff] }
 0x22e   : > { %2370 = vmatpush.msra.mxu2 %v1110_v63  ;;  %2389 = vmatpush.msra.mxu3 %v1178_v0  ;;  %v1262_v37 = vld [vmem:[%s6907_s14 + $0x948] sm:$0xff] }
 0x22f   : > { %2331 = vmatpush.msra.mxu0 %v978_v1  ;;  %2350 = vmatpush.msra.mxu1 %v1046_v2  ;;  %v1330_v38 = vld [vmem:[%s6907_s14 + $0xb68] sm:$0xff] }
 0x230   : > { %2371 = vmatpush.msra.mxu2 %v1106_v3  ;;  %2390 = vmatpush.msra.mxu3 %v1174_v4  ;;  %v1390_v39 = vld [vmem:[%s6907_s14 + $0xd48] sm:$0xff] }
 0x231   : > { %2332 = vmatpush.msra.mxu0 %v974_v5  ;;  %2351 = vmatpush.msra.mxu1 %v1042_v6  ;;  %v1458_v40 = vld [vmem:[%s6907_s14 + $0xf68] sm:$0xff] }
 0x232   : > { %2372 = vmatpush.msra.mxu2 %v1102_v7  ;;  %2391 = vmatpush.msra.mxu3 %v1170_v8  ;;  %v1258_v41 = vld [vmem:[%s6907_s14 + $0x928] sm:$0xff] }
 0x233   : > { %2333 = vmatpush.msra.mxu0 %v970_v9  ;;  %2352 = vmatpush.msra.mxu1 %v1038_v10  ;;  %v1326_v42 = vld [vmem:[%s6907_s14 + $0xb48] sm:$0xff] }
 0x234   : > { %2373 = vmatpush.msra.mxu2 %v1098_v11  ;;  %2392 = vmatpush.msra.mxu3 %v1166_v13  ;;  %v1386_v43 = vld [vmem:[%s6907_s14 + $0xd28] sm:$0xff] }
 0x235   : > { %2334 = vmatpush.msra.mxu0 %v966_v14  ;;  %2353 = vmatpush.msra.mxu1 %v1034_v15  ;;  %v1454_v44 = vld [vmem:[%s6907_s14 + $0xf48] sm:$0xff] }
 0x236   : > { %2374 = vmatpush.msra.mxu2 %v1094_v16  ;;  %2393 = vmatpush.msra.mxu3 %v1162_v17  ;;  %v1254_v45 = vld [vmem:[%s6907_s14 + $0x908] sm:$0xff] }
 0x237   : > { %2399 = vmatpush.msrb.mxu0 %v1282_v18  ;;  %2354 = vmatpush.msra.mxu1 %v1030_v19  ;;  %v1322_v46 = vld [vmem:[%s6907_s14 + $0xb28] sm:$0xff] }
 0x238   : > { %2439 = vmatpush.msrb.mxu2 %v1410_v12  ;;  %2394 = vmatpush.msra.mxu3 %v1158_v20  ;;  %v1382_v47 = vld [vmem:[%s6907_s14 + $0xd08] sm:$0xff] }
 0x239   : > { %2400 = vmatpush.msrb.mxu0 %v1278_v21  ;;  %2419 = vmatpush.msrb.mxu1 %v1346_v22  ;;  %v1450_v48 = vld [vmem:[%s6907_s14 + $0xf28] sm:$0xff]  ;;  %v6255_v21 = vld [vmem:[#allocation2 + $0x30] sm:$0xff]  ;;  %v6256_v22 = vld [vmem:[#allocation2 + $0x58] sm:$0xff] }
 0x23a   : > { %2440 = vmatpush.msrb.mxu2 %v1406_v23  ;;  %2459 = vmatpush.msrb.mxu3 %v1474_v24  ;;  %v1250_v49 = vld [vmem:[%s6907_s14 + $0x8e8] sm:$0xff] }
 0x23b   : > { %2401 = vmatpush.msrb.mxu0 %v1274_v25  ;;  %2420 = vmatpush.msrb.mxu1 %v1342_v26  ;;  %v1318_v50 = vld [vmem:[%s6907_s14 + $0xb08] sm:$0xff] }
 0x23c   : > { %2441 = vmatpush.msrb.mxu2 %v1402_v27  ;;  %2460 = vmatpush.msrb.mxu3 %v1470_v28  ;;  %v1378_v51 = vld [vmem:[%s6907_s14 + $0xce8] sm:$0xff]  ;;  %v6258_v28 = vld [vmem:[#allocation2 + $0x18] sm:$0xff] }
 0x23d   : > { %2402 = vmatpush.msrb.mxu0 %v1270_v29  ;;  %2421 = vmatpush.msrb.mxu1 %v1338_v30  ;;  %v1446_v52 = vld [vmem:[%s6907_s14 + $0xf08] sm:$0xff] }
 0x23e   : > { %2442 = vmatpush.msrb.mxu2 %v1398_v31  ;;  %2461 = vmatpush.msrb.mxu3 %v1466_v32  ;;  %v1246_v53 = vld [vmem:[%s6907_s14 + $0x8c8] sm:$0xff] }
 0x23f   : > { %2403 = vmatpush.msrb.mxu0 %v1266_v33  ;;  %2422 = vmatpush.msrb.mxu1 %v1334_v34  ;;  %v1314_v54 = vld [vmem:[%s6907_s14 + $0xae8] sm:$0xff] }
 0x240   : > { %2443 = vmatpush.msrb.mxu2 %v1394_v35  ;;  %2462 = vmatpush.msrb.mxu3 %v1462_v36  ;;  %v1374_v55 = vld [vmem:[%s6907_s14 + $0xcc8] sm:$0xff] }
 0x241   : > { %2404 = vmatpush.msrb.mxu0 %v1262_v37  ;;  %2423 = vmatpush.msrb.mxu1 %v1330_v38  ;;  %v1442_v56 = vld [vmem:[%s6907_s14 + $0xee8] sm:$0xff] }
 0x242   : > { %2444 = vmatpush.msrb.mxu2 %v1390_v39  ;;  %2463 = vmatpush.msrb.mxu3 %v1458_v40  ;;  %v1242_v57 = vld [vmem:[%s6907_s14 + $0x8a8] sm:$0xff] }
 0x243   : > { %2405 = vmatpush.msrb.mxu0 %v1258_v41  ;;  %2424 = vmatpush.msrb.mxu1 %v1326_v42  ;;  %v1310_v58 = vld [vmem:[%s6907_s14 + $0xac8] sm:$0xff]  ;;  %v6259_v41 = vld [vmem:[#allocation2 + $0x8] sm:$0xff] }
 0x244   : > { %2445 = vmatpush.msrb.mxu2 %v1386_v43  ;;  %2464 = vmatpush.msrb.mxu3 %v1454_v44  ;;  %v1370_v59 = vld [vmem:[%s6907_s14 + $0xca8] sm:$0xff]  ;;  %v1989_v43 = vld [vmem:[%s6913_s13] sm:$0xf] }
 0x245   : > { %2406 = vmatpush.msrb.mxu0 %v1254_v45  ;;  %2425 = vmatpush.msrb.mxu1 %v1322_v46  ;;  %v1438_v60 = vld [vmem:[%s6907_s14 + $0xec8] sm:$0xff]  ;;  %v6260_v46 = vld [vmem:[#allocation2 + $0x50] sm:$0xff] }
 0x246   : > { %2446 = vmatpush.msrb.mxu2 %v1382_v47  ;;  %2465 = vmatpush.msrb.mxu3 %v1450_v48  ;;  %v1238_v61 = vld [vmem:[%s6907_s14 + $0x888] sm:$0xff]  ;;  %v6261_v48 = vld [vmem:[#allocation2 + $0x48] sm:$0xff] }
 0x247   : > { %2407 = vmatpush.msrb.mxu0 %v1250_v49  ;;  %2426 = vmatpush.msrb.mxu1 %v1318_v50  ;;  %v1306_v62 = vld [vmem:[%s6907_s14 + $0xaa8] sm:$0xff] }
 0x248   : > { %2447 = vmatpush.msrb.mxu2 %v1378_v51  ;;  %2466 = vmatpush.msrb.mxu3 %v1446_v52  ;;  %v1366_v63 = vld [vmem:[%s6907_s14 + $0xc88] sm:$0xff]  ;;  %v1991_v51 = vperm.slane %v1989_v43, 0  ;;  %v6264_v43 = vld [vmem:[#allocation2 + $0x10] sm:$0xff] }
 0x249   : > { %2408 = vmatpush.msrb.mxu0 %v1246_v53  ;;  %2427 = vmatpush.msrb.mxu1 %v1314_v54  ;;  %v1434_v0 = vld [vmem:[%s6907_s14 + $0xea8] sm:$0xff]  ;;  %v2016_v54 = vpop.f32.mrf.mxu0 }
 0x24a   : > { %2448 = vmatpush.msrb.mxu2 %v1374_v55  ;;  %2467 = vmatpush.msrb.mxu3 %v1442_v56  ;;  %v1234_v1 = vld [vmem:[%s6907_s14 + $0x868] sm:$0xff]  ;;  %v6262_v55 = vld [vmem:[#allocation2 + $0x68] sm:$0xff] }
 0x24b   : > { %2409 = vmatpush.msrb.mxu0 %v1242_v57  ;;  %2428 = vmatpush.msrb.mxu1 %v1310_v58  ;;  %v1302_v2 = vld [vmem:[%s6907_s14 + $0xa88] sm:$0xff] }
 0x24c   : > { %2449 = vmatpush.msrb.mxu2 %v1370_v59  ;;  %2468 = vmatpush.msrb.mxu3 %v1438_v60  ;;  %v1362_v3 = vld [vmem:[%s6907_s14 + $0xc68] sm:$0xff] }
 0x24d   : > { %2410 = vmatpush.msrb.mxu0 %v1238_v61  ;;  %2429 = vmatpush.msrb.mxu1 %v1306_v62  ;;  %v1430_v4 = vld [vmem:[%s6907_s14 + $0xe88] sm:$0xff]  ;;  %v2017_v62 = vadd.f32 %v2016_v54, %v1991_v51  ;;  %v6266_v51 = vld [vmem:[#allocation2 + $0x38] sm:$0xff] }
 0x24e   : > { %2450 = vmatpush.msrb.mxu2 %v1366_v63  ;;  %2469 = vmatpush.msrb.mxu3 %v1434_v0  ;;  %v1230_v5 = vld [vmem:[%s6907_s14 + $0x848] sm:$0xff] }
 0x24f   : > { %v1298_v6 = vld [vmem:[%s6907_s14 + $0xa68] sm:$0xff]  ;;  %2411 = vmatpush.msrb.mxu0 %v1234_v1  ;;  %2430 = vmatpush.msrb.mxu1 %v1302_v2  ;;  %v2036_v1 = vpop.f32.mrf.mxu1 }
 0x250   : > { %v1358_v7 = vld [vmem:[%s6907_s14 + $0xc48] sm:$0xff]  ;;  %2451 = vmatpush.msrb.mxu2 %v1362_v3  ;;  %2470 = vmatpush.msrb.mxu3 %v1430_v4 }
 0x251   : > { %v1426_v8 = vld [vmem:[%s6907_s14 + $0xe68] sm:$0xff]  ;;  %2412 = vmatpush.msrb.mxu0 %v1230_v5  ;;  %2431 = vmatpush.msrb.mxu1 %v1298_v6 }
 0x252   : > { %v1226_v9 = vld [vmem:[%s6907_s14 + $0x828] sm:$0xff]  ;;  %2452 = vmatpush.msrb.mxu2 %v1358_v7  ;;  %2471 = vmatpush.msrb.mxu3 %v1426_v8  ;;  %v2037_v8 = vadd.f32 %v2036_v1, %v2017_v62 }
 0x253   : > { %v1294_v10 = vld [vmem:[%s6907_s14 + $0xa48] sm:$0xff]  ;;  %2413 = vmatpush.msrb.mxu0 %v1226_v9  ;;  %2375 = vmatmul.f32.vlgmr.msra.gmra.mxu2 %v6256_v22 }
 0x254   : > { %v1354_v11 = vld [vmem:[%s6907_s14 + $0xc28] sm:$0xff]  ;;  %2432 = vmatpush.msrb.mxu1 %v1294_v10  ;;  %2335 = vmatmul.f32.vlgmr.msra.gmra.mxu0 %v6255_v21  ;;  %v2076_v21 = vpop.f32.mrf.mxu3 }
 0x255   : > { %v1422_v13 = vld [vmem:[%s6907_s14 + $0xe48] sm:$0xff]  ;;  %2453 = vmatpush.msrb.mxu2 %v1354_v11  ;;  %2395 = vmatmul.f32.vlgmr.msra.gmra.mxu3 %v6258_v28  ;;  %v2056_v11 = vpop.f32.mrf.mxu2 }
 0x256   : > { %v1222_v14 = vld [vmem:[%s6907_s14 + $0x808] sm:$0xff]  ;;  %2472 = vmatpush.msrb.mxu3 %v1422_v13 }
 0x257   : > { %v1290_v15 = vld [vmem:[%s6907_s14 + $0xa28] sm:$0xff]  ;;  %2414 = vmatpush.msrb.mxu0 %v1222_v14 }
 0x258   : > { %v1350_v16 = vld [vmem:[%s6907_s14 + $0xc08] sm:$0xff]  ;;  %2433 = vmatpush.msrb.mxu1 %v1290_v15 }
 0x259   : > { %v1418_v17 = vld [vmem:[%s6907_s14 + $0xe28] sm:$0xff]  ;;  %2454 = vmatpush.msrb.mxu2 %v1350_v16 }
 0x25a   : > { %v1538_v18 = vld [vmem:[%s6907_s14 + $0x11e8] sm:$0xff]  ;;  %2473 = vmatpush.msrb.mxu3 %v1418_v17 }
 0x25b   : > { %v1666_v12 = vld [vmem:[%s6907_s14 + $0x15e8] sm:$0xff]  ;;  %2479 = vmatpush.msra.mxu0 %v1538_v18  ;;  %2455 = vmatmul.f32.vlgmr.msrb.gmra.mxu2 %v6259_v41 }
 0x25c   : > { %v1286_v19 = vld [vmem:[%s6907_s14 + $0xa08] sm:$0xff]  ;;  %2519 = vmatpush.msra.mxu2 %v1666_v12  ;;  %2415 = vmatmul.f32.vlgmr.msrb.gmra.mxu0 %v6260_v46  ;;  %v2057_v12 = vadd.f32 %v2056_v11, %v2037_v8 }
 0x25d   : > { %v1414_v20 = vld [vmem:[%s6907_s14 + $0xe08] sm:$0xff]  ;;  %2434 = vmatpush.msrb.mxu1 %v1286_v19 }
 0x25e   : > { %v1534_v23 = vld [vmem:[%s6907_s14 + $0x11c8] sm:$0xff]  ;;  %2474 = vmatpush.msrb.mxu3 %v1414_v20  ;;  %v2077_v28 = vadd.f32 %v2076_v21, %v2057_v12 }
 0x25f   : > { %v1602_v24 = vld [vmem:[%s6907_s14 + $0x13e8] sm:$0xff]  ;;  %2480 = vmatpush.msra.mxu0 %v1534_v23  ;;  %2475 = vmatmul.f32.vlgmr.msrb.gmra.mxu3 %v6261_v48 }
 0x260   : > { %v1662_v25 = vld [vmem:[%s6907_s14 + $0x15c8] sm:$0xff] }
 0x261   : > { %v1730_v26 = vld [vmem:[%s6907_s14 + $0x17e8] sm:$0xff]  ;;  %2520 = vmatpush.msra.mxu2 %v1662_v25 }
 0x262   : > { %v6257_v27 = vld [vmem:[#allocation2] sm:$0xff]  ;;  %2539 = vmatpush.msra.mxu3 %v1730_v26 }
 0x263   : > { %2355 = vmatmul.f32.vlgmr.msra.gmra.mxu1 %v6257_v27  ;;  %v1530_v29 = vld [vmem:[%s6907_s14 + $0x11a8] sm:$0xff] }
 0x264   : > { %v1598_v30 = vld [vmem:[%s6907_s14 + $0x13c8] sm:$0xff]  ;;  %2499 = vmatpush.msra.mxu1 %v1602_v24  ;;  %2481 = vmatpush.msra.mxu0 %v1530_v29 }
 0x265   : > { %v1658_v31 = vld [vmem:[%s6907_s14 + $0x15a8] sm:$0xff] }
 0x266   : > { %v1726_v32 = vld [vmem:[%s6907_s14 + $0x17c8] sm:$0xff]  ;;  %2500 = vmatpush.msra.mxu1 %v1598_v30  ;;  %2521 = vmatpush.msra.mxu2 %v1658_v31  ;;  %v2096_v31 = vpop.f32.mrf.mxu0 }
 0x267   : > { %v1526_v33 = vld [vmem:[%s6907_s14 + $0x1188] sm:$0xff]  ;;  %2540 = vmatpush.msra.mxu3 %v1726_v32 }
 0x268   : > { %v1594_v34 = vld [vmem:[%s6907_s14 + $0x13a8] sm:$0xff]  ;;  %2482 = vmatpush.msra.mxu0 %v1526_v33 }
 0x269   : > { %v1654_v35 = vld [vmem:[%s6907_s14 + $0x1588] sm:$0xff]  ;;  %2501 = vmatpush.msra.mxu1 %v1594_v34 }
 0x26a   : > { %v1722_v36 = vld [vmem:[%s6907_s14 + $0x17a8] sm:$0xff]  ;;  %2522 = vmatpush.msra.mxu2 %v1654_v35 }
 0x26b   : > { %v1522_v37 = vld [vmem:[%s6907_s14 + $0x1168] sm:$0xff]  ;;  %2541 = vmatpush.msra.mxu3 %v1722_v36  ;;  %2435 = vmatmul.f32.vlgmr.msrb.gmra.mxu1 %v6262_v55  ;;  %v2097_v36 = vadd.f32 %v2096_v31, %v2077_v28 }
 0x26c   : > { %v1590_v38 = vld [vmem:[%s6907_s14 + $0x1388] sm:$0xff]  ;;  %2483 = vmatpush.msra.mxu0 %v1522_v37 }
 0x26d   : > { %v1650_v39 = vld [vmem:[%s6907_s14 + $0x1568] sm:$0xff]  ;;  %2502 = vmatpush.msra.mxu1 %v1590_v38 }
 0x26e   : > { %v1718_v40 = vld [vmem:[%s6907_s14 + $0x1788] sm:$0xff]  ;;  %2523 = vmatpush.msra.mxu2 %v1650_v39  ;;  %v2116_v39 = vpop.f32.mrf.mxu1 }
 0x26f   : > { %v1518_v42 = vld [vmem:[%s6907_s14 + $0x1148] sm:$0xff]  ;;  %2542 = vmatpush.msra.mxu3 %v1718_v40  ;;  %v2117_v46 = vadd.f32 %v2116_v39, %v2097_v36 }
 0x270   : > { %v1586_v44 = vld [vmem:[%s6907_s14 + $0x1368] sm:$0xff]  ;;  %2484 = vmatpush.msra.mxu0 %v1518_v42 }
 0x271   : > { %v1646_v45 = vld [vmem:[%s6907_s14 + $0x1548] sm:$0xff]  ;;  %2503 = vmatpush.msra.mxu1 %v1586_v44 }
 0x272   : > { %v1714_v47 = vld [vmem:[%s6907_s14 + $0x1768] sm:$0xff]  ;;  %2524 = vmatpush.msra.mxu2 %v1646_v45 }
 0x273   : > { %v1514_v49 = vld [vmem:[%s6907_s14 + $0x1128] sm:$0xff]  ;;  %2543 = vmatpush.msra.mxu3 %v1714_v47 }
 0x274   : > { %v1582_v50 = vld [vmem:[%s6907_s14 + $0x1348] sm:$0xff]  ;;  %2485 = vmatpush.msra.mxu0 %v1514_v49  ;;  %v2136_v49 = vpop.f32.mrf.mxu2 }
 0x275   : > { %v1642_v52 = vld [vmem:[%s6907_s14 + $0x1528] sm:$0xff]  ;;  %2504 = vmatpush.msra.mxu1 %v1582_v50 }
 0x276   : > { %v1710_v53 = vld [vmem:[%s6907_s14 + $0x1748] sm:$0xff]  ;;  %2525 = vmatpush.msra.mxu2 %v1642_v52 }
 0x277   : > { %v1510_v56 = vld [vmem:[%s6907_s14 + $0x1108] sm:$0xff]  ;;  %2544 = vmatpush.msra.mxu3 %v1710_v53 }
 0x278   : > { %v1578_v57 = vld [vmem:[%s6907_s14 + $0x1328] sm:$0xff]  ;;  %2486 = vmatpush.msra.mxu0 %v1510_v56 }
 0x279   : > { %v1638_v58 = vld [vmem:[%s6907_s14 + $0x1508] sm:$0xff]  ;;  %2505 = vmatpush.msra.mxu1 %v1578_v57 }
 0x27a   : > { %v1706_v59 = vld [vmem:[%s6907_s14 + $0x1728] sm:$0xff]  ;;  %2526 = vmatpush.msra.mxu2 %v1638_v58  ;;  %v2137_v58 = vadd.f32 %v2136_v49, %v2117_v46 }
 0x27b   : > { %v1506_v60 = vld [vmem:[%s6907_s14 + $0x10e8] sm:$0xff]  ;;  %2545 = vmatpush.msra.mxu3 %v1706_v59 }
 0x27c   : > { %v1574_v61 = vld [vmem:[%s6907_s14 + $0x1308] sm:$0xff]  ;;  %2487 = vmatpush.msra.mxu0 %v1506_v60  ;;  %v2216_v12 = vpop.f32.mrf.mxu2 }
 0x27d   : > { %v1634_v63 = vld [vmem:[%s6907_s14 + $0x14e8] sm:$0xff]  ;;  %2506 = vmatpush.msra.mxu1 %v1574_v61  ;;  %v2156_v61 = vpop.f32.mrf.mxu3 }
 0x27e   : > { %v1702_v0 = vld [vmem:[%s6907_s14 + $0x1708] sm:$0xff]  ;;  %2527 = vmatpush.msra.mxu2 %v1634_v63 }
 0x27f   : > { %v1502_v2 = vld [vmem:[%s6907_s14 + $0x10c8] sm:$0xff]  ;;  %2546 = vmatpush.msra.mxu3 %v1702_v0 }
 0x280   : > { %v1570_v3 = vld [vmem:[%s6907_s14 + $0x12e8] sm:$0xff]  ;;  %2488 = vmatpush.msra.mxu0 %v1502_v2  ;;  %v2176_v2 = vpop.f32.mrf.mxu0 }
 0x281   : > { %v1630_v4 = vld [vmem:[%s6907_s14 + $0x14c8] sm:$0xff]  ;;  %2507 = vmatpush.msra.mxu1 %v1570_v3 }
 0x282   : > { %v1698_v5 = vld [vmem:[%s6907_s14 + $0x16e8] sm:$0xff]  ;;  %2528 = vmatpush.msra.mxu2 %v1630_v4 }
 0x283   : > { %v1498_v6 = vld [vmem:[%s6907_s14 + $0x10a8] sm:$0xff]  ;;  %2547 = vmatpush.msra.mxu3 %v1698_v5  ;;  %v2157_v5 = vadd.f32 %v2156_v61, %v2137_v58  ;;  %v1027_v61 = vld [vmem:[%s6907_s14 + $0x1f0] sm:$0xff] }
 0x284   : > { %v1566_v7 = vld [vmem:[%s6907_s14 + $0x12c8] sm:$0xff]  ;;  %2489 = vmatpush.msra.mxu0 %v1498_v6 }
 0x285   : > { %v1626_v9 = vld [vmem:[%s6907_s14 + $0x14a8] sm:$0xff]  ;;  %2508 = vmatpush.msra.mxu1 %v1566_v7 }
 0x286   : > { %v1694_v10 = vld [vmem:[%s6907_s14 + $0x16c8] sm:$0xff]  ;;  %2529 = vmatpush.msra.mxu2 %v1626_v9 }
 0x287   : > { %v1494_v13 = vld [vmem:[%s6907_s14 + $0x1088] sm:$0xff]  ;;  %2548 = vmatpush.msra.mxu3 %v1694_v10  ;;  %v2177_v10 = vadd.f32 %v2176_v2, %v2157_v5  ;;  %v1023_v5 = vld [vmem:[%s6907_s14 + $0x1d0] sm:$0xff] }
 0x288   : > { %v1562_v14 = vld [vmem:[%s6907_s14 + $0x12a8] sm:$0xff]  ;;  %2490 = vmatpush.msra.mxu0 %v1494_v13 }
 0x289   : > { %v1622_v15 = vld [vmem:[%s6907_s14 + $0x1488] sm:$0xff]  ;;  %2509 = vmatpush.msra.mxu1 %v1562_v14  ;;  %v2196_v14 = vpop.f32.mrf.mxu1 }
 0x28a   : > { %v1690_v16 = vld [vmem:[%s6907_s14 + $0x16a8] sm:$0xff]  ;;  %2530 = vmatpush.msra.mxu2 %v1622_v15  ;;  %v2197_v21 = vadd.f32 %v2196_v14, %v2177_v10  ;;  %v6269_v10 = vld [vmem:[#allocation2 + $0x70] sm:$0xff]  ;;  %v1087_v14 = vld [vmem:[%s6907_s14 + $0x3d0] sm:$0xff] }
 0x28b   : > { %v1490_v17 = vld [vmem:[%s6907_s14 + $0x1068] sm:$0xff]  ;;  %2549 = vmatpush.msra.mxu3 %v1690_v16 }
 0x28c   : > { %v1558_v18 = vld [vmem:[%s6907_s14 + $0x1288] sm:$0xff]  ;;  %2491 = vmatpush.msra.mxu0 %v1490_v17 }
 0x28d   : > { %v1618_v19 = vld [vmem:[%s6907_s14 + $0x1468] sm:$0xff]  ;;  %2510 = vmatpush.msra.mxu1 %v1558_v18 }
 0x28e   : > { %v1686_v20 = vld [vmem:[%s6907_s14 + $0x1688] sm:$0xff]  ;;  %2531 = vmatpush.msra.mxu2 %v1618_v19 }
 0x28f   : > { %v1486_v22 = vld [vmem:[%s6907_s14 + $0x1048] sm:$0xff]  ;;  %2550 = vmatpush.msra.mxu3 %v1686_v20 }
 0x290   : > { %v1554_v23 = vld [vmem:[%s6907_s14 + $0x1268] sm:$0xff]  ;;  %2492 = vmatpush.msra.mxu0 %v1486_v22 }
 0x291   : > { %v1614_v24 = vld [vmem:[%s6907_s14 + $0x1448] sm:$0xff]  ;;  %2511 = vmatpush.msra.mxu1 %v1554_v23 }
 0x292   : > { %v1682_v25 = vld [vmem:[%s6907_s14 + $0x1668] sm:$0xff]  ;;  %2532 = vmatpush.msra.mxu2 %v1614_v24 }
 0x293   : > { %v1482_v26 = vld [vmem:[%s6907_s14 + $0x1028] sm:$0xff]  ;;  %2551 = vmatpush.msra.mxu3 %v1682_v25 }
 0x294   : > { %v1550_v27 = vld [vmem:[%s6907_s14 + $0x1248] sm:$0xff]  ;;  %2493 = vmatpush.msra.mxu0 %v1482_v26  ;;  %v2217_v26 = vadd.f32 %v2216_v12, %v2197_v21  ;;  %v1143_v12 = vld [vmem:[%s6907_s14 + $0x590] sm:$0xff] }
 0x295   : > { %v1610_v29 = vld [vmem:[%s6907_s14 + $0x1428] sm:$0xff]  ;;  %2512 = vmatpush.msra.mxu1 %v1550_v27  ;;  %v2276_v49 = vpop.f32.mrf.mxu1  ;;  %v1079_v21 = vld [vmem:[%s6907_s14 + $0x390] sm:$0xff] }
 0x296   : > { %v1678_v30 = vld [vmem:[%s6907_s14 + $0x1648] sm:$0xff]  ;;  %2533 = vmatpush.msra.mxu2 %v1610_v29  ;;  %v2236_v29 = vpop.f32.mrf.mxu3 }
 0x297   : > { %v1478_v32 = vld [vmem:[%s6907_s14 + $0x1008] sm:$0xff]  ;;  %2552 = vmatpush.msra.mxu3 %v1678_v30  ;;  %v2237_v36 = vadd.f32 %v2236_v29, %v2217_v26  ;;  %v1135_v26 = vld [vmem:[%s6907_s14 + $0x550] sm:$0xff] }
 0x298   : > { %v1546_v33 = vld [vmem:[%s6907_s14 + $0x1228] sm:$0xff]  ;;  %2494 = vmatpush.msra.mxu0 %v1478_v32  ;;  %v1071_v29 = vld [vmem:[%s6907_s14 + $0x350] sm:$0xff] }
 0x299   : > { %v1606_v34 = vld [vmem:[%s6907_s14 + $0x1408] sm:$0xff]  ;;  %2513 = vmatpush.msra.mxu1 %v1546_v33 }
 0x29a   : > { %v1674_v35 = vld [vmem:[%s6907_s14 + $0x1628] sm:$0xff]  ;;  %2534 = vmatpush.msra.mxu2 %v1606_v34 }
 0x29b   : > { %v1794_v37 = vld [vmem:[%s6907_s14 + $0x19e8] sm:$0xff]  ;;  %2553 = vmatpush.msra.mxu3 %v1674_v35  ;;  %2535 = vmatmul.f32.vlgmr.msra.gmra.mxu2 %v6264_v43 }
 0x29c   : > { %v1922_v38 = vld [vmem:[%s6907_s14 + $0x1de8] sm:$0xff]  ;;  %2559 = vmatpush.msrb.mxu0 %v1794_v37 }
 0x29d   : > { %v1542_v40 = vld [vmem:[%s6907_s14 + $0x1208] sm:$0xff]  ;;  %2599 = vmatpush.msrb.mxu2 %v1922_v38 }
 0x29e   : > { %v1670_v41 = vld [vmem:[%s6907_s14 + $0x1608] sm:$0xff]  ;;  %2514 = vmatpush.msra.mxu1 %v1542_v40 }
 0x29f   : > { %v6263_v42 = vld [vmem:[#allocation2 + $0x40] sm:$0xff]  ;;  %2554 = vmatpush.msra.mxu3 %v1670_v41  ;;  %v2256_v41 = vpop.f32.mrf.mxu0 }
 0x2a0   : > { %2495 = vmatmul.f32.vlgmr.msra.gmra.mxu0 %v6263_v42  ;;  %v1790_v44 = vld [vmem:[%s6907_s14 + $0x19c8] sm:$0xff]  ;;  %2555 = vmatmul.f32.vlgmr.msra.gmra.mxu3 %v6266_v51 }
 0x2a1   : > { %v1858_v45 = vld [vmem:[%s6907_s14 + $0x1be8] sm:$0xff]  ;;  %2560 = vmatpush.msrb.mxu0 %v1790_v44  ;;  %v2257_v44 = vadd.f32 %v2256_v41, %v2237_v36  ;;  %v995_v36 = vld [vmem:[%s6907_s14 + $0xf0] sm:$0xff] }
 0x2a2   : > { %v1918_v47 = vld [vmem:[%s6907_s14 + $0x1dc8] sm:$0xff]  ;;  %2579 = vmatpush.msrb.mxu1 %v1858_v45  ;;  %v1059_v41 = vld [vmem:[%s6907_s14 + $0x2f0] sm:$0xff] }
 0x2a3   : > { %v1986_v48 = vld [vmem:[%s6907_s14 + $0x1fe8] sm:$0xff]  ;;  %2600 = vmatpush.msrb.mxu2 %v1918_v47 }
 0x2a4   : > { %v6265_v50 = vld [vmem:[#allocation2 + $0x20] sm:$0xff]  ;;  %2619 = vmatpush.msrb.mxu3 %v1986_v48 }
 0x2a5   : > { %2515 = vmatmul.f32.vlgmr.msra.gmra.mxu1 %v6265_v50  ;;  %v1786_v52 = vld [vmem:[%s6907_s14 + $0x19a8] sm:$0xff] }
 0x2a6   : > { %v1854_v53 = vld [vmem:[%s6907_s14 + $0x1bc8] sm:$0xff]  ;;  %2561 = vmatpush.msrb.mxu0 %v1786_v52 }
 0x2a7   : > { %v1914_v54 = vld [vmem:[%s6907_s14 + $0x1da8] sm:$0xff]  ;;  %2580 = vmatpush.msrb.mxu1 %v1854_v53 }
 0x2a8   : > { %v1982_v55 = vld [vmem:[%s6907_s14 + $0x1fc8] sm:$0xff]  ;;  %2601 = vmatpush.msrb.mxu2 %v1914_v54  ;;  %v2277_v54 = vadd.f32 %v2276_v49, %v2257_v44  ;;  %v987_v44 = vld [vmem:[%s6907_s14 + $0xb0] sm:$0xff] }
 0x2a9   : > { %v1782_v56 = vld [vmem:[%s6907_s14 + $0x1988] sm:$0xff]  ;;  %2620 = vmatpush.msrb.mxu3 %v1982_v55  ;;  %v1051_v49 = vld [vmem:[%s6907_s14 + $0x2b0] sm:$0xff] }
 0x2aa   : > { %v1850_v57 = vld [vmem:[%s6907_s14 + $0x1ba8] sm:$0xff]  ;;  %2562 = vmatpush.msrb.mxu0 %v1782_v56 }
 0x2ab   : > { %v1910_v59 = vld [vmem:[%s6907_s14 + $0x1d88] sm:$0xff]  ;;  %2581 = vmatpush.msrb.mxu1 %v1850_v57  ;;  %v2296_v57 = vpop.f32.mrf.mxu2 }
 0x2ac   : > { %v1978_v60 = vld [vmem:[%s6907_s14 + $0x1fa8] sm:$0xff]  ;;  %2602 = vmatpush.msrb.mxu2 %v1910_v59 }
 0x2ad   : > { %v1778_v62 = vld [vmem:[%s6907_s14 + $0x1968] sm:$0xff]  ;;  %2621 = vmatpush.msrb.mxu3 %v1978_v60  ;;  %v2297_v60 = vadd.f32 %v2296_v57, %v2277_v54  ;;  %v1107_v54 = vld [vmem:[%s6907_s14 + $0x470] sm:$0xff] }
 0x2ae   : > { %v1846_v63 = vld [vmem:[%s6907_s14 + $0x1b88] sm:$0xff]  ;;  %2563 = vmatpush.msrb.mxu0 %v1778_v62  ;;  %v1155_v62 = vld [vmem:[%s6907_s14 + $0x5f0] sm:$0xff] }
 0x2af   : > { %v1906_v0 = vld [vmem:[%s6907_s14 + $0x1d68] sm:$0xff]  ;;  %2582 = vmatpush.msrb.mxu1 %v1846_v63  ;;  %v2316_v63 = vpop.f32.mrf.mxu3  ;;  %v1043_v57 = vld [vmem:[%s6907_s14 + $0x270] sm:$0xff] }
 0x2b0   : > { %v1974_v1 = vld [vmem:[%s6907_s14 + $0x1f88] sm:$0xff]  ;;  %2603 = vmatpush.msrb.mxu2 %v1906_v0  ;;  %v2317_v2 = vadd.f32 %v2316_v63, %v2297_v60  ;;  %v971_v60 = vld [vmem:[%s6907_s14 + $0x30] sm:$0xff] }
 0x2b1   : > { %v1774_v3 = vld [vmem:[%s6907_s14 + $0x1948] sm:$0xff]  ;;  %2622 = vmatpush.msrb.mxu3 %v1974_v1  ;;  %v1167_v63 = vld [vmem:[%s6907_s14 + $0x650] sm:$0xff] }
 0x2b2   : > { %v1842_v4 = vld [vmem:[%s6907_s14 + $0x1b68] sm:$0xff]  ;;  %2564 = vmatpush.msrb.mxu0 %v1774_v3 }
 0x2b3   : > { %v1902_v6 = vld [vmem:[%s6907_s14 + $0x1d48] sm:$0xff]  ;;  %2583 = vmatpush.msrb.mxu1 %v1842_v4  ;;  %v6268_v4 = vld [vmem:[#allocation2 + $0x78] sm:$0xff] }
 0x2b4   : > { %v1970_v7 = vld [vmem:[%s6907_s14 + $0x1f68] sm:$0xff]  ;;  %2604 = vmatpush.msrb.mxu2 %v1902_v6  ;;  %v1091_v6 = vld [vmem:[%s6907_s14 + $0x3f0] sm:$0xff] }
 0x2b5   : > { %v1770_v8 = vld [vmem:[%s6907_s14 + $0x1928] sm:$0xff]  ;;  %2623 = vmatpush.msrb.mxu3 %v1970_v7  ;;  %v3279_v7 = vmax.f32 %v2317_v2, 0.0  ;;  %v1095_v2 = vld [vmem:[%s6907_s14 + $0x410] sm:$0xff] }
 0x2b6   : > { %v1838_v9 = vld [vmem:[%s6907_s14 + $0x1b48] sm:$0xff]  ;;  %2565 = vmatpush.msrb.mxu0 %v1770_v8  ;;  %v1151_v8 = vld [vmem:[%s6907_s14 + $0x5d0] sm:$0xff] }
 0x2b7   : > { %v1898_v11 = vld [vmem:[%s6907_s14 + $0x1d28] sm:$0xff]  ;;  %2584 = vmatpush.msrb.mxu1 %v1838_v9  ;;  %v1219_v9 = vld [vmem:[%s6907_s14 + $0x7f0] sm:$0xff]  ;;  %3287 = vst [vmem:[%s7486_s28] sm:$0xff] %v3279_v7 }
 0x2b8   : > { %v1966_v13 = vld [vmem:[%s6907_s14 + $0x1f48] sm:$0xff]  ;;  %2605 = vmatpush.msrb.mxu2 %v1898_v11  ;;  %v6270_v11 = vld [vmem:[#allocation2 + $0x28] sm:$0xff] }
 0x2b9   : > { %v1766_v15 = vld [vmem:[%s6907_s14 + $0x1908] sm:$0xff]  ;;  %2624 = vmatpush.msrb.mxu3 %v1966_v13  ;;  %v1019_v13 = vld [vmem:[%s6907_s14 + $0x1b0] sm:$0xff] }
 0x2ba   : > { %v1834_v16 = vld [vmem:[%s6907_s14 + $0x1b28] sm:$0xff]  ;;  %2566 = vmatpush.msrb.mxu0 %v1766_v15  ;;  %v1147_v15 = vld [vmem:[%s6907_s14 + $0x5b0] sm:$0xff] }
 0x2bb   : > { %v1894_v17 = vld [vmem:[%s6907_s14 + $0x1d08] sm:$0xff]  ;;  %2585 = vmatpush.msrb.mxu1 %v1834_v16  ;;  %v1215_v16 = vld [vmem:[%s6907_s14 + $0x7d0] sm:$0xff] }
 0x2bc   : > { %v1962_v18 = vld [vmem:[%s6907_s14 + $0x1f28] sm:$0xff]  ;;  %2606 = vmatpush.msrb.mxu2 %v1894_v17  ;;  %v1015_v17 = vld [vmem:[%s6907_s14 + $0x190] sm:$0xff] }
 0x2bd   : > { %v1762_v19 = vld [vmem:[%s6907_s14 + $0x18e8] sm:$0xff]  ;;  %2625 = vmatpush.msrb.mxu3 %v1962_v18  ;;  %v1083_v18 = vld [vmem:[%s6907_s14 + $0x3b0] sm:$0xff] }
 0x2be   : > { %v1830_v20 = vld [vmem:[%s6907_s14 + $0x1b08] sm:$0xff]  ;;  %2567 = vmatpush.msrb.mxu0 %v1762_v19  ;;  %v1211_v19 = vld [vmem:[%s6907_s14 + $0x7b0] sm:$0xff] }
 0x2bf   : > { %v1890_v22 = vld [vmem:[%s6907_s14 + $0x1ce8] sm:$0xff]  ;;  %2586 = vmatpush.msrb.mxu1 %v1830_v20  ;;  %v1011_v20 = vld [vmem:[%s6907_s14 + $0x170] sm:$0xff] }
 0x2c0   : > { %v1958_v23 = vld [vmem:[%s6907_s14 + $0x1f08] sm:$0xff]  ;;  %2607 = vmatpush.msrb.mxu2 %v1890_v22  ;;  %v1139_v22 = vld [vmem:[%s6907_s14 + $0x570] sm:$0xff] }
 0x2c1   : > { %v1758_v24 = vld [vmem:[%s6907_s14 + $0x18c8] sm:$0xff]  ;;  %2626 = vmatpush.msrb.mxu3 %v1958_v23  ;;  %v1207_v23 = vld [vmem:[%s6907_s14 + $0x790] sm:$0xff] }
 0x2c2   : > { %v1826_v25 = vld [vmem:[%s6907_s14 + $0x1ae8] sm:$0xff]  ;;  %2568 = vmatpush.msrb.mxu0 %v1758_v24  ;;  %v1007_v24 = vld [vmem:[%s6907_s14 + $0x150] sm:$0xff] }
 0x2c3   : > { %v1886_v27 = vld [vmem:[%s6907_s14 + $0x1cc8] sm:$0xff]  ;;  %2587 = vmatpush.msrb.mxu1 %v1826_v25  ;;  %v1075_v25 = vld [vmem:[%s6907_s14 + $0x370] sm:$0xff] }
 0x2c4   : > { %v1954_v28 = vld [vmem:[%s6907_s14 + $0x1ee8] sm:$0xff]  ;;  %2608 = vmatpush.msrb.mxu2 %v1886_v27  ;;  %v1203_v27 = vld [vmem:[%s6907_s14 + $0x770] sm:$0xff] }
 0x2c5   : > { %v1754_v30 = vld [vmem:[%s6907_s14 + $0x18a8] sm:$0xff]  ;;  %2627 = vmatpush.msrb.mxu3 %v1954_v28  ;;  %v1003_v28 = vld [vmem:[%s6907_s14 + $0x130] sm:$0xff] }
 0x2c6   : > { %v1822_v31 = vld [vmem:[%s6907_s14 + $0x1ac8] sm:$0xff]  ;;  %2569 = vmatpush.msrb.mxu0 %v1754_v30  ;;  %v1131_v30 = vld [vmem:[%s6907_s14 + $0x530] sm:$0xff] }
 0x2c7   : > { %v1882_v32 = vld [vmem:[%s6907_s14 + $0x1ca8] sm:$0xff]  ;;  %2588 = vmatpush.msrb.mxu1 %v1822_v31  ;;  %v1199_v31 = vld [vmem:[%s6907_s14 + $0x750] sm:$0xff] }
 0x2c8   : > { %v1950_v33 = vld [vmem:[%s6907_s14 + $0x1ec8] sm:$0xff]  ;;  %2609 = vmatpush.msrb.mxu2 %v1882_v32  ;;  %v999_v32 = vld [vmem:[%s6907_s14 + $0x110] sm:$0xff] }
 0x2c9   : > { %v1750_v34 = vld [vmem:[%s6907_s14 + $0x1888] sm:$0xff]  ;;  %2628 = vmatpush.msrb.mxu3 %v1950_v33  ;;  %v1067_v33 = vld [vmem:[%s6907_s14 + $0x330] sm:$0xff] }
 0x2ca   : > { %v1818_v35 = vld [vmem:[%s6907_s14 + $0x1aa8] sm:$0xff]  ;;  %2570 = vmatpush.msrb.mxu0 %v1750_v34  ;;  %v1127_v34 = vld [vmem:[%s6907_s14 + $0x510] sm:$0xff] }
 0x2cb   : > { %v1878_v37 = vld [vmem:[%s6907_s14 + $0x1c88] sm:$0xff]  ;;  %2589 = vmatpush.msrb.mxu1 %v1818_v35  ;;  %v1195_v35 = vld [vmem:[%s6907_s14 + $0x730] sm:$0xff] }
 0x2cc   : > { %v1946_v38 = vld [vmem:[%s6907_s14 + $0x1ea8] sm:$0xff]  ;;  %2610 = vmatpush.msrb.mxu2 %v1878_v37  ;;  %v1063_v37 = vld [vmem:[%s6907_s14 + $0x310] sm:$0xff] }
 0x2cd   : > { %v1746_v39 = vld [vmem:[%s6907_s14 + $0x1868] sm:$0xff]  ;;  %2629 = vmatpush.msrb.mxu3 %v1946_v38  ;;  %v1123_v38 = vld [vmem:[%s6907_s14 + $0x4f0] sm:$0xff] }
 0x2ce   : > { %v1814_v40 = vld [vmem:[%s6907_s14 + $0x1a88] sm:$0xff]  ;;  %2571 = vmatpush.msrb.mxu0 %v1746_v39  ;;  %v1191_v39 = vld [vmem:[%s6907_s14 + $0x710] sm:$0xff] }
 0x2cf   : > { %v1874_v42 = vld [vmem:[%s6907_s14 + $0x1c68] sm:$0xff]  ;;  %2590 = vmatpush.msrb.mxu1 %v1814_v40  ;;  %v991_v40 = vld [vmem:[%s6907_s14 + $0xd0] sm:$0xff] }
 0x2d0   : > { %v1942_v43 = vld [vmem:[%s6907_s14 + $0x1e88] sm:$0xff]  ;;  %2611 = vmatpush.msrb.mxu2 %v1874_v42  ;;  %v1119_v42 = vld [vmem:[%s6907_s14 + $0x4d0] sm:$0xff] }
 0x2d1   : > { %v1742_v45 = vld [vmem:[%s6907_s14 + $0x1848] sm:$0xff]  ;;  %2630 = vmatpush.msrb.mxu3 %v1942_v43  ;;  %v1187_v43 = vld [vmem:[%s6907_s14 + $0x6f0] sm:$0xff] }
 0x2d2   : > { %v1810_v46 = vld [vmem:[%s6907_s14 + $0x1a68] sm:$0xff]  ;;  %2572 = vmatpush.msrb.mxu0 %v1742_v45  ;;  %v1055_v45 = vld [vmem:[%s6907_s14 + $0x2d0] sm:$0xff] }
 0x2d3   : > { %v1870_v47 = vld [vmem:[%s6907_s14 + $0x1c48] sm:$0xff]  ;;  %2591 = vmatpush.msrb.mxu1 %v1810_v46  ;;  %v1115_v46 = vld [vmem:[%s6907_s14 + $0x4b0] sm:$0xff] }
 0x2d4   : > { %v1938_v48 = vld [vmem:[%s6907_s14 + $0x1e68] sm:$0xff]  ;;  %2612 = vmatpush.msrb.mxu2 %v1870_v47  ;;  %v1183_v47 = vld [vmem:[%s6907_s14 + $0x6d0] sm:$0xff] }
 0x2d5   : > { %v1738_v50 = vld [vmem:[%s6907_s14 + $0x1828] sm:$0xff]  ;;  %2631 = vmatpush.msrb.mxu3 %v1938_v48  ;;  %v983_v48 = vld [vmem:[%s6907_s14 + $0x90] sm:$0xff] }
 0x2d6   : > { %v1806_v51 = vld [vmem:[%s6907_s14 + $0x1a48] sm:$0xff]  ;;  %2573 = vmatpush.msrb.mxu0 %v1738_v50  ;;  %v1111_v50 = vld [vmem:[%s6907_s14 + $0x490] sm:$0xff] }
 0x2d7   : > { %v1866_v52 = vld [vmem:[%s6907_s14 + $0x1c28] sm:$0xff]  ;;  %2592 = vmatpush.msrb.mxu1 %v1806_v51  ;;  %v1179_v51 = vld [vmem:[%s6907_s14 + $0x6b0] sm:$0xff] }
 0x2d8   : > { %v1934_v53 = vld [vmem:[%s6907_s14 + $0x1e48] sm:$0xff]  ;;  %2613 = vmatpush.msrb.mxu2 %v1866_v52  ;;  %v979_v52 = vld [vmem:[%s6907_s14 + $0x70] sm:$0xff] }
 0x2d9   : > { %v1734_v55 = vld [vmem:[%s6907_s14 + $0x1808] sm:$0xff]  ;;  %2632 = vmatpush.msrb.mxu3 %v1934_v53  ;;  %v1047_v53 = vld [vmem:[%s6907_s14 + $0x290] sm:$0xff] }
 0x2da   : > { %v1802_v56 = vld [vmem:[%s6907_s14 + $0x1a28] sm:$0xff]  ;;  %2574 = vmatpush.msrb.mxu0 %v1734_v55  ;;  %v1175_v55 = vld [vmem:[%s6907_s14 + $0x690] sm:$0xff] }
 0x2db   : > { %v1862_v58 = vld [vmem:[%s6907_s14 + $0x1c08] sm:$0xff]  ;;  %2593 = vmatpush.msrb.mxu1 %v1802_v56  ;;  %v975_v56 = vld [vmem:[%s6907_s14 + $0x50] sm:$0xff] }
 0x2dc   : > { %v1930_v59 = vld [vmem:[%s6907_s14 + $0x1e28] sm:$0xff]  ;;  %2614 = vmatpush.msrb.mxu2 %v1862_v58  ;;  %2639 = vmatpush.msra.mxu0 %v1027_v61  ;;  %v1103_v58 = vld [vmem:[%s6907_s14 + $0x450] sm:$0xff] }
 0x2dd   : > { %2633 = vmatpush.msrb.mxu3 %v1930_v59  ;;  %v1798_v0 = vld [vmem:[%s6907_s14 + $0x1a08] sm:$0xff]  ;;  %2615 = vmatmul.f32.vlgmr.msrb.gmra.mxu2 %v6268_v4  ;;  %v1171_v59 = vld [vmem:[%s6907_s14 + $0x670] sm:$0xff] }
 0x2de   : > { %v1926_v1 = vld [vmem:[%s6907_s14 + $0x1e08] sm:$0xff]  ;;  %2679 = vmatpush.msra.mxu2 %v1155_v62  ;;  %2594 = vmatpush.msrb.mxu1 %v1798_v0  ;;  %v1039_v61 = vld [vmem:[%s6907_s14 + $0x250] sm:$0xff] }
 0x2df   : > { %v6267_v3 = vld [vmem:[#allocation2 + $0x60] sm:$0xff]  ;;  %2634 = vmatpush.msrb.mxu3 %v1926_v1  ;;  %2595 = vmatmul.f32.vlgmr.msrb.gmra.mxu1 %v6269_v10  ;;  %v1099_v62 = vld [vmem:[%s6907_s14 + $0x430] sm:$0xff] }
 0x2e0   : > { %2575 = vmatmul.f32.vlgmr.msrb.gmra.mxu0 %v6267_v3  ;;  %2635 = vmatmul.f32.vlgmr.msrb.gmra.mxu3 %v6270_v11  ;;  %v967_v0 = vld [vmem:[%s6907_s14 + $0x10] sm:$0xff] }
 0x2e1   : > { %2640 = vmatpush.msra.mxu0 %v1023_v5  ;;  %2659 = vmatpush.msra.mxu1 %v1091_v6  ;;  %v1035_v1 = vld [vmem:[%s6907_s14 + $0x230] sm:$0xff] }
 0x2e2   : > { %2680 = vmatpush.msra.mxu2 %v1151_v8  ;;  %2699 = vmatpush.msra.mxu3 %v1219_v9  ;;  %v1163_v3 = vld [vmem:[%s6907_s14 + $0x630] sm:$0xff] }
 0x2e3   : > { %2641 = vmatpush.msra.mxu0 %v1019_v13  ;;  %2660 = vmatpush.msra.mxu1 %v1087_v14  ;;  %v1283_v4 = vld [vmem:[%s6907_s14 + $0x9f0] sm:$0xff] }
 0x2e4   : > { %2681 = vmatpush.msra.mxu2 %v1147_v15  ;;  %2700 = vmatpush.msra.mxu3 %v1215_v16  ;;  %v1411_v5 = vld [vmem:[%s6907_s14 + $0xdf0] sm:$0xff] }
 0x2e5   : > { %2642 = vmatpush.msra.mxu0 %v1015_v17  ;;  %2661 = vmatpush.msra.mxu1 %v1083_v18  ;;  %v1031_v6 = vld [vmem:[%s6907_s14 + $0x210] sm:$0xff] }
 0x2e6   : > { %2682 = vmatpush.msra.mxu2 %v1143_v12  ;;  %2701 = vmatpush.msra.mxu3 %v1211_v19  ;;  %v1159_v7 = vld [vmem:[%s6907_s14 + $0x610] sm:$0xff] }
 0x2e7   : > { %2643 = vmatpush.msra.mxu0 %v1011_v20  ;;  %2662 = vmatpush.msra.mxu1 %v1079_v21  ;;  %v1279_v8 = vld [vmem:[%s6907_s14 + $0x9d0] sm:$0xff] }
 0x2e8   : > { %2683 = vmatpush.msra.mxu2 %v1139_v22  ;;  %2702 = vmatpush.msra.mxu3 %v1207_v23  ;;  %v1347_v9 = vld [vmem:[%s6907_s14 + $0xbf0] sm:$0xff] }
 0x2e9   : > { %2644 = vmatpush.msra.mxu0 %v1007_v24  ;;  %2663 = vmatpush.msra.mxu1 %v1075_v25  ;;  %v1407_v10 = vld [vmem:[%s6907_s14 + $0xdd0] sm:$0xff] }
 0x2ea   : > { %2684 = vmatpush.msra.mxu2 %v1135_v26  ;;  %2703 = vmatpush.msra.mxu3 %v1203_v27  ;;  %v1475_v11 = vld [vmem:[%s6907_s14 + $0xff0] sm:$0xff] }
 0x2eb   : > { %2645 = vmatpush.msra.mxu0 %v1003_v28  ;;  %2664 = vmatpush.msra.mxu1 %v1071_v29  ;;  %v1275_v13 = vld [vmem:[%s6907_s14 + $0x9b0] sm:$0xff] }
 0x2ec   : > { %2685 = vmatpush.msra.mxu2 %v1131_v30  ;;  %2704 = vmatpush.msra.mxu3 %v1199_v31  ;;  %v1343_v14 = vld [vmem:[%s6907_s14 + $0xbd0] sm:$0xff] }
 0x2ed   : > { %2646 = vmatpush.msra.mxu0 %v999_v32  ;;  %2665 = vmatpush.msra.mxu1 %v1067_v33  ;;  %v1403_v15 = vld [vmem:[%s6907_s14 + $0xdb0] sm:$0xff] }
 0x2ee   : > { %2686 = vmatpush.msra.mxu2 %v1127_v34  ;;  %2705 = vmatpush.msra.mxu3 %v1195_v35  ;;  %v1471_v16 = vld [vmem:[%s6907_s14 + $0xfd0] sm:$0xff] }
 0x2ef   : > { %2647 = vmatpush.msra.mxu0 %v995_v36  ;;  %2666 = vmatpush.msra.mxu1 %v1063_v37  ;;  %v1271_v17 = vld [vmem:[%s6907_s14 + $0x990] sm:$0xff] }
 0x2f0   : > { %2687 = vmatpush.msra.mxu2 %v1123_v38  ;;  %2706 = vmatpush.msra.mxu3 %v1191_v39  ;;  %v1339_v18 = vld [vmem:[%s6907_s14 + $0xbb0] sm:$0xff] }
 0x2f1   : > { %2648 = vmatpush.msra.mxu0 %v991_v40  ;;  %2667 = vmatpush.msra.mxu1 %v1059_v41  ;;  %v1399_v12 = vld [vmem:[%s6907_s14 + $0xd90] sm:$0xff] }
 0x2f2   : > { %2688 = vmatpush.msra.mxu2 %v1119_v42  ;;  %2707 = vmatpush.msra.mxu3 %v1187_v43  ;;  %v1467_v19 = vld [vmem:[%s6907_s14 + $0xfb0] sm:$0xff] }
 0x2f3   : > { %2649 = vmatpush.msra.mxu0 %v987_v44  ;;  %2668 = vmatpush.msra.mxu1 %v1055_v45  ;;  %v1267_v20 = vld [vmem:[%s6907_s14 + $0x970] sm:$0xff] }
 0x2f4   : > { %2689 = vmatpush.msra.mxu2 %v1115_v46  ;;  %2708 = vmatpush.msra.mxu3 %v1183_v47  ;;  %v1335_v21 = vld [vmem:[%s6907_s14 + $0xb90] sm:$0xff] }
 0x2f5   : > { %2650 = vmatpush.msra.mxu0 %v983_v48  ;;  %2669 = vmatpush.msra.mxu1 %v1051_v49  ;;  %v1395_v22 = vld [vmem:[%s6907_s14 + $0xd70] sm:$0xff] }
 0x2f6   : > { %2690 = vmatpush.msra.mxu2 %v1111_v50  ;;  %2709 = vmatpush.msra.mxu3 %v1179_v51  ;;  %v1463_v23 = vld [vmem:[%s6907_s14 + $0xf90] sm:$0xff] }
 0x2f7   : > { %2651 = vmatpush.msra.mxu0 %v979_v52  ;;  %2670 = vmatpush.msra.mxu1 %v1047_v53  ;;  %v1263_v24 = vld [vmem:[%s6907_s14 + $0x950] sm:$0xff] }
 0x2f8   : > { %2691 = vmatpush.msra.mxu2 %v1107_v54  ;;  %2710 = vmatpush.msra.mxu3 %v1175_v55  ;;  %v1331_v25 = vld [vmem:[%s6907_s14 + $0xb70] sm:$0xff] }
 0x2f9   : > { %2652 = vmatpush.msra.mxu0 %v975_v56  ;;  %2671 = vmatpush.msra.mxu1 %v1043_v57  ;;  %v1391_v26 = vld [vmem:[%s6907_s14 + $0xd50] sm:$0xff] }
 0x2fa   : > { %2692 = vmatpush.msra.mxu2 %v1103_v58  ;;  %2711 = vmatpush.msra.mxu3 %v1171_v59  ;;  %v1459_v27 = vld [vmem:[%s6907_s14 + $0xf70] sm:$0xff] }
 0x2fb   : > { %2653 = vmatpush.msra.mxu0 %v971_v60  ;;  %2672 = vmatpush.msra.mxu1 %v1039_v61  ;;  %v1259_v28 = vld [vmem:[%s6907_s14 + $0x930] sm:$0xff] }
 0x2fc   : > { %2693 = vmatpush.msra.mxu2 %v1099_v62  ;;  %2712 = vmatpush.msra.mxu3 %v1167_v63  ;;  %v1327_v29 = vld [vmem:[%s6907_s14 + $0xb50] sm:$0xff] }
 0x2fd   : > { %2654 = vmatpush.msra.mxu0 %v967_v0  ;;  %2673 = vmatpush.msra.mxu1 %v1035_v1  ;;  %v1387_v30 = vld [vmem:[%s6907_s14 + $0xd30] sm:$0xff] }
 0x2fe   : > { %2694 = vmatpush.msra.mxu2 %v1095_v2  ;;  %2713 = vmatpush.msra.mxu3 %v1163_v3  ;;  %v1455_v31 = vld [vmem:[%s6907_s14 + $0xf50] sm:$0xff] }
 0x2ff   : > { %2719 = vmatpush.msrb.mxu0 %v1283_v4  ;;  %2674 = vmatpush.msra.mxu1 %v1031_v6  ;;  %v1255_v32 = vld [vmem:[%s6907_s14 + $0x910] sm:$0xff] }
 0x300   : > { %2759 = vmatpush.msrb.mxu2 %v1411_v5  ;;  %2714 = vmatpush.msra.mxu3 %v1159_v7  ;;  %v1323_v33 = vld [vmem:[%s6907_s14 + $0xb30] sm:$0xff] }
 0x301   : > { %2720 = vmatpush.msrb.mxu0 %v1279_v8  ;;  %2739 = vmatpush.msrb.mxu1 %v1347_v9  ;;  %v1383_v34 = vld [vmem:[%s6907_s14 + $0xd10] sm:$0xff]  ;;  %v6271_v8 = vld [vmem:[#allocation2 + $0x30] sm:$0xff]  ;;  %v6272_v9 = vld [vmem:[#allocation2 + $0x58] sm:$0xff] }
 0x302   : > { %2760 = vmatpush.msrb.mxu2 %v1407_v10  ;;  %2779 = vmatpush.msrb.mxu3 %v1475_v11  ;;  %v1451_v35 = vld [vmem:[%s6907_s14 + $0xf30] sm:$0xff] }
 0x303   : > { %2721 = vmatpush.msrb.mxu0 %v1275_v13  ;;  %2740 = vmatpush.msrb.mxu1 %v1343_v14  ;;  %v1251_v36 = vld [vmem:[%s6907_s14 + $0x8f0] sm:$0xff] }
 0x304   : > { %2761 = vmatpush.msrb.mxu2 %v1403_v15  ;;  %2780 = vmatpush.msrb.mxu3 %v1471_v16  ;;  %v1319_v37 = vld [vmem:[%s6907_s14 + $0xb10] sm:$0xff]  ;;  %v6273_v15 = vld [vmem:[#allocation2] sm:$0xff]  ;;  %v6274_v16 = vld [vmem:[#allocation2 + $0x18] sm:$0xff] }
 0x305   : > { %2722 = vmatpush.msrb.mxu0 %v1271_v17  ;;  %2741 = vmatpush.msrb.mxu1 %v1339_v18  ;;  %v1379_v38 = vld [vmem:[%s6907_s14 + $0xcf0] sm:$0xff] }
 0x306   : > { %2762 = vmatpush.msrb.mxu2 %v1399_v12  ;;  %2781 = vmatpush.msrb.mxu3 %v1467_v19  ;;  %v1447_v39 = vld [vmem:[%s6907_s14 + $0xf10] sm:$0xff] }
 0x307   : > { %2723 = vmatpush.msrb.mxu0 %v1267_v20  ;;  %2742 = vmatpush.msrb.mxu1 %v1335_v21  ;;  %v1247_v40 = vld [vmem:[%s6907_s14 + $0x8d0] sm:$0xff] }
 0x308   : > { %2763 = vmatpush.msrb.mxu2 %v1395_v22  ;;  %2782 = vmatpush.msrb.mxu3 %v1463_v23  ;;  %v1315_v41 = vld [vmem:[%s6907_s14 + $0xaf0] sm:$0xff] }
 0x309   : > { %2724 = vmatpush.msrb.mxu0 %v1263_v24  ;;  %2743 = vmatpush.msrb.mxu1 %v1331_v25  ;;  %v1375_v42 = vld [vmem:[%s6907_s14 + $0xcd0] sm:$0xff] }
 0x30a   : > { %2764 = vmatpush.msrb.mxu2 %v1391_v26  ;;  %2783 = vmatpush.msrb.mxu3 %v1459_v27  ;;  %v1443_v43 = vld [vmem:[%s6907_s14 + $0xef0] sm:$0xff] }
 0x30b   : > { %2725 = vmatpush.msrb.mxu0 %v1259_v28  ;;  %2744 = vmatpush.msrb.mxu1 %v1327_v29  ;;  %v1243_v44 = vld [vmem:[%s6907_s14 + $0x8b0] sm:$0xff] }
 0x30c   : > { %2765 = vmatpush.msrb.mxu2 %v1387_v30  ;;  %2784 = vmatpush.msrb.mxu3 %v1455_v31  ;;  %v1311_v45 = vld [vmem:[%s6907_s14 + $0xad0] sm:$0xff] }
 0x30d   : > { %2726 = vmatpush.msrb.mxu0 %v1255_v32  ;;  %2745 = vmatpush.msrb.mxu1 %v1323_v33  ;;  %v1371_v46 = vld [vmem:[%s6907_s14 + $0xcb0] sm:$0xff]  ;;  %v6276_v32 = vld [vmem:[#allocation2 + $0x50] sm:$0xff] }
 0x30e   : > { %2766 = vmatpush.msrb.mxu2 %v1383_v34  ;;  %2785 = vmatpush.msrb.mxu3 %v1451_v35  ;;  %v1439_v47 = vld [vmem:[%s6907_s14 + $0xed0] sm:$0xff] }
 0x30f   : > { %2727 = vmatpush.msrb.mxu0 %v1251_v36  ;;  %2746 = vmatpush.msrb.mxu1 %v1319_v37  ;;  %v1239_v48 = vld [vmem:[%s6907_s14 + $0x890] sm:$0xff]  ;;  %v6278_v37 = vld [vmem:[%s6913_s13] sm:$0xf] }
 0x310   : > { %2767 = vmatpush.msrb.mxu2 %v1379_v38  ;;  %2786 = vmatpush.msrb.mxu3 %v1447_v39  ;;  %v1307_v49 = vld [vmem:[%s6907_s14 + $0xab0] sm:$0xff]  ;;  %v1992_v38 = vperm.slane %v6278_v37, 1  ;;  %v6282_v37 = vld [vmem:[#allocation2 + $0x20] sm:$0xff] }
 0x311   : > { %2728 = vmatpush.msrb.mxu0 %v1247_v40  ;;  %2747 = vmatpush.msrb.mxu1 %v1315_v41  ;;  %v1367_v50 = vld [vmem:[%s6907_s14 + $0xc90] sm:$0xff]  ;;  %v2336_v41 = vpop.f32.mrf.mxu0 }
 0x312   : > { %2768 = vmatpush.msrb.mxu2 %v1375_v42  ;;  %2787 = vmatpush.msrb.mxu3 %v1443_v43  ;;  %v1435_v51 = vld [vmem:[%s6907_s14 + $0xeb0] sm:$0xff] }
 0x313   : > { %2729 = vmatpush.msrb.mxu0 %v1243_v44  ;;  %2748 = vmatpush.msrb.mxu1 %v1311_v45  ;;  %v1235_v52 = vld [vmem:[%s6907_s14 + $0x870] sm:$0xff] }
 0x314   : > { %2769 = vmatpush.msrb.mxu2 %v1371_v46  ;;  %2788 = vmatpush.msrb.mxu3 %v1439_v47  ;;  %v1303_v53 = vld [vmem:[%s6907_s14 + $0xa90] sm:$0xff] }
 0x315   : > { %2730 = vmatpush.msrb.mxu0 %v1239_v48  ;;  %2749 = vmatpush.msrb.mxu1 %v1307_v49  ;;  %v1363_v54 = vld [vmem:[%s6907_s14 + $0xc70] sm:$0xff]  ;;  %v2337_v49 = vadd.f32 %v2336_v41, %v1992_v38  ;;  %v6283_v38 = vld [vmem:[#allocation2 + $0x38] sm:$0xff] }
 0x316   : > { %v1431_v55 = vld [vmem:[%s6907_s14 + $0xe90] sm:$0xff]  ;;  %2770 = vmatpush.msrb.mxu2 %v1367_v50  ;;  %2789 = vmatpush.msrb.mxu3 %v1435_v51 }
 0x317   : > { %v1231_v56 = vld [vmem:[%s6907_s14 + $0x850] sm:$0xff]  ;;  %2731 = vmatpush.msrb.mxu0 %v1235_v52  ;;  %2750 = vmatpush.msrb.mxu1 %v1303_v53  ;;  %v2356_v52 = vpop.f32.mrf.mxu1 }
 0x318   : > { %v1299_v57 = vld [vmem:[%s6907_s14 + $0xa70] sm:$0xff]  ;;  %2771 = vmatpush.msrb.mxu2 %v1363_v54  ;;  %2790 = vmatpush.msrb.mxu3 %v1431_v55 }
 0x319   : > { %v1359_v58 = vld [vmem:[%s6907_s14 + $0xc50] sm:$0xff]  ;;  %2732 = vmatpush.msrb.mxu0 %v1231_v56  ;;  %2751 = vmatpush.msrb.mxu1 %v1299_v57 }
 0x31a   : > { %v1427_v59 = vld [vmem:[%s6907_s14 + $0xe70] sm:$0xff]  ;;  %2772 = vmatpush.msrb.mxu2 %v1359_v58  ;;  %2655 = vmatmul.f32.vlgmr.msra.gmra.mxu0 %v6271_v8  ;;  %v2396_v8 = vpop.f32.mrf.mxu3 }
 0x31b   : > { %v1227_v60 = vld [vmem:[%s6907_s14 + $0x830] sm:$0xff]  ;;  %2791 = vmatpush.msrb.mxu3 %v1427_v59  ;;  %2695 = vmatmul.f32.vlgmr.msra.gmra.mxu2 %v6272_v9  ;;  %v2357_v59 = vadd.f32 %v2356_v52, %v2337_v49 }
 0x31c   : > { %v1295_v61 = vld [vmem:[%s6907_s14 + $0xa50] sm:$0xff]  ;;  %2733 = vmatpush.msrb.mxu0 %v1227_v60  ;;  %2675 = vmatmul.f32.vlgmr.msra.gmra.mxu1 %v6273_v15 }
 0x31d   : > { %v1355_v62 = vld [vmem:[%s6907_s14 + $0xc30] sm:$0xff]  ;;  %2752 = vmatpush.msrb.mxu1 %v1295_v61  ;;  %2715 = vmatmul.f32.vlgmr.msra.gmra.mxu3 %v6274_v16 }
 0x31e   : > { %v1423_v63 = vld [vmem:[%s6907_s14 + $0xe50] sm:$0xff]  ;;  %2773 = vmatpush.msrb.mxu2 %v1355_v62  ;;  %v2376_v62 = vpop.f32.mrf.mxu2 }
 0x31f   : > { %v1223_v0 = vld [vmem:[%s6907_s14 + $0x810] sm:$0xff]  ;;  %2792 = vmatpush.msrb.mxu3 %v1423_v63 }
 0x320   : > { %v1291_v1 = vld [vmem:[%s6907_s14 + $0xa30] sm:$0xff]  ;;  %2734 = vmatpush.msrb.mxu0 %v1223_v0 }
 0x321   : > { %v1351_v2 = vld [vmem:[%s6907_s14 + $0xc10] sm:$0xff]  ;;  %2753 = vmatpush.msrb.mxu1 %v1291_v1 }
 0x322   : > { %v1419_v3 = vld [vmem:[%s6907_s14 + $0xe30] sm:$0xff]  ;;  %2774 = vmatpush.msrb.mxu2 %v1351_v2  ;;  %2735 = vmatmul.f32.vlgmr.msrb.gmra.mxu0 %v6276_v32 }
 0x323   : > { %v1539_v4 = vld [vmem:[%s6907_s14 + $0x11f0] sm:$0xff]  ;;  %2793 = vmatpush.msrb.mxu3 %v1419_v3 }
 0x324   : > { %v1667_v5 = vld [vmem:[%s6907_s14 + $0x15f0] sm:$0xff]  ;;  %2799 = vmatpush.msra.mxu0 %v1539_v4 }
 0x325   : > { %v1287_v6 = vld [vmem:[%s6907_s14 + $0xa10] sm:$0xff]  ;;  %2839 = vmatpush.msra.mxu2 %v1667_v5  ;;  %v2377_v5 = vadd.f32 %v2376_v62, %v2357_v59 }
 0x326   : > { %v1415_v7 = vld [vmem:[%s6907_s14 + $0xe10] sm:$0xff]  ;;  %2754 = vmatpush.msrb.mxu1 %v1287_v6 }
 0x327   : > { %v1535_v10 = vld [vmem:[%s6907_s14 + $0x11d0] sm:$0xff]  ;;  %2794 = vmatpush.msrb.mxu3 %v1415_v7  ;;  %v2397_v16 = vadd.f32 %v2396_v8, %v2377_v5 }
 0x328   : > { %v1603_v11 = vld [vmem:[%s6907_s14 + $0x13f0] sm:$0xff]  ;;  %2800 = vmatpush.msra.mxu0 %v1535_v10 }
 0x329   : > { %v1663_v13 = vld [vmem:[%s6907_s14 + $0x15d0] sm:$0xff]  ;;  %2819 = vmatpush.msra.mxu1 %v1603_v11 }
 0x32a   : > { %v1731_v14 = vld [vmem:[%s6907_s14 + $0x17f0] sm:$0xff]  ;;  %2840 = vmatpush.msra.mxu2 %v1663_v13 }
 0x32b   : > { %v1531_v17 = vld [vmem:[%s6907_s14 + $0x11b0] sm:$0xff]  ;;  %2859 = vmatpush.msra.mxu3 %v1731_v14 }
 0x32c   : > { %v1599_v18 = vld [vmem:[%s6907_s14 + $0x13d0] sm:$0xff]  ;;  %2801 = vmatpush.msra.mxu0 %v1531_v17 }
 0x32d   : > { %v1659_v12 = vld [vmem:[%s6907_s14 + $0x15b0] sm:$0xff]  ;;  %2820 = vmatpush.msra.mxu1 %v1599_v18 }
 0x32e   : > { %v1727_v19 = vld [vmem:[%s6907_s14 + $0x17d0] sm:$0xff]  ;;  %2841 = vmatpush.msra.mxu2 %v1659_v12  ;;  %v2416_v12 = vpop.f32.mrf.mxu0 }
 0x32f   : > { %v1527_v20 = vld [vmem:[%s6907_s14 + $0x1190] sm:$0xff]  ;;  %2860 = vmatpush.msra.mxu3 %v1727_v19 }
 0x330   : > { %v1595_v21 = vld [vmem:[%s6907_s14 + $0x13b0] sm:$0xff]  ;;  %2802 = vmatpush.msra.mxu0 %v1527_v20 }
 0x331   : > { %v1655_v22 = vld [vmem:[%s6907_s14 + $0x1590] sm:$0xff]  ;;  %2821 = vmatpush.msra.mxu1 %v1595_v21 }
 0x332   : > { %v1723_v23 = vld [vmem:[%s6907_s14 + $0x17b0] sm:$0xff]  ;;  %2842 = vmatpush.msra.mxu2 %v1655_v22 }
 0x333   : > { %v1523_v24 = vld [vmem:[%s6907_s14 + $0x1170] sm:$0xff]  ;;  %2861 = vmatpush.msra.mxu3 %v1723_v23  ;;  %v2417_v23 = vadd.f32 %v2416_v12, %v2397_v16 }
 0x334   : > { %v1591_v25 = vld [vmem:[%s6907_s14 + $0x1390] sm:$0xff]  ;;  %2803 = vmatpush.msra.mxu0 %v1523_v24 }
 0x335   : > { %v1651_v26 = vld [vmem:[%s6907_s14 + $0x1570] sm:$0xff]  ;;  %2822 = vmatpush.msra.mxu1 %v1591_v25 }
 0x336   : > { %v1719_v27 = vld [vmem:[%s6907_s14 + $0x1790] sm:$0xff]  ;;  %2843 = vmatpush.msra.mxu2 %v1651_v26  ;;  %v2436_v26 = vpop.f32.mrf.mxu1 }
 0x337   : > { %v6275_v28 = vld [vmem:[#allocation2 + $0x8] sm:$0xff]  ;;  %2862 = vmatpush.msra.mxu3 %v1719_v27 }
 0x338   : > { %2775 = vmatmul.f32.vlgmr.msrb.gmra.mxu2 %v6275_v28  ;;  %v1519_v29 = vld [vmem:[%s6907_s14 + $0x1150] sm:$0xff] }
 0x339   : > { %v1587_v30 = vld [vmem:[%s6907_s14 + $0x1370] sm:$0xff]  ;;  %2804 = vmatpush.msra.mxu0 %v1519_v29  ;;  %v6280_v29 = vld [vmem:[#allocation2 + $0x40] sm:$0xff] }
 0x33a   : > { %v1647_v31 = vld [vmem:[%s6907_s14 + $0x1550] sm:$0xff]  ;;  %2823 = vmatpush.msra.mxu1 %v1587_v30  ;;  %v6281_v30 = vld [vmem:[#allocation2 + $0x10] sm:$0xff] }
 0x33b   : > { %v1715_v33 = vld [vmem:[%s6907_s14 + $0x1770] sm:$0xff]  ;;  %2844 = vmatpush.msra.mxu2 %v1647_v31 }
 0x33c   : > { %v6277_v34 = vld [vmem:[#allocation2 + $0x48] sm:$0xff]  ;;  %2863 = vmatpush.msra.mxu3 %v1715_v33  ;;  %v2437_v33 = vadd.f32 %v2436_v26, %v2417_v23 }
 0x33d   : > { %2795 = vmatmul.f32.vlgmr.msrb.gmra.mxu3 %v6277_v34  ;;  %v1515_v35 = vld [vmem:[%s6907_s14 + $0x1130] sm:$0xff] }
 0x33e   : > { %v1583_v36 = vld [vmem:[%s6907_s14 + $0x1350] sm:$0xff]  ;;  %2805 = vmatpush.msra.mxu0 %v1515_v35 }
 0x33f   : > { %v1643_v39 = vld [vmem:[%s6907_s14 + $0x1530] sm:$0xff]  ;;  %2824 = vmatpush.msra.mxu1 %v1583_v36  ;;  %v2456_v36 = vpop.f32.mrf.mxu2 }
 0x340   : > { %v1711_v40 = vld [vmem:[%s6907_s14 + $0x1750] sm:$0xff]  ;;  %2845 = vmatpush.msra.mxu2 %v1643_v39 }
 0x341   : > { %v6279_v42 = vld [vmem:[#allocation2 + $0x68] sm:$0xff]  ;;  %2864 = vmatpush.msra.mxu3 %v1711_v40 }
 0x342   : > { %2755 = vmatmul.f32.vlgmr.msrb.gmra.mxu1 %v6279_v42  ;;  %v1511_v43 = vld [vmem:[%s6907_s14 + $0x1110] sm:$0xff] }
 0x343   : > { %v1579_v44 = vld [vmem:[%s6907_s14 + $0x1330] sm:$0xff]  ;;  %2806 = vmatpush.msra.mxu0 %v1511_v43 }
 0x344   : > { %v1639_v45 = vld [vmem:[%s6907_s14 + $0x1510] sm:$0xff]  ;;  %2825 = vmatpush.msra.mxu1 %v1579_v44 }
 0x345   : > { %v1707_v46 = vld [vmem:[%s6907_s14 + $0x1730] sm:$0xff]  ;;  %2846 = vmatpush.msra.mxu2 %v1639_v45  ;;  %v2457_v45 = vadd.f32 %v2456_v36, %v2437_v33 }
 0x346   : > { %v1507_v47 = vld [vmem:[%s6907_s14 + $0x10f0] sm:$0xff]  ;;  %2865 = vmatpush.msra.mxu3 %v1707_v46 }
 0x347   : > { %v1575_v48 = vld [vmem:[%s6907_s14 + $0x1310] sm:$0xff]  ;;  %2807 = vmatpush.msra.mxu0 %v1507_v47  ;;  %v2536_v5 = vpop.f32.mrf.mxu2 }
 0x348   : > { %v1635_v50 = vld [vmem:[%s6907_s14 + $0x14f0] sm:$0xff]  ;;  %2826 = vmatpush.msra.mxu1 %v1575_v48  ;;  %v2476_v48 = vpop.f32.mrf.mxu3 }
 0x349   : > { %v1703_v51 = vld [vmem:[%s6907_s14 + $0x1710] sm:$0xff]  ;;  %2847 = vmatpush.msra.mxu2 %v1635_v50 }
 0x34a   : > { %v1503_v53 = vld [vmem:[%s6907_s14 + $0x10d0] sm:$0xff]  ;;  %2866 = vmatpush.msra.mxu3 %v1703_v51 }
 0x34b   : > { %v1571_v54 = vld [vmem:[%s6907_s14 + $0x12f0] sm:$0xff]  ;;  %2808 = vmatpush.msra.mxu0 %v1503_v53  ;;  %v2496_v53 = vpop.f32.mrf.mxu0 }
 0x34c   : > { %v1631_v55 = vld [vmem:[%s6907_s14 + $0x14d0] sm:$0xff]  ;;  %2827 = vmatpush.msra.mxu1 %v1571_v54 }
 0x34d   : > { %v1699_v56 = vld [vmem:[%s6907_s14 + $0x16f0] sm:$0xff]  ;;  %2848 = vmatpush.msra.mxu2 %v1631_v55 }
 0x34e   : > { %v1499_v57 = vld [vmem:[%s6907_s14 + $0x10b0] sm:$0xff]  ;;  %2867 = vmatpush.msra.mxu3 %v1699_v56  ;;  %v2477_v56 = vadd.f32 %v2476_v48, %v2457_v45  ;;  %v1028_v48 = vld [vmem:[%s6907_s14 + $0x1f8] sm:$0xff] }
 0x34f   : > { %v1567_v58 = vld [vmem:[%s6907_s14 + $0x12d0] sm:$0xff]  ;;  %2809 = vmatpush.msra.mxu0 %v1499_v57 }
 0x350   : > { %v1627_v60 = vld [vmem:[%s6907_s14 + $0x14b0] sm:$0xff]  ;;  %2828 = vmatpush.msra.mxu1 %v1567_v58 }
 0x351   : > { %v1695_v61 = vld [vmem:[%s6907_s14 + $0x16d0] sm:$0xff]  ;;  %2849 = vmatpush.msra.mxu2 %v1627_v60 }
 0x352   : > { %v1495_v63 = vld [vmem:[%s6907_s14 + $0x1090] sm:$0xff]  ;;  %2868 = vmatpush.msra.mxu3 %v1695_v61  ;;  %v2497_v61 = vadd.f32 %v2496_v53, %v2477_v56  ;;  %v1024_v56 = vld [vmem:[%s6907_s14 + $0x1d8] sm:$0xff] }
 0x353   : > { %v1563_v0 = vld [vmem:[%s6907_s14 + $0x12b0] sm:$0xff]  ;;  %2810 = vmatpush.msra.mxu0 %v1495_v63 }
 0x354   : > { %v1623_v1 = vld [vmem:[%s6907_s14 + $0x1490] sm:$0xff]  ;;  %2829 = vmatpush.msra.mxu1 %v1563_v0  ;;  %v2516_v0 = vpop.f32.mrf.mxu1 }
 0x355   : > { %v1691_v2 = vld [vmem:[%s6907_s14 + $0x16b0] sm:$0xff]  ;;  %2850 = vmatpush.msra.mxu2 %v1623_v1  ;;  %v2517_v8 = vadd.f32 %v2516_v0, %v2497_v61  ;;  %v6286_v61 = vld [vmem:[#allocation2 + $0x70] sm:$0xff] }
 0x356   : > { %v1491_v3 = vld [vmem:[%s6907_s14 + $0x1070] sm:$0xff]  ;;  %2869 = vmatpush.msra.mxu3 %v1691_v2  ;;  %v1088_v0 = vld [vmem:[%s6907_s14 + $0x3d8] sm:$0xff] }
 0x357   : > { %v1559_v4 = vld [vmem:[%s6907_s14 + $0x1290] sm:$0xff]  ;;  %2811 = vmatpush.msra.mxu0 %v1491_v3 }
 0x358   : > { %v1619_v6 = vld [vmem:[%s6907_s14 + $0x1470] sm:$0xff]  ;;  %2830 = vmatpush.msra.mxu1 %v1559_v4 }
 0x359   : > { %v1687_v7 = vld [vmem:[%s6907_s14 + $0x1690] sm:$0xff]  ;;  %2851 = vmatpush.msra.mxu2 %v1619_v6 }
 0x35a   : > { %v1487_v9 = vld [vmem:[%s6907_s14 + $0x1050] sm:$0xff]  ;;  %2870 = vmatpush.msra.mxu3 %v1687_v7 }
 0x35b   : > { %v1555_v10 = vld [vmem:[%s6907_s14 + $0x1270] sm:$0xff]  ;;  %2812 = vmatpush.msra.mxu0 %v1487_v9 }
 0x35c   : > { %v1615_v11 = vld [vmem:[%s6907_s14 + $0x1450] sm:$0xff]  ;;  %2831 = vmatpush.msra.mxu1 %v1555_v10  ;;  %v2596_v36 = vpop.f32.mrf.mxu1 }
 0x35d   : > { %v1683_v13 = vld [vmem:[%s6907_s14 + $0x1670] sm:$0xff]  ;;  %2852 = vmatpush.msra.mxu2 %v1615_v11 }
 0x35e   : > { %v1483_v14 = vld [vmem:[%s6907_s14 + $0x1030] sm:$0xff]  ;;  %2871 = vmatpush.msra.mxu3 %v1683_v13 }
 0x35f   : > { %v1551_v15 = vld [vmem:[%s6907_s14 + $0x1250] sm:$0xff]  ;;  %2813 = vmatpush.msra.mxu0 %v1483_v14  ;;  %v2537_v14 = vadd.f32 %v2536_v5, %v2517_v8  ;;  %v1144_v5 = vld [vmem:[%s6907_s14 + $0x598] sm:$0xff] }
 0x360   : > { %v1611_v17 = vld [vmem:[%s6907_s14 + $0x1430] sm:$0xff]  ;;  %2832 = vmatpush.msra.mxu1 %v1551_v15  ;;  %v1080_v8 = vld [vmem:[%s6907_s14 + $0x398] sm:$0xff] }
 0x361   : > { %v1679_v18 = vld [vmem:[%s6907_s14 + $0x1650] sm:$0xff]  ;;  %2853 = vmatpush.msra.mxu2 %v1611_v17  ;;  %v2556_v17 = vpop.f32.mrf.mxu3 }
 0x362   : > { %v1479_v19 = vld [vmem:[%s6907_s14 + $0x1010] sm:$0xff]  ;;  %2872 = vmatpush.msra.mxu3 %v1679_v18  ;;  %v2557_v23 = vadd.f32 %v2556_v17, %v2537_v14  ;;  %v1136_v14 = vld [vmem:[%s6907_s14 + $0x558] sm:$0xff] }
 0x363   : > { %v1547_v20 = vld [vmem:[%s6907_s14 + $0x1230] sm:$0xff]  ;;  %2814 = vmatpush.msra.mxu0 %v1479_v19  ;;  %v1072_v17 = vld [vmem:[%s6907_s14 + $0x358] sm:$0xff] }
 0x364   : > { %v1607_v21 = vld [vmem:[%s6907_s14 + $0x1410] sm:$0xff]  ;;  %2833 = vmatpush.msra.mxu1 %v1547_v20  ;;  %2815 = vmatmul.f32.vlgmr.msra.gmra.mxu0 %v6280_v29 }
 0x365   : > { %v1675_v22 = vld [vmem:[%s6907_s14 + $0x1630] sm:$0xff]  ;;  %2854 = vmatpush.msra.mxu2 %v1607_v21 }
 0x366   : > { %v1795_v24 = vld [vmem:[%s6907_s14 + $0x19f0] sm:$0xff]  ;;  %2873 = vmatpush.msra.mxu3 %v1675_v22  ;;  %2855 = vmatmul.f32.vlgmr.msra.gmra.mxu2 %v6281_v30 }
 0x367   : > { %v1923_v25 = vld [vmem:[%s6907_s14 + $0x1df0] sm:$0xff]  ;;  %2879 = vmatpush.msrb.mxu0 %v1795_v24 }
 0x368   : > { %v1543_v27 = vld [vmem:[%s6907_s14 + $0x1210] sm:$0xff]  ;;  %2919 = vmatpush.msrb.mxu2 %v1923_v25 }
 0x369   : > { %v1671_v28 = vld [vmem:[%s6907_s14 + $0x1610] sm:$0xff]  ;;  %2834 = vmatpush.msra.mxu1 %v1543_v27 }
 0x36a   : > { %v1791_v31 = vld [vmem:[%s6907_s14 + $0x19d0] sm:$0xff]  ;;  %2874 = vmatpush.msra.mxu3 %v1671_v28  ;;  %2835 = vmatmul.f32.vlgmr.msra.gmra.mxu1 %v6282_v37  ;;  %v2576_v28 = vpop.f32.mrf.mxu0 }
 0x36b   : > { %v1859_v32 = vld [vmem:[%s6907_s14 + $0x1bf0] sm:$0xff]  ;;  %2875 = vmatmul.f32.vlgmr.msra.gmra.mxu3 %v6283_v38  ;;  %2880 = vmatpush.msrb.mxu0 %v1791_v31  ;;  %v2577_v31 = vadd.f32 %v2576_v28, %v2557_v23  ;;  %v996_v23 = vld [vmem:[%s6907_s14 + $0xf8] sm:$0xff] }
 0x36c   : > { %v1919_v34 = vld [vmem:[%s6907_s14 + $0x1dd0] sm:$0xff]  ;;  %2899 = vmatpush.msrb.mxu1 %v1859_v32  ;;  %v1060_v28 = vld [vmem:[%s6907_s14 + $0x2f8] sm:$0xff] }
 0x36d   : > { %v1987_v35 = vld [vmem:[%s6907_s14 + $0x1ff0] sm:$0xff]  ;;  %2920 = vmatpush.msrb.mxu2 %v1919_v34 }
 0x36e   : > { %v1787_v39 = vld [vmem:[%s6907_s14 + $0x19b0] sm:$0xff]  ;;  %2939 = vmatpush.msrb.mxu3 %v1987_v35 }
 0x36f   : > { %v1855_v40 = vld [vmem:[%s6907_s14 + $0x1bd0] sm:$0xff]  ;;  %2881 = vmatpush.msrb.mxu0 %v1787_v39 }
 0x370   : > { %v1915_v41 = vld [vmem:[%s6907_s14 + $0x1db0] sm:$0xff]  ;;  %2900 = vmatpush.msrb.mxu1 %v1855_v40 }
 0x371   : > { %v1983_v42 = vld [vmem:[%s6907_s14 + $0x1fd0] sm:$0xff]  ;;  %2921 = vmatpush.msrb.mxu2 %v1915_v41  ;;  %v2597_v41 = vadd.f32 %v2596_v36, %v2577_v31  ;;  %v988_v31 = vld [vmem:[%s6907_s14 + $0xb8] sm:$0xff] }
 0x372   : > { %v1783_v43 = vld [vmem:[%s6907_s14 + $0x1990] sm:$0xff]  ;;  %2940 = vmatpush.msrb.mxu3 %v1983_v42  ;;  %v1052_v36 = vld [vmem:[%s6907_s14 + $0x2b8] sm:$0xff] }
 0x373   : > { %v1851_v44 = vld [vmem:[%s6907_s14 + $0x1bb0] sm:$0xff]  ;;  %2882 = vmatpush.msrb.mxu0 %v1783_v43 }
 0x374   : > { %v1911_v46 = vld [vmem:[%s6907_s14 + $0x1d90] sm:$0xff]  ;;  %2901 = vmatpush.msrb.mxu1 %v1851_v44  ;;  %v2616_v44 = vpop.f32.mrf.mxu2 }
 0x375   : > { %v1979_v47 = vld [vmem:[%s6907_s14 + $0x1fb0] sm:$0xff]  ;;  %2922 = vmatpush.msrb.mxu2 %v1911_v46 }
 0x376   : > { %v1779_v49 = vld [vmem:[%s6907_s14 + $0x1970] sm:$0xff]  ;;  %2941 = vmatpush.msrb.mxu3 %v1979_v47  ;;  %v2617_v47 = vadd.f32 %v2616_v44, %v2597_v41  ;;  %v1108_v41 = vld [vmem:[%s6907_s14 + $0x478] sm:$0xff] }
 0x377   : > { %v1847_v50 = vld [vmem:[%s6907_s14 + $0x1b90] sm:$0xff]  ;;  %2883 = vmatpush.msrb.mxu0 %v1779_v49  ;;  %v1156_v49 = vld [vmem:[%s6907_s14 + $0x5f8] sm:$0xff] }
 0x378   : > { %v1907_v51 = vld [vmem:[%s6907_s14 + $0x1d70] sm:$0xff]  ;;  %2902 = vmatpush.msrb.mxu1 %v1847_v50  ;;  %v2636_v50 = vpop.f32.mrf.mxu3  ;;  %v1044_v44 = vld [vmem:[%s6907_s14 + $0x278] sm:$0xff] }
 0x379   : > { %v1975_v52 = vld [vmem:[%s6907_s14 + $0x1f90] sm:$0xff]  ;;  %2923 = vmatpush.msrb.mxu2 %v1907_v51  ;;  %v2637_v53 = vadd.f32 %v2636_v50, %v2617_v47  ;;  %v972_v47 = vld [vmem:[%s6907_s14 + $0x38] sm:$0xff] }
 0x37a   : > { %v1775_v54 = vld [vmem:[%s6907_s14 + $0x1950] sm:$0xff]  ;;  %2942 = vmatpush.msrb.mxu3 %v1975_v52  ;;  %v1168_v50 = vld [vmem:[%s6907_s14 + $0x658] sm:$0xff] }
 0x37b   : > { %v1843_v55 = vld [vmem:[%s6907_s14 + $0x1b70] sm:$0xff]  ;;  %2884 = vmatpush.msrb.mxu0 %v1775_v54  ;;  %v6284_v54 = vld [vmem:[#allocation2 + $0x60] sm:$0xff] }
 0x37c   : > { %v1903_v57 = vld [vmem:[%s6907_s14 + $0x1d50] sm:$0xff]  ;;  %2903 = vmatpush.msrb.mxu1 %v1843_v55  ;;  %v6285_v55 = vld [vmem:[#allocation2 + $0x78] sm:$0xff] }
 0x37d   : > { %v1971_v58 = vld [vmem:[%s6907_s14 + $0x1f70] sm:$0xff]  ;;  %2924 = vmatpush.msrb.mxu2 %v1903_v57  ;;  %v1092_v57 = vld [vmem:[%s6907_s14 + $0x3f8] sm:$0xff] }
 0x37e   : > { %v1771_v59 = vld [vmem:[%s6907_s14 + $0x1930] sm:$0xff]  ;;  %2943 = vmatpush.msrb.mxu3 %v1971_v58  ;;  %v3280_v58 = vmax.f32 %v2637_v53, 0.0  ;;  %v1096_v53 = vld [vmem:[%s6907_s14 + $0x418] sm:$0xff] }
 0x37f   : > { %v1839_v60 = vld [vmem:[%s6907_s14 + $0x1b50] sm:$0xff]  ;;  %2885 = vmatpush.msrb.mxu0 %v1771_v59  ;;  %v1152_v59 = vld [vmem:[%s6907_s14 + $0x5d8] sm:$0xff] }
 0x380   : > { %v1899_v62 = vld [vmem:[%s6907_s14 + $0x1d30] sm:$0xff]  ;;  %2904 = vmatpush.msrb.mxu1 %v1839_v60  ;;  %v1220_v60 = vld [vmem:[%s6907_s14 + $0x7f8] sm:$0xff]  ;;  %3288 = vst [vmem:[%s7486_s28 + $0x8] sm:$0xff] %v3280_v58 }
 0x381   : > { %v1967_v63 = vld [vmem:[%s6907_s14 + $0x1f50] sm:$0xff]  ;;  %2925 = vmatpush.msrb.mxu2 %v1899_v62  ;;  %v1160_v58 = vld [vmem:[%s6907_s14 + $0x618] sm:$0xff] }
 0x382   : > { %v1767_v1 = vld [vmem:[%s6907_s14 + $0x1910] sm:$0xff]  ;;  %2944 = vmatpush.msrb.mxu3 %v1967_v63  ;;  %v1020_v63 = vld [vmem:[%s6907_s14 + $0x1b8] sm:$0xff] }
 0x383   : > { %v1835_v2 = vld [vmem:[%s6907_s14 + $0x1b30] sm:$0xff]  ;;  %2886 = vmatpush.msrb.mxu0 %v1767_v1  ;;  %v1148_v1 = vld [vmem:[%s6907_s14 + $0x5b8] sm:$0xff] }
 0x384   : > { %v1895_v3 = vld [vmem:[%s6907_s14 + $0x1d10] sm:$0xff]  ;;  %2905 = vmatpush.msrb.mxu1 %v1835_v2  ;;  %v1216_v2 = vld [vmem:[%s6907_s14 + $0x7d8] sm:$0xff] }
 0x385   : > { %v1963_v4 = vld [vmem:[%s6907_s14 + $0x1f30] sm:$0xff]  ;;  %2926 = vmatpush.msrb.mxu2 %v1895_v3  ;;  %v1016_v3 = vld [vmem:[%s6907_s14 + $0x198] sm:$0xff] }
 0x386   : > { %v1763_v6 = vld [vmem:[%s6907_s14 + $0x18f0] sm:$0xff]  ;;  %2945 = vmatpush.msrb.mxu3 %v1963_v4  ;;  %v1084_v4 = vld [vmem:[%s6907_s14 + $0x3b8] sm:$0xff] }
 0x387   : > { %v1831_v7 = vld [vmem:[%s6907_s14 + $0x1b10] sm:$0xff]  ;;  %2887 = vmatpush.msrb.mxu0 %v1763_v6  ;;  %v1212_v6 = vld [vmem:[%s6907_s14 + $0x7b8] sm:$0xff] }
 0x388   : > { %v1891_v9 = vld [vmem:[%s6907_s14 + $0x1cf0] sm:$0xff]  ;;  %2906 = vmatpush.msrb.mxu1 %v1831_v7  ;;  %v1012_v7 = vld [vmem:[%s6907_s14 + $0x178] sm:$0xff] }
 0x389   : > { %v1959_v10 = vld [vmem:[%s6907_s14 + $0x1f10] sm:$0xff]  ;;  %2927 = vmatpush.msrb.mxu2 %v1891_v9  ;;  %v1140_v9 = vld [vmem:[%s6907_s14 + $0x578] sm:$0xff] }
 0x38a   : > { %v1759_v11 = vld [vmem:[%s6907_s14 + $0x18d0] sm:$0xff]  ;;  %2946 = vmatpush.msrb.mxu3 %v1959_v10  ;;  %v1208_v10 = vld [vmem:[%s6907_s14 + $0x798] sm:$0xff] }
 0x38b   : > { %v1827_v13 = vld [vmem:[%s6907_s14 + $0x1af0] sm:$0xff]  ;;  %2888 = vmatpush.msrb.mxu0 %v1759_v11  ;;  %v1008_v11 = vld [vmem:[%s6907_s14 + $0x158] sm:$0xff] }
 0x38c   : > { %v1887_v15 = vld [vmem:[%s6907_s14 + $0x1cd0] sm:$0xff]  ;;  %2907 = vmatpush.msrb.mxu1 %v1827_v13  ;;  %v1076_v13 = vld [vmem:[%s6907_s14 + $0x378] sm:$0xff] }
 0x38d   : > { %v1955_v16 = vld [vmem:[%s6907_s14 + $0x1ef0] sm:$0xff]  ;;  %2928 = vmatpush.msrb.mxu2 %v1887_v15  ;;  %v1204_v15 = vld [vmem:[%s6907_s14 + $0x778] sm:$0xff] }
 0x38e   : > { %v1755_v18 = vld [vmem:[%s6907_s14 + $0x18b0] sm:$0xff]  ;;  %2947 = vmatpush.msrb.mxu3 %v1955_v16  ;;  %v1004_v16 = vld [vmem:[%s6907_s14 + $0x138] sm:$0xff] }
 0x38f   : > { %v1823_v12 = vld [vmem:[%s6907_s14 + $0x1ad0] sm:$0xff]  ;;  %2889 = vmatpush.msrb.mxu0 %v1755_v18  ;;  %v1132_v18 = vld [vmem:[%s6907_s14 + $0x538] sm:$0xff] }
 0x390   : > { %v1883_v19 = vld [vmem:[%s6907_s14 + $0x1cb0] sm:$0xff]  ;;  %2908 = vmatpush.msrb.mxu1 %v1823_v12  ;;  %v1200_v12 = vld [vmem:[%s6907_s14 + $0x758] sm:$0xff] }
 0x391   : > { %v1951_v20 = vld [vmem:[%s6907_s14 + $0x1ed0] sm:$0xff]  ;;  %2929 = vmatpush.msrb.mxu2 %v1883_v19  ;;  %v1000_v19 = vld [vmem:[%s6907_s14 + $0x118] sm:$0xff] }
 0x392   : > { %v1751_v21 = vld [vmem:[%s6907_s14 + $0x1890] sm:$0xff]  ;;  %2948 = vmatpush.msrb.mxu3 %v1951_v20  ;;  %v1068_v20 = vld [vmem:[%s6907_s14 + $0x338] sm:$0xff] }
 0x393   : > { %v1819_v22 = vld [vmem:[%s6907_s14 + $0x1ab0] sm:$0xff]  ;;  %2890 = vmatpush.msrb.mxu0 %v1751_v21  ;;  %v1128_v21 = vld [vmem:[%s6907_s14 + $0x518] sm:$0xff] }
 0x394   : > { %v1879_v24 = vld [vmem:[%s6907_s14 + $0x1c90] sm:$0xff]  ;;  %2909 = vmatpush.msrb.mxu1 %v1819_v22  ;;  %v1196_v22 = vld [vmem:[%s6907_s14 + $0x738] sm:$0xff] }
 0x395   : > { %v1947_v25 = vld [vmem:[%s6907_s14 + $0x1eb0] sm:$0xff]  ;;  %2930 = vmatpush.msrb.mxu2 %v1879_v24  ;;  %v1064_v24 = vld [vmem:[%s6907_s14 + $0x318] sm:$0xff] }
 0x396   : > { %v1747_v26 = vld [vmem:[%s6907_s14 + $0x1870] sm:$0xff]  ;;  %2949 = vmatpush.msrb.mxu3 %v1947_v25  ;;  %v1124_v25 = vld [vmem:[%s6907_s14 + $0x4f8] sm:$0xff] }
 0x397   : > { %v1815_v27 = vld [vmem:[%s6907_s14 + $0x1a90] sm:$0xff]  ;;  %2891 = vmatpush.msrb.mxu0 %v1747_v26  ;;  %v1192_v26 = vld [vmem:[%s6907_s14 + $0x718] sm:$0xff] }
 0x398   : > { %v1875_v29 = vld [vmem:[%s6907_s14 + $0x1c70] sm:$0xff]  ;;  %2910 = vmatpush.msrb.mxu1 %v1815_v27  ;;  %v992_v27 = vld [vmem:[%s6907_s14 + $0xd8] sm:$0xff] }
 0x399   : > { %v1943_v30 = vld [vmem:[%s6907_s14 + $0x1e90] sm:$0xff]  ;;  %2931 = vmatpush.msrb.mxu2 %v1875_v29  ;;  %v1120_v29 = vld [vmem:[%s6907_s14 + $0x4d8] sm:$0xff] }
 0x39a   : > { %v1743_v32 = vld [vmem:[%s6907_s14 + $0x1850] sm:$0xff]  ;;  %2950 = vmatpush.msrb.mxu3 %v1943_v30  ;;  %v1188_v30 = vld [vmem:[%s6907_s14 + $0x6f8] sm:$0xff] }
 0x39b   : > { %v1811_v33 = vld [vmem:[%s6907_s14 + $0x1a70] sm:$0xff]  ;;  %2892 = vmatpush.msrb.mxu0 %v1743_v32  ;;  %v1056_v32 = vld [vmem:[%s6907_s14 + $0x2d8] sm:$0xff] }
 0x39c   : > { %v1871_v34 = vld [vmem:[%s6907_s14 + $0x1c50] sm:$0xff]  ;;  %2911 = vmatpush.msrb.mxu1 %v1811_v33  ;;  %v1116_v33 = vld [vmem:[%s6907_s14 + $0x4b8] sm:$0xff] }
 0x39d   : > { %v1939_v35 = vld [vmem:[%s6907_s14 + $0x1e70] sm:$0xff]  ;;  %2932 = vmatpush.msrb.mxu2 %v1871_v34  ;;  %v1184_v34 = vld [vmem:[%s6907_s14 + $0x6d8] sm:$0xff] }
 0x39e   : > { %v1739_v37 = vld [vmem:[%s6907_s14 + $0x1830] sm:$0xff]  ;;  %2951 = vmatpush.msrb.mxu3 %v1939_v35  ;;  %v984_v35 = vld [vmem:[%s6907_s14 + $0x98] sm:$0xff] }
 0x39f   : > { %v1807_v38 = vld [vmem:[%s6907_s14 + $0x1a50] sm:$0xff]  ;;  %2893 = vmatpush.msrb.mxu0 %v1739_v37  ;;  %v1112_v37 = vld [vmem:[%s6907_s14 + $0x498] sm:$0xff] }
 0x3a0   : > { %v1867_v39 = vld [vmem:[%s6907_s14 + $0x1c30] sm:$0xff]  ;;  %2912 = vmatpush.msrb.mxu1 %v1807_v38  ;;  %v1180_v38 = vld [vmem:[%s6907_s14 + $0x6b8] sm:$0xff] }
 0x3a1   : > { %v1935_v40 = vld [vmem:[%s6907_s14 + $0x1e50] sm:$0xff]  ;;  %2933 = vmatpush.msrb.mxu2 %v1867_v39  ;;  %v980_v39 = vld [vmem:[%s6907_s14 + $0x78] sm:$0xff] }
 0x3a2   : > { %v1735_v42 = vld [vmem:[%s6907_s14 + $0x1810] sm:$0xff]  ;;  %2952 = vmatpush.msrb.mxu3 %v1935_v40  ;;  %v1048_v40 = vld [vmem:[%s6907_s14 + $0x298] sm:$0xff] }
 0x3a3   : > { %v1803_v43 = vld [vmem:[%s6907_s14 + $0x1a30] sm:$0xff]  ;;  %2894 = vmatpush.msrb.mxu0 %v1735_v42  ;;  %v1176_v42 = vld [vmem:[%s6907_s14 + $0x698] sm:$0xff] }
 0x3a4   : > { %v1863_v45 = vld [vmem:[%s6907_s14 + $0x1c10] sm:$0xff]  ;;  %2913 = vmatpush.msrb.mxu1 %v1803_v43  ;;  %2895 = vmatmul.f32.vlgmr.msrb.gmra.mxu0 %v6284_v54  ;;  %v976_v43 = vld [vmem:[%s6907_s14 + $0x58] sm:$0xff] }
 0x3a5   : > { %v1931_v46 = vld [vmem:[%s6907_s14 + $0x1e30] sm:$0xff]  ;;  %2934 = vmatpush.msrb.mxu2 %v1863_v45  ;;  %2959 = vmatpush.msra.mxu0 %v1028_v48  ;;  %v1104_v45 = vld [vmem:[%s6907_s14 + $0x458] sm:$0xff] }
 0x3a6   : > { %2953 = vmatpush.msrb.mxu3 %v1931_v46  ;;  %v1799_v51 = vld [vmem:[%s6907_s14 + $0x1a10] sm:$0xff]  ;;  %2935 = vmatmul.f32.vlgmr.msrb.gmra.mxu2 %v6285_v55  ;;  %v1172_v46 = vld [vmem:[%s6907_s14 + $0x678] sm:$0xff] }
 0x3a7   : > { %v1927_v52 = vld [vmem:[%s6907_s14 + $0x1e10] sm:$0xff]  ;;  %2999 = vmatpush.msra.mxu2 %v1156_v49  ;;  %2914 = vmatpush.msrb.mxu1 %v1799_v51  ;;  %v1040_v48 = vld [vmem:[%s6907_s14 + $0x258] sm:$0xff] }
 0x3a8   : > { %2954 = vmatpush.msrb.mxu3 %v1927_v52  ;;  %2915 = vmatmul.f32.vlgmr.msrb.gmra.mxu1 %v6286_v61  ;;  %v6287_v62 = vld [vmem:[#allocation2 + $0x28] sm:$0xff]  ;;  %v1100_v49 = vld [vmem:[%s6907_s14 + $0x438] sm:$0xff] }
 0x3a9   : > { %2955 = vmatmul.f32.vlgmr.msrb.gmra.mxu3 %v6287_v62  ;;  %2960 = vmatpush.msra.mxu0 %v1024_v56  ;;  %v968_v51 = vld [vmem:[%s6907_s14 + $0x18] sm:$0xff] }
 0x3aa   : > { %2979 = vmatpush.msra.mxu1 %v1092_v57  ;;  %3000 = vmatpush.msra.mxu2 %v1152_v59  ;;  %v1036_v52 = vld [vmem:[%s6907_s14 + $0x238] sm:$0xff] }
 0x3ab   : > { %3019 = vmatpush.msra.mxu3 %v1220_v60  ;;  %2961 = vmatpush.msra.mxu0 %v1020_v63  ;;  %v1164_v54 = vld [vmem:[%s6907_s14 + $0x638] sm:$0xff] }
 0x3ac   : > { %2980 = vmatpush.msra.mxu1 %v1088_v0  ;;  %3001 = vmatpush.msra.mxu2 %v1148_v1  ;;  %v1284_v55 = vld [vmem:[%s6907_s14 + $0x9f8] sm:$0xff] }
 0x3ad   : > { %3020 = vmatpush.msra.mxu3 %v1216_v2  ;;  %2962 = vmatpush.msra.mxu0 %v1016_v3  ;;  %v1412_v56 = vld [vmem:[%s6907_s14 + $0xdf8] sm:$0xff] }
 0x3ae   : > { %2981 = vmatpush.msra.mxu1 %v1084_v4  ;;  %3002 = vmatpush.msra.mxu2 %v1144_v5  ;;  %v1032_v57 = vld [vmem:[%s6907_s14 + $0x218] sm:$0xff] }
 0x3af   : > { %3021 = vmatpush.msra.mxu3 %v1212_v6  ;;  %2963 = vmatpush.msra.mxu0 %v1012_v7  ;;  %v1280_v59 = vld [vmem:[%s6907_s14 + $0x9d8] sm:$0xff] }
 0x3b0   : > { %2982 = vmatpush.msra.mxu1 %v1080_v8  ;;  %3003 = vmatpush.msra.mxu2 %v1140_v9  ;;  %v1348_v60 = vld [vmem:[%s6907_s14 + $0xbf8] sm:$0xff] }
 0x3b1   : > { %3022 = vmatpush.msra.mxu3 %v1208_v10  ;;  %2964 = vmatpush.msra.mxu0 %v1008_v11  ;;  %v1408_v61 = vld [vmem:[%s6907_s14 + $0xdd8] sm:$0xff] }
 0x3b2   : > { %2983 = vmatpush.msra.mxu1 %v1076_v13  ;;  %3004 = vmatpush.msra.mxu2 %v1136_v14  ;;  %v1476_v62 = vld [vmem:[%s6907_s14 + $0xff8] sm:$0xff] }
 0x3b3   : > { %3023 = vmatpush.msra.mxu3 %v1204_v15  ;;  %2965 = vmatpush.msra.mxu0 %v1004_v16  ;;  %v1276_v63 = vld [vmem:[%s6907_s14 + $0x9b8] sm:$0xff] }
 0x3b4   : > { %2984 = vmatpush.msra.mxu1 %v1072_v17  ;;  %3005 = vmatpush.msra.mxu2 %v1132_v18  ;;  %v1344_v0 = vld [vmem:[%s6907_s14 + $0xbd8] sm:$0xff] }
 0x3b5   : > { %3024 = vmatpush.msra.mxu3 %v1200_v12  ;;  %2966 = vmatpush.msra.mxu0 %v1000_v19  ;;  %v1404_v1 = vld [vmem:[%s6907_s14 + $0xdb8] sm:$0xff] }
 0x3b6   : > { %2985 = vmatpush.msra.mxu1 %v1068_v20  ;;  %3006 = vmatpush.msra.mxu2 %v1128_v21  ;;  %v1472_v2 = vld [vmem:[%s6907_s14 + $0xfd8] sm:$0xff] }
 0x3b7   : > { %3025 = vmatpush.msra.mxu3 %v1196_v22  ;;  %2967 = vmatpush.msra.mxu0 %v996_v23  ;;  %v1272_v3 = vld [vmem:[%s6907_s14 + $0x998] sm:$0xff] }
 0x3b8   : > { %2986 = vmatpush.msra.mxu1 %v1064_v24  ;;  %3007 = vmatpush.msra.mxu2 %v1124_v25  ;;  %v1340_v4 = vld [vmem:[%s6907_s14 + $0xbb8] sm:$0xff] }
 0x3b9   : > { %3026 = vmatpush.msra.mxu3 %v1192_v26  ;;  %2968 = vmatpush.msra.mxu0 %v992_v27  ;;  %v1400_v5 = vld [vmem:[%s6907_s14 + $0xd98] sm:$0xff] }
 0x3ba   : > { %2987 = vmatpush.msra.mxu1 %v1060_v28  ;;  %3008 = vmatpush.msra.mxu2 %v1120_v29  ;;  %v1468_v6 = vld [vmem:[%s6907_s14 + $0xfb8] sm:$0xff] }
 0x3bb   : > { %3027 = vmatpush.msra.mxu3 %v1188_v30  ;;  %2969 = vmatpush.msra.mxu0 %v988_v31  ;;  %v1268_v7 = vld [vmem:[%s6907_s14 + $0x978] sm:$0xff] }
 0x3bc   : > { %2988 = vmatpush.msra.mxu1 %v1056_v32  ;;  %3009 = vmatpush.msra.mxu2 %v1116_v33  ;;  %v1336_v8 = vld [vmem:[%s6907_s14 + $0xb98] sm:$0xff] }
 0x3bd   : > { %3028 = vmatpush.msra.mxu3 %v1184_v34  ;;  %2970 = vmatpush.msra.mxu0 %v984_v35  ;;  %v1396_v9 = vld [vmem:[%s6907_s14 + $0xd78] sm:$0xff] }
 0x3be   : > { %2989 = vmatpush.msra.mxu1 %v1052_v36  ;;  %3010 = vmatpush.msra.mxu2 %v1112_v37  ;;  %v1464_v10 = vld [vmem:[%s6907_s14 + $0xf98] sm:$0xff] }
 0x3bf   : > { %3029 = vmatpush.msra.mxu3 %v1180_v38  ;;  %2971 = vmatpush.msra.mxu0 %v980_v39  ;;  %v1264_v11 = vld [vmem:[%s6907_s14 + $0x958] sm:$0xff] }
 0x3c0   : > { %2990 = vmatpush.msra.mxu1 %v1048_v40  ;;  %3011 = vmatpush.msra.mxu2 %v1108_v41  ;;  %v1332_v13 = vld [vmem:[%s6907_s14 + $0xb78] sm:$0xff] }
 0x3c1   : > { %3030 = vmatpush.msra.mxu3 %v1176_v42  ;;  %2972 = vmatpush.msra.mxu0 %v976_v43  ;;  %v1392_v14 = vld [vmem:[%s6907_s14 + $0xd58] sm:$0xff] }
 0x3c2   : > { %2991 = vmatpush.msra.mxu1 %v1044_v44  ;;  %3012 = vmatpush.msra.mxu2 %v1104_v45  ;;  %v1460_v15 = vld [vmem:[%s6907_s14 + $0xf78] sm:$0xff] }
 0x3c3   : > { %3031 = vmatpush.msra.mxu3 %v1172_v46  ;;  %2973 = vmatpush.msra.mxu0 %v972_v47  ;;  %v1260_v16 = vld [vmem:[%s6907_s14 + $0x938] sm:$0xff] }
 0x3c4   : > { %2992 = vmatpush.msra.mxu1 %v1040_v48  ;;  %3013 = vmatpush.msra.mxu2 %v1100_v49  ;;  %v1328_v17 = vld [vmem:[%s6907_s14 + $0xb58] sm:$0xff] }
 0x3c5   : > { %3032 = vmatpush.msra.mxu3 %v1168_v50  ;;  %2974 = vmatpush.msra.mxu0 %v968_v51  ;;  %v1388_v18 = vld [vmem:[%s6907_s14 + $0xd38] sm:$0xff] }
 0x3c6   : > { %2993 = vmatpush.msra.mxu1 %v1036_v52  ;;  %3014 = vmatpush.msra.mxu2 %v1096_v53  ;;  %v1456_v12 = vld [vmem:[%s6907_s14 + $0xf58] sm:$0xff] }
 0x3c7   : > { %3033 = vmatpush.msra.mxu3 %v1164_v54  ;;  %3039 = vmatpush.msrb.mxu0 %v1284_v55  ;;  %v1256_v19 = vld [vmem:[%s6907_s14 + $0x918] sm:$0xff] }
 0x3c8   : > { %3079 = vmatpush.msrb.mxu2 %v1412_v56  ;;  %2994 = vmatpush.msra.mxu1 %v1032_v57  ;;  %v1324_v20 = vld [vmem:[%s6907_s14 + $0xb38] sm:$0xff] }
 0x3c9   : > { %3034 = vmatpush.msra.mxu3 %v1160_v58  ;;  %3040 = vmatpush.msrb.mxu0 %v1280_v59  ;;  %v1384_v21 = vld [vmem:[%s6907_s14 + $0xd18] sm:$0xff] }
 0x3ca   : > { %3059 = vmatpush.msrb.mxu1 %v1348_v60  ;;  %3080 = vmatpush.msrb.mxu2 %v1408_v61  ;;  %v1452_v22 = vld [vmem:[%s6907_s14 + $0xf38] sm:$0xff]  ;;  %v6289_v60 = vld [vmem:[#allocation2 + $0x58] sm:$0xff] }
 0x3cb   : > { %3099 = vmatpush.msrb.mxu3 %v1476_v62  ;;  %3041 = vmatpush.msrb.mxu0 %v1276_v63  ;;  %v1252_v23 = vld [vmem:[%s6907_s14 + $0x8f8] sm:$0xff] }
 0x3cc   : > { %3060 = vmatpush.msrb.mxu1 %v1344_v0  ;;  %3081 = vmatpush.msrb.mxu2 %v1404_v1  ;;  %v1320_v24 = vld [vmem:[%s6907_s14 + $0xb18] sm:$0xff]  ;;  %v6290_v1 = vld [vmem:[#allocation2] sm:$0xff] }
 0x3cd   : > { %3100 = vmatpush.msrb.mxu3 %v1472_v2  ;;  %3042 = vmatpush.msrb.mxu0 %v1272_v3  ;;  %v1380_v25 = vld [vmem:[%s6907_s14 + $0xcf8] sm:$0xff]  ;;  %v6291_v2 = vld [vmem:[#allocation2 + $0x18] sm:$0xff] }
 0x3ce   : > { %3061 = vmatpush.msrb.mxu1 %v1340_v4  ;;  %3082 = vmatpush.msrb.mxu2 %v1400_v5  ;;  %v1448_v26 = vld [vmem:[%s6907_s14 + $0xf18] sm:$0xff] }
 0x3cf   : > { %3101 = vmatpush.msrb.mxu3 %v1468_v6  ;;  %3043 = vmatpush.msrb.mxu0 %v1268_v7  ;;  %v1248_v27 = vld [vmem:[%s6907_s14 + $0x8d8] sm:$0xff] }
 0x3d0   : > { %3062 = vmatpush.msrb.mxu1 %v1336_v8  ;;  %3083 = vmatpush.msrb.mxu2 %v1396_v9  ;;  %v1316_v28 = vld [vmem:[%s6907_s14 + $0xaf8] sm:$0xff] }
 0x3d1   : > { %3102 = vmatpush.msrb.mxu3 %v1464_v10  ;;  %3044 = vmatpush.msrb.mxu0 %v1264_v11  ;;  %v1376_v29 = vld [vmem:[%s6907_s14 + $0xcd8] sm:$0xff] }
 0x3d2   : > { %3063 = vmatpush.msrb.mxu1 %v1332_v13  ;;  %3084 = vmatpush.msrb.mxu2 %v1392_v14  ;;  %v1444_v30 = vld [vmem:[%s6907_s14 + $0xef8] sm:$0xff] }
 0x3d3   : > { %3103 = vmatpush.msrb.mxu3 %v1460_v15  ;;  %3045 = vmatpush.msrb.mxu0 %v1260_v16  ;;  %v1244_v31 = vld [vmem:[%s6907_s14 + $0x8b8] sm:$0xff]  ;;  %v6292_v16 = vld [vmem:[#allocation2 + $0x8] sm:$0xff] }
 0x3d4   : > { %3064 = vmatpush.msrb.mxu1 %v1328_v17  ;;  %3085 = vmatpush.msrb.mxu2 %v1388_v18  ;;  %v1312_v32 = vld [vmem:[%s6907_s14 + $0xad8] sm:$0xff] }
 0x3d5   : > { %3104 = vmatpush.msrb.mxu3 %v1456_v12  ;;  %3046 = vmatpush.msrb.mxu0 %v1256_v19  ;;  %v1372_v33 = vld [vmem:[%s6907_s14 + $0xcb8] sm:$0xff] }
 0x3d6   : > { %3065 = vmatpush.msrb.mxu1 %v1324_v20  ;;  %3086 = vmatpush.msrb.mxu2 %v1384_v21  ;;  %v1440_v34 = vld [vmem:[%s6907_s14 + $0xed8] sm:$0xff]  ;;  %v6294_v21 = vld [vmem:[#allocation2 + $0x48] sm:$0xff] }
 0x3d7   : > { %3105 = vmatpush.msrb.mxu3 %v1452_v22  ;;  %3047 = vmatpush.msrb.mxu0 %v1252_v23  ;;  %v1240_v35 = vld [vmem:[%s6907_s14 + $0x898] sm:$0xff] }
 0x3d8   : > { %3066 = vmatpush.msrb.mxu1 %v1320_v24  ;;  %3087 = vmatpush.msrb.mxu2 %v1380_v25  ;;  %v1308_v36 = vld [vmem:[%s6907_s14 + $0xab8] sm:$0xff]  ;;  %v7892_v24 = vld [vmem:[%s6913_s13] sm:$0xf] }
 0x3d9   : > { %3106 = vmatpush.msrb.mxu3 %v1448_v26  ;;  %3048 = vmatpush.msrb.mxu0 %v1248_v27  ;;  %v1368_v37 = vld [vmem:[%s6907_s14 + $0xc98] sm:$0xff]  ;;  %v1993_v25 = vperm.slane %v7892_v24, 2 }
 0x3da   : > { %3067 = vmatpush.msrb.mxu1 %v1316_v28  ;;  %3088 = vmatpush.msrb.mxu2 %v1376_v29  ;;  %v1436_v38 = vld [vmem:[%s6907_s14 + $0xeb8] sm:$0xff]  ;;  %v2656_v28 = vpop.f32.mrf.mxu0  ;;  %v6296_v29 = vld [vmem:[#allocation2 + $0x68] sm:$0xff] }
 0x3db   : > { %3107 = vmatpush.msrb.mxu3 %v1444_v30  ;;  %3049 = vmatpush.msrb.mxu0 %v1244_v31  ;;  %v1236_v39 = vld [vmem:[%s6907_s14 + $0x878] sm:$0xff] }
 0x3dc   : > { %3068 = vmatpush.msrb.mxu1 %v1312_v32  ;;  %3089 = vmatpush.msrb.mxu2 %v1372_v33  ;;  %v1304_v40 = vld [vmem:[%s6907_s14 + $0xa98] sm:$0xff] }
 0x3dd   : > { %3108 = vmatpush.msrb.mxu3 %v1440_v34  ;;  %3050 = vmatpush.msrb.mxu0 %v1240_v35  ;;  %v1364_v41 = vld [vmem:[%s6907_s14 + $0xc78] sm:$0xff] }
 0x3de   : > { %3069 = vmatpush.msrb.mxu1 %v1308_v36  ;;  %v1432_v42 = vld [vmem:[%s6907_s14 + $0xe98] sm:$0xff]  ;;  %3090 = vmatpush.msrb.mxu2 %v1368_v37  ;;  %v2657_v36 = vadd.f32 %v2656_v28, %v1993_v25  ;;  %v6299_v25 = vld [vmem:[#allocation2 + $0x20] sm:$0xff] }
 0x3df   : > { %3109 = vmatpush.msrb.mxu3 %v1436_v38  ;;  %v1232_v43 = vld [vmem:[%s6907_s14 + $0x858] sm:$0xff]  ;;  %3051 = vmatpush.msrb.mxu0 %v1236_v39  ;;  %v2676_v39 = vpop.f32.mrf.mxu1 }
 0x3e0   : > { %v1300_v44 = vld [vmem:[%s6907_s14 + $0xa78] sm:$0xff]  ;;  %3070 = vmatpush.msrb.mxu1 %v1304_v40  ;;  %3091 = vmatpush.msrb.mxu2 %v1364_v41 }
 0x3e1   : > { %v1360_v45 = vld [vmem:[%s6907_s14 + $0xc58] sm:$0xff]  ;;  %3110 = vmatpush.msrb.mxu3 %v1432_v42  ;;  %3052 = vmatpush.msrb.mxu0 %v1232_v43 }
 0x3e2   : > { %v1428_v46 = vld [vmem:[%s6907_s14 + $0xe78] sm:$0xff]  ;;  %3071 = vmatpush.msrb.mxu1 %v1300_v44  ;;  %3092 = vmatpush.msrb.mxu2 %v1360_v45 }
 0x3e3   : > { %v1228_v47 = vld [vmem:[%s6907_s14 + $0x838] sm:$0xff]  ;;  %3111 = vmatpush.msrb.mxu3 %v1428_v46  ;;  %3015 = vmatmul.f32.vlgmr.msra.gmra.mxu2 %v6289_v60  ;;  %v2677_v46 = vadd.f32 %v2676_v39, %v2657_v36 }
 0x3e4   : > { %v1296_v48 = vld [vmem:[%s6907_s14 + $0xa58] sm:$0xff]  ;;  %3053 = vmatpush.msrb.mxu0 %v1228_v47  ;;  %2995 = vmatmul.f32.vlgmr.msra.gmra.mxu1 %v6290_v1 }
 0x3e5   : > { %v1356_v49 = vld [vmem:[%s6907_s14 + $0xc38] sm:$0xff]  ;;  %3072 = vmatpush.msrb.mxu1 %v1296_v48  ;;  %3035 = vmatmul.f32.vlgmr.msra.gmra.mxu3 %v6291_v2 }
 0x3e6   : > { %v1424_v50 = vld [vmem:[%s6907_s14 + $0xe58] sm:$0xff]  ;;  %3093 = vmatpush.msrb.mxu2 %v1356_v49  ;;  %v2696_v49 = vpop.f32.mrf.mxu2 }
 0x3e7   : > { %v1224_v51 = vld [vmem:[%s6907_s14 + $0x818] sm:$0xff]  ;;  %3112 = vmatpush.msrb.mxu3 %v1424_v50 }
 0x3e8   : > { %v1292_v52 = vld [vmem:[%s6907_s14 + $0xa38] sm:$0xff]  ;;  %3054 = vmatpush.msrb.mxu0 %v1224_v51 }
 0x3e9   : > { %v1352_v53 = vld [vmem:[%s6907_s14 + $0xc18] sm:$0xff]  ;;  %3073 = vmatpush.msrb.mxu1 %v1292_v52 }
 0x3ea   : > { %v1420_v54 = vld [vmem:[%s6907_s14 + $0xe38] sm:$0xff]  ;;  %3094 = vmatpush.msrb.mxu2 %v1352_v53 }
 0x3eb   : > { %v1540_v55 = vld [vmem:[%s6907_s14 + $0x11f8] sm:$0xff]  ;;  %3113 = vmatpush.msrb.mxu3 %v1420_v54  ;;  %3095 = vmatmul.f32.vlgmr.msrb.gmra.mxu2 %v6292_v16 }
 0x3ec   : > { %v1668_v56 = vld [vmem:[%s6907_s14 + $0x15f8] sm:$0xff] }
 0x3ed   : > { %v1288_v57 = vld [vmem:[%s6907_s14 + $0xa18] sm:$0xff]  ;;  %3159 = vmatpush.msra.mxu2 %v1668_v56  ;;  %v2697_v56 = vadd.f32 %v2696_v49, %v2677_v46 }
 0x3ee   : > { %v1416_v58 = vld [vmem:[%s6907_s14 + $0xe18] sm:$0xff]  ;;  %3074 = vmatpush.msrb.mxu1 %v1288_v57 }
 0x3ef   : > { %v6288_v59 = vld [vmem:[#allocation2 + $0x30] sm:$0xff]  ;;  %3114 = vmatpush.msrb.mxu3 %v1416_v58  ;;  %3075 = vmatmul.f32.vlgmr.msrb.gmra.mxu1 %v6296_v29 }
 0x3f0   : > { %2975 = vmatmul.f32.vlgmr.msra.gmra.mxu0 %v6288_v59  ;;  %v1536_v61 = vld [vmem:[%s6907_s14 + $0x11d8] sm:$0xff]  ;;  %3115 = vmatmul.f32.vlgmr.msrb.gmra.mxu3 %v6294_v21  ;;  %v2716_v59 = vpop.f32.mrf.mxu3 }
 0x3f1   : > { %3119 = vmatpush.msra.mxu0 %v1540_v55  ;;  %v1604_v62 = vld [vmem:[%s6907_s14 + $0x13f8] sm:$0xff]  ;;  %v2717_v2 = vadd.f32 %v2716_v59, %v2697_v56 }
 0x3f2   : > { %v1664_v63 = vld [vmem:[%s6907_s14 + $0x15d8] sm:$0xff]  ;;  %3139 = vmatpush.msra.mxu1 %v1604_v62 }
 0x3f3   : > { %v1732_v0 = vld [vmem:[%s6907_s14 + $0x17f8] sm:$0xff]  ;;  %3120 = vmatpush.msra.mxu0 %v1536_v61  ;;  %3160 = vmatpush.msra.mxu2 %v1664_v63 }
 0x3f4   : > { %v1532_v3 = vld [vmem:[%s6907_s14 + $0x11b8] sm:$0xff]  ;;  %3179 = vmatpush.msra.mxu3 %v1732_v0 }
 0x3f5   : > { %v1600_v4 = vld [vmem:[%s6907_s14 + $0x13d8] sm:$0xff]  ;;  %3121 = vmatpush.msra.mxu0 %v1532_v3 }
 0x3f6   : > { %v1660_v5 = vld [vmem:[%s6907_s14 + $0x15b8] sm:$0xff]  ;;  %3140 = vmatpush.msra.mxu1 %v1600_v4 }
 0x3f7   : > { %v1728_v6 = vld [vmem:[%s6907_s14 + $0x17d8] sm:$0xff]  ;;  %3161 = vmatpush.msra.mxu2 %v1660_v5  ;;  %v2736_v5 = vpop.f32.mrf.mxu0 }
 0x3f8   : > { %v1528_v7 = vld [vmem:[%s6907_s14 + $0x1198] sm:$0xff]  ;;  %3180 = vmatpush.msra.mxu3 %v1728_v6  ;;  %v2796_v36 = vpop.f32.mrf.mxu3 }
 0x3f9   : > { %v1596_v8 = vld [vmem:[%s6907_s14 + $0x13b8] sm:$0xff]  ;;  %3122 = vmatpush.msra.mxu0 %v1528_v7 }
 0x3fa   : > { %v1656_v9 = vld [vmem:[%s6907_s14 + $0x1598] sm:$0xff]  ;;  %3141 = vmatpush.msra.mxu1 %v1596_v8 }
 0x3fb   : > { %v1724_v10 = vld [vmem:[%s6907_s14 + $0x17b8] sm:$0xff]  ;;  %3162 = vmatpush.msra.mxu2 %v1656_v9 }
 0x3fc   : > { %v1524_v11 = vld [vmem:[%s6907_s14 + $0x1178] sm:$0xff]  ;;  %3181 = vmatpush.msra.mxu3 %v1724_v10  ;;  %v2737_v10 = vadd.f32 %v2736_v5, %v2717_v2 }
 0x3fd   : > { %v1592_v13 = vld [vmem:[%s6907_s14 + $0x1398] sm:$0xff]  ;;  %3123 = vmatpush.msra.mxu0 %v1524_v11 }
 0x3fe   : > { %v1652_v14 = vld [vmem:[%s6907_s14 + $0x1578] sm:$0xff]  ;;  %3142 = vmatpush.msra.mxu1 %v1592_v13 }
 0x3ff   : > { %v1720_v15 = vld [vmem:[%s6907_s14 + $0x1798] sm:$0xff]  ;;  %3163 = vmatpush.msra.mxu2 %v1652_v14  ;;  %v2756_v14 = vpop.f32.mrf.mxu1 }
 0x400   : > { %v1520_v17 = vld [vmem:[%s6907_s14 + $0x1158] sm:$0xff]  ;;  %3182 = vmatpush.msra.mxu3 %v1720_v15 }
 0x401   : > { %v1588_v18 = vld [vmem:[%s6907_s14 + $0x1378] sm:$0xff]  ;;  %3124 = vmatpush.msra.mxu0 %v1520_v17  ;;  %v6297_v17 = vld [vmem:[#allocation2 + $0x40] sm:$0xff] }
 0x402   : > { %v1648_v12 = vld [vmem:[%s6907_s14 + $0x1558] sm:$0xff]  ;;  %3143 = vmatpush.msra.mxu1 %v1588_v18 }
 0x403   : > { %v6293_v19 = vld [vmem:[#allocation2 + $0x50] sm:$0xff]  ;;  %3164 = vmatpush.msra.mxu2 %v1648_v12 }
 0x404   : > { %3055 = vmatmul.f32.vlgmr.msrb.gmra.mxu0 %v6293_v19  ;;  %v1716_v20 = vld [vmem:[%s6907_s14 + $0x1778] sm:$0xff] }
 0x405   : > { %v1516_v22 = vld [vmem:[%s6907_s14 + $0x1138] sm:$0xff]  ;;  %3183 = vmatpush.msra.mxu3 %v1716_v20  ;;  %v2757_v20 = vadd.f32 %v2756_v14, %v2737_v10 }
 0x406   : > { %v1584_v23 = vld [vmem:[%s6907_s14 + $0x1358] sm:$0xff]  ;;  %3125 = vmatpush.msra.mxu0 %v1516_v22 }
 0x407   : > { %v1644_v26 = vld [vmem:[%s6907_s14 + $0x1538] sm:$0xff]  ;;  %3144 = vmatpush.msra.mxu1 %v1584_v23  ;;  %v2776_v23 = vpop.f32.mrf.mxu2 }
 0x408   : > { %v1712_v27 = vld [vmem:[%s6907_s14 + $0x1758] sm:$0xff]  ;;  %3165 = vmatpush.msra.mxu2 %v1644_v26  ;;  %v6300_v26 = vld [vmem:[#allocation2 + $0x38] sm:$0xff] }
 0x409   : > { %v1512_v30 = vld [vmem:[%s6907_s14 + $0x1118] sm:$0xff]  ;;  %3184 = vmatpush.msra.mxu3 %v1712_v27 }
 0x40a   : > { %v1580_v31 = vld [vmem:[%s6907_s14 + $0x1338] sm:$0xff]  ;;  %3126 = vmatpush.msra.mxu0 %v1512_v30 }
 0x40b   : > { %v1640_v32 = vld [vmem:[%s6907_s14 + $0x1518] sm:$0xff]  ;;  %3145 = vmatpush.msra.mxu1 %v1580_v31 }
 0x40c   : > { %v1708_v33 = vld [vmem:[%s6907_s14 + $0x1738] sm:$0xff]  ;;  %3166 = vmatpush.msra.mxu2 %v1640_v32 }
 0x40d   : > { %v1508_v34 = vld [vmem:[%s6907_s14 + $0x10f8] sm:$0xff]  ;;  %3185 = vmatpush.msra.mxu3 %v1708_v33  ;;  %v2777_v33 = vadd.f32 %v2776_v23, %v2757_v20 }
 0x40e   : > { %v1576_v35 = vld [vmem:[%s6907_s14 + $0x1318] sm:$0xff]  ;;  %3127 = vmatpush.msra.mxu0 %v1508_v34 }
 0x40f   : > { %v1636_v37 = vld [vmem:[%s6907_s14 + $0x14f8] sm:$0xff]  ;;  %3146 = vmatpush.msra.mxu1 %v1576_v35 }
 0x410   : > { %v1704_v38 = vld [vmem:[%s6907_s14 + $0x1718] sm:$0xff]  ;;  %3167 = vmatpush.msra.mxu2 %v1636_v37 }
 0x411   : > { %v1504_v40 = vld [vmem:[%s6907_s14 + $0x10d8] sm:$0xff]  ;;  %3186 = vmatpush.msra.mxu3 %v1704_v38 }
 0x412   : > { %v1572_v41 = vld [vmem:[%s6907_s14 + $0x12f8] sm:$0xff]  ;;  %3128 = vmatpush.msra.mxu0 %v1504_v40 }
 0x413   : > { %v1632_v42 = vld [vmem:[%s6907_s14 + $0x14d8] sm:$0xff]  ;;  %3147 = vmatpush.msra.mxu1 %v1572_v41  ;;  %v2816_v41 = vpop.f32.mrf.mxu0 }
 0x414   : > { %v1700_v43 = vld [vmem:[%s6907_s14 + $0x16f8] sm:$0xff]  ;;  %3168 = vmatpush.msra.mxu2 %v1632_v42 }
 0x415   : > { %v1500_v44 = vld [vmem:[%s6907_s14 + $0x10b8] sm:$0xff]  ;;  %3187 = vmatpush.msra.mxu3 %v1700_v43 }
 0x416   : > { %v1568_v45 = vld [vmem:[%s6907_s14 + $0x12d8] sm:$0xff]  ;;  %3129 = vmatpush.msra.mxu0 %v1500_v44  ;;  %v2797_v44 = vadd.f32 %v2796_v36, %v2777_v33 }
 0x417   : > { %v1628_v47 = vld [vmem:[%s6907_s14 + $0x14b8] sm:$0xff]  ;;  %3148 = vmatpush.msra.mxu1 %v1568_v45 }
 0x418   : > { %v1696_v48 = vld [vmem:[%s6907_s14 + $0x16d8] sm:$0xff]  ;;  %3169 = vmatpush.msra.mxu2 %v1628_v47  ;;  %v2817_v49 = vadd.f32 %v2816_v41, %v2797_v44  ;;  %v6301_v41 = vld [vmem:[#allocation2 + $0x60] sm:$0xff] }
 0x419   : > { %v1496_v50 = vld [vmem:[%s6907_s14 + $0x1098] sm:$0xff]  ;;  %3188 = vmatpush.msra.mxu3 %v1696_v48 }
 0x41a   : > { %v1564_v51 = vld [vmem:[%s6907_s14 + $0x12b8] sm:$0xff]  ;;  %3130 = vmatpush.msra.mxu0 %v1496_v50 }
 0x41b   : > { %v1624_v52 = vld [vmem:[%s6907_s14 + $0x1498] sm:$0xff]  ;;  %3149 = vmatpush.msra.mxu1 %v1564_v51 }
 0x41c   : > { %v1692_v53 = vld [vmem:[%s6907_s14 + $0x16b8] sm:$0xff]  ;;  %3170 = vmatpush.msra.mxu2 %v1624_v52  ;;  %v2836_v52 = vpop.f32.mrf.mxu1 }
 0x41d   : > { %v1492_v54 = vld [vmem:[%s6907_s14 + $0x1078] sm:$0xff]  ;;  %3189 = vmatpush.msra.mxu3 %v1692_v53 }
 0x41e   : > { %v1560_v55 = vld [vmem:[%s6907_s14 + $0x1298] sm:$0xff]  ;;  %3131 = vmatpush.msra.mxu0 %v1492_v54 }
 0x41f   : > { %v1620_v57 = vld [vmem:[%s6907_s14 + $0x1478] sm:$0xff]  ;;  %3150 = vmatpush.msra.mxu1 %v1560_v55 }
 0x420   : > { %v1688_v58 = vld [vmem:[%s6907_s14 + $0x1698] sm:$0xff]  ;;  %3171 = vmatpush.msra.mxu2 %v1620_v57  ;;  %v2856_v57 = vpop.f32.mrf.mxu2 }
 0x421   : > { %v1488_v60 = vld [vmem:[%s6907_s14 + $0x1058] sm:$0xff]  ;;  %3190 = vmatpush.msra.mxu3 %v1688_v58 }
 0x422   : > { %v1556_v61 = vld [vmem:[%s6907_s14 + $0x1278] sm:$0xff]  ;;  %3132 = vmatpush.msra.mxu0 %v1488_v60  ;;  %v2837_v60 = vadd.f32 %v2836_v52, %v2817_v49 }
 0x423   : > { %v1616_v62 = vld [vmem:[%s6907_s14 + $0x1458] sm:$0xff]  ;;  %3151 = vmatpush.msra.mxu1 %v1556_v61 }
 0x424   : > { %v1684_v63 = vld [vmem:[%s6907_s14 + $0x1678] sm:$0xff]  ;;  %3172 = vmatpush.msra.mxu2 %v1616_v62 }
 0x425   : > { %v1484_v0 = vld [vmem:[%s6907_s14 + $0x1038] sm:$0xff]  ;;  %3191 = vmatpush.msra.mxu3 %v1684_v63 }
 0x426   : > { %v1552_v1 = vld [vmem:[%s6907_s14 + $0x1258] sm:$0xff]  ;;  %3133 = vmatpush.msra.mxu0 %v1484_v0 }
 0x427   : > { %v1612_v3 = vld [vmem:[%s6907_s14 + $0x1438] sm:$0xff]  ;;  %3152 = vmatpush.msra.mxu1 %v1552_v1  ;;  %v2857_v1 = vadd.f32 %v2856_v57, %v2837_v60 }
 0x428   : > { %v1680_v4 = vld [vmem:[%s6907_s14 + $0x1658] sm:$0xff]  ;;  %3173 = vmatpush.msra.mxu2 %v1612_v3 }
 0x429   : > { %v1480_v6 = vld [vmem:[%s6907_s14 + $0x1018] sm:$0xff]  ;;  %3192 = vmatpush.msra.mxu3 %v1680_v4  ;;  %v2876_v4 = vpop.f32.mrf.mxu3  ;;  %v2936_v33 = vpop.f32.mrf.mxu2 }
 0x42a   : > { %v1548_v7 = vld [vmem:[%s6907_s14 + $0x1238] sm:$0xff]  ;;  %3134 = vmatpush.msra.mxu0 %v1480_v6 }
 0x42b   : > { %v1608_v8 = vld [vmem:[%s6907_s14 + $0x1418] sm:$0xff]  ;;  %3153 = vmatpush.msra.mxu1 %v1548_v7  ;;  %3135 = vmatmul.f32.vlgmr.msra.gmra.mxu0 %v6297_v17  ;;  %v2896_v17 = vpop.f32.mrf.mxu0 }
 0x42c   : > { %v1676_v9 = vld [vmem:[%s6907_s14 + $0x1638] sm:$0xff]  ;;  %3174 = vmatpush.msra.mxu2 %v1608_v8 }
 0x42d   : > { %v1796_v11 = vld [vmem:[%s6907_s14 + $0x19f8] sm:$0xff]  ;;  %3193 = vmatpush.msra.mxu3 %v1676_v9 }
 0x42e   : > { %v1924_v13 = vld [vmem:[%s6907_s14 + $0x1df8] sm:$0xff]  ;;  %3199 = vmatpush.msrb.mxu0 %v1796_v11  ;;  %v2877_v11 = vadd.f32 %v2876_v4, %v2857_v1 }
 0x42f   : > { %v1544_v15 = vld [vmem:[%s6907_s14 + $0x1218] sm:$0xff]  ;;  %3239 = vmatpush.msrb.mxu2 %v1924_v13 }
 0x430   : > { %v1672_v16 = vld [vmem:[%s6907_s14 + $0x1618] sm:$0xff]  ;;  %3154 = vmatpush.msra.mxu1 %v1544_v15 }
 0x431   : > { %v6298_v18 = vld [vmem:[#allocation2 + $0x10] sm:$0xff]  ;;  %3194 = vmatpush.msra.mxu3 %v1672_v16  ;;  %3155 = vmatmul.f32.vlgmr.msra.gmra.mxu1 %v6299_v25  ;;  %v2916_v25 = vpop.f32.mrf.mxu1 }
 0x432   : > { %3175 = vmatmul.f32.vlgmr.msra.gmra.mxu2 %v6298_v18  ;;  %v1792_v12 = vld [vmem:[%s6907_s14 + $0x19d8] sm:$0xff]  ;;  %3195 = vmatmul.f32.vlgmr.msra.gmra.mxu3 %v6300_v26 }
 0x433   : > { %v1860_v19 = vld [vmem:[%s6907_s14 + $0x1bf8] sm:$0xff]  ;;  %3200 = vmatpush.msrb.mxu0 %v1792_v12 }
 0x434   : > { %v1920_v21 = vld [vmem:[%s6907_s14 + $0x1dd8] sm:$0xff]  ;;  %3219 = vmatpush.msrb.mxu1 %v1860_v19  ;;  %v2897_v19 = vadd.f32 %v2896_v17, %v2877_v11 }
 0x435   : > { %v1988_v22 = vld [vmem:[%s6907_s14 + $0x1ff8] sm:$0xff]  ;;  %3240 = vmatpush.msrb.mxu2 %v1920_v21 }
 0x436   : > { %v1788_v27 = vld [vmem:[%s6907_s14 + $0x19b8] sm:$0xff]  ;;  %3259 = vmatpush.msrb.mxu3 %v1988_v22 }
 0x437   : > { %v1856_v28 = vld [vmem:[%s6907_s14 + $0x1bd8] sm:$0xff]  ;;  %3201 = vmatpush.msrb.mxu0 %v1788_v27 }
 0x438   : > { %v1916_v29 = vld [vmem:[%s6907_s14 + $0x1db8] sm:$0xff]  ;;  %3220 = vmatpush.msrb.mxu1 %v1856_v28 }
 0x439   : > { %v1984_v30 = vld [vmem:[%s6907_s14 + $0x1fd8] sm:$0xff]  ;;  %3241 = vmatpush.msrb.mxu2 %v1916_v29 }
 0x43a   : > { %v1784_v31 = vld [vmem:[%s6907_s14 + $0x1998] sm:$0xff]  ;;  %3260 = vmatpush.msrb.mxu3 %v1984_v30  ;;  %v2917_v30 = vadd.f32 %v2916_v25, %v2897_v19 }
 0x43b   : > { %v1852_v32 = vld [vmem:[%s6907_s14 + $0x1bb8] sm:$0xff]  ;;  %3202 = vmatpush.msrb.mxu0 %v1784_v31 }
 0x43c   : > { %v1912_v34 = vld [vmem:[%s6907_s14 + $0x1d98] sm:$0xff]  ;;  %3221 = vmatpush.msrb.mxu1 %v1852_v32  ;;  %v2937_v36 = vadd.f32 %v2936_v33, %v2917_v30 }
 0x43d   : > { %v1980_v35 = vld [vmem:[%s6907_s14 + $0x1fb8] sm:$0xff]  ;;  %3242 = vmatpush.msrb.mxu2 %v1912_v34 }
 0x43e   : > { %v1780_v37 = vld [vmem:[%s6907_s14 + $0x1978] sm:$0xff]  ;;  %3261 = vmatpush.msrb.mxu3 %v1980_v35 }
 0x43f   : > { %v1848_v38 = vld [vmem:[%s6907_s14 + $0x1b98] sm:$0xff]  ;;  %3203 = vmatpush.msrb.mxu0 %v1780_v37 }
 0x440   : > { %v1908_v39 = vld [vmem:[%s6907_s14 + $0x1d78] sm:$0xff]  ;;  %3222 = vmatpush.msrb.mxu1 %v1848_v38 }
 0x441   : > { %v1976_v40 = vld [vmem:[%s6907_s14 + $0x1f98] sm:$0xff]  ;;  %3243 = vmatpush.msrb.mxu2 %v1908_v39  ;;  %v2956_v39 = vpop.f32.mrf.mxu3 }
 0x442   : > { %v1776_v42 = vld [vmem:[%s6907_s14 + $0x1958] sm:$0xff]  ;;  %3262 = vmatpush.msrb.mxu3 %v1976_v40  ;;  %v2957_v40 = vadd.f32 %v2956_v39, %v2937_v36 }
 0x443   : > { %v1844_v43 = vld [vmem:[%s6907_s14 + $0x1b78] sm:$0xff]  ;;  %3204 = vmatpush.msrb.mxu0 %v1776_v42  ;;  %v6302_v42 = vld [vmem:[#allocation2 + $0x78] sm:$0xff] }
 0x444   : > { %v1904_v45 = vld [vmem:[%s6907_s14 + $0x1d58] sm:$0xff]  ;;  %3223 = vmatpush.msrb.mxu1 %v1844_v43  ;;  %v3281_v43 = vmax.f32 %v2957_v40, 0.0 }
 0x445   : > { %v1972_v46 = vld [vmem:[%s6907_s14 + $0x1f78] sm:$0xff]  ;;  %3244 = vmatpush.msrb.mxu2 %v1904_v45  ;;  %v6304_v45 = vld [vmem:[#allocation2 + $0x28] sm:$0xff] }
 0x446   : > { %v1772_v47 = vld [vmem:[%s6907_s14 + $0x1938] sm:$0xff]  ;;  %3263 = vmatpush.msrb.mxu3 %v1972_v46  ;;  %3289 = vst [vmem:[%s7486_s28 + $0x10] sm:$0xff] %v3281_v43  ;;  %v1994_v46 = vperm.slane %v7892_v24, 3 }
 0x447   : > { %v1840_v48 = vld [vmem:[%s6907_s14 + $0x1b58] sm:$0xff]  ;;  %3205 = vmatpush.msrb.mxu0 %v1772_v47 }
 0x448   : > { %v1900_v50 = vld [vmem:[%s6907_s14 + $0x1d38] sm:$0xff]  ;;  %3224 = vmatpush.msrb.mxu1 %v1840_v48 }
 0x449   : > { %v1968_v51 = vld [vmem:[%s6907_s14 + $0x1f58] sm:$0xff]  ;;  %3245 = vmatpush.msrb.mxu2 %v1900_v50 }
 0x44a   : > { %v1768_v53 = vld [vmem:[%s6907_s14 + $0x1918] sm:$0xff]  ;;  %3264 = vmatpush.msrb.mxu3 %v1968_v51 }
 0x44b   : > { %v1836_v54 = vld [vmem:[%s6907_s14 + $0x1b38] sm:$0xff]  ;;  %3206 = vmatpush.msrb.mxu0 %v1768_v53 }
 0x44c   : > { %v1896_v55 = vld [vmem:[%s6907_s14 + $0x1d18] sm:$0xff]  ;;  %3225 = vmatpush.msrb.mxu1 %v1836_v54 }
 0x44d   : > { %v1964_v56 = vld [vmem:[%s6907_s14 + $0x1f38] sm:$0xff]  ;;  %3246 = vmatpush.msrb.mxu2 %v1896_v55 }
 0x44e   : > { %v1764_v58 = vld [vmem:[%s6907_s14 + $0x18f8] sm:$0xff]  ;;  %3265 = vmatpush.msrb.mxu3 %v1964_v56 }
 0x44f   : > { %v1832_v59 = vld [vmem:[%s6907_s14 + $0x1b18] sm:$0xff]  ;;  %3207 = vmatpush.msrb.mxu0 %v1764_v58 }
 0x450   : > { %v1892_v61 = vld [vmem:[%s6907_s14 + $0x1cf8] sm:$0xff]  ;;  %3226 = vmatpush.msrb.mxu1 %v1832_v59 }
 0x451   : > { %v1960_v62 = vld [vmem:[%s6907_s14 + $0x1f18] sm:$0xff]  ;;  %3247 = vmatpush.msrb.mxu2 %v1892_v61 }
 0x452   : > { %v1760_v63 = vld [vmem:[%s6907_s14 + $0x18d8] sm:$0xff]  ;;  %3266 = vmatpush.msrb.mxu3 %v1960_v62 }
 0x453   : > { %v1828_v0 = vld [vmem:[%s6907_s14 + $0x1af8] sm:$0xff]  ;;  %3208 = vmatpush.msrb.mxu0 %v1760_v63 }
 0x454   : > { %v1888_v2 = vld [vmem:[%s6907_s14 + $0x1cd8] sm:$0xff]  ;;  %3227 = vmatpush.msrb.mxu1 %v1828_v0 }
 0x455   : > { %v1956_v3 = vld [vmem:[%s6907_s14 + $0x1ef8] sm:$0xff]  ;;  %3248 = vmatpush.msrb.mxu2 %v1888_v2 }
 0x456   : > { %v1756_v5 = vld [vmem:[%s6907_s14 + $0x18b8] sm:$0xff]  ;;  %3267 = vmatpush.msrb.mxu3 %v1956_v3 }
 0x457   : > { %v1824_v6 = vld [vmem:[%s6907_s14 + $0x1ad8] sm:$0xff]  ;;  %3209 = vmatpush.msrb.mxu0 %v1756_v5 }
 0x458   : > { %v1884_v7 = vld [vmem:[%s6907_s14 + $0x1cb8] sm:$0xff]  ;;  %3228 = vmatpush.msrb.mxu1 %v1824_v6 }
 0x459   : > { %v1952_v8 = vld [vmem:[%s6907_s14 + $0x1ed8] sm:$0xff]  ;;  %3249 = vmatpush.msrb.mxu2 %v1884_v7 }
 0x45a   : > { %v1752_v9 = vld [vmem:[%s6907_s14 + $0x1898] sm:$0xff]  ;;  %3268 = vmatpush.msrb.mxu3 %v1952_v8 }
 0x45b   : > { %v1820_v10 = vld [vmem:[%s6907_s14 + $0x1ab8] sm:$0xff]  ;;  %3210 = vmatpush.msrb.mxu0 %v1752_v9 }
 0x45c   : > { %v1880_v13 = vld [vmem:[%s6907_s14 + $0x1c98] sm:$0xff]  ;;  %3229 = vmatpush.msrb.mxu1 %v1820_v10 }
 0x45d   : > { %v1948_v14 = vld [vmem:[%s6907_s14 + $0x1eb8] sm:$0xff]  ;;  %3250 = vmatpush.msrb.mxu2 %v1880_v13 }
 0x45e   : > { %v1748_v15 = vld [vmem:[%s6907_s14 + $0x1878] sm:$0xff]  ;;  %3269 = vmatpush.msrb.mxu3 %v1948_v14 }
 0x45f   : > { %v1816_v16 = vld [vmem:[%s6907_s14 + $0x1a98] sm:$0xff]  ;;  %3211 = vmatpush.msrb.mxu0 %v1748_v15 }
 0x460   : > { %v1876_v18 = vld [vmem:[%s6907_s14 + $0x1c78] sm:$0xff]  ;;  %3230 = vmatpush.msrb.mxu1 %v1816_v16 }
 0x461   : > { %v1944_v12 = vld [vmem:[%s6907_s14 + $0x1e98] sm:$0xff]  ;;  %3251 = vmatpush.msrb.mxu2 %v1876_v18  ;;  %v2996_v49 = vpop.f32.mrf.mxu1 }
 0x462   : > { %v1744_v20 = vld [vmem:[%s6907_s14 + $0x1858] sm:$0xff]  ;;  %3270 = vmatpush.msrb.mxu3 %v1944_v12 }
 0x463   : > { %v1812_v21 = vld [vmem:[%s6907_s14 + $0x1a78] sm:$0xff]  ;;  %3212 = vmatpush.msrb.mxu0 %v1744_v20 }
 0x464   : > { %v1872_v22 = vld [vmem:[%s6907_s14 + $0x1c58] sm:$0xff]  ;;  %3231 = vmatpush.msrb.mxu1 %v1812_v21 }
 0x465   : > { %v1940_v23 = vld [vmem:[%s6907_s14 + $0x1e78] sm:$0xff]  ;;  %3252 = vmatpush.msrb.mxu2 %v1872_v22 }
 0x466   : > { %v1740_v26 = vld [vmem:[%s6907_s14 + $0x1838] sm:$0xff]  ;;  %3271 = vmatpush.msrb.mxu3 %v1940_v23  ;;  %v3016_v51 = vpop.f32.mrf.mxu2 }
 0x467   : > { %v1808_v27 = vld [vmem:[%s6907_s14 + $0x1a58] sm:$0xff]  ;;  %3213 = vmatpush.msrb.mxu0 %v1740_v26 }
 0x468   : > { %v1868_v28 = vld [vmem:[%s6907_s14 + $0x1c38] sm:$0xff]  ;;  %3232 = vmatpush.msrb.mxu1 %v1808_v27  ;;  %v3036_v53 = vpop.f32.mrf.mxu3 }
 0x469   : > { %v1936_v29 = vld [vmem:[%s6907_s14 + $0x1e58] sm:$0xff]  ;;  %3253 = vmatpush.msrb.mxu2 %v1868_v28 }
 0x46a   : > { %v1736_v31 = vld [vmem:[%s6907_s14 + $0x1818] sm:$0xff]  ;;  %3272 = vmatpush.msrb.mxu3 %v1936_v29 }
 0x46b   : > { %v1804_v32 = vld [vmem:[%s6907_s14 + $0x1a38] sm:$0xff]  ;;  %3214 = vmatpush.msrb.mxu0 %v1736_v31 }
 0x46c   : > { %v1864_v34 = vld [vmem:[%s6907_s14 + $0x1c18] sm:$0xff]  ;;  %3233 = vmatpush.msrb.mxu1 %v1804_v32  ;;  %3215 = vmatmul.f32.vlgmr.msrb.gmra.mxu0 %v6301_v41  ;;  %v3076_v57 = vpop.f32.mrf.mxu1 }
 0x46d   : > { %v1932_v35 = vld [vmem:[%s6907_s14 + $0x1e38] sm:$0xff]  ;;  %3254 = vmatpush.msrb.mxu2 %v1864_v34  ;;  %v2976_v47 = vpop.f32.mrf.mxu0 }
 0x46e   : > { %v1800_v37 = vld [vmem:[%s6907_s14 + $0x1a18] sm:$0xff]  ;;  %3273 = vmatpush.msrb.mxu3 %v1932_v35  ;;  %3255 = vmatmul.f32.vlgmr.msrb.gmra.mxu2 %v6302_v42  ;;  %v2977_v48 = vadd.f32 %v2976_v47, %v1994_v46  ;;  %v3096_v59 = vpop.f32.mrf.mxu2 }
 0x46f   : > { %v1928_v38 = vld [vmem:[%s6907_s14 + $0x1e18] sm:$0xff]  ;;  %3234 = vmatpush.msrb.mxu1 %v1800_v37 }
 0x470   : > { %3274 = vmatpush.msrb.mxu3 %v1928_v38  ;;  %v6303_v44 = vld [vmem:[#allocation2 + $0x70] sm:$0xff]  ;;  %v2997_v50 = vadd.f32 %v2996_v49, %v2977_v48 }
 0x471   : > { %3235 = vmatmul.f32.vlgmr.msrb.gmra.mxu1 %v6303_v44  ;;  %3275 = vmatmul.f32.vlgmr.msrb.gmra.mxu3 %v6304_v45 }
 0x472   : > { %v3017_v52 = vadd.f32 %v3016_v51, %v2997_v50 }
 0x473   : > { %v3116_v61 = vpop.f32.mrf.mxu3 }
 0x474   : > { %v3037_v54 = vadd.f32 %v3036_v53, %v3017_v52 }
 0x481   : > { %v3056_v55 = vpop.f32.mrf.mxu0 }
 0x482   : > { %v3057_v56 = vadd.f32 %v3056_v55, %v3037_v54 }
 0x484   : > { %v3077_v58 = vadd.f32 %v3076_v57, %v3057_v56 }
 0x486   : > { %v3097_v60 = vadd.f32 %v3096_v59, %v3077_v58 }
 0x488   : > { %v3117_v63 = vadd.f32 %v3116_v61, %v3097_v60 }
 0x4a8   : > { %v3136_v62 = vpop.f32.mrf.mxu0 }
 0x4a9   : > { %v3137_v0 = vadd.f32 %v3136_v62, %v3117_v63 }
 0x4ae   : > { %v3156_v24 = vpop.f32.mrf.mxu1 }
 0x4af   : > { %v3157_v2 = vadd.f32 %v3156_v24, %v3137_v0 }
 0x4b5   : > { %v3176_v1 = vpop.f32.mrf.mxu2  ;;  %v3196_v4 = vpop.f32.mrf.mxu3 }
 0x4b6   : > { %v3177_v3 = vadd.f32 %v3176_v1, %v3157_v2 }
 0x4b8   : > { %v3197_v5 = vadd.f32 %v3196_v4, %v3177_v3 }
 0x4e9   : > { %v3216_v6 = vpop.f32.mrf.mxu0 }
 0x4ea   : > { %v3217_v7 = vadd.f32 %v3216_v6, %v3197_v5 }
 0x4ee   : > { %v3236_v8 = vpop.f32.mrf.mxu1 }
 0x4ef   : > { %v3237_v9 = vadd.f32 %v3236_v8, %v3217_v7 }
 0x4f1   : > { %v3256_v10 = vpop.f32.mrf.mxu2 }
 0x4f2   : > { %v3257_v11 = vadd.f32 %v3256_v10, %v3237_v9 }
 0x4f4   : > { %v3276_v13 = vpop.f32.mrf.mxu3 }
 0x4f5   : > { %v3277_v14 = vadd.f32 %v3276_v13, %v3257_v11  ;;  %3294 = sbr.rel (%p6120_p1) target bundleno = 2254 (0x8ce), region = 100 }
 0x4f7   : > { %v3282_v15 = vmax.f32 %v3277_v14, 0.0 }
 0x4f9   : > { %3290 = vst [vmem:[%s7486_s28 + $0x18] sm:$0xff] %v3282_v15 }
 0x4fa   : > { %v3423_v16 = vld [vmem:[#allocation13 + $0x3c0] sm:$0xff] }
 0x4fb   : > { %v3551_v17 = vld [vmem:[#allocation13 + $0x7c0] sm:$0xff]  ;;  %4345 = vmatpush.msra.mxu0 %v3423_v16 }
 0x4fc   : > { %v3679_v18 = vld [vmem:[#allocation13 + $0xbc0] sm:$0xff]  ;;  %4365 = vmatpush.msra.mxu1 %v3551_v17 }
 0x4fd   : > { %v3807_v12 = vld [vmem:[#allocation13 + $0xfc0] sm:$0xff]  ;;  %4385 = vmatpush.msra.mxu2 %v3679_v18 }
 0x4fe   : > { %v3415_v19 = vld [vmem:[#allocation13 + $0x380] sm:$0xff]  ;;  %4405 = vmatpush.msra.mxu3 %v3807_v12 }
 0x4ff   : > { %v3543_v20 = vld [vmem:[#allocation13 + $0x780] sm:$0xff]  ;;  %4346 = vmatpush.msra.mxu0 %v3415_v19 }
 0x500   : > { %v3671_v21 = vld [vmem:[#allocation13 + $0xb80] sm:$0xff]  ;;  %4366 = vmatpush.msra.mxu1 %v3543_v20 }
 0x501   : > { %v3799_v22 = vld [vmem:[#allocation13 + $0xf80] sm:$0xff]  ;;  %4386 = vmatpush.msra.mxu2 %v3671_v21 }
 0x502   : > { %v3407_v23 = vld [vmem:[#allocation13 + $0x340] sm:$0xff]  ;;  %4406 = vmatpush.msra.mxu3 %v3799_v22 }
 0x503   : > { %v3535_v25 = vld [vmem:[#allocation13 + $0x740] sm:$0xff]  ;;  %4347 = vmatpush.msra.mxu0 %v3407_v23 }
 0x504   : > { %v3663_v26 = vld [vmem:[#allocation13 + $0xb40] sm:$0xff]  ;;  %4367 = vmatpush.msra.mxu1 %v3535_v25 }
 0x505   : > { %v3791_v27 = vld [vmem:[#allocation13 + $0xf40] sm:$0xff]  ;;  %4387 = vmatpush.msra.mxu2 %v3663_v26 }
 0x506   : > { %v3399_v28 = vld [vmem:[#allocation13 + $0x300] sm:$0xff]  ;;  %4407 = vmatpush.msra.mxu3 %v3791_v27 }
 0x507   : > { %v3527_v29 = vld [vmem:[#allocation13 + $0x700] sm:$0xff]  ;;  %4348 = vmatpush.msra.mxu0 %v3399_v28 }
 0x508   : > { %v3655_v30 = vld [vmem:[#allocation13 + $0xb00] sm:$0xff]  ;;  %4368 = vmatpush.msra.mxu1 %v3527_v29 }
 0x509   : > { %v3783_v31 = vld [vmem:[#allocation13 + $0xf00] sm:$0xff]  ;;  %4388 = vmatpush.msra.mxu2 %v3655_v30 }
 0x50a   : > { %v3391_v32 = vld [vmem:[#allocation13 + $0x2c0] sm:$0xff]  ;;  %4408 = vmatpush.msra.mxu3 %v3783_v31 }
 0x50b   : > { %v3519_v33 = vld [vmem:[#allocation13 + $0x6c0] sm:$0xff]  ;;  %4349 = vmatpush.msra.mxu0 %v3391_v32 }
 0x50c   : > { %v3647_v34 = vld [vmem:[#allocation13 + $0xac0] sm:$0xff]  ;;  %4369 = vmatpush.msra.mxu1 %v3519_v33 }
 0x50d   : > { %v3775_v35 = vld [vmem:[#allocation13 + $0xec0] sm:$0xff]  ;;  %4389 = vmatpush.msra.mxu2 %v3647_v34 }
 0x50e   : > { %v3383_v36 = vld [vmem:[#allocation13 + $0x280] sm:$0xff]  ;;  %4409 = vmatpush.msra.mxu3 %v3775_v35 }
 0x50f   : > { %v3511_v37 = vld [vmem:[#allocation13 + $0x680] sm:$0xff]  ;;  %4350 = vmatpush.msra.mxu0 %v3383_v36 }
 0x510   : > { %v3639_v38 = vld [vmem:[#allocation13 + $0xa80] sm:$0xff]  ;;  %4370 = vmatpush.msra.mxu1 %v3511_v37 }
 0x511   : > { %v3767_v39 = vld [vmem:[#allocation13 + $0xe80] sm:$0xff]  ;;  %4390 = vmatpush.msra.mxu2 %v3639_v38 }
 0x512   : > { %v3375_v40 = vld [vmem:[#allocation13 + $0x240] sm:$0xff]  ;;  %4410 = vmatpush.msra.mxu3 %v3767_v39 }
 0x513   : > { %v3503_v41 = vld [vmem:[#allocation13 + $0x640] sm:$0xff]  ;;  %4351 = vmatpush.msra.mxu0 %v3375_v40 }
 0x514   : > { %v3631_v42 = vld [vmem:[#allocation13 + $0xa40] sm:$0xff]  ;;  %4371 = vmatpush.msra.mxu1 %v3503_v41 }
 0x515   : > { %v3759_v43 = vld [vmem:[#allocation13 + $0xe40] sm:$0xff]  ;;  %4391 = vmatpush.msra.mxu2 %v3631_v42 }
 0x516   : > { %v3367_v44 = vld [vmem:[#allocation13 + $0x200] sm:$0xff]  ;;  %4411 = vmatpush.msra.mxu3 %v3759_v43 }
 0x517   : > { %v3495_v45 = vld [vmem:[#allocation13 + $0x600] sm:$0xff]  ;;  %4352 = vmatpush.msra.mxu0 %v3367_v44 }
 0x518   : > { %v3623_v46 = vld [vmem:[#allocation13 + $0xa00] sm:$0xff]  ;;  %4372 = vmatpush.msra.mxu1 %v3495_v45 }
 0x519   : > { %v3751_v47 = vld [vmem:[#allocation13 + $0xe00] sm:$0xff]  ;;  %4392 = vmatpush.msra.mxu2 %v3623_v46 }
 0x51a   : > { %v3359_v48 = vld [vmem:[#allocation13 + $0x1c0] sm:$0xff]  ;;  %4412 = vmatpush.msra.mxu3 %v3751_v47 }
 0x51b   : > { %v3487_v49 = vld [vmem:[#allocation13 + $0x5c0] sm:$0xff]  ;;  %4353 = vmatpush.msra.mxu0 %v3359_v48 }
 0x51c   : > { %v3615_v50 = vld [vmem:[#allocation13 + $0x9c0] sm:$0xff]  ;;  %4373 = vmatpush.msra.mxu1 %v3487_v49 }
 0x51d   : > { %v3743_v51 = vld [vmem:[#allocation13 + $0xdc0] sm:$0xff]  ;;  %4393 = vmatpush.msra.mxu2 %v3615_v50 }
 0x51e   : > { %v3351_v52 = vld [vmem:[#allocation13 + $0x180] sm:$0xff]  ;;  %4413 = vmatpush.msra.mxu3 %v3743_v51 }
 0x51f   : > { %v3479_v53 = vld [vmem:[#allocation13 + $0x580] sm:$0xff]  ;;  %4354 = vmatpush.msra.mxu0 %v3351_v52 }
 0x520   : > { %v3607_v54 = vld [vmem:[#allocation13 + $0x980] sm:$0xff]  ;;  %4374 = vmatpush.msra.mxu1 %v3479_v53 }
 0x521   : > { %v3735_v55 = vld [vmem:[#allocation13 + $0xd80] sm:$0xff]  ;;  %4394 = vmatpush.msra.mxu2 %v3607_v54 }
 0x522   : > { %v3343_v56 = vld [vmem:[#allocation13 + $0x140] sm:$0xff]  ;;  %4414 = vmatpush.msra.mxu3 %v3735_v55 }
 0x523   : > { %v3471_v57 = vld [vmem:[#allocation13 + $0x540] sm:$0xff]  ;;  %4355 = vmatpush.msra.mxu0 %v3343_v56 }
 0x524   : > { %v3599_v58 = vld [vmem:[#allocation13 + $0x940] sm:$0xff]  ;;  %4375 = vmatpush.msra.mxu1 %v3471_v57 }
 0x525   : > { %v3727_v59 = vld [vmem:[#allocation13 + $0xd40] sm:$0xff]  ;;  %4395 = vmatpush.msra.mxu2 %v3599_v58 }
 0x526   : > { %v3335_v60 = vld [vmem:[#allocation13 + $0x100] sm:$0xff]  ;;  %4415 = vmatpush.msra.mxu3 %v3727_v59 }
 0x527   : > { %v3463_v61 = vld [vmem:[#allocation13 + $0x500] sm:$0xff]  ;;  %4356 = vmatpush.msra.mxu0 %v3335_v60 }
 0x528   : > { %v3591_v62 = vld [vmem:[#allocation13 + $0x900] sm:$0xff]  ;;  %4376 = vmatpush.msra.mxu1 %v3463_v61 }
 0x529   : > { %v3719_v63 = vld [vmem:[#allocation13 + $0xd00] sm:$0xff]  ;;  %4396 = vmatpush.msra.mxu2 %v3591_v62 }
 0x52a   : > { %v3327_v0 = vld [vmem:[#allocation13 + $0xc0] sm:$0xff]  ;;  %4416 = vmatpush.msra.mxu3 %v3719_v63 }
 0x52b   : > { %v3455_v24 = vld [vmem:[#allocation13 + $0x4c0] sm:$0xff]  ;;  %4357 = vmatpush.msra.mxu0 %v3327_v0 }
 0x52c   : > { %v3583_v1 = vld [vmem:[#allocation13 + $0x8c0] sm:$0xff]  ;;  %4377 = vmatpush.msra.mxu1 %v3455_v24 }
 0x52d   : > { %v3711_v2 = vld [vmem:[#allocation13 + $0xcc0] sm:$0xff]  ;;  %4397 = vmatpush.msra.mxu2 %v3583_v1 }
 0x52e   : > { %v3319_v3 = vld [vmem:[#allocation13 + $0x80] sm:$0xff]  ;;  %4417 = vmatpush.msra.mxu3 %v3711_v2 }
 0x52f   : > { %v3447_v4 = vld [vmem:[#allocation13 + $0x480] sm:$0xff]  ;;  %4358 = vmatpush.msra.mxu0 %v3319_v3 }
 0x530   : > { %v3575_v5 = vld [vmem:[#allocation13 + $0x880] sm:$0xff]  ;;  %4378 = vmatpush.msra.mxu1 %v3447_v4 }
 0x531   : > { %v3703_v6 = vld [vmem:[#allocation13 + $0xc80] sm:$0xff]  ;;  %4398 = vmatpush.msra.mxu2 %v3575_v5 }
 0x532   : > { %v3311_v7 = vld [vmem:[#allocation13 + $0x40] sm:$0xff]  ;;  %4418 = vmatpush.msra.mxu3 %v3703_v6 }
 0x533   : > { %v3439_v8 = vld [vmem:[#allocation13 + $0x440] sm:$0xff]  ;;  %4359 = vmatpush.msra.mxu0 %v3311_v7 }
 0x534   : > { %v3567_v9 = vld [vmem:[#allocation13 + $0x840] sm:$0xff]  ;;  %4379 = vmatpush.msra.mxu1 %v3439_v8 }
 0x535   : > { %v3695_v10 = vld [vmem:[#allocation13 + $0xc40] sm:$0xff]  ;;  %4399 = vmatpush.msra.mxu2 %v3567_v9 }
 0x536   : > { %v3303_v11 = vld [vmem:[#allocation13] sm:$0xff]  ;;  %4419 = vmatpush.msra.mxu3 %v3695_v10 }
 0x537   : > { %v3431_v13 = vld [vmem:[#allocation13 + $0x400] sm:$0xff]  ;;  %4360 = vmatpush.msra.mxu0 %v3303_v11 }
 0x538   : > { %v3559_v14 = vld [vmem:[#allocation13 + $0x800] sm:$0xff]  ;;  %4380 = vmatpush.msra.mxu1 %v3431_v13 }
 0x539   : > { %v3687_v15 = vld [vmem:[#allocation13 + $0xc00] sm:$0xff]  ;;  %4400 = vmatpush.msra.mxu2 %v3559_v14 }
 0x53a   : > { %v3935_v16 = vld [vmem:[#allocation13 + $0x13c0] sm:$0xff]  ;;  %4420 = vmatpush.msra.mxu3 %v3687_v15 }
 0x53b   : > { %v4063_v17 = vld [vmem:[#allocation13 + $0x17c0] sm:$0xff]  ;;  %4425 = vmatpush.msrb.mxu0 %v3935_v16 }
 0x53c   : > { %v4191_v18 = vld [vmem:[#allocation13 + $0x1bc0] sm:$0xff]  ;;  %4445 = vmatpush.msrb.mxu1 %v4063_v17  ;;  %v8005_v17 = vld [vmem:[#allocation3 + $0x8] sm:$0xff] }
 0x53d   : > { %v4319_v12 = vld [vmem:[#allocation13 + $0x1fc0] sm:$0xff]  ;;  %4465 = vmatpush.msrb.mxu2 %v4191_v18  ;;  %v8007_v18 = vld [vmem:[#allocation3 + $0x10] sm:$0xff]  ;;  %4381 = vmatmul.f32.vlgmr.msra.gmra.mxu1 %v8005_v17 }
 0x53e   : > { %v3927_v19 = vld [vmem:[#allocation13 + $0x1380] sm:$0xff]  ;;  %4485 = vmatpush.msrb.mxu3 %v4319_v12  ;;  %v8009_v12 = vld [vmem:[#allocation3 + $0x18] sm:$0xff]  ;;  %4401 = vmatmul.f32.vlgmr.msra.gmra.mxu2 %v8007_v18 }
 0x53f   : > { %v4055_v20 = vld [vmem:[#allocation13 + $0x1780] sm:$0xff]  ;;  %4426 = vmatpush.msrb.mxu0 %v3927_v19  ;;  %v3424_v19 = vld [vmem:[#allocation13 + $0x3c8] sm:$0xff]  ;;  %4421 = vmatmul.f32.vlgmr.msra.gmra.mxu3 %v8009_v12 }
 0x540   : > { %v4183_v21 = vld [vmem:[#allocation13 + $0x1b80] sm:$0xff]  ;;  %4446 = vmatpush.msrb.mxu1 %v4055_v20  ;;  %v3552_v20 = vld [vmem:[#allocation13 + $0x7c8] sm:$0xff] }
 0x541   : > { %v4311_v22 = vld [vmem:[#allocation13 + $0x1f80] sm:$0xff]  ;;  %4466 = vmatpush.msrb.mxu2 %v4183_v21  ;;  %v3680_v21 = vld [vmem:[#allocation13 + $0xbc8] sm:$0xff] }
 0x542   : > { %v3919_v23 = vld [vmem:[#allocation13 + $0x1340] sm:$0xff]  ;;  %4486 = vmatpush.msrb.mxu3 %v4311_v22  ;;  %v3808_v22 = vld [vmem:[#allocation13 + $0xfc8] sm:$0xff] }
 0x543   : > { %v4047_v25 = vld [vmem:[#allocation13 + $0x1740] sm:$0xff]  ;;  %4427 = vmatpush.msrb.mxu0 %v3919_v23  ;;  %v3416_v23 = vld [vmem:[#allocation13 + $0x388] sm:$0xff] }
 0x544   : > { %v4175_v26 = vld [vmem:[#allocation13 + $0x1b40] sm:$0xff]  ;;  %4447 = vmatpush.msrb.mxu1 %v4047_v25  ;;  %v3544_v25 = vld [vmem:[#allocation13 + $0x788] sm:$0xff] }
 0x545   : > { %v4303_v27 = vld [vmem:[#allocation13 + $0x1f40] sm:$0xff]  ;;  %4467 = vmatpush.msrb.mxu2 %v4175_v26  ;;  %v3672_v26 = vld [vmem:[#allocation13 + $0xb88] sm:$0xff] }
 0x546   : > { %v3911_v28 = vld [vmem:[#allocation13 + $0x1300] sm:$0xff]  ;;  %4487 = vmatpush.msrb.mxu3 %v4303_v27  ;;  %v3800_v27 = vld [vmem:[#allocation13 + $0xf88] sm:$0xff] }
 0x547   : > { %v4039_v29 = vld [vmem:[#allocation13 + $0x1700] sm:$0xff]  ;;  %4428 = vmatpush.msrb.mxu0 %v3911_v28  ;;  %v3408_v28 = vld [vmem:[#allocation13 + $0x348] sm:$0xff] }
 0x548   : > { %v4167_v30 = vld [vmem:[#allocation13 + $0x1b00] sm:$0xff]  ;;  %4448 = vmatpush.msrb.mxu1 %v4039_v29  ;;  %v3536_v29 = vld [vmem:[#allocation13 + $0x748] sm:$0xff] }
 0x549   : > { %v4295_v31 = vld [vmem:[#allocation13 + $0x1f00] sm:$0xff]  ;;  %4468 = vmatpush.msrb.mxu2 %v4167_v30  ;;  %v3664_v30 = vld [vmem:[#allocation13 + $0xb48] sm:$0xff] }
 0x54a   : > { %v3903_v32 = vld [vmem:[#allocation13 + $0x12c0] sm:$0xff]  ;;  %4488 = vmatpush.msrb.mxu3 %v4295_v31  ;;  %v3792_v31 = vld [vmem:[#allocation13 + $0xf48] sm:$0xff] }
 0x54b   : > { %v4031_v33 = vld [vmem:[#allocation13 + $0x16c0] sm:$0xff]  ;;  %4429 = vmatpush.msrb.mxu0 %v3903_v32  ;;  %v3400_v32 = vld [vmem:[#allocation13 + $0x308] sm:$0xff] }
 0x54c   : > { %v4159_v34 = vld [vmem:[#allocation13 + $0x1ac0] sm:$0xff]  ;;  %4449 = vmatpush.msrb.mxu1 %v4031_v33  ;;  %v3528_v33 = vld [vmem:[#allocation13 + $0x708] sm:$0xff] }
 0x54d   : > { %v4287_v35 = vld [vmem:[#allocation13 + $0x1ec0] sm:$0xff]  ;;  %4469 = vmatpush.msrb.mxu2 %v4159_v34  ;;  %v3656_v34 = vld [vmem:[#allocation13 + $0xb08] sm:$0xff] }
 0x54e   : > { %v3895_v36 = vld [vmem:[#allocation13 + $0x1280] sm:$0xff]  ;;  %4489 = vmatpush.msrb.mxu3 %v4287_v35  ;;  %v3784_v35 = vld [vmem:[#allocation13 + $0xf08] sm:$0xff] }
 0x54f   : > { %v4023_v37 = vld [vmem:[#allocation13 + $0x1680] sm:$0xff]  ;;  %4430 = vmatpush.msrb.mxu0 %v3895_v36  ;;  %v8015_v36 = vld [vmem:[#allocation3 + $0x30] sm:$0xff] }
 0x550   : > { %v4151_v38 = vld [vmem:[#allocation13 + $0x1a80] sm:$0xff]  ;;  %4450 = vmatpush.msrb.mxu1 %v4023_v37  ;;  %v3392_v37 = vld [vmem:[#allocation13 + $0x2c8] sm:$0xff] }
 0x551   : > { %v4279_v39 = vld [vmem:[#allocation13 + $0x1e80] sm:$0xff]  ;;  %4470 = vmatpush.msrb.mxu2 %v4151_v38  ;;  %v3520_v38 = vld [vmem:[#allocation13 + $0x6c8] sm:$0xff] }
 0x552   : > { %v3887_v40 = vld [vmem:[#allocation13 + $0x1240] sm:$0xff]  ;;  %4490 = vmatpush.msrb.mxu3 %v4279_v39  ;;  %v3648_v39 = vld [vmem:[#allocation13 + $0xac8] sm:$0xff] }
 0x553   : > { %v4015_v41 = vld [vmem:[#allocation13 + $0x1640] sm:$0xff]  ;;  %4431 = vmatpush.msrb.mxu0 %v3887_v40  ;;  %v3776_v40 = vld [vmem:[#allocation13 + $0xec8] sm:$0xff] }
 0x554   : > { %v4143_v42 = vld [vmem:[#allocation13 + $0x1a40] sm:$0xff]  ;;  %4451 = vmatpush.msrb.mxu1 %v4015_v41 }
 0x555   : > { %v4271_v43 = vld [vmem:[#allocation13 + $0x1e40] sm:$0xff]  ;;  %4471 = vmatpush.msrb.mxu2 %v4143_v42  ;;  %v8020_v42 = vld [vmem:[#allocation3 + $0x38] sm:$0xff] }
 0x556   : > { %v3879_v44 = vld [vmem:[#allocation13 + $0x1200] sm:$0xff]  ;;  %4491 = vmatpush.msrb.mxu3 %v4271_v43  ;;  %v3384_v43 = vld [vmem:[#allocation13 + $0x288] sm:$0xff] }
 0x557   : > { %v4007_v45 = vld [vmem:[#allocation13 + $0x1600] sm:$0xff]  ;;  %4432 = vmatpush.msrb.mxu0 %v3879_v44  ;;  %v3512_v44 = vld [vmem:[#allocation13 + $0x688] sm:$0xff] }
 0x558   : > { %v4135_v46 = vld [vmem:[#allocation13 + $0x1a00] sm:$0xff]  ;;  %4452 = vmatpush.msrb.mxu1 %v4007_v45  ;;  %v3640_v45 = vld [vmem:[#allocation13 + $0xa88] sm:$0xff] }
 0x559   : > { %v4263_v47 = vld [vmem:[#allocation13 + $0x1e00] sm:$0xff]  ;;  %4472 = vmatpush.msrb.mxu2 %v4135_v46  ;;  %v3768_v46 = vld [vmem:[#allocation13 + $0xe88] sm:$0xff] }
 0x55a   : > { %v3871_v48 = vld [vmem:[#allocation13 + $0x11c0] sm:$0xff]  ;;  %4492 = vmatpush.msrb.mxu3 %v4263_v47  ;;  %v8023_v47 = vld [vmem:[#allocation3 + $0x28] sm:$0xff] }
 0x55b   : > { %v3999_v49 = vld [vmem:[#allocation13 + $0x15c0] sm:$0xff]  ;;  %4433 = vmatpush.msrb.mxu0 %v3871_v48  ;;  %v3376_v48 = vld [vmem:[#allocation13 + $0x248] sm:$0xff] }
 0x55c   : > { %v4127_v50 = vld [vmem:[#allocation13 + $0x19c0] sm:$0xff]  ;;  %4453 = vmatpush.msrb.mxu1 %v3999_v49  ;;  %v3504_v49 = vld [vmem:[#allocation13 + $0x648] sm:$0xff] }
 0x55d   : > { %v4255_v51 = vld [vmem:[#allocation13 + $0x1dc0] sm:$0xff]  ;;  %4473 = vmatpush.msrb.mxu2 %v4127_v50  ;;  %v3632_v50 = vld [vmem:[#allocation13 + $0xa48] sm:$0xff] }
 0x55e   : > { %v3863_v52 = vld [vmem:[#allocation13 + $0x1180] sm:$0xff]  ;;  %4493 = vmatpush.msrb.mxu3 %v4255_v51  ;;  %v3760_v51 = vld [vmem:[#allocation13 + $0xe48] sm:$0xff] }
 0x55f   : > { %v3991_v53 = vld [vmem:[#allocation13 + $0x1580] sm:$0xff]  ;;  %4434 = vmatpush.msrb.mxu0 %v3863_v52  ;;  %v3368_v52 = vld [vmem:[#allocation13 + $0x208] sm:$0xff] }
 0x560   : > { %v4119_v54 = vld [vmem:[#allocation13 + $0x1980] sm:$0xff]  ;;  %4454 = vmatpush.msrb.mxu1 %v3991_v53  ;;  %v3496_v53 = vld [vmem:[#allocation13 + $0x608] sm:$0xff] }
 0x561   : > { %v4247_v55 = vld [vmem:[#allocation13 + $0x1d80] sm:$0xff]  ;;  %4474 = vmatpush.msrb.mxu2 %v4119_v54  ;;  %v3624_v54 = vld [vmem:[#allocation13 + $0xa08] sm:$0xff] }
 0x562   : > { %v3855_v56 = vld [vmem:[#allocation13 + $0x1140] sm:$0xff]  ;;  %4494 = vmatpush.msrb.mxu3 %v4247_v55  ;;  %v3752_v55 = vld [vmem:[#allocation13 + $0xe08] sm:$0xff] }
 0x563   : > { %v3983_v57 = vld [vmem:[#allocation13 + $0x1540] sm:$0xff]  ;;  %4435 = vmatpush.msrb.mxu0 %v3855_v56  ;;  %v3360_v56 = vld [vmem:[#allocation13 + $0x1c8] sm:$0xff] }
 0x564   : > { %v4111_v58 = vld [vmem:[#allocation13 + $0x1940] sm:$0xff]  ;;  %4455 = vmatpush.msrb.mxu1 %v3983_v57  ;;  %v3488_v57 = vld [vmem:[#allocation13 + $0x5c8] sm:$0xff] }
 0x565   : > { %v4239_v59 = vld [vmem:[#allocation13 + $0x1d40] sm:$0xff]  ;;  %4475 = vmatpush.msrb.mxu2 %v4111_v58  ;;  %v3616_v58 = vld [vmem:[#allocation13 + $0x9c8] sm:$0xff] }
 0x566   : > { %v3847_v60 = vld [vmem:[#allocation13 + $0x1100] sm:$0xff]  ;;  %4495 = vmatpush.msrb.mxu3 %v4239_v59  ;;  %v3744_v59 = vld [vmem:[#allocation13 + $0xdc8] sm:$0xff] }
 0x567   : > { %v3975_v61 = vld [vmem:[#allocation13 + $0x1500] sm:$0xff]  ;;  %4436 = vmatpush.msrb.mxu0 %v3847_v60  ;;  %v3352_v60 = vld [vmem:[#allocation13 + $0x188] sm:$0xff] }
 0x568   : > { %v4103_v62 = vld [vmem:[#allocation13 + $0x1900] sm:$0xff]  ;;  %4456 = vmatpush.msrb.mxu1 %v3975_v61  ;;  %v3480_v61 = vld [vmem:[#allocation13 + $0x588] sm:$0xff] }
 0x569   : > { %v4231_v63 = vld [vmem:[#allocation13 + $0x1d00] sm:$0xff]  ;;  %4476 = vmatpush.msrb.mxu2 %v4103_v62  ;;  %v3608_v62 = vld [vmem:[#allocation13 + $0x988] sm:$0xff] }
 0x56a   : > { %v3839_v0 = vld [vmem:[#allocation13 + $0x10c0] sm:$0xff]  ;;  %4496 = vmatpush.msrb.mxu3 %v4231_v63  ;;  %v3736_v63 = vld [vmem:[#allocation13 + $0xd88] sm:$0xff] }
 0x56b   : > { %v3967_v24 = vld [vmem:[#allocation13 + $0x14c0] sm:$0xff]  ;;  %4437 = vmatpush.msrb.mxu0 %v3839_v0  ;;  %v3344_v0 = vld [vmem:[#allocation13 + $0x148] sm:$0xff] }
 0x56c   : > { %v4095_v1 = vld [vmem:[#allocation13 + $0x18c0] sm:$0xff]  ;;  %4457 = vmatpush.msrb.mxu1 %v3967_v24  ;;  %v3472_v24 = vld [vmem:[#allocation13 + $0x548] sm:$0xff] }
 0x56d   : > { %v4223_v2 = vld [vmem:[#allocation13 + $0x1cc0] sm:$0xff]  ;;  %4477 = vmatpush.msrb.mxu2 %v4095_v1  ;;  %v3600_v1 = vld [vmem:[#allocation13 + $0x948] sm:$0xff] }
 0x56e   : > { %v3831_v3 = vld [vmem:[#allocation13 + $0x1080] sm:$0xff]  ;;  %4497 = vmatpush.msrb.mxu3 %v4223_v2  ;;  %v3728_v2 = vld [vmem:[#allocation13 + $0xd48] sm:$0xff] }
 0x56f   : > { %v3959_v4 = vld [vmem:[#allocation13 + $0x1480] sm:$0xff]  ;;  %4438 = vmatpush.msrb.mxu0 %v3831_v3  ;;  %v3336_v3 = vld [vmem:[#allocation13 + $0x108] sm:$0xff] }
 0x570   : > { %v4087_v5 = vld [vmem:[#allocation13 + $0x1880] sm:$0xff]  ;;  %4458 = vmatpush.msrb.mxu1 %v3959_v4  ;;  %v3464_v4 = vld [vmem:[#allocation13 + $0x508] sm:$0xff] }
 0x571   : > { %v4215_v6 = vld [vmem:[#allocation13 + $0x1c80] sm:$0xff]  ;;  %4478 = vmatpush.msrb.mxu2 %v4087_v5  ;;  %v3592_v5 = vld [vmem:[#allocation13 + $0x908] sm:$0xff] }
 0x572   : > { %v3823_v7 = vld [vmem:[#allocation13 + $0x1040] sm:$0xff]  ;;  %4498 = vmatpush.msrb.mxu3 %v4215_v6  ;;  %v3720_v6 = vld [vmem:[#allocation13 + $0xd08] sm:$0xff] }
 0x573   : > { %v3951_v8 = vld [vmem:[#allocation13 + $0x1440] sm:$0xff]  ;;  %4439 = vmatpush.msrb.mxu0 %v3823_v7  ;;  %v3328_v7 = vld [vmem:[#allocation13 + $0xc8] sm:$0xff] }
 0x574   : > { %v4079_v9 = vld [vmem:[#allocation13 + $0x1840] sm:$0xff]  ;;  %4459 = vmatpush.msrb.mxu1 %v3951_v8  ;;  %v3456_v8 = vld [vmem:[#allocation13 + $0x4c8] sm:$0xff] }
 0x575   : > { %v4207_v10 = vld [vmem:[#allocation13 + $0x1c40] sm:$0xff]  ;;  %4479 = vmatpush.msrb.mxu2 %v4079_v9  ;;  %v3584_v9 = vld [vmem:[#allocation13 + $0x8c8] sm:$0xff] }
 0x576   : > { %v3815_v11 = vld [vmem:[#allocation13 + $0x1000] sm:$0xff]  ;;  %4499 = vmatpush.msrb.mxu3 %v4207_v10  ;;  %v3712_v10 = vld [vmem:[#allocation13 + $0xcc8] sm:$0xff] }
 0x577   : > { %v3943_v13 = vld [vmem:[#allocation13 + $0x1400] sm:$0xff]  ;;  %4440 = vmatpush.msrb.mxu0 %v3815_v11  ;;  %v3320_v11 = vld [vmem:[#allocation13 + $0x88] sm:$0xff] }
 0x578   : > { %v4071_v14 = vld [vmem:[#allocation13 + $0x1800] sm:$0xff]  ;;  %4460 = vmatpush.msrb.mxu1 %v3943_v13  ;;  %v3448_v13 = vld [vmem:[#allocation13 + $0x488] sm:$0xff] }
 0x579   : > { %v4199_v15 = vld [vmem:[#allocation13 + $0x1c00] sm:$0xff]  ;;  %4480 = vmatpush.msrb.mxu2 %v4071_v14  ;;  %4461 = vmatmul.f32.vlgmr.msrb.gmra.mxu1 %v8023_v47  ;;  %v3576_v14 = vld [vmem:[#allocation13 + $0x888] sm:$0xff] }
 0x57a   : > { %v8003_v16 = vld [vmem:[#allocation3] sm:$0xff]  ;;  %4500 = vmatpush.msrb.mxu3 %v4199_v15  ;;  %4525 = vmatpush.msra.mxu1 %v3552_v20  ;;  %v3704_v15 = vld [vmem:[#allocation13 + $0xc88] sm:$0xff] }
 0x57b   : > { %4361 = vmatmul.f32.vlgmr.msra.gmra.mxu0 %v8003_v16  ;;  %4545 = vmatpush.msra.mxu2 %v3680_v21  ;;  %v8017_v41 = vld [vmem:[#allocation3 + $0x20] sm:$0xff]  ;;  %v3440_v20 = vld [vmem:[#allocation13 + $0x448] sm:$0xff] }
 0x57c   : > { %4505 = vmatpush.msra.mxu0 %v3424_v19  ;;  %4565 = vmatpush.msra.mxu3 %v3808_v22  ;;  %v3312_v19 = vld [vmem:[#allocation13 + $0x48] sm:$0xff] }
 0x57d   : > { %4526 = vmatpush.msra.mxu1 %v3544_v25  ;;  %4546 = vmatpush.msra.mxu2 %v3672_v26  ;;  %v3568_v21 = vld [vmem:[#allocation13 + $0x848] sm:$0xff] }
 0x57e   : > { %4506 = vmatpush.msra.mxu0 %v3416_v23  ;;  %4566 = vmatpush.msra.mxu3 %v3800_v27  ;;  %v3696_v22 = vld [vmem:[#allocation13 + $0xc48] sm:$0xff] }
 0x57f   : > { %4527 = vmatpush.msra.mxu1 %v3536_v29  ;;  %4547 = vmatpush.msra.mxu2 %v3664_v30  ;;  %v3304_v23 = vld [vmem:[#allocation13 + $0x8] sm:$0xff] }
 0x580   : > { %4507 = vmatpush.msra.mxu0 %v3408_v28  ;;  %4567 = vmatpush.msra.mxu3 %v3792_v31  ;;  %v3432_v25 = vld [vmem:[#allocation13 + $0x408] sm:$0xff] }
 0x581   : > { %4528 = vmatpush.msra.mxu1 %v3528_v33  ;;  %4548 = vmatpush.msra.mxu2 %v3656_v34  ;;  %v3560_v26 = vld [vmem:[#allocation13 + $0x808] sm:$0xff] }
 0x582   : > { %4508 = vmatpush.msra.mxu0 %v3400_v32  ;;  %4568 = vmatpush.msra.mxu3 %v3784_v35  ;;  %v3688_v27 = vld [vmem:[#allocation13 + $0xc08] sm:$0xff] }
 0x583   : > { %4481 = vmatmul.f32.vlgmr.msrb.gmra.mxu2 %v8015_v36  ;;  %4529 = vmatpush.msra.mxu1 %v3520_v38  ;;  %v3936_v28 = vld [vmem:[#allocation13 + $0x13c8] sm:$0xff] }
 0x584   : > { %4509 = vmatpush.msra.mxu0 %v3392_v37  ;;  %4549 = vmatpush.msra.mxu2 %v3648_v39  ;;  %v4064_v29 = vld [vmem:[#allocation13 + $0x17c8] sm:$0xff] }
 0x585   : > { %4569 = vmatpush.msra.mxu3 %v3776_v40  ;;  %4441 = vmatmul.f32.vlgmr.msrb.gmra.mxu0 %v8017_v41  ;;  %v4192_v30 = vld [vmem:[#allocation13 + $0x1bc8] sm:$0xff] }
 0x586   : > { %4501 = vmatmul.f32.vlgmr.msrb.gmra.mxu3 %v8020_v42  ;;  %4510 = vmatpush.msra.mxu0 %v3384_v43  ;;  %v4320_v31 = vld [vmem:[#allocation13 + $0x1fc8] sm:$0xff] }
 0x587   : > { %4530 = vmatpush.msra.mxu1 %v3512_v44  ;;  %4550 = vmatpush.msra.mxu2 %v3640_v45  ;;  %v3928_v32 = vld [vmem:[#allocation13 + $0x1388] sm:$0xff] }
 0x588   : > { %4570 = vmatpush.msra.mxu3 %v3768_v46  ;;  %4511 = vmatpush.msra.mxu0 %v3376_v48  ;;  %v4056_v33 = vld [vmem:[#allocation13 + $0x1788] sm:$0xff] }
 0x589   : > { %4531 = vmatpush.msra.mxu1 %v3504_v49  ;;  %4551 = vmatpush.msra.mxu2 %v3632_v50  ;;  %v4184_v34 = vld [vmem:[#allocation13 + $0x1b88] sm:$0xff] }
 0x58a   : > { %4571 = vmatpush.msra.mxu3 %v3760_v51  ;;  %4512 = vmatpush.msra.mxu0 %v3368_v52  ;;  %v4312_v35 = vld [vmem:[#allocation13 + $0x1f88] sm:$0xff] }
 0x58b   : > { %4532 = vmatpush.msra.mxu1 %v3496_v53  ;;  %4552 = vmatpush.msra.mxu2 %v3624_v54  ;;  %v3920_v37 = vld [vmem:[#allocation13 + $0x1348] sm:$0xff] }
 0x58c   : > { %4572 = vmatpush.msra.mxu3 %v3752_v55  ;;  %4513 = vmatpush.msra.mxu0 %v3360_v56  ;;  %v4048_v38 = vld [vmem:[#allocation13 + $0x1748] sm:$0xff] }
 0x58d   : > { %4533 = vmatpush.msra.mxu1 %v3488_v57  ;;  %4553 = vmatpush.msra.mxu2 %v3616_v58  ;;  %v4176_v39 = vld [vmem:[#allocation13 + $0x1b48] sm:$0xff] }
 0x58e   : > { %4573 = vmatpush.msra.mxu3 %v3744_v59  ;;  %4514 = vmatpush.msra.mxu0 %v3352_v60  ;;  %v4304_v40 = vld [vmem:[#allocation13 + $0x1f48] sm:$0xff] }
 0x58f   : > { %4534 = vmatpush.msra.mxu1 %v3480_v61  ;;  %4554 = vmatpush.msra.mxu2 %v3608_v62  ;;  %v3912_v43 = vld [vmem:[#allocation13 + $0x1308] sm:$0xff] }
 0x590   : > { %4574 = vmatpush.msra.mxu3 %v3736_v63  ;;  %4515 = vmatpush.msra.mxu0 %v3344_v0  ;;  %v4040_v44 = vld [vmem:[#allocation13 + $0x1708] sm:$0xff] }
 0x591   : > { %4535 = vmatpush.msra.mxu1 %v3472_v24  ;;  %4555 = vmatpush.msra.mxu2 %v3600_v1  ;;  %v4168_v45 = vld [vmem:[#allocation13 + $0x1b08] sm:$0xff] }
 0x592   : > { %4575 = vmatpush.msra.mxu3 %v3728_v2  ;;  %4516 = vmatpush.msra.mxu0 %v3336_v3  ;;  %v4296_v46 = vld [vmem:[#allocation13 + $0x1f08] sm:$0xff] }
 0x593   : > { %4536 = vmatpush.msra.mxu1 %v3464_v4  ;;  %4556 = vmatpush.msra.mxu2 %v3592_v5  ;;  %v3904_v48 = vld [vmem:[#allocation13 + $0x12c8] sm:$0xff] }
 0x594   : > { %4576 = vmatpush.msra.mxu3 %v3720_v6  ;;  %4517 = vmatpush.msra.mxu0 %v3328_v7  ;;  %v4032_v49 = vld [vmem:[#allocation13 + $0x16c8] sm:$0xff] }
 0x595   : > { %4537 = vmatpush.msra.mxu1 %v3456_v8  ;;  %4557 = vmatpush.msra.mxu2 %v3584_v9  ;;  %v4160_v50 = vld [vmem:[#allocation13 + $0x1ac8] sm:$0xff] }
 0x596   : > { %4577 = vmatpush.msra.mxu3 %v3712_v10  ;;  %4518 = vmatpush.msra.mxu0 %v3320_v11  ;;  %v4288_v51 = vld [vmem:[#allocation13 + $0x1ec8] sm:$0xff] }
 0x597   : > { %4538 = vmatpush.msra.mxu1 %v3448_v13  ;;  %4558 = vmatpush.msra.mxu2 %v3576_v14  ;;  %v3896_v52 = vld [vmem:[#allocation13 + $0x1288] sm:$0xff] }
 0x598   : > { %4578 = vmatpush.msra.mxu3 %v3704_v15  ;;  %4519 = vmatpush.msra.mxu0 %v3312_v19  ;;  %v4024_v53 = vld [vmem:[#allocation13 + $0x1688] sm:$0xff] }
 0x599   : > { %4539 = vmatpush.msra.mxu1 %v3440_v20  ;;  %4559 = vmatpush.msra.mxu2 %v3568_v21  ;;  %v4152_v54 = vld [vmem:[#allocation13 + $0x1a88] sm:$0xff] }
 0x59a   : > { %4579 = vmatpush.msra.mxu3 %v3696_v22  ;;  %4520 = vmatpush.msra.mxu0 %v3304_v23  ;;  %v4280_v55 = vld [vmem:[#allocation13 + $0x1e88] sm:$0xff] }
 0x59b   : > { %4540 = vmatpush.msra.mxu1 %v3432_v25  ;;  %4560 = vmatpush.msra.mxu2 %v3560_v26  ;;  %v3888_v56 = vld [vmem:[#allocation13 + $0x1248] sm:$0xff] }
 0x59c   : > { %4580 = vmatpush.msra.mxu3 %v3688_v27  ;;  %4585 = vmatpush.msrb.mxu0 %v3936_v28  ;;  %v4016_v57 = vld [vmem:[#allocation13 + $0x1648] sm:$0xff] }
 0x59d   : > { %4605 = vmatpush.msrb.mxu1 %v4064_v29  ;;  %4625 = vmatpush.msrb.mxu2 %v4192_v30  ;;  %v4144_v58 = vld [vmem:[#allocation13 + $0x1a48] sm:$0xff] }
 0x59e   : > { %4645 = vmatpush.msrb.mxu3 %v4320_v31  ;;  %4586 = vmatpush.msrb.mxu0 %v3928_v32  ;;  %v4272_v59 = vld [vmem:[#allocation13 + $0x1e48] sm:$0xff] }
 0x59f   : > { %4606 = vmatpush.msrb.mxu1 %v4056_v33  ;;  %4626 = vmatpush.msrb.mxu2 %v4184_v34  ;;  %v3880_v60 = vld [vmem:[#allocation13 + $0x1208] sm:$0xff] }
 0x5a0   : > { %4646 = vmatpush.msrb.mxu3 %v4312_v35  ;;  %4587 = vmatpush.msrb.mxu0 %v3920_v37  ;;  %v4008_v61 = vld [vmem:[#allocation13 + $0x1608] sm:$0xff]  ;;  %v3425_v37 = vld [vmem:[#allocation13 + $0x3d0] sm:$0xff] }
 0x5a1   : > { %4607 = vmatpush.msrb.mxu1 %v4048_v38  ;;  %4627 = vmatpush.msrb.mxu2 %v4176_v39  ;;  %v4136_v62 = vld [vmem:[#allocation13 + $0x1a08] sm:$0xff]  ;;  %v3553_v38 = vld [vmem:[#allocation13 + $0x7d0] sm:$0xff] }
 0x5a2   : > { %4647 = vmatpush.msrb.mxu3 %v4304_v40  ;;  %4588 = vmatpush.msrb.mxu0 %v3912_v43  ;;  %v4264_v63 = vld [vmem:[#allocation13 + $0x1e08] sm:$0xff]  ;;  %v3681_v39 = vld [vmem:[#allocation13 + $0xbd0] sm:$0xff] }
 0x5a3   : > { %4608 = vmatpush.msrb.mxu1 %v4040_v44  ;;  %4628 = vmatpush.msrb.mxu2 %v4168_v45  ;;  %v3872_v0 = vld [vmem:[#allocation13 + $0x11c8] sm:$0xff]  ;;  %v3809_v40 = vld [vmem:[#allocation13 + $0xfd0] sm:$0xff] }
 0x5a4   : > { %4648 = vmatpush.msrb.mxu3 %v4296_v46  ;;  %4589 = vmatpush.msrb.mxu0 %v3904_v48  ;;  %v4000_v24 = vld [vmem:[#allocation13 + $0x15c8] sm:$0xff]  ;;  %v3417_v43 = vld [vmem:[#allocation13 + $0x390] sm:$0xff] }
 0x5a5   : > { %4609 = vmatpush.msrb.mxu1 %v4032_v49  ;;  %4629 = vmatpush.msrb.mxu2 %v4160_v50  ;;  %v4128_v1 = vld [vmem:[#allocation13 + $0x19c8] sm:$0xff]  ;;  %v3545_v44 = vld [vmem:[#allocation13 + $0x790] sm:$0xff] }
 0x5a6   : > { %4649 = vmatpush.msrb.mxu3 %v4288_v51  ;;  %4590 = vmatpush.msrb.mxu0 %v3896_v52  ;;  %v4256_v2 = vld [vmem:[#allocation13 + $0x1dc8] sm:$0xff]  ;;  %v3673_v45 = vld [vmem:[#allocation13 + $0xb90] sm:$0xff] }
 0x5a7   : > { %4610 = vmatpush.msrb.mxu1 %v4024_v53  ;;  %4630 = vmatpush.msrb.mxu2 %v4152_v54  ;;  %v3864_v3 = vld [vmem:[#allocation13 + $0x1188] sm:$0xff]  ;;  %v3801_v46 = vld [vmem:[#allocation13 + $0xf90] sm:$0xff] }
 0x5a8   : > { %4650 = vmatpush.msrb.mxu3 %v4280_v55  ;;  %4591 = vmatpush.msrb.mxu0 %v3888_v56  ;;  %v3992_v4 = vld [vmem:[#allocation13 + $0x1588] sm:$0xff]  ;;  %v3409_v48 = vld [vmem:[#allocation13 + $0x350] sm:$0xff] }
 0x5a9   : > { %4611 = vmatpush.msrb.mxu1 %v4016_v57  ;;  %4631 = vmatpush.msrb.mxu2 %v4144_v58  ;;  %v4120_v5 = vld [vmem:[#allocation13 + $0x1988] sm:$0xff]  ;;  %v3537_v49 = vld [vmem:[#allocation13 + $0x750] sm:$0xff] }
 0x5aa   : > { %4651 = vmatpush.msrb.mxu3 %v4272_v59  ;;  %4592 = vmatpush.msrb.mxu0 %v3880_v60  ;;  %v4248_v6 = vld [vmem:[#allocation13 + $0x1d88] sm:$0xff]  ;;  %v3401_v50 = vld [vmem:[#allocation13 + $0x310] sm:$0xff] }
 0x5ab   : > { %4612 = vmatpush.msrb.mxu1 %v4008_v61  ;;  %4632 = vmatpush.msrb.mxu2 %v4136_v62  ;;  %v3856_v7 = vld [vmem:[#allocation13 + $0x1148] sm:$0xff]  ;;  %v3785_v51 = vld [vmem:[#allocation13 + $0xf10] sm:$0xff] }
 0x5ac   : > { %4652 = vmatpush.msrb.mxu3 %v4264_v63  ;;  %4593 = vmatpush.msrb.mxu0 %v3872_v0  ;;  %v3984_v8 = vld [vmem:[#allocation13 + $0x1548] sm:$0xff]  ;;  %v3393_v52 = vld [vmem:[#allocation13 + $0x2d0] sm:$0xff] }
 0x5ad   : > { %4613 = vmatpush.msrb.mxu1 %v4000_v24  ;;  %4633 = vmatpush.msrb.mxu2 %v4128_v1  ;;  %v4112_v9 = vld [vmem:[#allocation13 + $0x1948] sm:$0xff]  ;;  %v3521_v53 = vld [vmem:[#allocation13 + $0x6d0] sm:$0xff] }
 0x5ae   : > { %4653 = vmatpush.msrb.mxu3 %v4256_v2  ;;  %4594 = vmatpush.msrb.mxu0 %v3864_v3  ;;  %v4240_v10 = vld [vmem:[#allocation13 + $0x1d48] sm:$0xff]  ;;  %v3649_v54 = vld [vmem:[#allocation13 + $0xad0] sm:$0xff] }
 0x5af   : > { %4614 = vmatpush.msrb.mxu1 %v3992_v4  ;;  %4634 = vmatpush.msrb.mxu2 %v4120_v5  ;;  %v3848_v11 = vld [vmem:[#allocation13 + $0x1108] sm:$0xff]  ;;  %v3777_v55 = vld [vmem:[#allocation13 + $0xed0] sm:$0xff] }
 0x5b0   : > { %4654 = vmatpush.msrb.mxu3 %v4248_v6  ;;  %v3976_v13 = vld [vmem:[#allocation13 + $0x1508] sm:$0xff]  ;;  %4595 = vmatpush.msrb.mxu0 %v3856_v7  ;;  %v3385_v56 = vld [vmem:[#allocation13 + $0x290] sm:$0xff] }
 0x5b1   : > { %4615 = vmatpush.msrb.mxu1 %v3984_v8  ;;  %v4104_v14 = vld [vmem:[#allocation13 + $0x1908] sm:$0xff]  ;;  %4635 = vmatpush.msrb.mxu2 %v4112_v9  ;;  %v3513_v57 = vld [vmem:[#allocation13 + $0x690] sm:$0xff] }
 0x5b2   : > { %v4232_v15 = vld [vmem:[#allocation13 + $0x1d08] sm:$0xff]  ;;  %4655 = vmatpush.msrb.mxu3 %v4240_v10  ;;  %4596 = vmatpush.msrb.mxu0 %v3848_v11  ;;  %v3641_v58 = vld [vmem:[#allocation13 + $0xa90] sm:$0xff] }
 0x5b3   : > { %v3840_v19 = vld [vmem:[#allocation13 + $0x10c8] sm:$0xff]  ;;  %4616 = vmatpush.msrb.mxu1 %v3976_v13  ;;  %4636 = vmatpush.msrb.mxu2 %v4104_v14  ;;  %v3769_v59 = vld [vmem:[#allocation13 + $0xe90] sm:$0xff] }
 0x5b4   : > { %v3968_v20 = vld [vmem:[#allocation13 + $0x14c8] sm:$0xff]  ;;  %4656 = vmatpush.msrb.mxu3 %v4232_v15  ;;  %4597 = vmatpush.msrb.mxu0 %v3840_v19  ;;  %v3377_v60 = vld [vmem:[#allocation13 + $0x250] sm:$0xff] }
 0x5b5   : > { %v4096_v21 = vld [vmem:[#allocation13 + $0x18c8] sm:$0xff]  ;;  %4617 = vmatpush.msrb.mxu1 %v3968_v20  ;;  %4521 = vmatmul.f32.vlgmr.msra.gmra.mxu0 %v8003_v16  ;;  %v3665_v16 = vld [vmem:[#allocation13 + $0xb50] sm:$0xff] }
 0x5b6   : > { %v4224_v22 = vld [vmem:[#allocation13 + $0x1cc8] sm:$0xff]  ;;  %4637 = vmatpush.msrb.mxu2 %v4096_v21  ;;  %4541 = vmatmul.f32.vlgmr.msra.gmra.mxu1 %v8005_v17  ;;  %v3793_v17 = vld [vmem:[#allocation13 + $0xf50] sm:$0xff] }
 0x5b7   : > { %v3832_v23 = vld [vmem:[#allocation13 + $0x1088] sm:$0xff]  ;;  %4657 = vmatpush.msrb.mxu3 %v4224_v22  ;;  %4561 = vmatmul.f32.vlgmr.msra.gmra.mxu2 %v8007_v18  ;;  %v3529_v18 = vld [vmem:[#allocation13 + $0x710] sm:$0xff] }
 0x5b8   : > { %v3960_v25 = vld [vmem:[#allocation13 + $0x1488] sm:$0xff]  ;;  %4598 = vmatpush.msrb.mxu0 %v3832_v23  ;;  %4581 = vmatmul.f32.vlgmr.msra.gmra.mxu3 %v8009_v12  ;;  %v3657_v12 = vld [vmem:[#allocation13 + $0xb10] sm:$0xff] }
 0x5b9   : > { %v4088_v26 = vld [vmem:[#allocation13 + $0x1888] sm:$0xff]  ;;  %4618 = vmatpush.msrb.mxu1 %v3960_v25  ;;  %v3505_v61 = vld [vmem:[#allocation13 + $0x650] sm:$0xff] }
 0x5ba   : > { %v4216_v27 = vld [vmem:[#allocation13 + $0x1c88] sm:$0xff]  ;;  %4638 = vmatpush.msrb.mxu2 %v4088_v26  ;;  %v3633_v62 = vld [vmem:[#allocation13 + $0xa50] sm:$0xff] }
 0x5bb   : > { %v3824_v28 = vld [vmem:[#allocation13 + $0x1048] sm:$0xff]  ;;  %4658 = vmatpush.msrb.mxu3 %v4216_v27  ;;  %v3761_v63 = vld [vmem:[#allocation13 + $0xe50] sm:$0xff] }
 0x5bc   : > { %v3952_v29 = vld [vmem:[#allocation13 + $0x1448] sm:$0xff]  ;;  %4599 = vmatpush.msrb.mxu0 %v3824_v28  ;;  %v3497_v0 = vld [vmem:[#allocation13 + $0x610] sm:$0xff] }
 0x5bd   : > { %v4080_v30 = vld [vmem:[#allocation13 + $0x1848] sm:$0xff]  ;;  %4619 = vmatpush.msrb.mxu1 %v3952_v29  ;;  %v3625_v24 = vld [vmem:[#allocation13 + $0xa10] sm:$0xff] }
 0x5be   : > { %v4208_v31 = vld [vmem:[#allocation13 + $0x1c48] sm:$0xff]  ;;  %4639 = vmatpush.msrb.mxu2 %v4080_v30  ;;  %v3753_v1 = vld [vmem:[#allocation13 + $0xe10] sm:$0xff] }
 0x5bf   : > { %v3816_v32 = vld [vmem:[#allocation13 + $0x1008] sm:$0xff]  ;;  %4659 = vmatpush.msrb.mxu3 %v4208_v31  ;;  %v3617_v2 = vld [vmem:[#allocation13 + $0x9d0] sm:$0xff] }
 0x5c0   : > { %v3944_v33 = vld [vmem:[#allocation13 + $0x1408] sm:$0xff]  ;;  %4600 = vmatpush.msrb.mxu0 %v3816_v32  ;;  %v3745_v3 = vld [vmem:[#allocation13 + $0xdd0] sm:$0xff] }
 0x5c1   : > { %v4072_v34 = vld [vmem:[#allocation13 + $0x1808] sm:$0xff]  ;;  %4620 = vmatpush.msrb.mxu1 %v3944_v33  ;;  %4601 = vmatmul.f32.vlgmr.msrb.gmra.mxu0 %v8017_v41  ;;  %v3361_v41 = vld [vmem:[#allocation13 + $0x1d0] sm:$0xff] }
 0x5c2   : > { %v4200_v35 = vld [vmem:[#allocation13 + $0x1c08] sm:$0xff]  ;;  %4640 = vmatpush.msrb.mxu2 %v4072_v34  ;;  %4665 = vmatpush.msra.mxu0 %v3425_v37  ;;  %v3353_v4 = vld [vmem:[#allocation13 + $0x190] sm:$0xff] }
 0x5c3   : > { %4660 = vmatpush.msrb.mxu3 %v4200_v35  ;;  %4685 = vmatpush.msra.mxu1 %v3553_v38  ;;  %v3481_v5 = vld [vmem:[#allocation13 + $0x590] sm:$0xff] }
 0x5c4   : > { %4705 = vmatpush.msra.mxu2 %v3681_v39  ;;  %4666 = vmatpush.msra.mxu0 %v3417_v43  ;;  %v3737_v6 = vld [vmem:[#allocation13 + $0xd90] sm:$0xff] }
 0x5c5   : > { %4725 = vmatpush.msra.mxu3 %v3809_v40  ;;  %4686 = vmatpush.msra.mxu1 %v3545_v44  ;;  %v3345_v7 = vld [vmem:[#allocation13 + $0x150] sm:$0xff] }
 0x5c6   : > { %4706 = vmatpush.msra.mxu2 %v3673_v45  ;;  %4667 = vmatpush.msra.mxu0 %v3409_v48  ;;  %v3473_v8 = vld [vmem:[#allocation13 + $0x550] sm:$0xff] }
 0x5c7   : > { %4726 = vmatpush.msra.mxu3 %v3801_v46  ;;  %4687 = vmatpush.msra.mxu1 %v3537_v49  ;;  %v3601_v9 = vld [vmem:[#allocation13 + $0x950] sm:$0xff] }
 0x5c8   : > { %4707 = vmatpush.msra.mxu2 %v3665_v16  ;;  %4668 = vmatpush.msra.mxu0 %v3401_v50  ;;  %v3729_v10 = vld [vmem:[#allocation13 + $0xd50] sm:$0xff] }
 0x5c9   : > { %4727 = vmatpush.msra.mxu3 %v3793_v17  ;;  %4688 = vmatpush.msra.mxu1 %v3529_v18  ;;  %v3337_v11 = vld [vmem:[#allocation13 + $0x110] sm:$0xff] }
 0x5ca   : > { %4708 = vmatpush.msra.mxu2 %v3657_v12  ;;  %4669 = vmatpush.msra.mxu0 %v3393_v52  ;;  %v3465_v13 = vld [vmem:[#allocation13 + $0x510] sm:$0xff] }
 0x5cb   : > { %4728 = vmatpush.msra.mxu3 %v3785_v51  ;;  %4641 = vmatmul.f32.vlgmr.msrb.gmra.mxu2 %v8015_v36  ;;  %v3369_v36 = vld [vmem:[#allocation13 + $0x210] sm:$0xff] }
 0x5cc   : > { %4689 = vmatpush.msra.mxu1 %v3521_v53  ;;  %4709 = vmatpush.msra.mxu2 %v3649_v54  ;;  %v3593_v14 = vld [vmem:[#allocation13 + $0x910] sm:$0xff] }
 0x5cd   : > { %4729 = vmatpush.msra.mxu3 %v3777_v55  ;;  %4670 = vmatpush.msra.mxu0 %v3385_v56  ;;  %v3721_v15 = vld [vmem:[#allocation13 + $0xd10] sm:$0xff] }
 0x5ce   : > { %4661 = vmatmul.f32.vlgmr.msrb.gmra.mxu3 %v8020_v42  ;;  %4690 = vmatpush.msra.mxu1 %v3513_v57  ;;  %v3489_v42 = vld [vmem:[#allocation13 + $0x5d0] sm:$0xff] }
 0x5cf   : > { %4710 = vmatpush.msra.mxu2 %v3641_v58  ;;  %4730 = vmatpush.msra.mxu3 %v3769_v59  ;;  %v3329_v19 = vld [vmem:[#allocation13 + $0xd0] sm:$0xff] }
 0x5d0   : > { %4621 = vmatmul.f32.vlgmr.msrb.gmra.mxu1 %v8023_v47  ;;  %4671 = vmatpush.msra.mxu0 %v3377_v60  ;;  %v3609_v47 = vld [vmem:[#allocation13 + $0x990] sm:$0xff] }
 0x5d1   : > { %4691 = vmatpush.msra.mxu1 %v3505_v61  ;;  %4711 = vmatpush.msra.mxu2 %v3633_v62  ;;  %v3457_v20 = vld [vmem:[#allocation13 + $0x4d0] sm:$0xff] }
 0x5d2   : > { %4731 = vmatpush.msra.mxu3 %v3761_v63  ;;  %4672 = vmatpush.msra.mxu0 %v3369_v36  ;;  %v3585_v21 = vld [vmem:[#allocation13 + $0x8d0] sm:$0xff] }
 0x5d3   : > { %4692 = vmatpush.msra.mxu1 %v3497_v0  ;;  %4712 = vmatpush.msra.mxu2 %v3625_v24  ;;  %v3713_v22 = vld [vmem:[#allocation13 + $0xcd0] sm:$0xff] }
 0x5d4   : > { %4732 = vmatpush.msra.mxu3 %v3753_v1  ;;  %4673 = vmatpush.msra.mxu0 %v3361_v41  ;;  %v3321_v23 = vld [vmem:[#allocation13 + $0x90] sm:$0xff] }
 0x5d5   : > { %4693 = vmatpush.msra.mxu1 %v3489_v42  ;;  %4713 = vmatpush.msra.mxu2 %v3617_v2  ;;  %v3449_v25 = vld [vmem:[#allocation13 + $0x490] sm:$0xff] }
 0x5d6   : > { %4733 = vmatpush.msra.mxu3 %v3745_v3  ;;  %4674 = vmatpush.msra.mxu0 %v3353_v4  ;;  %v3577_v26 = vld [vmem:[#allocation13 + $0x890] sm:$0xff] }
 0x5d7   : > { %4694 = vmatpush.msra.mxu1 %v3481_v5  ;;  %4714 = vmatpush.msra.mxu2 %v3609_v47  ;;  %v3705_v27 = vld [vmem:[#allocation13 + $0xc90] sm:$0xff] }
 0x5d8   : > { %4734 = vmatpush.msra.mxu3 %v3737_v6  ;;  %4675 = vmatpush.msra.mxu0 %v3345_v7  ;;  %v3313_v28 = vld [vmem:[#allocation13 + $0x50] sm:$0xff] }
 0x5d9   : > { %4695 = vmatpush.msra.mxu1 %v3473_v8  ;;  %4715 = vmatpush.msra.mxu2 %v3601_v9  ;;  %v3441_v29 = vld [vmem:[#allocation13 + $0x450] sm:$0xff] }
 0x5da   : > { %4735 = vmatpush.msra.mxu3 %v3729_v10  ;;  %4676 = vmatpush.msra.mxu0 %v3337_v11  ;;  %v3569_v30 = vld [vmem:[#allocation13 + $0x850] sm:$0xff] }
 0x5db   : > { %4696 = vmatpush.msra.mxu1 %v3465_v13  ;;  %4716 = vmatpush.msra.mxu2 %v3593_v14  ;;  %v3697_v31 = vld [vmem:[#allocation13 + $0xc50] sm:$0xff] }
 0x5dc   : > { %4736 = vmatpush.msra.mxu3 %v3721_v15  ;;  %4677 = vmatpush.msra.mxu0 %v3329_v19  ;;  %v3305_v32 = vld [vmem:[#allocation13 + $0x10] sm:$0xff] }
 0x5dd   : > { %4697 = vmatpush.msra.mxu1 %v3457_v20  ;;  %4717 = vmatpush.msra.mxu2 %v3585_v21  ;;  %v3433_v33 = vld [vmem:[#allocation13 + $0x410] sm:$0xff] }
 0x5de   : > { %4737 = vmatpush.msra.mxu3 %v3713_v22  ;;  %4678 = vmatpush.msra.mxu0 %v3321_v23  ;;  %v3561_v34 = vld [vmem:[#allocation13 + $0x810] sm:$0xff] }
 0x5df   : > { %4698 = vmatpush.msra.mxu1 %v3449_v25  ;;  %4718 = vmatpush.msra.mxu2 %v3577_v26  ;;  %v3689_v35 = vld [vmem:[#allocation13 + $0xc10] sm:$0xff] }
 0x5e0   : > { %4738 = vmatpush.msra.mxu3 %v3705_v27  ;;  %4679 = vmatpush.msra.mxu0 %v3313_v28  ;;  %v3937_v37 = vld [vmem:[#allocation13 + $0x13d0] sm:$0xff] }
 0x5e1   : > { %4699 = vmatpush.msra.mxu1 %v3441_v29  ;;  %4719 = vmatpush.msra.mxu2 %v3569_v30  ;;  %v4065_v38 = vld [vmem:[#allocation13 + $0x17d0] sm:$0xff] }
 0x5e2   : > { %4739 = vmatpush.msra.mxu3 %v3697_v31  ;;  %4680 = vmatpush.msra.mxu0 %v3305_v32  ;;  %v4193_v39 = vld [vmem:[#allocation13 + $0x1bd0] sm:$0xff] }
 0x5e3   : > { %4700 = vmatpush.msra.mxu1 %v3433_v33  ;;  %v4321_v40 = vld [vmem:[#allocation13 + $0x1fd0] sm:$0xff]  ;;  %4720 = vmatpush.msra.mxu2 %v3561_v34 }
 0x5e4   : > { %4740 = vmatpush.msra.mxu3 %v3689_v35  ;;  %v3929_v43 = vld [vmem:[#allocation13 + $0x1390] sm:$0xff]  ;;  %4745 = vmatpush.msrb.mxu0 %v3937_v37  ;;  %v3426_v37 = vld [vmem:[#allocation13 + $0x3d8] sm:$0xff] }
 0x5e5   : > { %v4057_v44 = vld [vmem:[#allocation13 + $0x1790] sm:$0xff]  ;;  %4765 = vmatpush.msrb.mxu1 %v4065_v38  ;;  %4785 = vmatpush.msrb.mxu2 %v4193_v39  ;;  %v3554_v38 = vld [vmem:[#allocation13 + $0x7d8] sm:$0xff]  ;;  %v8035_v39 = vld [vmem:[#allocation3] sm:$0xff] }
 0x5e6   : > { %v4185_v45 = vld [vmem:[#allocation13 + $0x1b90] sm:$0xff]  ;;  %4805 = vmatpush.msrb.mxu3 %v4321_v40  ;;  %4746 = vmatpush.msrb.mxu0 %v3929_v43  ;;  %v8038_v40 = vld [vmem:[#allocation3 + $0x8] sm:$0xff]  ;;  %v3682_v43 = vld [vmem:[#allocation13 + $0xbd8] sm:$0xff] }
 0x5e7   : > { %v4313_v46 = vld [vmem:[#allocation13 + $0x1f90] sm:$0xff]  ;;  %4766 = vmatpush.msrb.mxu1 %v4057_v44  ;;  %4786 = vmatpush.msrb.mxu2 %v4185_v45  ;;  %v3810_v44 = vld [vmem:[#allocation13 + $0xfd8] sm:$0xff] }
 0x5e8   : > { %v3921_v48 = vld [vmem:[#allocation13 + $0x1350] sm:$0xff]  ;;  %4806 = vmatpush.msrb.mxu3 %v4313_v46  ;;  %4681 = vmatmul.f32.vlgmr.msra.gmra.mxu0 %v8035_v39  ;;  %v8044_v46 = vld [vmem:[#allocation3 + $0x18] sm:$0xff] }
 0x5e9   : > { %v4049_v49 = vld [vmem:[#allocation13 + $0x1750] sm:$0xff]  ;;  %4747 = vmatpush.msrb.mxu0 %v3921_v48  ;;  %4701 = vmatmul.f32.vlgmr.msra.gmra.mxu1 %v8038_v40  ;;  %v3418_v48 = vld [vmem:[#allocation13 + $0x398] sm:$0xff] }
 0x5ea   : > { %v4177_v16 = vld [vmem:[#allocation13 + $0x1b50] sm:$0xff]  ;;  %4767 = vmatpush.msrb.mxu1 %v4049_v49  ;;  %4741 = vmatmul.f32.vlgmr.msra.gmra.mxu3 %v8044_v46  ;;  %v3546_v49 = vld [vmem:[#allocation13 + $0x798] sm:$0xff] }
 0x5eb   : > { %v4305_v17 = vld [vmem:[#allocation13 + $0x1f50] sm:$0xff]  ;;  %4787 = vmatpush.msrb.mxu2 %v4177_v16  ;;  %v3674_v16 = vld [vmem:[#allocation13 + $0xb98] sm:$0xff] }
 0x5ec   : > { %v3913_v50 = vld [vmem:[#allocation13 + $0x1310] sm:$0xff]  ;;  %4807 = vmatpush.msrb.mxu3 %v4305_v17  ;;  %v3802_v17 = vld [vmem:[#allocation13 + $0xf98] sm:$0xff] }
 0x5ed   : > { %v4041_v18 = vld [vmem:[#allocation13 + $0x1710] sm:$0xff]  ;;  %4748 = vmatpush.msrb.mxu0 %v3913_v50  ;;  %v3410_v50 = vld [vmem:[#allocation13 + $0x358] sm:$0xff] }
 0x5ee   : > { %v4169_v12 = vld [vmem:[#allocation13 + $0x1b10] sm:$0xff]  ;;  %4768 = vmatpush.msrb.mxu1 %v4041_v18  ;;  %v3538_v18 = vld [vmem:[#allocation13 + $0x758] sm:$0xff] }
 0x5ef   : > { %v4297_v51 = vld [vmem:[#allocation13 + $0x1f10] sm:$0xff]  ;;  %4788 = vmatpush.msrb.mxu2 %v4169_v12  ;;  %v3666_v12 = vld [vmem:[#allocation13 + $0xb58] sm:$0xff] }
 0x5f0   : > { %v3905_v52 = vld [vmem:[#allocation13 + $0x12d0] sm:$0xff]  ;;  %4808 = vmatpush.msrb.mxu3 %v4297_v51  ;;  %v3794_v51 = vld [vmem:[#allocation13 + $0xf58] sm:$0xff] }
 0x5f1   : > { %v4033_v53 = vld [vmem:[#allocation13 + $0x16d0] sm:$0xff]  ;;  %4749 = vmatpush.msrb.mxu0 %v3905_v52  ;;  %v3402_v52 = vld [vmem:[#allocation13 + $0x318] sm:$0xff] }
 0x5f2   : > { %v4161_v54 = vld [vmem:[#allocation13 + $0x1ad0] sm:$0xff]  ;;  %4769 = vmatpush.msrb.mxu1 %v4033_v53  ;;  %v3530_v53 = vld [vmem:[#allocation13 + $0x718] sm:$0xff] }
 0x5f3   : > { %v4289_v55 = vld [vmem:[#allocation13 + $0x1ed0] sm:$0xff]  ;;  %4789 = vmatpush.msrb.mxu2 %v4161_v54  ;;  %v3658_v54 = vld [vmem:[#allocation13 + $0xb18] sm:$0xff] }
 0x5f4   : > { %v3897_v56 = vld [vmem:[#allocation13 + $0x1290] sm:$0xff]  ;;  %4809 = vmatpush.msrb.mxu3 %v4289_v55  ;;  %v3786_v55 = vld [vmem:[#allocation13 + $0xf18] sm:$0xff] }
 0x5f5   : > { %v4025_v57 = vld [vmem:[#allocation13 + $0x1690] sm:$0xff]  ;;  %4750 = vmatpush.msrb.mxu0 %v3897_v56  ;;  %v3394_v56 = vld [vmem:[#allocation13 + $0x2d8] sm:$0xff] }
 0x5f6   : > { %v4153_v58 = vld [vmem:[#allocation13 + $0x1a90] sm:$0xff]  ;;  %4770 = vmatpush.msrb.mxu1 %v4025_v57  ;;  %v3522_v57 = vld [vmem:[#allocation13 + $0x6d8] sm:$0xff] }
 0x5f7   : > { %v4281_v59 = vld [vmem:[#allocation13 + $0x1e90] sm:$0xff]  ;;  %4790 = vmatpush.msrb.mxu2 %v4153_v58  ;;  %v3650_v58 = vld [vmem:[#allocation13 + $0xad8] sm:$0xff] }
 0x5f8   : > { %v3889_v60 = vld [vmem:[#allocation13 + $0x1250] sm:$0xff]  ;;  %4810 = vmatpush.msrb.mxu3 %v4281_v59  ;;  %v3778_v59 = vld [vmem:[#allocation13 + $0xed8] sm:$0xff] }
 0x5f9   : > { %v4017_v61 = vld [vmem:[#allocation13 + $0x1650] sm:$0xff]  ;;  %4751 = vmatpush.msrb.mxu0 %v3889_v60 }
 0x5fa   : > { %v4145_v62 = vld [vmem:[#allocation13 + $0x1a50] sm:$0xff]  ;;  %4771 = vmatpush.msrb.mxu1 %v4017_v61  ;;  %v3386_v61 = vld [vmem:[#allocation13 + $0x298] sm:$0xff] }
 0x5fb   : > { %v4273_v63 = vld [vmem:[#allocation13 + $0x1e50] sm:$0xff]  ;;  %4791 = vmatpush.msrb.mxu2 %v4145_v62  ;;  %v3514_v62 = vld [vmem:[#allocation13 + $0x698] sm:$0xff] }
 0x5fc   : > { %v3881_v36 = vld [vmem:[#allocation13 + $0x1210] sm:$0xff]  ;;  %4811 = vmatpush.msrb.mxu3 %v4273_v63  ;;  %v3642_v63 = vld [vmem:[#allocation13 + $0xa98] sm:$0xff] }
 0x5fd   : > { %v4009_v0 = vld [vmem:[#allocation13 + $0x1610] sm:$0xff]  ;;  %4752 = vmatpush.msrb.mxu0 %v3881_v36  ;;  %v8050_v36 = vld [vmem:[#allocation3 + $0x20] sm:$0xff] }
 0x5fe   : > { %v4137_v24 = vld [vmem:[#allocation13 + $0x1a10] sm:$0xff]  ;;  %4772 = vmatpush.msrb.mxu1 %v4009_v0  ;;  %v3770_v0 = vld [vmem:[#allocation13 + $0xe98] sm:$0xff] }
 0x5ff   : > { %v4265_v1 = vld [vmem:[#allocation13 + $0x1e10] sm:$0xff]  ;;  %4792 = vmatpush.msrb.mxu2 %v4137_v24  ;;  %v8053_v24 = vld [vmem:[#allocation3 + $0x38] sm:$0xff] }
 0x600   : > { %v3873_v41 = vld [vmem:[#allocation13 + $0x11d0] sm:$0xff]  ;;  %4812 = vmatpush.msrb.mxu3 %v4265_v1  ;;  %v3378_v1 = vld [vmem:[#allocation13 + $0x258] sm:$0xff] }
 0x601   : > { %v4001_v42 = vld [vmem:[#allocation13 + $0x15d0] sm:$0xff]  ;;  %4753 = vmatpush.msrb.mxu0 %v3873_v41  ;;  %v3506_v41 = vld [vmem:[#allocation13 + $0x658] sm:$0xff] }
 0x602   : > { %v4129_v2 = vld [vmem:[#allocation13 + $0x19d0] sm:$0xff]  ;;  %4773 = vmatpush.msrb.mxu1 %v4001_v42  ;;  %v3634_v42 = vld [vmem:[#allocation13 + $0xa58] sm:$0xff] }
 0x603   : > { %v4257_v3 = vld [vmem:[#allocation13 + $0x1dd0] sm:$0xff]  ;;  %4793 = vmatpush.msrb.mxu2 %v4129_v2  ;;  %v3762_v2 = vld [vmem:[#allocation13 + $0xe58] sm:$0xff] }
 0x604   : > { %v3865_v4 = vld [vmem:[#allocation13 + $0x1190] sm:$0xff]  ;;  %4813 = vmatpush.msrb.mxu3 %v4257_v3  ;;  %v8056_v3 = vld [vmem:[#allocation3 + $0x28] sm:$0xff] }
 0x605   : > { %v3993_v5 = vld [vmem:[#allocation13 + $0x1590] sm:$0xff]  ;;  %4754 = vmatpush.msrb.mxu0 %v3865_v4  ;;  %v3370_v4 = vld [vmem:[#allocation13 + $0x218] sm:$0xff] }
 0x606   : > { %v4121_v47 = vld [vmem:[#allocation13 + $0x1990] sm:$0xff]  ;;  %4774 = vmatpush.msrb.mxu1 %v3993_v5  ;;  %v3498_v5 = vld [vmem:[#allocation13 + $0x618] sm:$0xff] }
 0x607   : > { %v4249_v6 = vld [vmem:[#allocation13 + $0x1d90] sm:$0xff]  ;;  %4794 = vmatpush.msrb.mxu2 %v4121_v47  ;;  %v3626_v47 = vld [vmem:[#allocation13 + $0xa18] sm:$0xff] }
 0x608   : > { %v3857_v7 = vld [vmem:[#allocation13 + $0x1150] sm:$0xff]  ;;  %4814 = vmatpush.msrb.mxu3 %v4249_v6  ;;  %v3754_v6 = vld [vmem:[#allocation13 + $0xe18] sm:$0xff] }
 0x609   : > { %v3985_v8 = vld [vmem:[#allocation13 + $0x1550] sm:$0xff]  ;;  %4755 = vmatpush.msrb.mxu0 %v3857_v7  ;;  %v3362_v7 = vld [vmem:[#allocation13 + $0x1d8] sm:$0xff] }
 0x60a   : > { %v4113_v9 = vld [vmem:[#allocation13 + $0x1950] sm:$0xff]  ;;  %4775 = vmatpush.msrb.mxu1 %v3985_v8  ;;  %v3490_v8 = vld [vmem:[#allocation13 + $0x5d8] sm:$0xff] }
 0x60b   : > { %v4241_v10 = vld [vmem:[#allocation13 + $0x1d50] sm:$0xff]  ;;  %4795 = vmatpush.msrb.mxu2 %v4113_v9  ;;  %v3618_v9 = vld [vmem:[#allocation13 + $0x9d8] sm:$0xff] }
 0x60c   : > { %v3849_v11 = vld [vmem:[#allocation13 + $0x1110] sm:$0xff]  ;;  %4815 = vmatpush.msrb.mxu3 %v4241_v10  ;;  %v3746_v10 = vld [vmem:[#allocation13 + $0xdd8] sm:$0xff] }
 0x60d   : > { %v3977_v13 = vld [vmem:[#allocation13 + $0x1510] sm:$0xff]  ;;  %4756 = vmatpush.msrb.mxu0 %v3849_v11  ;;  %v3354_v11 = vld [vmem:[#allocation13 + $0x198] sm:$0xff] }
 0x60e   : > { %v4105_v14 = vld [vmem:[#allocation13 + $0x1910] sm:$0xff]  ;;  %4776 = vmatpush.msrb.mxu1 %v3977_v13  ;;  %v3482_v13 = vld [vmem:[#allocation13 + $0x598] sm:$0xff] }
 0x60f   : > { %v4233_v15 = vld [vmem:[#allocation13 + $0x1d10] sm:$0xff]  ;;  %4796 = vmatpush.msrb.mxu2 %v4105_v14  ;;  %v3610_v14 = vld [vmem:[#allocation13 + $0x998] sm:$0xff] }
 0x610   : > { %v3841_v19 = vld [vmem:[#allocation13 + $0x10d0] sm:$0xff]  ;;  %4816 = vmatpush.msrb.mxu3 %v4233_v15  ;;  %v3738_v15 = vld [vmem:[#allocation13 + $0xd98] sm:$0xff] }
 0x611   : > { %v3969_v20 = vld [vmem:[#allocation13 + $0x14d0] sm:$0xff]  ;;  %4757 = vmatpush.msrb.mxu0 %v3841_v19  ;;  %v3346_v19 = vld [vmem:[#allocation13 + $0x158] sm:$0xff] }
 0x612   : > { %v4097_v21 = vld [vmem:[#allocation13 + $0x18d0] sm:$0xff]  ;;  %4777 = vmatpush.msrb.mxu1 %v3969_v20  ;;  %v3474_v20 = vld [vmem:[#allocation13 + $0x558] sm:$0xff] }
 0x613   : > { %v4225_v22 = vld [vmem:[#allocation13 + $0x1cd0] sm:$0xff]  ;;  %4797 = vmatpush.msrb.mxu2 %v4097_v21  ;;  %v3602_v21 = vld [vmem:[#allocation13 + $0x958] sm:$0xff] }
 0x614   : > { %v3833_v23 = vld [vmem:[#allocation13 + $0x1090] sm:$0xff]  ;;  %4817 = vmatpush.msrb.mxu3 %v4225_v22  ;;  %v3730_v22 = vld [vmem:[#allocation13 + $0xd58] sm:$0xff] }
 0x615   : > { %v3961_v25 = vld [vmem:[#allocation13 + $0x1490] sm:$0xff]  ;;  %4758 = vmatpush.msrb.mxu0 %v3833_v23  ;;  %v3338_v23 = vld [vmem:[#allocation13 + $0x118] sm:$0xff] }
 0x616   : > { %v4089_v26 = vld [vmem:[#allocation13 + $0x1890] sm:$0xff]  ;;  %4778 = vmatpush.msrb.mxu1 %v3961_v25  ;;  %v3466_v25 = vld [vmem:[#allocation13 + $0x518] sm:$0xff] }
 0x617   : > { %v4217_v27 = vld [vmem:[#allocation13 + $0x1c90] sm:$0xff]  ;;  %4798 = vmatpush.msrb.mxu2 %v4089_v26  ;;  %v3594_v26 = vld [vmem:[#allocation13 + $0x918] sm:$0xff] }
 0x618   : > { %v3825_v28 = vld [vmem:[#allocation13 + $0x1050] sm:$0xff]  ;;  %4818 = vmatpush.msrb.mxu3 %v4217_v27  ;;  %v3722_v27 = vld [vmem:[#allocation13 + $0xd18] sm:$0xff] }
 0x619   : > { %v3953_v29 = vld [vmem:[#allocation13 + $0x1450] sm:$0xff]  ;;  %4759 = vmatpush.msrb.mxu0 %v3825_v28  ;;  %v3330_v28 = vld [vmem:[#allocation13 + $0xd8] sm:$0xff] }
 0x61a   : > { %v4081_v30 = vld [vmem:[#allocation13 + $0x1850] sm:$0xff]  ;;  %4779 = vmatpush.msrb.mxu1 %v3953_v29  ;;  %v3458_v29 = vld [vmem:[#allocation13 + $0x4d8] sm:$0xff] }
 0x61b   : > { %v4209_v31 = vld [vmem:[#allocation13 + $0x1c50] sm:$0xff]  ;;  %4799 = vmatpush.msrb.mxu2 %v4081_v30  ;;  %v3586_v30 = vld [vmem:[#allocation13 + $0x8d8] sm:$0xff] }
 0x61c   : > { %v3817_v32 = vld [vmem:[#allocation13 + $0x1010] sm:$0xff]  ;;  %4819 = vmatpush.msrb.mxu3 %v4209_v31  ;;  %v3714_v31 = vld [vmem:[#allocation13 + $0xcd8] sm:$0xff] }
 0x61d   : > { %v3945_v33 = vld [vmem:[#allocation13 + $0x1410] sm:$0xff]  ;;  %4760 = vmatpush.msrb.mxu0 %v3817_v32  ;;  %v3322_v32 = vld [vmem:[#allocation13 + $0x98] sm:$0xff] }
 0x61e   : > { %v4073_v34 = vld [vmem:[#allocation13 + $0x1810] sm:$0xff]  ;;  %4780 = vmatpush.msrb.mxu1 %v3945_v33  ;;  %4761 = vmatmul.f32.vlgmr.msrb.gmra.mxu0 %v8050_v36  ;;  %v3450_v33 = vld [vmem:[#allocation13 + $0x498] sm:$0xff] }
 0x61f   : > { %v4201_v35 = vld [vmem:[#allocation13 + $0x1c10] sm:$0xff]  ;;  %4800 = vmatpush.msrb.mxu2 %v4073_v34  ;;  %4825 = vmatpush.msra.mxu0 %v3426_v37  ;;  %v3578_v34 = vld [vmem:[#allocation13 + $0x898] sm:$0xff] }
 0x620   : > { %4820 = vmatpush.msrb.mxu3 %v4201_v35  ;;  %v8041_v45 = vld [vmem:[#allocation3 + $0x10] sm:$0xff]  ;;  %4845 = vmatpush.msra.mxu1 %v3554_v38  ;;  %v3706_v35 = vld [vmem:[#allocation13 + $0xc98] sm:$0xff] }
 0x621   : > { %4721 = vmatmul.f32.vlgmr.msra.gmra.mxu2 %v8041_v45  ;;  %4826 = vmatpush.msra.mxu0 %v3418_v48  ;;  %v8047_v60 = vld [vmem:[#allocation3 + $0x30] sm:$0xff]  ;;  %v3314_v37 = vld [vmem:[#allocation13 + $0x58] sm:$0xff] }
 0x622   : > { %4865 = vmatpush.msra.mxu2 %v3682_v43  ;;  %4885 = vmatpush.msra.mxu3 %v3810_v44  ;;  %v3442_v38 = vld [vmem:[#allocation13 + $0x458] sm:$0xff] }
 0x623   : > { %4846 = vmatpush.msra.mxu1 %v3546_v49  ;;  %4827 = vmatpush.msra.mxu0 %v3410_v50  ;;  %v3570_v43 = vld [vmem:[#allocation13 + $0x858] sm:$0xff] }
 0x624   : > { %4866 = vmatpush.msra.mxu2 %v3674_v16  ;;  %4886 = vmatpush.msra.mxu3 %v3802_v17  ;;  %v3698_v44 = vld [vmem:[#allocation13 + $0xc58] sm:$0xff] }
 0x625   : > { %4847 = vmatpush.msra.mxu1 %v3538_v18  ;;  %4828 = vmatpush.msra.mxu0 %v3402_v52  ;;  %v3306_v48 = vld [vmem:[#allocation13 + $0x18] sm:$0xff] }
 0x626   : > { %4867 = vmatpush.msra.mxu2 %v3666_v12  ;;  %4887 = vmatpush.msra.mxu3 %v3794_v51  ;;  %v3434_v49 = vld [vmem:[#allocation13 + $0x418] sm:$0xff] }
 0x627   : > { %4848 = vmatpush.msra.mxu1 %v3530_v53  ;;  %4829 = vmatpush.msra.mxu0 %v3394_v56  ;;  %v3562_v16 = vld [vmem:[#allocation13 + $0x818] sm:$0xff] }
 0x628   : > { %4868 = vmatpush.msra.mxu2 %v3658_v54  ;;  %4888 = vmatpush.msra.mxu3 %v3786_v55  ;;  %v3690_v17 = vld [vmem:[#allocation13 + $0xc18] sm:$0xff] }
 0x629   : > { %4801 = vmatmul.f32.vlgmr.msrb.gmra.mxu2 %v8047_v60  ;;  %4849 = vmatpush.msra.mxu1 %v3522_v57  ;;  %v3938_v50 = vld [vmem:[#allocation13 + $0x13d8] sm:$0xff] }
 0x62a   : > { %4869 = vmatpush.msra.mxu2 %v3650_v58  ;;  %4889 = vmatpush.msra.mxu3 %v3778_v59  ;;  %v4066_v18 = vld [vmem:[#allocation13 + $0x17d8] sm:$0xff] }
 0x62b   : > { %4821 = vmatmul.f32.vlgmr.msrb.gmra.mxu3 %v8053_v24  ;;  %4830 = vmatpush.msra.mxu0 %v3386_v61  ;;  %v4194_v12 = vld [vmem:[#allocation13 + $0x1bd8] sm:$0xff] }
 0x62c   : > { %4850 = vmatpush.msra.mxu1 %v3514_v62  ;;  %4870 = vmatpush.msra.mxu2 %v3642_v63  ;;  %v4322_v51 = vld [vmem:[#allocation13 + $0x1fd8] sm:$0xff] }
 0x62d   : > { %4890 = vmatpush.msra.mxu3 %v3770_v0  ;;  %4781 = vmatmul.f32.vlgmr.msrb.gmra.mxu1 %v8056_v3  ;;  %v3930_v52 = vld [vmem:[#allocation13 + $0x1398] sm:$0xff] }
 0x62e   : > { %4831 = vmatpush.msra.mxu0 %v3378_v1  ;;  %4851 = vmatpush.msra.mxu1 %v3506_v41  ;;  %v4058_v53 = vld [vmem:[#allocation13 + $0x1798] sm:$0xff] }
 0x62f   : > { %4871 = vmatpush.msra.mxu2 %v3634_v42  ;;  %4891 = vmatpush.msra.mxu3 %v3762_v2  ;;  %v4186_v54 = vld [vmem:[#allocation13 + $0x1b98] sm:$0xff] }
 0x630   : > { %4832 = vmatpush.msra.mxu0 %v3370_v4  ;;  %4852 = vmatpush.msra.mxu1 %v3498_v5  ;;  %v4314_v55 = vld [vmem:[#allocation13 + $0x1f98] sm:$0xff] }
 0x631   : > { %4872 = vmatpush.msra.mxu2 %v3626_v47  ;;  %4892 = vmatpush.msra.mxu3 %v3754_v6  ;;  %v3922_v56 = vld [vmem:[#allocation13 + $0x1358] sm:$0xff] }
 0x632   : > { %4833 = vmatpush.msra.mxu0 %v3362_v7  ;;  %4853 = vmatpush.msra.mxu1 %v3490_v8  ;;  %v4050_v57 = vld [vmem:[#allocation13 + $0x1758] sm:$0xff] }
 0x633   : > { %4873 = vmatpush.msra.mxu2 %v3618_v9  ;;  %4893 = vmatpush.msra.mxu3 %v3746_v10  ;;  %v4178_v58 = vld [vmem:[#allocation13 + $0x1b58] sm:$0xff] }
 0x634   : > { %4834 = vmatpush.msra.mxu0 %v3354_v11  ;;  %4854 = vmatpush.msra.mxu1 %v3482_v13  ;;  %v4306_v59 = vld [vmem:[#allocation13 + $0x1f58] sm:$0xff] }
 0x635   : > { %4874 = vmatpush.msra.mxu2 %v3610_v14  ;;  %4894 = vmatpush.msra.mxu3 %v3738_v15  ;;  %v3914_v61 = vld [vmem:[#allocation13 + $0x1318] sm:$0xff] }
 0x636   : > { %4835 = vmatpush.msra.mxu0 %v3346_v19  ;;  %4855 = vmatpush.msra.mxu1 %v3474_v20  ;;  %v4042_v62 = vld [vmem:[#allocation13 + $0x1718] sm:$0xff] }
 0x637   : > { %4875 = vmatpush.msra.mxu2 %v3602_v21  ;;  %4895 = vmatpush.msra.mxu3 %v3730_v22  ;;  %v4170_v63 = vld [vmem:[#allocation13 + $0x1b18] sm:$0xff] }
 0x638   : > { %4836 = vmatpush.msra.mxu0 %v3338_v23  ;;  %4856 = vmatpush.msra.mxu1 %v3466_v25  ;;  %v4298_v0 = vld [vmem:[#allocation13 + $0x1f18] sm:$0xff] }
 0x639   : > { %4876 = vmatpush.msra.mxu2 %v3594_v26  ;;  %4896 = vmatpush.msra.mxu3 %v3722_v27  ;;  %v3906_v1 = vld [vmem:[#allocation13 + $0x12d8] sm:$0xff] }
 0x63a   : > { %4837 = vmatpush.msra.mxu0 %v3330_v28  ;;  %4857 = vmatpush.msra.mxu1 %v3458_v29  ;;  %v4034_v41 = vld [vmem:[#allocation13 + $0x16d8] sm:$0xff] }
 0x63b   : > { %4877 = vmatpush.msra.mxu2 %v3586_v30  ;;  %4897 = vmatpush.msra.mxu3 %v3714_v31  ;;  %v4162_v42 = vld [vmem:[#allocation13 + $0x1ad8] sm:$0xff] }
 0x63c   : > { %4838 = vmatpush.msra.mxu0 %v3322_v32  ;;  %4858 = vmatpush.msra.mxu1 %v3450_v33  ;;  %v4290_v2 = vld [vmem:[#allocation13 + $0x1ed8] sm:$0xff] }
 0x63d   : > { %4878 = vmatpush.msra.mxu2 %v3578_v34  ;;  %4898 = vmatpush.msra.mxu3 %v3706_v35  ;;  %v3898_v4 = vld [vmem:[#allocation13 + $0x1298] sm:$0xff] }
 0x63e   : > { %4839 = vmatpush.msra.mxu0 %v3314_v37  ;;  %4859 = vmatpush.msra.mxu1 %v3442_v38  ;;  %v4026_v5 = vld [vmem:[#allocation13 + $0x1698] sm:$0xff] }
 0x63f   : > { %4879 = vmatpush.msra.mxu2 %v3570_v43  ;;  %4899 = vmatpush.msra.mxu3 %v3698_v44  ;;  %v4154_v47 = vld [vmem:[#allocation13 + $0x1a98] sm:$0xff] }
 0x640   : > { %4840 = vmatpush.msra.mxu0 %v3306_v48  ;;  %4860 = vmatpush.msra.mxu1 %v3434_v49  ;;  %v4282_v6 = vld [vmem:[#allocation13 + $0x1e98] sm:$0xff] }
 0x641   : > { %4880 = vmatpush.msra.mxu2 %v3562_v16  ;;  %4900 = vmatpush.msra.mxu3 %v3690_v17  ;;  %v3890_v7 = vld [vmem:[#allocation13 + $0x1258] sm:$0xff] }
 0x642   : > { %4905 = vmatpush.msrb.mxu0 %v3938_v50  ;;  %4925 = vmatpush.msrb.mxu1 %v4066_v18  ;;  %v4018_v8 = vld [vmem:[#allocation13 + $0x1658] sm:$0xff] }
 0x643   : > { %4945 = vmatpush.msrb.mxu2 %v4194_v12  ;;  %4965 = vmatpush.msrb.mxu3 %v4322_v51  ;;  %v4146_v9 = vld [vmem:[#allocation13 + $0x1a58] sm:$0xff] }
 0x644   : > { %4906 = vmatpush.msrb.mxu0 %v3930_v52  ;;  %4926 = vmatpush.msrb.mxu1 %v4058_v53  ;;  %v4274_v10 = vld [vmem:[#allocation13 + $0x1e58] sm:$0xff] }
 0x645   : > { %4946 = vmatpush.msrb.mxu2 %v4186_v54  ;;  %4966 = vmatpush.msrb.mxu3 %v4314_v55  ;;  %v3882_v11 = vld [vmem:[#allocation13 + $0x1218] sm:$0xff] }
 0x646   : > { %4907 = vmatpush.msrb.mxu0 %v3922_v56  ;;  %4927 = vmatpush.msrb.mxu1 %v4050_v57  ;;  %v4010_v13 = vld [vmem:[#allocation13 + $0x1618] sm:$0xff]  ;;  %v3427_v56 = vld [vmem:[#allocation13 + $0x3e0] sm:$0xff] }
 0x647   : > { %4947 = vmatpush.msrb.mxu2 %v4178_v58  ;;  %4967 = vmatpush.msrb.mxu3 %v4306_v59  ;;  %v4138_v14 = vld [vmem:[#allocation13 + $0x1a18] sm:$0xff]  ;;  %v3555_v57 = vld [vmem:[#allocation13 + $0x7e0] sm:$0xff] }
 0x648   : > { %4908 = vmatpush.msrb.mxu0 %v3914_v61  ;;  %4928 = vmatpush.msrb.mxu1 %v4042_v62  ;;  %v4266_v15 = vld [vmem:[#allocation13 + $0x1e18] sm:$0xff]  ;;  %v3683_v58 = vld [vmem:[#allocation13 + $0xbe0] sm:$0xff] }
 0x649   : > { %4948 = vmatpush.msrb.mxu2 %v4170_v63  ;;  %4968 = vmatpush.msrb.mxu3 %v4298_v0  ;;  %v3874_v19 = vld [vmem:[#allocation13 + $0x11d8] sm:$0xff]  ;;  %v3811_v59 = vld [vmem:[#allocation13 + $0xfe0] sm:$0xff] }
 0x64a   : > { %4909 = vmatpush.msrb.mxu0 %v3906_v1  ;;  %4929 = vmatpush.msrb.mxu1 %v4034_v41  ;;  %v4002_v20 = vld [vmem:[#allocation13 + $0x15d8] sm:$0xff]  ;;  %v3419_v61 = vld [vmem:[#allocation13 + $0x3a0] sm:$0xff] }
 0x64b   : > { %4949 = vmatpush.msrb.mxu2 %v4162_v42  ;;  %4969 = vmatpush.msrb.mxu3 %v4290_v2  ;;  %v4130_v21 = vld [vmem:[#allocation13 + $0x19d8] sm:$0xff]  ;;  %v3547_v62 = vld [vmem:[#allocation13 + $0x7a0] sm:$0xff] }
 0x64c   : > { %4910 = vmatpush.msrb.mxu0 %v3898_v4  ;;  %4930 = vmatpush.msrb.mxu1 %v4026_v5  ;;  %v4258_v22 = vld [vmem:[#allocation13 + $0x1dd8] sm:$0xff]  ;;  %v3675_v63 = vld [vmem:[#allocation13 + $0xba0] sm:$0xff] }
 0x64d   : > { %4950 = vmatpush.msrb.mxu2 %v4154_v47  ;;  %4970 = vmatpush.msrb.mxu3 %v4282_v6  ;;  %v3866_v23 = vld [vmem:[#allocation13 + $0x1198] sm:$0xff]  ;;  %v3803_v0 = vld [vmem:[#allocation13 + $0xfa0] sm:$0xff] }
 0x64e   : > { %4911 = vmatpush.msrb.mxu0 %v3890_v7  ;;  %4931 = vmatpush.msrb.mxu1 %v4018_v8  ;;  %v3994_v25 = vld [vmem:[#allocation13 + $0x1598] sm:$0xff]  ;;  %v3411_v1 = vld [vmem:[#allocation13 + $0x360] sm:$0xff] }
 0x64f   : > { %4951 = vmatpush.msrb.mxu2 %v4146_v9  ;;  %4971 = vmatpush.msrb.mxu3 %v4274_v10  ;;  %v4122_v26 = vld [vmem:[#allocation13 + $0x1998] sm:$0xff]  ;;  %v3539_v41 = vld [vmem:[#allocation13 + $0x760] sm:$0xff] }
 0x650   : > { %4912 = vmatpush.msrb.mxu0 %v3882_v11  ;;  %4932 = vmatpush.msrb.mxu1 %v4010_v13  ;;  %v4250_v27 = vld [vmem:[#allocation13 + $0x1d98] sm:$0xff]  ;;  %v3403_v42 = vld [vmem:[#allocation13 + $0x320] sm:$0xff] }
 0x651   : > { %4952 = vmatpush.msrb.mxu2 %v4138_v14  ;;  %4972 = vmatpush.msrb.mxu3 %v4266_v15  ;;  %v3858_v28 = vld [vmem:[#allocation13 + $0x1158] sm:$0xff]  ;;  %v3787_v2 = vld [vmem:[#allocation13 + $0xf20] sm:$0xff] }
 0x652   : > { %4913 = vmatpush.msrb.mxu0 %v3874_v19  ;;  %4933 = vmatpush.msrb.mxu1 %v4002_v20  ;;  %v3986_v29 = vld [vmem:[#allocation13 + $0x1558] sm:$0xff]  ;;  %v3395_v4 = vld [vmem:[#allocation13 + $0x2e0] sm:$0xff] }
 0x653   : > { %4953 = vmatpush.msrb.mxu2 %v4130_v21  ;;  %4973 = vmatpush.msrb.mxu3 %v4258_v22  ;;  %v4114_v30 = vld [vmem:[#allocation13 + $0x1958] sm:$0xff]  ;;  %v3523_v5 = vld [vmem:[#allocation13 + $0x6e0] sm:$0xff] }
 0x654   : > { %4914 = vmatpush.msrb.mxu0 %v3866_v23  ;;  %4934 = vmatpush.msrb.mxu1 %v3994_v25  ;;  %v4242_v31 = vld [vmem:[#allocation13 + $0x1d58] sm:$0xff]  ;;  %v3651_v47 = vld [vmem:[#allocation13 + $0xae0] sm:$0xff] }
 0x655   : > { %4954 = vmatpush.msrb.mxu2 %v4122_v26  ;;  %4974 = vmatpush.msrb.mxu3 %v4250_v27  ;;  %v3850_v32 = vld [vmem:[#allocation13 + $0x1118] sm:$0xff]  ;;  %v3779_v6 = vld [vmem:[#allocation13 + $0xee0] sm:$0xff] }
 0x656   : > { %v3978_v33 = vld [vmem:[#allocation13 + $0x1518] sm:$0xff]  ;;  %4915 = vmatpush.msrb.mxu0 %v3858_v28  ;;  %4935 = vmatpush.msrb.mxu1 %v3986_v29  ;;  %v3387_v7 = vld [vmem:[#allocation13 + $0x2a0] sm:$0xff] }
 0x657   : > { %v4106_v34 = vld [vmem:[#allocation13 + $0x1918] sm:$0xff]  ;;  %4955 = vmatpush.msrb.mxu2 %v4114_v30  ;;  %4975 = vmatpush.msrb.mxu3 %v4242_v31  ;;  %v3515_v8 = vld [vmem:[#allocation13 + $0x6a0] sm:$0xff] }
 0x658   : > { %v4234_v35 = vld [vmem:[#allocation13 + $0x1d18] sm:$0xff]  ;;  %4916 = vmatpush.msrb.mxu0 %v3850_v32  ;;  %4936 = vmatpush.msrb.mxu1 %v3978_v33  ;;  %v3643_v9 = vld [vmem:[#allocation13 + $0xaa0] sm:$0xff] }
 0x659   : > { %v3842_v37 = vld [vmem:[#allocation13 + $0x10d8] sm:$0xff]  ;;  %4956 = vmatpush.msrb.mxu2 %v4106_v34  ;;  %4976 = vmatpush.msrb.mxu3 %v4234_v35  ;;  %v3771_v10 = vld [vmem:[#allocation13 + $0xea0] sm:$0xff] }
 0x65a   : > { %v3970_v38 = vld [vmem:[#allocation13 + $0x14d8] sm:$0xff]  ;;  %4917 = vmatpush.msrb.mxu0 %v3842_v37  ;;  %4861 = vmatmul.f32.vlgmr.msra.gmra.mxu1 %v8038_v40  ;;  %v3795_v40 = vld [vmem:[#allocation13 + $0xf60] sm:$0xff] }
 0x65b   : > { %v4098_v43 = vld [vmem:[#allocation13 + $0x18d8] sm:$0xff]  ;;  %4937 = vmatpush.msrb.mxu1 %v3970_v38  ;;  %4841 = vmatmul.f32.vlgmr.msra.gmra.mxu0 %v8035_v39  ;;  %v3667_v39 = vld [vmem:[#allocation13 + $0xb60] sm:$0xff] }
 0x65c   : > { %v4226_v44 = vld [vmem:[#allocation13 + $0x1cd8] sm:$0xff]  ;;  %4957 = vmatpush.msrb.mxu2 %v4098_v43  ;;  %4901 = vmatmul.f32.vlgmr.msra.gmra.mxu3 %v8044_v46  ;;  %v3659_v46 = vld [vmem:[#allocation13 + $0xb20] sm:$0xff] }
 0x65d   : > { %v3834_v48 = vld [vmem:[#allocation13 + $0x1098] sm:$0xff]  ;;  %4977 = vmatpush.msrb.mxu3 %v4226_v44  ;;  %4881 = vmatmul.f32.vlgmr.msra.gmra.mxu2 %v8041_v45  ;;  %v3531_v45 = vld [vmem:[#allocation13 + $0x720] sm:$0xff] }
 0x65e   : > { %v3962_v49 = vld [vmem:[#allocation13 + $0x1498] sm:$0xff]  ;;  %4918 = vmatpush.msrb.mxu0 %v3834_v48  ;;  %v3379_v11 = vld [vmem:[#allocation13 + $0x260] sm:$0xff] }
 0x65f   : > { %v4090_v16 = vld [vmem:[#allocation13 + $0x1898] sm:$0xff]  ;;  %4938 = vmatpush.msrb.mxu1 %v3962_v49  ;;  %v3507_v13 = vld [vmem:[#allocation13 + $0x660] sm:$0xff] }
 0x660   : > { %v4218_v17 = vld [vmem:[#allocation13 + $0x1c98] sm:$0xff]  ;;  %4958 = vmatpush.msrb.mxu2 %v4090_v16  ;;  %v3635_v14 = vld [vmem:[#allocation13 + $0xa60] sm:$0xff] }
 0x661   : > { %v3826_v50 = vld [vmem:[#allocation13 + $0x1058] sm:$0xff]  ;;  %4978 = vmatpush.msrb.mxu3 %v4218_v17  ;;  %v3763_v15 = vld [vmem:[#allocation13 + $0xe60] sm:$0xff] }
 0x662   : > { %v3954_v18 = vld [vmem:[#allocation13 + $0x1458] sm:$0xff]  ;;  %4919 = vmatpush.msrb.mxu0 %v3826_v50  ;;  %v3499_v19 = vld [vmem:[#allocation13 + $0x620] sm:$0xff] }
 0x663   : > { %v4082_v12 = vld [vmem:[#allocation13 + $0x1858] sm:$0xff]  ;;  %4939 = vmatpush.msrb.mxu1 %v3954_v18  ;;  %v3627_v20 = vld [vmem:[#allocation13 + $0xa20] sm:$0xff] }
 0x664   : > { %v4210_v51 = vld [vmem:[#allocation13 + $0x1c58] sm:$0xff]  ;;  %4959 = vmatpush.msrb.mxu2 %v4082_v12  ;;  %v3755_v21 = vld [vmem:[#allocation13 + $0xe20] sm:$0xff] }
 0x665   : > { %v3818_v52 = vld [vmem:[#allocation13 + $0x1018] sm:$0xff]  ;;  %4979 = vmatpush.msrb.mxu3 %v4210_v51  ;;  %v3619_v22 = vld [vmem:[#allocation13 + $0x9e0] sm:$0xff] }
 0x666   : > { %v3946_v53 = vld [vmem:[#allocation13 + $0x1418] sm:$0xff]  ;;  %4920 = vmatpush.msrb.mxu0 %v3818_v52  ;;  %v3747_v23 = vld [vmem:[#allocation13 + $0xde0] sm:$0xff] }
 0x667   : > { %v4074_v54 = vld [vmem:[#allocation13 + $0x1818] sm:$0xff]  ;;  %4940 = vmatpush.msrb.mxu1 %v3946_v53  ;;  %4921 = vmatmul.f32.vlgmr.msrb.gmra.mxu0 %v8050_v36  ;;  %v3363_v36 = vld [vmem:[#allocation13 + $0x1e0] sm:$0xff] }
 0x668   : > { %v4202_v55 = vld [vmem:[#allocation13 + $0x1c18] sm:$0xff]  ;;  %4960 = vmatpush.msrb.mxu2 %v4074_v54  ;;  %4985 = vmatpush.msra.mxu0 %v3427_v56  ;;  %v3355_v25 = vld [vmem:[#allocation13 + $0x1a0] sm:$0xff] }
 0x669   : > { %4980 = vmatpush.msrb.mxu3 %v4202_v55  ;;  %5005 = vmatpush.msra.mxu1 %v3555_v57  ;;  %v3483_v26 = vld [vmem:[#allocation13 + $0x5a0] sm:$0xff] }
 0x66a   : > { %5025 = vmatpush.msra.mxu2 %v3683_v58  ;;  %4986 = vmatpush.msra.mxu0 %v3419_v61  ;;  %v3739_v27 = vld [vmem:[#allocation13 + $0xda0] sm:$0xff] }
 0x66b   : > { %5045 = vmatpush.msra.mxu3 %v3811_v59  ;;  %5006 = vmatpush.msra.mxu1 %v3547_v62  ;;  %v3347_v28 = vld [vmem:[#allocation13 + $0x160] sm:$0xff] }
 0x66c   : > { %5026 = vmatpush.msra.mxu2 %v3675_v63  ;;  %4987 = vmatpush.msra.mxu0 %v3411_v1  ;;  %v3475_v29 = vld [vmem:[#allocation13 + $0x560] sm:$0xff] }
 0x66d   : > { %5046 = vmatpush.msra.mxu3 %v3803_v0  ;;  %5007 = vmatpush.msra.mxu1 %v3539_v41  ;;  %v3603_v30 = vld [vmem:[#allocation13 + $0x960] sm:$0xff] }
 0x66e   : > { %5027 = vmatpush.msra.mxu2 %v3667_v39  ;;  %4988 = vmatpush.msra.mxu0 %v3403_v42  ;;  %v3731_v31 = vld [vmem:[#allocation13 + $0xd60] sm:$0xff] }
 0x66f   : > { %5047 = vmatpush.msra.mxu3 %v3795_v40  ;;  %5008 = vmatpush.msra.mxu1 %v3531_v45  ;;  %v3339_v32 = vld [vmem:[#allocation13 + $0x120] sm:$0xff] }
 0x670   : > { %5028 = vmatpush.msra.mxu2 %v3659_v46  ;;  %4989 = vmatpush.msra.mxu0 %v3395_v4  ;;  %v3467_v33 = vld [vmem:[#allocation13 + $0x520] sm:$0xff] }
 0x671   : > { %5048 = vmatpush.msra.mxu3 %v3787_v2  ;;  %4961 = vmatmul.f32.vlgmr.msrb.gmra.mxu2 %v8047_v60  ;;  %v3371_v60 = vld [vmem:[#allocation13 + $0x220] sm:$0xff] }
 0x672   : > { %5009 = vmatpush.msra.mxu1 %v3523_v5  ;;  %5029 = vmatpush.msra.mxu2 %v3651_v47  ;;  %v3595_v34 = vld [vmem:[#allocation13 + $0x920] sm:$0xff] }
 0x673   : > { %5049 = vmatpush.msra.mxu3 %v3779_v6  ;;  %4990 = vmatpush.msra.mxu0 %v3387_v7  ;;  %v3723_v35 = vld [vmem:[#allocation13 + $0xd20] sm:$0xff] }
 0x674   : > { %4981 = vmatmul.f32.vlgmr.msrb.gmra.mxu3 %v8053_v24  ;;  %5010 = vmatpush.msra.mxu1 %v3515_v8  ;;  %v3491_v24 = vld [vmem:[#allocation13 + $0x5e0] sm:$0xff] }
 0x675   : > { %5030 = vmatpush.msra.mxu2 %v3643_v9  ;;  %5050 = vmatpush.msra.mxu3 %v3771_v10  ;;  %v3331_v37 = vld [vmem:[#allocation13 + $0xe0] sm:$0xff] }
 0x676   : > { %4941 = vmatmul.f32.vlgmr.msrb.gmra.mxu1 %v8056_v3  ;;  %4991 = vmatpush.msra.mxu0 %v3379_v11  ;;  %v3611_v3 = vld [vmem:[#allocation13 + $0x9a0] sm:$0xff] }
 0x677   : > { %5011 = vmatpush.msra.mxu1 %v3507_v13  ;;  %5031 = vmatpush.msra.mxu2 %v3635_v14  ;;  %v3459_v38 = vld [vmem:[#allocation13 + $0x4e0] sm:$0xff] }
 0x678   : > { %5051 = vmatpush.msra.mxu3 %v3763_v15  ;;  %4992 = vmatpush.msra.mxu0 %v3371_v60  ;;  %v3587_v43 = vld [vmem:[#allocation13 + $0x8e0] sm:$0xff] }
 0x679   : > { %5012 = vmatpush.msra.mxu1 %v3499_v19  ;;  %5032 = vmatpush.msra.mxu2 %v3627_v20  ;;  %v3715_v44 = vld [vmem:[#allocation13 + $0xce0] sm:$0xff] }
 0x67a   : > { %5052 = vmatpush.msra.mxu3 %v3755_v21  ;;  %4993 = vmatpush.msra.mxu0 %v3363_v36  ;;  %v3323_v48 = vld [vmem:[#allocation13 + $0xa0] sm:$0xff] }
 0x67b   : > { %5013 = vmatpush.msra.mxu1 %v3491_v24  ;;  %5033 = vmatpush.msra.mxu2 %v3619_v22  ;;  %v3451_v49 = vld [vmem:[#allocation13 + $0x4a0] sm:$0xff] }
 0x67c   : > { %5053 = vmatpush.msra.mxu3 %v3747_v23  ;;  %4994 = vmatpush.msra.mxu0 %v3355_v25  ;;  %v3579_v16 = vld [vmem:[#allocation13 + $0x8a0] sm:$0xff] }
 0x67d   : > { %5014 = vmatpush.msra.mxu1 %v3483_v26  ;;  %5034 = vmatpush.msra.mxu2 %v3611_v3  ;;  %v3707_v17 = vld [vmem:[#allocation13 + $0xca0] sm:$0xff] }
 0x67e   : > { %5054 = vmatpush.msra.mxu3 %v3739_v27  ;;  %4995 = vmatpush.msra.mxu0 %v3347_v28  ;;  %v3315_v50 = vld [vmem:[#allocation13 + $0x60] sm:$0xff] }
 0x67f   : > { %5015 = vmatpush.msra.mxu1 %v3475_v29  ;;  %5035 = vmatpush.msra.mxu2 %v3603_v30  ;;  %v3443_v18 = vld [vmem:[#allocation13 + $0x460] sm:$0xff] }
 0x680   : > { %5055 = vmatpush.msra.mxu3 %v3731_v31  ;;  %4996 = vmatpush.msra.mxu0 %v3339_v32  ;;  %v3571_v12 = vld [vmem:[#allocation13 + $0x860] sm:$0xff] }
 0x681   : > { %5016 = vmatpush.msra.mxu1 %v3467_v33  ;;  %5036 = vmatpush.msra.mxu2 %v3595_v34  ;;  %v3699_v51 = vld [vmem:[#allocation13 + $0xc60] sm:$0xff] }
 0x682   : > { %5056 = vmatpush.msra.mxu3 %v3723_v35  ;;  %4997 = vmatpush.msra.mxu0 %v3331_v37  ;;  %v3307_v52 = vld [vmem:[#allocation13 + $0x20] sm:$0xff] }
 0x683   : > { %5017 = vmatpush.msra.mxu1 %v3459_v38  ;;  %5037 = vmatpush.msra.mxu2 %v3587_v43  ;;  %v3435_v53 = vld [vmem:[#allocation13 + $0x420] sm:$0xff] }
 0x684   : > { %5057 = vmatpush.msra.mxu3 %v3715_v44  ;;  %4998 = vmatpush.msra.mxu0 %v3323_v48  ;;  %v3563_v54 = vld [vmem:[#allocation13 + $0x820] sm:$0xff] }
 0x685   : > { %5018 = vmatpush.msra.mxu1 %v3451_v49  ;;  %5038 = vmatpush.msra.mxu2 %v3579_v16  ;;  %v3691_v55 = vld [vmem:[#allocation13 + $0xc20] sm:$0xff] }
 0x686   : > { %5058 = vmatpush.msra.mxu3 %v3707_v17  ;;  %4999 = vmatpush.msra.mxu0 %v3315_v50  ;;  %v3939_v56 = vld [vmem:[#allocation13 + $0x13e0] sm:$0xff] }
 0x687   : > { %5019 = vmatpush.msra.mxu1 %v3443_v18  ;;  %5039 = vmatpush.msra.mxu2 %v3571_v12  ;;  %v4067_v57 = vld [vmem:[#allocation13 + $0x17e0] sm:$0xff] }
 0x688   : > { %5059 = vmatpush.msra.mxu3 %v3699_v51  ;;  %5000 = vmatpush.msra.mxu0 %v3307_v52  ;;  %v4195_v58 = vld [vmem:[#allocation13 + $0x1be0] sm:$0xff] }
 0x689   : > { %5020 = vmatpush.msra.mxu1 %v3435_v53  ;;  %v4323_v59 = vld [vmem:[#allocation13 + $0x1fe0] sm:$0xff]  ;;  %5040 = vmatpush.msra.mxu2 %v3563_v54 }
 0x68a   : > { %5060 = vmatpush.msra.mxu3 %v3691_v55  ;;  %v3931_v61 = vld [vmem:[#allocation13 + $0x13a0] sm:$0xff]  ;;  %5065 = vmatpush.msrb.mxu0 %v3939_v56  ;;  %v3428_v56 = vld [vmem:[#allocation13 + $0x3e8] sm:$0xff] }
 0x68b   : > { %v4059_v62 = vld [vmem:[#allocation13 + $0x17a0] sm:$0xff]  ;;  %5085 = vmatpush.msrb.mxu1 %v4067_v57  ;;  %5105 = vmatpush.msrb.mxu2 %v4195_v58  ;;  %v3556_v57 = vld [vmem:[#allocation13 + $0x7e8] sm:$0xff] }
 0x68c   : > { %v4187_v63 = vld [vmem:[#allocation13 + $0x1ba0] sm:$0xff]  ;;  %5125 = vmatpush.msrb.mxu3 %v4323_v59  ;;  %5066 = vmatpush.msrb.mxu0 %v3931_v61  ;;  %v8070_v59 = vld [vmem:[#allocation3 + $0x8] sm:$0xff] }
 0x68d   : > { %v4315_v0 = vld [vmem:[#allocation13 + $0x1fa0] sm:$0xff]  ;;  %5086 = vmatpush.msrb.mxu1 %v4059_v62  ;;  %5106 = vmatpush.msrb.mxu2 %v4187_v63  ;;  %v3684_v61 = vld [vmem:[#allocation13 + $0xbe8] sm:$0xff]  ;;  %v8073_v63 = vld [vmem:[#allocation3 + $0x10] sm:$0xff] }
 0x68e   : > { %v3923_v1 = vld [vmem:[#allocation13 + $0x1360] sm:$0xff]  ;;  %5126 = vmatpush.msrb.mxu3 %v4315_v0  ;;  %5021 = vmatmul.f32.vlgmr.msra.gmra.mxu1 %v8070_v59  ;;  %v3812_v62 = vld [vmem:[#allocation13 + $0xfe8] sm:$0xff]  ;;  %v8076_v0 = vld [vmem:[#allocation3 + $0x18] sm:$0xff] }
 0x68f   : > { %v4051_v41 = vld [vmem:[#allocation13 + $0x1760] sm:$0xff]  ;;  %5067 = vmatpush.msrb.mxu0 %v3923_v1  ;;  %5041 = vmatmul.f32.vlgmr.msra.gmra.mxu2 %v8073_v63  ;;  %v3420_v1 = vld [vmem:[#allocation13 + $0x3a8] sm:$0xff] }
 0x690   : > { %v4179_v39 = vld [vmem:[#allocation13 + $0x1b60] sm:$0xff]  ;;  %5087 = vmatpush.msrb.mxu1 %v4051_v41  ;;  %5061 = vmatmul.f32.vlgmr.msra.gmra.mxu3 %v8076_v0  ;;  %v3548_v41 = vld [vmem:[#allocation13 + $0x7a8] sm:$0xff] }
 0x691   : > { %v4307_v40 = vld [vmem:[#allocation13 + $0x1f60] sm:$0xff]  ;;  %5107 = vmatpush.msrb.mxu2 %v4179_v39  ;;  %v3676_v39 = vld [vmem:[#allocation13 + $0xba8] sm:$0xff] }
 0x692   : > { %v3915_v42 = vld [vmem:[#allocation13 + $0x1320] sm:$0xff]  ;;  %5127 = vmatpush.msrb.mxu3 %v4307_v40  ;;  %v3804_v40 = vld [vmem:[#allocation13 + $0xfa8] sm:$0xff] }
 0x693   : > { %v4043_v45 = vld [vmem:[#allocation13 + $0x1720] sm:$0xff]  ;;  %5068 = vmatpush.msrb.mxu0 %v3915_v42  ;;  %v3412_v42 = vld [vmem:[#allocation13 + $0x368] sm:$0xff] }
 0x694   : > { %v4171_v46 = vld [vmem:[#allocation13 + $0x1b20] sm:$0xff]  ;;  %5088 = vmatpush.msrb.mxu1 %v4043_v45  ;;  %v3540_v45 = vld [vmem:[#allocation13 + $0x768] sm:$0xff] }
 0x695   : > { %v4299_v2 = vld [vmem:[#allocation13 + $0x1f20] sm:$0xff]  ;;  %5108 = vmatpush.msrb.mxu2 %v4171_v46  ;;  %v3668_v46 = vld [vmem:[#allocation13 + $0xb68] sm:$0xff] }
 0x696   : > { %v3907_v4 = vld [vmem:[#allocation13 + $0x12e0] sm:$0xff]  ;;  %5128 = vmatpush.msrb.mxu3 %v4299_v2  ;;  %v3796_v2 = vld [vmem:[#allocation13 + $0xf68] sm:$0xff] }
 0x697   : > { %v4035_v5 = vld [vmem:[#allocation13 + $0x16e0] sm:$0xff]  ;;  %5069 = vmatpush.msrb.mxu0 %v3907_v4  ;;  %v3404_v4 = vld [vmem:[#allocation13 + $0x328] sm:$0xff] }
 0x698   : > { %v4163_v47 = vld [vmem:[#allocation13 + $0x1ae0] sm:$0xff]  ;;  %5089 = vmatpush.msrb.mxu1 %v4035_v5  ;;  %v3532_v5 = vld [vmem:[#allocation13 + $0x728] sm:$0xff] }
 0x699   : > { %v4291_v6 = vld [vmem:[#allocation13 + $0x1ee0] sm:$0xff]  ;;  %5109 = vmatpush.msrb.mxu2 %v4163_v47  ;;  %v3660_v47 = vld [vmem:[#allocation13 + $0xb28] sm:$0xff] }
 0x69a   : > { %v3899_v7 = vld [vmem:[#allocation13 + $0x12a0] sm:$0xff]  ;;  %5129 = vmatpush.msrb.mxu3 %v4291_v6  ;;  %v3788_v6 = vld [vmem:[#allocation13 + $0xf28] sm:$0xff] }
 0x69b   : > { %v4027_v8 = vld [vmem:[#allocation13 + $0x16a0] sm:$0xff]  ;;  %5070 = vmatpush.msrb.mxu0 %v3899_v7  ;;  %v3396_v7 = vld [vmem:[#allocation13 + $0x2e8] sm:$0xff] }
 0x69c   : > { %v4155_v9 = vld [vmem:[#allocation13 + $0x1aa0] sm:$0xff]  ;;  %5090 = vmatpush.msrb.mxu1 %v4027_v8  ;;  %v3524_v8 = vld [vmem:[#allocation13 + $0x6e8] sm:$0xff] }
 0x69d   : > { %v4283_v10 = vld [vmem:[#allocation13 + $0x1ea0] sm:$0xff]  ;;  %5110 = vmatpush.msrb.mxu2 %v4155_v9  ;;  %v3652_v9 = vld [vmem:[#allocation13 + $0xae8] sm:$0xff] }
 0x69e   : > { %v3891_v11 = vld [vmem:[#allocation13 + $0x1260] sm:$0xff]  ;;  %5130 = vmatpush.msrb.mxu3 %v4283_v10  ;;  %v3780_v10 = vld [vmem:[#allocation13 + $0xee8] sm:$0xff] }
 0x69f   : > { %v4019_v13 = vld [vmem:[#allocation13 + $0x1660] sm:$0xff]  ;;  %5071 = vmatpush.msrb.mxu0 %v3891_v11  ;;  %v8079_v11 = vld [vmem:[#allocation3 + $0x30] sm:$0xff] }
 0x6a0   : > { %v4147_v14 = vld [vmem:[#allocation13 + $0x1a60] sm:$0xff]  ;;  %5091 = vmatpush.msrb.mxu1 %v4019_v13  ;;  %v3388_v13 = vld [vmem:[#allocation13 + $0x2a8] sm:$0xff] }
 0x6a1   : > { %v4275_v15 = vld [vmem:[#allocation13 + $0x1e60] sm:$0xff]  ;;  %5111 = vmatpush.msrb.mxu2 %v4147_v14  ;;  %v3516_v14 = vld [vmem:[#allocation13 + $0x6a8] sm:$0xff] }
 0x6a2   : > { %v3883_v60 = vld [vmem:[#allocation13 + $0x1220] sm:$0xff]  ;;  %5131 = vmatpush.msrb.mxu3 %v4275_v15  ;;  %v3644_v15 = vld [vmem:[#allocation13 + $0xaa8] sm:$0xff] }
 0x6a3   : > { %v4011_v19 = vld [vmem:[#allocation13 + $0x1620] sm:$0xff]  ;;  %5072 = vmatpush.msrb.mxu0 %v3883_v60 }
 0x6a4   : > { %v4139_v20 = vld [vmem:[#allocation13 + $0x1a20] sm:$0xff]  ;;  %5092 = vmatpush.msrb.mxu1 %v4011_v19  ;;  %v3772_v19 = vld [vmem:[#allocation13 + $0xea8] sm:$0xff] }
 0x6a5   : > { %v4267_v21 = vld [vmem:[#allocation13 + $0x1e20] sm:$0xff]  ;;  %5112 = vmatpush.msrb.mxu2 %v4139_v20  ;;  %v8085_v20 = vld [vmem:[#allocation3 + $0x38] sm:$0xff] }
 0x6a6   : > { %v3875_v36 = vld [vmem:[#allocation13 + $0x11e0] sm:$0xff]  ;;  %5132 = vmatpush.msrb.mxu3 %v4267_v21  ;;  %v3380_v21 = vld [vmem:[#allocation13 + $0x268] sm:$0xff] }
 0x6a7   : > { %v4003_v24 = vld [vmem:[#allocation13 + $0x15e0] sm:$0xff]  ;;  %5073 = vmatpush.msrb.mxu0 %v3875_v36  ;;  %v3508_v36 = vld [vmem:[#allocation13 + $0x668] sm:$0xff] }
 0x6a8   : > { %v4131_v22 = vld [vmem:[#allocation13 + $0x19e0] sm:$0xff]  ;;  %5093 = vmatpush.msrb.mxu1 %v4003_v24  ;;  %v3636_v24 = vld [vmem:[#allocation13 + $0xa68] sm:$0xff] }
 0x6a9   : > { %v4259_v23 = vld [vmem:[#allocation13 + $0x1de0] sm:$0xff]  ;;  %5113 = vmatpush.msrb.mxu2 %v4131_v22  ;;  %v3764_v22 = vld [vmem:[#allocation13 + $0xe68] sm:$0xff] }
 0x6aa   : > { %v3867_v25 = vld [vmem:[#allocation13 + $0x11a0] sm:$0xff]  ;;  %5133 = vmatpush.msrb.mxu3 %v4259_v23  ;;  %v8088_v23 = vld [vmem:[#allocation3 + $0x28] sm:$0xff] }
 0x6ab   : > { %v3995_v26 = vld [vmem:[#allocation13 + $0x15a0] sm:$0xff]  ;;  %5074 = vmatpush.msrb.mxu0 %v3867_v25  ;;  %v3372_v25 = vld [vmem:[#allocation13 + $0x228] sm:$0xff] }
 0x6ac   : > { %v4123_v3 = vld [vmem:[#allocation13 + $0x19a0] sm:$0xff]  ;;  %5094 = vmatpush.msrb.mxu1 %v3995_v26  ;;  %v3500_v26 = vld [vmem:[#allocation13 + $0x628] sm:$0xff] }
 0x6ad   : > { %v4251_v27 = vld [vmem:[#allocation13 + $0x1da0] sm:$0xff]  ;;  %5114 = vmatpush.msrb.mxu2 %v4123_v3  ;;  %v3628_v3 = vld [vmem:[#allocation13 + $0xa28] sm:$0xff] }
 0x6ae   : > { %v3859_v28 = vld [vmem:[#allocation13 + $0x1160] sm:$0xff]  ;;  %5134 = vmatpush.msrb.mxu3 %v4251_v27  ;;  %v3756_v27 = vld [vmem:[#allocation13 + $0xe28] sm:$0xff] }
 0x6af   : > { %v3987_v29 = vld [vmem:[#allocation13 + $0x1560] sm:$0xff]  ;;  %5075 = vmatpush.msrb.mxu0 %v3859_v28  ;;  %v3364_v28 = vld [vmem:[#allocation13 + $0x1e8] sm:$0xff] }
 0x6b0   : > { %v4115_v30 = vld [vmem:[#allocation13 + $0x1960] sm:$0xff]  ;;  %5095 = vmatpush.msrb.mxu1 %v3987_v29  ;;  %v3492_v29 = vld [vmem:[#allocation13 + $0x5e8] sm:$0xff] }
 0x6b1   : > { %v4243_v31 = vld [vmem:[#allocation13 + $0x1d60] sm:$0xff]  ;;  %5115 = vmatpush.msrb.mxu2 %v4115_v30  ;;  %v3620_v30 = vld [vmem:[#allocation13 + $0x9e8] sm:$0xff] }
 0x6b2   : > { %v3851_v32 = vld [vmem:[#allocation13 + $0x1120] sm:$0xff]  ;;  %5135 = vmatpush.msrb.mxu3 %v4243_v31  ;;  %v3748_v31 = vld [vmem:[#allocation13 + $0xde8] sm:$0xff] }
 0x6b3   : > { %v3979_v33 = vld [vmem:[#allocation13 + $0x1520] sm:$0xff]  ;;  %5076 = vmatpush.msrb.mxu0 %v3851_v32  ;;  %v3356_v32 = vld [vmem:[#allocation13 + $0x1a8] sm:$0xff] }
 0x6b4   : > { %v4107_v34 = vld [vmem:[#allocation13 + $0x1920] sm:$0xff]  ;;  %5096 = vmatpush.msrb.mxu1 %v3979_v33  ;;  %v3484_v33 = vld [vmem:[#allocation13 + $0x5a8] sm:$0xff] }
 0x6b5   : > { %v4235_v35 = vld [vmem:[#allocation13 + $0x1d20] sm:$0xff]  ;;  %5116 = vmatpush.msrb.mxu2 %v4107_v34  ;;  %v3612_v34 = vld [vmem:[#allocation13 + $0x9a8] sm:$0xff] }
 0x6b6   : > { %v3843_v37 = vld [vmem:[#allocation13 + $0x10e0] sm:$0xff]  ;;  %5136 = vmatpush.msrb.mxu3 %v4235_v35  ;;  %v3740_v35 = vld [vmem:[#allocation13 + $0xda8] sm:$0xff] }
 0x6b7   : > { %v3971_v38 = vld [vmem:[#allocation13 + $0x14e0] sm:$0xff]  ;;  %5077 = vmatpush.msrb.mxu0 %v3843_v37  ;;  %v3348_v37 = vld [vmem:[#allocation13 + $0x168] sm:$0xff] }
 0x6b8   : > { %v4099_v43 = vld [vmem:[#allocation13 + $0x18e0] sm:$0xff]  ;;  %5097 = vmatpush.msrb.mxu1 %v3971_v38  ;;  %v3476_v38 = vld [vmem:[#allocation13 + $0x568] sm:$0xff] }
 0x6b9   : > { %v4227_v44 = vld [vmem:[#allocation13 + $0x1ce0] sm:$0xff]  ;;  %5117 = vmatpush.msrb.mxu2 %v4099_v43  ;;  %v3604_v43 = vld [vmem:[#allocation13 + $0x968] sm:$0xff] }
 0x6ba   : > { %v3835_v48 = vld [vmem:[#allocation13 + $0x10a0] sm:$0xff]  ;;  %5137 = vmatpush.msrb.mxu3 %v4227_v44  ;;  %v3732_v44 = vld [vmem:[#allocation13 + $0xd68] sm:$0xff] }
 0x6bb   : > { %v3963_v49 = vld [vmem:[#allocation13 + $0x14a0] sm:$0xff]  ;;  %5078 = vmatpush.msrb.mxu0 %v3835_v48  ;;  %v3340_v48 = vld [vmem:[#allocation13 + $0x128] sm:$0xff] }
 0x6bc   : > { %v4091_v16 = vld [vmem:[#allocation13 + $0x18a0] sm:$0xff]  ;;  %5098 = vmatpush.msrb.mxu1 %v3963_v49  ;;  %v3468_v49 = vld [vmem:[#allocation13 + $0x528] sm:$0xff] }
 0x6bd   : > { %v4219_v17 = vld [vmem:[#allocation13 + $0x1ca0] sm:$0xff]  ;;  %5118 = vmatpush.msrb.mxu2 %v4091_v16  ;;  %v3596_v16 = vld [vmem:[#allocation13 + $0x928] sm:$0xff] }
 0x6be   : > { %v3827_v50 = vld [vmem:[#allocation13 + $0x1060] sm:$0xff]  ;;  %5138 = vmatpush.msrb.mxu3 %v4219_v17  ;;  %v3724_v17 = vld [vmem:[#allocation13 + $0xd28] sm:$0xff] }
 0x6bf   : > { %v3955_v18 = vld [vmem:[#allocation13 + $0x1460] sm:$0xff]  ;;  %5079 = vmatpush.msrb.mxu0 %v3827_v50  ;;  %v3332_v50 = vld [vmem:[#allocation13 + $0xe8] sm:$0xff] }
 0x6c0   : > { %v4083_v12 = vld [vmem:[#allocation13 + $0x1860] sm:$0xff]  ;;  %5099 = vmatpush.msrb.mxu1 %v3955_v18  ;;  %v3460_v18 = vld [vmem:[#allocation13 + $0x4e8] sm:$0xff] }
 0x6c1   : > { %v4211_v51 = vld [vmem:[#allocation13 + $0x1c60] sm:$0xff]  ;;  %5119 = vmatpush.msrb.mxu2 %v4083_v12  ;;  %v3588_v12 = vld [vmem:[#allocation13 + $0x8e8] sm:$0xff] }
 0x6c2   : > { %v3819_v52 = vld [vmem:[#allocation13 + $0x1020] sm:$0xff]  ;;  %5139 = vmatpush.msrb.mxu3 %v4211_v51  ;;  %v3716_v51 = vld [vmem:[#allocation13 + $0xce8] sm:$0xff] }
 0x6c3   : > { %v3947_v53 = vld [vmem:[#allocation13 + $0x1420] sm:$0xff]  ;;  %5080 = vmatpush.msrb.mxu0 %v3819_v52  ;;  %v3324_v52 = vld [vmem:[#allocation13 + $0xa8] sm:$0xff] }
 0x6c4   : > { %v4075_v54 = vld [vmem:[#allocation13 + $0x1820] sm:$0xff]  ;;  %5100 = vmatpush.msrb.mxu1 %v3947_v53  ;;  %v3452_v53 = vld [vmem:[#allocation13 + $0x4a8] sm:$0xff] }
 0x6c5   : > { %v4203_v55 = vld [vmem:[#allocation13 + $0x1c20] sm:$0xff]  ;;  %5120 = vmatpush.msrb.mxu2 %v4075_v54  ;;  %5101 = vmatmul.f32.vlgmr.msrb.gmra.mxu1 %v8088_v23  ;;  %v3580_v54 = vld [vmem:[#allocation13 + $0x8a8] sm:$0xff] }
 0x6c6   : > { %5140 = vmatpush.msrb.mxu3 %v4203_v55  ;;  %v8067_v58 = vld [vmem:[#allocation3] sm:$0xff]  ;;  %5165 = vmatpush.msra.mxu1 %v3556_v57  ;;  %v3708_v55 = vld [vmem:[#allocation13 + $0xca8] sm:$0xff] }
 0x6c7   : > { %5001 = vmatmul.f32.vlgmr.msra.gmra.mxu0 %v8067_v58  ;;  %5185 = vmatpush.msra.mxu2 %v3684_v61  ;;  %v8082_v60 = vld [vmem:[#allocation3 + $0x20] sm:$0xff]  ;;  %v3444_v57 = vld [vmem:[#allocation13 + $0x468] sm:$0xff] }
 0x6c8   : > { %5145 = vmatpush.msra.mxu0 %v3428_v56  ;;  %5205 = vmatpush.msra.mxu3 %v3812_v62  ;;  %v3316_v56 = vld [vmem:[#allocation13 + $0x68] sm:$0xff] }
 0x6c9   : > { %5166 = vmatpush.msra.mxu1 %v3548_v41  ;;  %5186 = vmatpush.msra.mxu2 %v3676_v39  ;;  %v3572_v61 = vld [vmem:[#allocation13 + $0x868] sm:$0xff] }
 0x6ca   : > { %5146 = vmatpush.msra.mxu0 %v3420_v1  ;;  %5206 = vmatpush.msra.mxu3 %v3804_v40  ;;  %v3700_v62 = vld [vmem:[#allocation13 + $0xc68] sm:$0xff] }
 0x6cb   : > { %5167 = vmatpush.msra.mxu1 %v3540_v45  ;;  %5187 = vmatpush.msra.mxu2 %v3668_v46  ;;  %v3308_v1 = vld [vmem:[#allocation13 + $0x28] sm:$0xff] }
 0x6cc   : > { %5147 = vmatpush.msra.mxu0 %v3412_v42  ;;  %5207 = vmatpush.msra.mxu3 %v3796_v2  ;;  %v3436_v41 = vld [vmem:[#allocation13 + $0x428] sm:$0xff] }
 0x6cd   : > { %5168 = vmatpush.msra.mxu1 %v3532_v5  ;;  %5188 = vmatpush.msra.mxu2 %v3660_v47  ;;  %v3564_v39 = vld [vmem:[#allocation13 + $0x828] sm:$0xff] }
 0x6ce   : > { %5148 = vmatpush.msra.mxu0 %v3404_v4  ;;  %5208 = vmatpush.msra.mxu3 %v3788_v6  ;;  %v3692_v40 = vld [vmem:[#allocation13 + $0xc28] sm:$0xff] }
 0x6cf   : > { %5121 = vmatmul.f32.vlgmr.msrb.gmra.mxu2 %v8079_v11  ;;  %5169 = vmatpush.msra.mxu1 %v3524_v8  ;;  %v3940_v42 = vld [vmem:[#allocation13 + $0x13e8] sm:$0xff] }
 0x6d0   : > { %5149 = vmatpush.msra.mxu0 %v3396_v7  ;;  %5189 = vmatpush.msra.mxu2 %v3652_v9  ;;  %v4068_v45 = vld [vmem:[#allocation13 + $0x17e8] sm:$0xff] }
 0x6d1   : > { %5209 = vmatpush.msra.mxu3 %v3780_v10  ;;  %5081 = vmatmul.f32.vlgmr.msrb.gmra.mxu0 %v8082_v60  ;;  %v4196_v46 = vld [vmem:[#allocation13 + $0x1be8] sm:$0xff] }
 0x6d2   : > { %5141 = vmatmul.f32.vlgmr.msrb.gmra.mxu3 %v8085_v20  ;;  %5150 = vmatpush.msra.mxu0 %v3388_v13  ;;  %v4324_v2 = vld [vmem:[#allocation13 + $0x1fe8] sm:$0xff] }
 0x6d3   : > { %5170 = vmatpush.msra.mxu1 %v3516_v14  ;;  %5190 = vmatpush.msra.mxu2 %v3644_v15  ;;  %v3932_v4 = vld [vmem:[#allocation13 + $0x13a8] sm:$0xff] }
 0x6d4   : > { %5210 = vmatpush.msra.mxu3 %v3772_v19  ;;  %5151 = vmatpush.msra.mxu0 %v3380_v21  ;;  %v4060_v5 = vld [vmem:[#allocation13 + $0x17a8] sm:$0xff] }
 0x6d5   : > { %5171 = vmatpush.msra.mxu1 %v3508_v36  ;;  %5191 = vmatpush.msra.mxu2 %v3636_v24  ;;  %v4188_v47 = vld [vmem:[#allocation13 + $0x1ba8] sm:$0xff] }
 0x6d6   : > { %5211 = vmatpush.msra.mxu3 %v3764_v22  ;;  %5152 = vmatpush.msra.mxu0 %v3372_v25  ;;  %v4316_v6 = vld [vmem:[#allocation13 + $0x1fa8] sm:$0xff] }
 0x6d7   : > { %5172 = vmatpush.msra.mxu1 %v3500_v26  ;;  %5192 = vmatpush.msra.mxu2 %v3628_v3  ;;  %v3924_v7 = vld [vmem:[#allocation13 + $0x1368] sm:$0xff] }
 0x6d8   : > { %5212 = vmatpush.msra.mxu3 %v3756_v27  ;;  %5153 = vmatpush.msra.mxu0 %v3364_v28  ;;  %v4052_v8 = vld [vmem:[#allocation13 + $0x1768] sm:$0xff] }
 0x6d9   : > { %5173 = vmatpush.msra.mxu1 %v3492_v29  ;;  %5193 = vmatpush.msra.mxu2 %v3620_v30  ;;  %v4180_v9 = vld [vmem:[#allocation13 + $0x1b68] sm:$0xff] }
 0x6da   : > { %5213 = vmatpush.msra.mxu3 %v3748_v31  ;;  %5154 = vmatpush.msra.mxu0 %v3356_v32  ;;  %v4308_v10 = vld [vmem:[#allocation13 + $0x1f68] sm:$0xff] }
 0x6db   : > { %5174 = vmatpush.msra.mxu1 %v3484_v33  ;;  %5194 = vmatpush.msra.mxu2 %v3612_v34  ;;  %v3916_v13 = vld [vmem:[#allocation13 + $0x1328] sm:$0xff] }
 0x6dc   : > { %5214 = vmatpush.msra.mxu3 %v3740_v35  ;;  %5155 = vmatpush.msra.mxu0 %v3348_v37  ;;  %v4044_v14 = vld [vmem:[#allocation13 + $0x1728] sm:$0xff] }
 0x6dd   : > { %5175 = vmatpush.msra.mxu1 %v3476_v38  ;;  %5195 = vmatpush.msra.mxu2 %v3604_v43  ;;  %v4172_v15 = vld [vmem:[#allocation13 + $0x1b28] sm:$0xff] }
 0x6de   : > { %5215 = vmatpush.msra.mxu3 %v3732_v44  ;;  %5156 = vmatpush.msra.mxu0 %v3340_v48  ;;  %v4300_v19 = vld [vmem:[#allocation13 + $0x1f28] sm:$0xff] }
 0x6df   : > { %5176 = vmatpush.msra.mxu1 %v3468_v49  ;;  %5196 = vmatpush.msra.mxu2 %v3596_v16  ;;  %v3908_v21 = vld [vmem:[#allocation13 + $0x12e8] sm:$0xff] }
 0x6e0   : > { %5216 = vmatpush.msra.mxu3 %v3724_v17  ;;  %5157 = vmatpush.msra.mxu0 %v3332_v50  ;;  %v4036_v36 = vld [vmem:[#allocation13 + $0x16e8] sm:$0xff] }
 0x6e1   : > { %5177 = vmatpush.msra.mxu1 %v3460_v18  ;;  %5197 = vmatpush.msra.mxu2 %v3588_v12  ;;  %v4164_v24 = vld [vmem:[#allocation13 + $0x1ae8] sm:$0xff] }
 0x6e2   : > { %5217 = vmatpush.msra.mxu3 %v3716_v51  ;;  %5158 = vmatpush.msra.mxu0 %v3324_v52  ;;  %v4292_v22 = vld [vmem:[#allocation13 + $0x1ee8] sm:$0xff] }
 0x6e3   : > { %5178 = vmatpush.msra.mxu1 %v3452_v53  ;;  %5198 = vmatpush.msra.mxu2 %v3580_v54  ;;  %v3900_v25 = vld [vmem:[#allocation13 + $0x12a8] sm:$0xff] }
 0x6e4   : > { %5218 = vmatpush.msra.mxu3 %v3708_v55  ;;  %5159 = vmatpush.msra.mxu0 %v3316_v56  ;;  %v4028_v26 = vld [vmem:[#allocation13 + $0x16a8] sm:$0xff] }
 0x6e5   : > { %5179 = vmatpush.msra.mxu1 %v3444_v57  ;;  %5199 = vmatpush.msra.mxu2 %v3572_v61  ;;  %v4156_v3 = vld [vmem:[#allocation13 + $0x1aa8] sm:$0xff] }
 0x6e6   : > { %5219 = vmatpush.msra.mxu3 %v3700_v62  ;;  %5160 = vmatpush.msra.mxu0 %v3308_v1  ;;  %v4284_v27 = vld [vmem:[#allocation13 + $0x1ea8] sm:$0xff] }
 0x6e7   : > { %5180 = vmatpush.msra.mxu1 %v3436_v41  ;;  %5200 = vmatpush.msra.mxu2 %v3564_v39  ;;  %v3892_v28 = vld [vmem:[#allocation13 + $0x1268] sm:$0xff] }
 0x6e8   : > { %5220 = vmatpush.msra.mxu3 %v3692_v40  ;;  %5225 = vmatpush.msrb.mxu0 %v3940_v42  ;;  %v4020_v29 = vld [vmem:[#allocation13 + $0x1668] sm:$0xff] }
 0x6e9   : > { %5245 = vmatpush.msrb.mxu1 %v4068_v45  ;;  %5265 = vmatpush.msrb.mxu2 %v4196_v46  ;;  %v4148_v30 = vld [vmem:[#allocation13 + $0x1a68] sm:$0xff] }
 0x6ea   : > { %5285 = vmatpush.msrb.mxu3 %v4324_v2  ;;  %5226 = vmatpush.msrb.mxu0 %v3932_v4  ;;  %v4276_v31 = vld [vmem:[#allocation13 + $0x1e68] sm:$0xff] }
 0x6eb   : > { %5246 = vmatpush.msrb.mxu1 %v4060_v5  ;;  %5266 = vmatpush.msrb.mxu2 %v4188_v47  ;;  %v3884_v32 = vld [vmem:[#allocation13 + $0x1228] sm:$0xff] }
 0x6ec   : > { %5286 = vmatpush.msrb.mxu3 %v4316_v6  ;;  %5227 = vmatpush.msrb.mxu0 %v3924_v7  ;;  %v4012_v33 = vld [vmem:[#allocation13 + $0x1628] sm:$0xff]  ;;  %v3429_v7 = vld [vmem:[#allocation13 + $0x3f0] sm:$0xff] }
 0x6ed   : > { %5247 = vmatpush.msrb.mxu1 %v4052_v8  ;;  %5267 = vmatpush.msrb.mxu2 %v4180_v9  ;;  %v4140_v34 = vld [vmem:[#allocation13 + $0x1a28] sm:$0xff]  ;;  %v3557_v8 = vld [vmem:[#allocation13 + $0x7f0] sm:$0xff] }
 0x6ee   : > { %5287 = vmatpush.msrb.mxu3 %v4308_v10  ;;  %5228 = vmatpush.msrb.mxu0 %v3916_v13  ;;  %v4268_v35 = vld [vmem:[#allocation13 + $0x1e28] sm:$0xff]  ;;  %v3685_v9 = vld [vmem:[#allocation13 + $0xbf0] sm:$0xff] }
 0x6ef   : > { %5248 = vmatpush.msrb.mxu1 %v4044_v14  ;;  %5268 = vmatpush.msrb.mxu2 %v4172_v15  ;;  %v3876_v37 = vld [vmem:[#allocation13 + $0x11e8] sm:$0xff]  ;;  %v3813_v10 = vld [vmem:[#allocation13 + $0xff0] sm:$0xff] }
 0x6f0   : > { %5288 = vmatpush.msrb.mxu3 %v4300_v19  ;;  %5229 = vmatpush.msrb.mxu0 %v3908_v21  ;;  %v4004_v38 = vld [vmem:[#allocation13 + $0x15e8] sm:$0xff]  ;;  %v3421_v13 = vld [vmem:[#allocation13 + $0x3b0] sm:$0xff] }
 0x6f1   : > { %5249 = vmatpush.msrb.mxu1 %v4036_v36  ;;  %5269 = vmatpush.msrb.mxu2 %v4164_v24  ;;  %v4132_v43 = vld [vmem:[#allocation13 + $0x19e8] sm:$0xff]  ;;  %v3549_v14 = vld [vmem:[#allocation13 + $0x7b0] sm:$0xff] }
 0x6f2   : > { %5289 = vmatpush.msrb.mxu3 %v4292_v22  ;;  %5230 = vmatpush.msrb.mxu0 %v3900_v25  ;;  %v4260_v44 = vld [vmem:[#allocation13 + $0x1de8] sm:$0xff]  ;;  %v3677_v15 = vld [vmem:[#allocation13 + $0xbb0] sm:$0xff] }
 0x6f3   : > { %5250 = vmatpush.msrb.mxu1 %v4028_v26  ;;  %5270 = vmatpush.msrb.mxu2 %v4156_v3  ;;  %v3868_v48 = vld [vmem:[#allocation13 + $0x11a8] sm:$0xff]  ;;  %v3805_v19 = vld [vmem:[#allocation13 + $0xfb0] sm:$0xff] }
 0x6f4   : > { %5290 = vmatpush.msrb.mxu3 %v4284_v27  ;;  %5231 = vmatpush.msrb.mxu0 %v3892_v28  ;;  %v3996_v49 = vld [vmem:[#allocation13 + $0x15a8] sm:$0xff]  ;;  %v3413_v21 = vld [vmem:[#allocation13 + $0x370] sm:$0xff] }
 0x6f5   : > { %5251 = vmatpush.msrb.mxu1 %v4020_v29  ;;  %5271 = vmatpush.msrb.mxu2 %v4148_v30  ;;  %v4124_v16 = vld [vmem:[#allocation13 + $0x19a8] sm:$0xff]  ;;  %v3541_v36 = vld [vmem:[#allocation13 + $0x770] sm:$0xff] }
 0x6f6   : > { %5291 = vmatpush.msrb.mxu3 %v4276_v31  ;;  %5232 = vmatpush.msrb.mxu0 %v3884_v32  ;;  %v4252_v17 = vld [vmem:[#allocation13 + $0x1da8] sm:$0xff]  ;;  %v3669_v24 = vld [vmem:[#allocation13 + $0xb70] sm:$0xff] }
 0x6f7   : > { %5252 = vmatpush.msrb.mxu1 %v4012_v33  ;;  %5272 = vmatpush.msrb.mxu2 %v4140_v34  ;;  %v3860_v50 = vld [vmem:[#allocation13 + $0x1168] sm:$0xff]  ;;  %v3405_v22 = vld [vmem:[#allocation13 + $0x330] sm:$0xff] }
 0x6f8   : > { %5292 = vmatpush.msrb.mxu3 %v4268_v35  ;;  %5233 = vmatpush.msrb.mxu0 %v3876_v37  ;;  %v3988_v18 = vld [vmem:[#allocation13 + $0x1568] sm:$0xff]  ;;  %v3533_v25 = vld [vmem:[#allocation13 + $0x730] sm:$0xff] }
 0x6f9   : > { %5253 = vmatpush.msrb.mxu1 %v4004_v38  ;;  %5273 = vmatpush.msrb.mxu2 %v4132_v43  ;;  %v4116_v12 = vld [vmem:[#allocation13 + $0x1968] sm:$0xff]  ;;  %v3661_v26 = vld [vmem:[#allocation13 + $0xb30] sm:$0xff] }
 0x6fa   : > { %5293 = vmatpush.msrb.mxu3 %v4260_v44  ;;  %5234 = vmatpush.msrb.mxu0 %v3868_v48  ;;  %v4244_v51 = vld [vmem:[#allocation13 + $0x1d68] sm:$0xff]  ;;  %v3789_v3 = vld [vmem:[#allocation13 + $0xf30] sm:$0xff] }
 0x6fb   : > { %5254 = vmatpush.msrb.mxu1 %v3996_v49  ;;  %5274 = vmatpush.msrb.mxu2 %v4124_v16  ;;  %v3852_v52 = vld [vmem:[#allocation13 + $0x1128] sm:$0xff]  ;;  %v3397_v27 = vld [vmem:[#allocation13 + $0x2f0] sm:$0xff] }
 0x6fc   : > { %5294 = vmatpush.msrb.mxu3 %v4252_v17  ;;  %v3980_v53 = vld [vmem:[#allocation13 + $0x1528] sm:$0xff]  ;;  %5235 = vmatpush.msrb.mxu0 %v3860_v50  ;;  %v3525_v28 = vld [vmem:[#allocation13 + $0x6f0] sm:$0xff] }
 0x6fd   : > { %5255 = vmatpush.msrb.mxu1 %v3988_v18  ;;  %v4108_v54 = vld [vmem:[#allocation13 + $0x1928] sm:$0xff]  ;;  %5275 = vmatpush.msrb.mxu2 %v4116_v12  ;;  %v3653_v29 = vld [vmem:[#allocation13 + $0xaf0] sm:$0xff] }
 0x6fe   : > { %v4236_v55 = vld [vmem:[#allocation13 + $0x1d28] sm:$0xff]  ;;  %5295 = vmatpush.msrb.mxu3 %v4244_v51  ;;  %5236 = vmatpush.msrb.mxu0 %v3852_v52  ;;  %v3781_v30 = vld [vmem:[#allocation13 + $0xef0] sm:$0xff] }
 0x6ff   : > { %v3844_v56 = vld [vmem:[#allocation13 + $0x10e8] sm:$0xff]  ;;  %5256 = vmatpush.msrb.mxu1 %v3980_v53  ;;  %5276 = vmatpush.msrb.mxu2 %v4108_v54  ;;  %v3389_v31 = vld [vmem:[#allocation13 + $0x2b0] sm:$0xff] }
 0x700   : > { %v3972_v57 = vld [vmem:[#allocation13 + $0x14e8] sm:$0xff]  ;;  %5296 = vmatpush.msrb.mxu3 %v4236_v55  ;;  %5237 = vmatpush.msrb.mxu0 %v3844_v56  ;;  %v3517_v32 = vld [vmem:[#allocation13 + $0x6b0] sm:$0xff] }
 0x701   : > { %v4100_v61 = vld [vmem:[#allocation13 + $0x18e8] sm:$0xff]  ;;  %5257 = vmatpush.msrb.mxu1 %v3972_v57  ;;  %5161 = vmatmul.f32.vlgmr.msra.gmra.mxu0 %v8067_v58  ;;  %v3645_v33 = vld [vmem:[#allocation13 + $0xab0] sm:$0xff] }
 0x702   : > { %v4228_v62 = vld [vmem:[#allocation13 + $0x1ce8] sm:$0xff]  ;;  %5277 = vmatpush.msrb.mxu2 %v4100_v61  ;;  %5181 = vmatmul.f32.vlgmr.msra.gmra.mxu1 %v8070_v59  ;;  %v3797_v59 = vld [vmem:[#allocation13 + $0xf70] sm:$0xff] }
 0x703   : > { %v3836_v1 = vld [vmem:[#allocation13 + $0x10a8] sm:$0xff]  ;;  %5297 = vmatpush.msrb.mxu3 %v4228_v62  ;;  %5201 = vmatmul.f32.vlgmr.msra.gmra.mxu2 %v8073_v63  ;;  %v3773_v34 = vld [vmem:[#allocation13 + $0xeb0] sm:$0xff] }
 0x704   : > { %v3964_v41 = vld [vmem:[#allocation13 + $0x14a8] sm:$0xff]  ;;  %5238 = vmatpush.msrb.mxu0 %v3836_v1  ;;  %5221 = vmatmul.f32.vlgmr.msra.gmra.mxu3 %v8076_v0  ;;  %v3381_v35 = vld [vmem:[#allocation13 + $0x270] sm:$0xff] }
 0x705   : > { %v4092_v39 = vld [vmem:[#allocation13 + $0x18a8] sm:$0xff]  ;;  %5258 = vmatpush.msrb.mxu1 %v3964_v41  ;;  %v3509_v37 = vld [vmem:[#allocation13 + $0x670] sm:$0xff] }
 0x706   : > { %v4220_v40 = vld [vmem:[#allocation13 + $0x1ca8] sm:$0xff]  ;;  %5278 = vmatpush.msrb.mxu2 %v4092_v39  ;;  %v3637_v38 = vld [vmem:[#allocation13 + $0xa70] sm:$0xff] }
 0x707   : > { %v3828_v42 = vld [vmem:[#allocation13 + $0x1068] sm:$0xff]  ;;  %5298 = vmatpush.msrb.mxu3 %v4220_v40  ;;  %v3765_v43 = vld [vmem:[#allocation13 + $0xe70] sm:$0xff] }
 0x708   : > { %v3956_v45 = vld [vmem:[#allocation13 + $0x1468] sm:$0xff]  ;;  %5239 = vmatpush.msrb.mxu0 %v3828_v42  ;;  %v3373_v44 = vld [vmem:[#allocation13 + $0x230] sm:$0xff] }
 0x709   : > { %v4084_v46 = vld [vmem:[#allocation13 + $0x1868] sm:$0xff]  ;;  %5259 = vmatpush.msrb.mxu1 %v3956_v45  ;;  %v3501_v48 = vld [vmem:[#allocation13 + $0x630] sm:$0xff] }
 0x70a   : > { %v4212_v2 = vld [vmem:[#allocation13 + $0x1c68] sm:$0xff]  ;;  %5279 = vmatpush.msrb.mxu2 %v4084_v46  ;;  %v3629_v49 = vld [vmem:[#allocation13 + $0xa30] sm:$0xff] }
 0x70b   : > { %v3820_v4 = vld [vmem:[#allocation13 + $0x1028] sm:$0xff]  ;;  %5299 = vmatpush.msrb.mxu3 %v4212_v2  ;;  %v3757_v16 = vld [vmem:[#allocation13 + $0xe30] sm:$0xff] }
 0x70c   : > { %v3948_v5 = vld [vmem:[#allocation13 + $0x1428] sm:$0xff]  ;;  %5240 = vmatpush.msrb.mxu0 %v3820_v4  ;;  %v3365_v17 = vld [vmem:[#allocation13 + $0x1f0] sm:$0xff] }
 0x70d   : > { %v4076_v47 = vld [vmem:[#allocation13 + $0x1828] sm:$0xff]  ;;  %5260 = vmatpush.msrb.mxu1 %v3948_v5  ;;  %5241 = vmatmul.f32.vlgmr.msrb.gmra.mxu0 %v8082_v60  ;;  %v3493_v50 = vld [vmem:[#allocation13 + $0x5f0] sm:$0xff] }
 0x70e   : > { %v4204_v6 = vld [vmem:[#allocation13 + $0x1c28] sm:$0xff]  ;;  %5280 = vmatpush.msrb.mxu2 %v4076_v47  ;;  %5305 = vmatpush.msra.mxu0 %v3429_v7  ;;  %v3621_v18 = vld [vmem:[#allocation13 + $0x9f0] sm:$0xff] }
 0x70f   : > { %5300 = vmatpush.msrb.mxu3 %v4204_v6  ;;  %5325 = vmatpush.msra.mxu1 %v3557_v8  ;;  %v3749_v12 = vld [vmem:[#allocation13 + $0xdf0] sm:$0xff] }
 0x710   : > { %5345 = vmatpush.msra.mxu2 %v3685_v9  ;;  %5306 = vmatpush.msra.mxu0 %v3421_v13  ;;  %v3357_v51 = vld [vmem:[#allocation13 + $0x1b0] sm:$0xff] }
 0x711   : > { %5365 = vmatpush.msra.mxu3 %v3813_v10  ;;  %5326 = vmatpush.msra.mxu1 %v3549_v14  ;;  %v3485_v52 = vld [vmem:[#allocation13 + $0x5b0] sm:$0xff] }
 0x712   : > { %5346 = vmatpush.msra.mxu2 %v3677_v15  ;;  %5307 = vmatpush.msra.mxu0 %v3413_v21  ;;  %v3613_v53 = vld [vmem:[#allocation13 + $0x9b0] sm:$0xff] }
 0x713   : > { %5366 = vmatpush.msra.mxu3 %v3805_v19  ;;  %5327 = vmatpush.msra.mxu1 %v3541_v36  ;;  %v3741_v54 = vld [vmem:[#allocation13 + $0xdb0] sm:$0xff] }
 0x714   : > { %5347 = vmatpush.msra.mxu2 %v3669_v24  ;;  %5308 = vmatpush.msra.mxu0 %v3405_v22  ;;  %v3349_v55 = vld [vmem:[#allocation13 + $0x170] sm:$0xff] }
 0x715   : > { %5367 = vmatpush.msra.mxu3 %v3797_v59  ;;  %5328 = vmatpush.msra.mxu1 %v3533_v25  ;;  %v3477_v56 = vld [vmem:[#allocation13 + $0x570] sm:$0xff] }
 0x716   : > { %5348 = vmatpush.msra.mxu2 %v3661_v26  ;;  %5309 = vmatpush.msra.mxu0 %v3397_v27  ;;  %v3605_v57 = vld [vmem:[#allocation13 + $0x970] sm:$0xff] }
 0x717   : > { %5368 = vmatpush.msra.mxu3 %v3789_v3  ;;  %5281 = vmatmul.f32.vlgmr.msrb.gmra.mxu2 %v8079_v11  ;;  %v3733_v61 = vld [vmem:[#allocation13 + $0xd70] sm:$0xff] }
 0x718   : > { %5329 = vmatpush.msra.mxu1 %v3525_v28  ;;  %5349 = vmatpush.msra.mxu2 %v3653_v29  ;;  %v3341_v62 = vld [vmem:[#allocation13 + $0x130] sm:$0xff] }
 0x719   : > { %5369 = vmatpush.msra.mxu3 %v3781_v30  ;;  %5310 = vmatpush.msra.mxu0 %v3389_v31  ;;  %v3469_v1 = vld [vmem:[#allocation13 + $0x530] sm:$0xff] }
 0x71a   : > { %5301 = vmatmul.f32.vlgmr.msrb.gmra.mxu3 %v8085_v20  ;;  %5330 = vmatpush.msra.mxu1 %v3517_v32  ;;  %v3597_v41 = vld [vmem:[#allocation13 + $0x930] sm:$0xff] }
 0x71b   : > { %5350 = vmatpush.msra.mxu2 %v3645_v33  ;;  %5370 = vmatpush.msra.mxu3 %v3773_v34  ;;  %v3725_v39 = vld [vmem:[#allocation13 + $0xd30] sm:$0xff] }
 0x71c   : > { %5261 = vmatmul.f32.vlgmr.msrb.gmra.mxu1 %v8088_v23  ;;  %5311 = vmatpush.msra.mxu0 %v3381_v35  ;;  %v3333_v40 = vld [vmem:[#allocation13 + $0xf0] sm:$0xff] }
 0x71d   : > { %5331 = vmatpush.msra.mxu1 %v3509_v37  ;;  %5351 = vmatpush.msra.mxu2 %v3637_v38  ;;  %v3461_v42 = vld [vmem:[#allocation13 + $0x4f0] sm:$0xff] }
 0x71e   : > { %5371 = vmatpush.msra.mxu3 %v3765_v43  ;;  %5312 = vmatpush.msra.mxu0 %v3373_v44  ;;  %v3589_v45 = vld [vmem:[#allocation13 + $0x8f0] sm:$0xff] }
 0x71f   : > { %5332 = vmatpush.msra.mxu1 %v3501_v48  ;;  %5352 = vmatpush.msra.mxu2 %v3629_v49  ;;  %v3717_v46 = vld [vmem:[#allocation13 + $0xcf0] sm:$0xff] }
 0x720   : > { %5372 = vmatpush.msra.mxu3 %v3757_v16  ;;  %5313 = vmatpush.msra.mxu0 %v3365_v17  ;;  %v3325_v2 = vld [vmem:[#allocation13 + $0xb0] sm:$0xff] }
 0x721   : > { %5333 = vmatpush.msra.mxu1 %v3493_v50  ;;  %5353 = vmatpush.msra.mxu2 %v3621_v18  ;;  %v3453_v4 = vld [vmem:[#allocation13 + $0x4b0] sm:$0xff] }
 0x722   : > { %5373 = vmatpush.msra.mxu3 %v3749_v12  ;;  %5314 = vmatpush.msra.mxu0 %v3357_v51  ;;  %v3581_v5 = vld [vmem:[#allocation13 + $0x8b0] sm:$0xff] }
 0x723   : > { %5334 = vmatpush.msra.mxu1 %v3485_v52  ;;  %5354 = vmatpush.msra.mxu2 %v3613_v53  ;;  %v3709_v47 = vld [vmem:[#allocation13 + $0xcb0] sm:$0xff] }
 0x724   : > { %5374 = vmatpush.msra.mxu3 %v3741_v54  ;;  %5315 = vmatpush.msra.mxu0 %v3349_v55  ;;  %v3317_v6 = vld [vmem:[#allocation13 + $0x70] sm:$0xff] }
 0x725   : > { %5335 = vmatpush.msra.mxu1 %v3477_v56  ;;  %5355 = vmatpush.msra.mxu2 %v3605_v57  ;;  %v3445_v7 = vld [vmem:[#allocation13 + $0x470] sm:$0xff] }
 0x726   : > { %5375 = vmatpush.msra.mxu3 %v3733_v61  ;;  %5316 = vmatpush.msra.mxu0 %v3341_v62  ;;  %v3573_v8 = vld [vmem:[#allocation13 + $0x870] sm:$0xff] }
 0x727   : > { %5336 = vmatpush.msra.mxu1 %v3469_v1  ;;  %5356 = vmatpush.msra.mxu2 %v3597_v41  ;;  %v3701_v9 = vld [vmem:[#allocation13 + $0xc70] sm:$0xff] }
 0x728   : > { %5376 = vmatpush.msra.mxu3 %v3725_v39  ;;  %5317 = vmatpush.msra.mxu0 %v3333_v40  ;;  %v3309_v10 = vld [vmem:[#allocation13 + $0x30] sm:$0xff] }
 0x729   : > { %5337 = vmatpush.msra.mxu1 %v3461_v42  ;;  %5357 = vmatpush.msra.mxu2 %v3589_v45  ;;  %v3437_v13 = vld [vmem:[#allocation13 + $0x430] sm:$0xff] }
 0x72a   : > { %5377 = vmatpush.msra.mxu3 %v3717_v46  ;;  %5318 = vmatpush.msra.mxu0 %v3325_v2  ;;  %v3565_v14 = vld [vmem:[#allocation13 + $0x830] sm:$0xff] }
 0x72b   : > { %5338 = vmatpush.msra.mxu1 %v3453_v4  ;;  %5358 = vmatpush.msra.mxu2 %v3581_v5  ;;  %v3693_v15 = vld [vmem:[#allocation13 + $0xc30] sm:$0xff] }
 0x72c   : > { %5378 = vmatpush.msra.mxu3 %v3709_v47  ;;  %5319 = vmatpush.msra.mxu0 %v3317_v6  ;;  %v3941_v19 = vld [vmem:[#allocation13 + $0x13f0] sm:$0xff] }
 0x72d   : > { %5339 = vmatpush.msra.mxu1 %v3445_v7  ;;  %5359 = vmatpush.msra.mxu2 %v3573_v8  ;;  %v4069_v21 = vld [vmem:[#allocation13 + $0x17f0] sm:$0xff] }
 0x72e   : > { %5379 = vmatpush.msra.mxu3 %v3701_v9  ;;  %5320 = vmatpush.msra.mxu0 %v3309_v10  ;;  %v4197_v36 = vld [vmem:[#allocation13 + $0x1bf0] sm:$0xff] }
 0x72f   : > { %5340 = vmatpush.msra.mxu1 %v3437_v13  ;;  %v4325_v24 = vld [vmem:[#allocation13 + $0x1ff0] sm:$0xff]  ;;  %5360 = vmatpush.msra.mxu2 %v3565_v14 }
 0x730   : > { %5380 = vmatpush.msra.mxu3 %v3693_v15  ;;  %v3933_v59 = vld [vmem:[#allocation13 + $0x13b0] sm:$0xff]  ;;  %5385 = vmatpush.msrb.mxu0 %v3941_v19 }
 0x731   : > { %v4061_v22 = vld [vmem:[#allocation13 + $0x17b0] sm:$0xff]  ;;  %5405 = vmatpush.msrb.mxu1 %v4069_v21  ;;  %5425 = vmatpush.msrb.mxu2 %v4197_v36 }
 0x732   : > { %v4189_v25 = vld [vmem:[#allocation13 + $0x1bb0] sm:$0xff]  ;;  %5445 = vmatpush.msrb.mxu3 %v4325_v24  ;;  %5386 = vmatpush.msrb.mxu0 %v3933_v59 }
 0x733   : > { %v4317_v26 = vld [vmem:[#allocation13 + $0x1fb0] sm:$0xff]  ;;  %5406 = vmatpush.msrb.mxu1 %v4061_v22  ;;  %5426 = vmatpush.msrb.mxu2 %v4189_v25  ;;  %v3558_v25 = vld [vmem:[#allocation13 + $0x7f8] sm:$0xff] }
 0x734   : > { %v3925_v3 = vld [vmem:[#allocation13 + $0x1370] sm:$0xff]  ;;  %5446 = vmatpush.msrb.mxu3 %v4317_v26  ;;  %5361 = vmatmul.f32.vlgmr.msra.gmra.mxu2 %v8073_v63  ;;  %v8102_v63 = vld [vmem:[#allocation3 + $0x8] sm:$0xff]  ;;  %v3686_v26 = vld [vmem:[#allocation13 + $0xbf8] sm:$0xff] }
 0x735   : > { %v4053_v27 = vld [vmem:[#allocation13 + $0x1770] sm:$0xff]  ;;  %5387 = vmatpush.msrb.mxu0 %v3925_v3  ;;  %5381 = vmatmul.f32.vlgmr.msra.gmra.mxu3 %v8076_v0  ;;  %v3430_v0 = vld [vmem:[#allocation13 + $0x3f8] sm:$0xff] }
 0x736   : > { %v4181_v28 = vld [vmem:[#allocation13 + $0x1b70] sm:$0xff]  ;;  %5407 = vmatpush.msrb.mxu1 %v4053_v27  ;;  %5321 = vmatmul.f32.vlgmr.msra.gmra.mxu0 %v8067_v58  ;;  %v3814_v3 = vld [vmem:[#allocation13 + $0xff8] sm:$0xff] }
 0x737   : > { %v4309_v29 = vld [vmem:[#allocation13 + $0x1f70] sm:$0xff]  ;;  %5427 = vmatpush.msrb.mxu2 %v4181_v28  ;;  %5341 = vmatmul.f32.vlgmr.msra.gmra.mxu1 %v8102_v63  ;;  %v3422_v27 = vld [vmem:[#allocation13 + $0x3b8] sm:$0xff] }
 0x738   : > { %v3917_v30 = vld [vmem:[#allocation13 + $0x1330] sm:$0xff]  ;;  %5447 = vmatpush.msrb.mxu3 %v4309_v29  ;;  %v3550_v28 = vld [vmem:[#allocation13 + $0x7b8] sm:$0xff] }
 0x739   : > { %v4045_v31 = vld [vmem:[#allocation13 + $0x1730] sm:$0xff]  ;;  %5388 = vmatpush.msrb.mxu0 %v3917_v30  ;;  %v3678_v29 = vld [vmem:[#allocation13 + $0xbb8] sm:$0xff] }
 0x73a   : > { %v4173_v32 = vld [vmem:[#allocation13 + $0x1b30] sm:$0xff]  ;;  %5408 = vmatpush.msrb.mxu1 %v4045_v31  ;;  %v3806_v30 = vld [vmem:[#allocation13 + $0xfb8] sm:$0xff] }
 0x73b   : > { %v4301_v33 = vld [vmem:[#allocation13 + $0x1f30] sm:$0xff]  ;;  %5428 = vmatpush.msrb.mxu2 %v4173_v32  ;;  %v3414_v31 = vld [vmem:[#allocation13 + $0x378] sm:$0xff] }
 0x73c   : > { %v3909_v34 = vld [vmem:[#allocation13 + $0x12f0] sm:$0xff]  ;;  %5448 = vmatpush.msrb.mxu3 %v4301_v33  ;;  %v3542_v32 = vld [vmem:[#allocation13 + $0x778] sm:$0xff] }
 0x73d   : > { %v4037_v35 = vld [vmem:[#allocation13 + $0x16f0] sm:$0xff]  ;;  %5389 = vmatpush.msrb.mxu0 %v3909_v34  ;;  %v3670_v33 = vld [vmem:[#allocation13 + $0xb78] sm:$0xff] }
 0x73e   : > { %v4165_v37 = vld [vmem:[#allocation13 + $0x1af0] sm:$0xff]  ;;  %5409 = vmatpush.msrb.mxu1 %v4037_v35  ;;  %v3798_v34 = vld [vmem:[#allocation13 + $0xf78] sm:$0xff] }
 0x73f   : > { %v4293_v38 = vld [vmem:[#allocation13 + $0x1ef0] sm:$0xff]  ;;  %5429 = vmatpush.msrb.mxu2 %v4165_v37  ;;  %v3534_v35 = vld [vmem:[#allocation13 + $0x738] sm:$0xff] }
 0x740   : > { %v3901_v43 = vld [vmem:[#allocation13 + $0x12b0] sm:$0xff]  ;;  %5449 = vmatpush.msrb.mxu3 %v4293_v38  ;;  %v3662_v37 = vld [vmem:[#allocation13 + $0xb38] sm:$0xff] }
 0x741   : > { %v4029_v44 = vld [vmem:[#allocation13 + $0x16b0] sm:$0xff]  ;;  %5390 = vmatpush.msrb.mxu0 %v3901_v43  ;;  %v3790_v38 = vld [vmem:[#allocation13 + $0xf38] sm:$0xff]  ;;  %v8109_v43 = vpop.f32.mrf.mxu0 }
 0x742   : > { %v4157_v48 = vld [vmem:[#allocation13 + $0x1ab0] sm:$0xff]  ;;  %5410 = vmatpush.msrb.mxu1 %v4029_v44  ;;  %v3654_v44 = vld [vmem:[#allocation13 + $0xaf8] sm:$0xff] }
 0x743   : > { %v4285_v49 = vld [vmem:[#allocation13 + $0x1eb0] sm:$0xff]  ;;  %5430 = vmatpush.msrb.mxu2 %v4157_v48  ;;  %v3782_v48 = vld [vmem:[#allocation13 + $0xef8] sm:$0xff] }
 0x744   : > { %v3893_v16 = vld [vmem:[#allocation13 + $0x1270] sm:$0xff]  ;;  %5450 = vmatpush.msrb.mxu3 %v4285_v49  ;;  %v3390_v49 = vld [vmem:[#allocation13 + $0x2b8] sm:$0xff] }
 0x745   : > { %v4021_v17 = vld [vmem:[#allocation13 + $0x1670] sm:$0xff]  ;;  %5391 = vmatpush.msrb.mxu0 %v3893_v16  ;;  %v3646_v16 = vld [vmem:[#allocation13 + $0xab8] sm:$0xff] }
 0x746   : > { %v4149_v50 = vld [vmem:[#allocation13 + $0x1a70] sm:$0xff]  ;;  %5411 = vmatpush.msrb.mxu1 %v4021_v17  ;;  %v3774_v17 = vld [vmem:[#allocation13 + $0xeb8] sm:$0xff] }
 0x747   : > { %v4277_v18 = vld [vmem:[#allocation13 + $0x1e70] sm:$0xff]  ;;  %5431 = vmatpush.msrb.mxu2 %v4149_v50  ;;  %v3382_v50 = vld [vmem:[#allocation13 + $0x278] sm:$0xff] }
 0x748   : > { %v3885_v12 = vld [vmem:[#allocation13 + $0x1230] sm:$0xff]  ;;  %5451 = vmatpush.msrb.mxu3 %v4277_v18  ;;  %v3510_v18 = vld [vmem:[#allocation13 + $0x678] sm:$0xff] }
 0x749   : > { %v4013_v51 = vld [vmem:[#allocation13 + $0x1630] sm:$0xff]  ;;  %5392 = vmatpush.msrb.mxu0 %v3885_v12  ;;  %v8111_v12 = vpop.f32.mrf.mxu1 }
 0x74a   : > { %v4141_v52 = vld [vmem:[#allocation13 + $0x1a30] sm:$0xff]  ;;  %5412 = vmatpush.msrb.mxu1 %v4013_v51  ;;  %v3638_v51 = vld [vmem:[#allocation13 + $0xa78] sm:$0xff] }
 0x74b   : > { %v4269_v53 = vld [vmem:[#allocation13 + $0x1e30] sm:$0xff]  ;;  %5432 = vmatpush.msrb.mxu2 %v4141_v52  ;;  %v3766_v52 = vld [vmem:[#allocation13 + $0xe78] sm:$0xff] }
 0x74c   : > { %v3877_v54 = vld [vmem:[#allocation13 + $0x11f0] sm:$0xff]  ;;  %5452 = vmatpush.msrb.mxu3 %v4269_v53  ;;  %v8113_v53 = vpop.f32.mrf.mxu2 }
 0x74d   : > { %v4005_v55 = vld [vmem:[#allocation13 + $0x15f0] sm:$0xff]  ;;  %5393 = vmatpush.msrb.mxu0 %v3877_v54  ;;  %v3374_v54 = vld [vmem:[#allocation13 + $0x238] sm:$0xff] }
 0x74e   : > { %v4133_v56 = vld [vmem:[#allocation13 + $0x19f0] sm:$0xff]  ;;  %5413 = vmatpush.msrb.mxu1 %v4005_v55  ;;  %v3502_v55 = vld [vmem:[#allocation13 + $0x638] sm:$0xff] }
 0x74f   : > { %v4261_v57 = vld [vmem:[#allocation13 + $0x1df0] sm:$0xff]  ;;  %5433 = vmatpush.msrb.mxu2 %v4133_v56  ;;  %v3630_v56 = vld [vmem:[#allocation13 + $0xa38] sm:$0xff] }
 0x750   : > { %v3869_v61 = vld [vmem:[#allocation13 + $0x11b0] sm:$0xff]  ;;  %5453 = vmatpush.msrb.mxu3 %v4261_v57  ;;  %v3758_v57 = vld [vmem:[#allocation13 + $0xe38] sm:$0xff] }
 0x751   : > { %v3997_v62 = vld [vmem:[#allocation13 + $0x15b0] sm:$0xff]  ;;  %5394 = vmatpush.msrb.mxu0 %v3869_v61  ;;  %v3366_v61 = vld [vmem:[#allocation13 + $0x1f8] sm:$0xff] }
 0x752   : > { %v4125_v1 = vld [vmem:[#allocation13 + $0x19b0] sm:$0xff]  ;;  %5414 = vmatpush.msrb.mxu1 %v3997_v62  ;;  %v3494_v62 = vld [vmem:[#allocation13 + $0x5f8] sm:$0xff] }
 0x753   : > { %v4253_v41 = vld [vmem:[#allocation13 + $0x1db0] sm:$0xff]  ;;  %5434 = vmatpush.msrb.mxu2 %v4125_v1  ;;  %v8115_v1 = vpop.f32.mrf.mxu3 }
 0x754   : > { %v3861_v39 = vld [vmem:[#allocation13 + $0x1170] sm:$0xff]  ;;  %5454 = vmatpush.msrb.mxu3 %v4253_v41  ;;  %v3622_v41 = vld [vmem:[#allocation13 + $0x9f8] sm:$0xff] }
 0x755   : > { %v3989_v40 = vld [vmem:[#allocation13 + $0x1570] sm:$0xff]  ;;  %5395 = vmatpush.msrb.mxu0 %v3861_v39  ;;  %v3750_v39 = vld [vmem:[#allocation13 + $0xdf8] sm:$0xff] }
 0x756   : > { %v4117_v42 = vld [vmem:[#allocation13 + $0x1970] sm:$0xff]  ;;  %5415 = vmatpush.msrb.mxu1 %v3989_v40  ;;  %v3358_v40 = vld [vmem:[#allocation13 + $0x1b8] sm:$0xff] }
 0x757   : > { %v4245_v45 = vld [vmem:[#allocation13 + $0x1d70] sm:$0xff]  ;;  %5435 = vmatpush.msrb.mxu2 %v4117_v42  ;;  %v3486_v42 = vld [vmem:[#allocation13 + $0x5b8] sm:$0xff] }
 0x758   : > { %v3853_v46 = vld [vmem:[#allocation13 + $0x1130] sm:$0xff]  ;;  %5455 = vmatpush.msrb.mxu3 %v4245_v45  ;;  %v8117_v45 = vpop.f32.mrf.mxu0 }
 0x759   : > { %v3981_v2 = vld [vmem:[#allocation13 + $0x1530] sm:$0xff]  ;;  %5396 = vmatpush.msrb.mxu0 %v3853_v46  ;;  %v3614_v46 = vld [vmem:[#allocation13 + $0x9b8] sm:$0xff] }
 0x75a   : > { %v4109_v4 = vld [vmem:[#allocation13 + $0x1930] sm:$0xff]  ;;  %5416 = vmatpush.msrb.mxu1 %v3981_v2  ;;  %v3742_v2 = vld [vmem:[#allocation13 + $0xdb8] sm:$0xff] }
 0x75b   : > { %v4237_v5 = vld [vmem:[#allocation13 + $0x1d30] sm:$0xff]  ;;  %5436 = vmatpush.msrb.mxu2 %v4109_v4  ;;  %v3350_v4 = vld [vmem:[#allocation13 + $0x178] sm:$0xff] }
 0x75c   : > { %v3845_v47 = vld [vmem:[#allocation13 + $0x10f0] sm:$0xff]  ;;  %5456 = vmatpush.msrb.mxu3 %v4237_v5  ;;  %v3478_v5 = vld [vmem:[#allocation13 + $0x578] sm:$0xff] }
 0x75d   : > { %v3973_v6 = vld [vmem:[#allocation13 + $0x14f0] sm:$0xff]  ;;  %5397 = vmatpush.msrb.mxu0 %v3845_v47  ;;  %v3606_v47 = vld [vmem:[#allocation13 + $0x978] sm:$0xff] }
 0x75e   : > { %v4101_v7 = vld [vmem:[#allocation13 + $0x18f0] sm:$0xff]  ;;  %5417 = vmatpush.msrb.mxu1 %v3973_v6  ;;  %v3734_v6 = vld [vmem:[#allocation13 + $0xd78] sm:$0xff] }
 0x75f   : > { %v4229_v8 = vld [vmem:[#allocation13 + $0x1cf0] sm:$0xff]  ;;  %5437 = vmatpush.msrb.mxu2 %v4101_v7  ;;  %v3342_v7 = vld [vmem:[#allocation13 + $0x138] sm:$0xff] }
 0x760   : > { %v3837_v9 = vld [vmem:[#allocation13 + $0x10b0] sm:$0xff]  ;;  %5457 = vmatpush.msrb.mxu3 %v4229_v8  ;;  %v3470_v8 = vld [vmem:[#allocation13 + $0x538] sm:$0xff] }
 0x761   : > { %v3965_v10 = vld [vmem:[#allocation13 + $0x14b0] sm:$0xff]  ;;  %5398 = vmatpush.msrb.mxu0 %v3837_v9  ;;  %v8119_v9 = vpop.f32.mrf.mxu1 }
 0x762   : > { %v4093_v13 = vld [vmem:[#allocation13 + $0x18b0] sm:$0xff]  ;;  %5418 = vmatpush.msrb.mxu1 %v3965_v10  ;;  %v3598_v10 = vld [vmem:[#allocation13 + $0x938] sm:$0xff] }
 0x763   : > { %v4221_v14 = vld [vmem:[#allocation13 + $0x1cb0] sm:$0xff]  ;;  %5438 = vmatpush.msrb.mxu2 %v4093_v13  ;;  %v3726_v13 = vld [vmem:[#allocation13 + $0xd38] sm:$0xff] }
 0x764   : > { %v3829_v15 = vld [vmem:[#allocation13 + $0x1070] sm:$0xff]  ;;  %5458 = vmatpush.msrb.mxu3 %v4221_v14  ;;  %v8121_v14 = vpop.f32.mrf.mxu2 }
 0x765   : > { %v3957_v19 = vld [vmem:[#allocation13 + $0x1470] sm:$0xff]  ;;  %5399 = vmatpush.msrb.mxu0 %v3829_v15  ;;  %v3334_v15 = vld [vmem:[#allocation13 + $0xf8] sm:$0xff] }
 0x766   : > { %v4085_v21 = vld [vmem:[#allocation13 + $0x1870] sm:$0xff]  ;;  %5419 = vmatpush.msrb.mxu1 %v3957_v19  ;;  %v3462_v19 = vld [vmem:[#allocation13 + $0x4f8] sm:$0xff] }
 0x767   : > { %v4213_v36 = vld [vmem:[#allocation13 + $0x1c70] sm:$0xff]  ;;  %5439 = vmatpush.msrb.mxu2 %v4085_v21  ;;  %v3590_v21 = vld [vmem:[#allocation13 + $0x8f8] sm:$0xff] }
 0x768   : > { %v3821_v24 = vld [vmem:[#allocation13 + $0x1030] sm:$0xff]  ;;  %5459 = vmatpush.msrb.mxu3 %v4213_v36  ;;  %v3718_v36 = vld [vmem:[#allocation13 + $0xcf8] sm:$0xff] }
 0x769   : > { %v3949_v59 = vld [vmem:[#allocation13 + $0x1430] sm:$0xff]  ;;  %5400 = vmatpush.msrb.mxu0 %v3821_v24  ;;  %v3326_v24 = vld [vmem:[#allocation13 + $0xb8] sm:$0xff] }
 0x76a   : > { %v4077_v58 = vld [vmem:[#allocation13 + $0x1830] sm:$0xff]  ;;  %5420 = vmatpush.msrb.mxu1 %v3949_v59  ;;  %5401 = vmatmul.f32.vlgmr.msrb.gmra.mxu0 %v8082_v60  ;;  %v3398_v60 = vld [vmem:[#allocation13 + $0x2f8] sm:$0xff] }
 0x76b   : > { %v4205_v22 = vld [vmem:[#allocation13 + $0x1c30] sm:$0xff]  ;;  %5440 = vmatpush.msrb.mxu2 %v4077_v58  ;;  %5465 = vmatpush.msra.mxu0 %v3430_v0  ;;  %v3454_v59 = vld [vmem:[#allocation13 + $0x4b8] sm:$0xff]  ;;  %v8123_v58 = vpop.f32.mrf.mxu3 }
 0x76c   : > { %5460 = vmatpush.msrb.mxu3 %v4205_v22  ;;  %5441 = vmatmul.f32.vlgmr.msrb.gmra.mxu2 %v8079_v11  ;;  %v3406_v11 = vld [vmem:[#allocation13 + $0x338] sm:$0xff]  ;;  %v8125_v22 = vpop.f32.mrf.mxu0 }
 0x76d   : > { %5485 = vmatpush.msra.mxu1 %v3558_v25  ;;  %5505 = vmatpush.msra.mxu2 %v3686_v26  ;;  %v3582_v0 = vld [vmem:[#allocation13 + $0x8b8] sm:$0xff] }
 0x76e   : > { %5525 = vmatpush.msra.mxu3 %v3814_v3  ;;  %5466 = vmatpush.msra.mxu0 %v3422_v27  ;;  %v3710_v25 = vld [vmem:[#allocation13 + $0xcb8] sm:$0xff] }
 0x76f   : > { %5461 = vmatmul.f32.vlgmr.msrb.gmra.mxu3 %v8085_v20  ;;  %5486 = vmatpush.msra.mxu1 %v3550_v28  ;;  %v3526_v20 = vld [vmem:[#allocation13 + $0x6f8] sm:$0xff] }
 0x770   : > { %5506 = vmatpush.msra.mxu2 %v3678_v29  ;;  %5526 = vmatpush.msra.mxu3 %v3806_v30  ;;  %v3318_v26 = vld [vmem:[#allocation13 + $0x78] sm:$0xff] }
 0x771   : > { %5421 = vmatmul.f32.vlgmr.msrb.gmra.mxu1 %v8088_v23  ;;  %5467 = vmatpush.msra.mxu0 %v3414_v31  ;;  %v3518_v23 = vld [vmem:[#allocation13 + $0x6b8] sm:$0xff]  ;;  %v8127_v31 = vpop.f32.mrf.mxu1 }
 0x772   : > { %5487 = vmatpush.msra.mxu1 %v3542_v32  ;;  %5507 = vmatpush.msra.mxu2 %v3670_v33  ;;  %v3446_v3 = vld [vmem:[#allocation13 + $0x478] sm:$0xff] }
 0x773   : > { %5527 = vmatpush.msra.mxu3 %v3798_v34  ;;  %5468 = vmatpush.msra.mxu0 %v3406_v11  ;;  %v3574_v27 = vld [vmem:[#allocation13 + $0x878] sm:$0xff]  ;;  %v8129_v34 = vpop.f32.mrf.mxu2 }
 0x774   : > { %5488 = vmatpush.msra.mxu1 %v3534_v35  ;;  %5508 = vmatpush.msra.mxu2 %v3662_v37  ;;  %v3702_v28 = vld [vmem:[#allocation13 + $0xc78] sm:$0xff] }
 0x775   : > { %5528 = vmatpush.msra.mxu3 %v3790_v38  ;;  %5469 = vmatpush.msra.mxu0 %v3398_v60  ;;  %v3310_v29 = vld [vmem:[#allocation13 + $0x38] sm:$0xff] }
 0x776   : > { %5489 = vmatpush.msra.mxu1 %v3526_v20  ;;  %5509 = vmatpush.msra.mxu2 %v3654_v44  ;;  %v3438_v30 = vld [vmem:[#allocation13 + $0x438] sm:$0xff]  ;;  %v8131_v44 = vpop.f32.mrf.mxu3 }
 0x777   : > { %5529 = vmatpush.msra.mxu3 %v3782_v48  ;;  %5470 = vmatpush.msra.mxu0 %v3390_v49  ;;  %v3566_v32 = vld [vmem:[#allocation13 + $0x838] sm:$0xff] }
 0x778   : > { %5490 = vmatpush.msra.mxu1 %v3518_v23  ;;  %5510 = vmatpush.msra.mxu2 %v3646_v16  ;;  %v3694_v33 = vld [vmem:[#allocation13 + $0xc38] sm:$0xff] }
 0x779   : > { %5530 = vmatpush.msra.mxu3 %v3774_v17  ;;  %5471 = vmatpush.msra.mxu0 %v3382_v50  ;;  %v3942_v11 = vld [vmem:[#allocation13 + $0x13f8] sm:$0xff]  ;;  %v8133_v17 = vpop.f32.mrf.mxu0 }
 0x77a   : > { %5491 = vmatpush.msra.mxu1 %v3510_v18  ;;  %5511 = vmatpush.msra.mxu2 %v3638_v51  ;;  %v4070_v35 = vld [vmem:[#allocation13 + $0x17f8] sm:$0xff] }
 0x77b   : > { %5531 = vmatpush.msra.mxu3 %v3766_v52  ;;  %5472 = vmatpush.msra.mxu0 %v3374_v54  ;;  %v4198_v37 = vld [vmem:[#allocation13 + $0x1bf8] sm:$0xff] }
 0x77c   : > { %5492 = vmatpush.msra.mxu1 %v3502_v55  ;;  %5512 = vmatpush.msra.mxu2 %v3630_v56  ;;  %v4326_v38 = vld [vmem:[#allocation13 + $0x1ff8] sm:$0xff] }
 0x77d   : > { %5532 = vmatpush.msra.mxu3 %v3758_v57  ;;  %5473 = vmatpush.msra.mxu0 %v3366_v61  ;;  %v3934_v60 = vld [vmem:[#allocation13 + $0x13b8] sm:$0xff]  ;;  %v8135_v61 = vpop.f32.mrf.mxu1 }
 0x77e   : > { %5493 = vmatpush.msra.mxu1 %v3494_v62  ;;  %5513 = vmatpush.msra.mxu2 %v3622_v41  ;;  %v4062_v20 = vld [vmem:[#allocation13 + $0x17b8] sm:$0xff] }
 0x77f   : > { %5533 = vmatpush.msra.mxu3 %v3750_v39  ;;  %5474 = vmatpush.msra.mxu0 %v3358_v40  ;;  %v4190_v48 = vld [vmem:[#allocation13 + $0x1bb8] sm:$0xff]  ;;  %v8137_v39 = vpop.f32.mrf.mxu2 }
 0x780   : > { %5494 = vmatpush.msra.mxu1 %v3486_v42  ;;  %5514 = vmatpush.msra.mxu2 %v3614_v46  ;;  %v4318_v49 = vld [vmem:[#allocation13 + $0x1fb8] sm:$0xff] }
 0x781   : > { %5534 = vmatpush.msra.mxu3 %v3742_v2  ;;  %5475 = vmatpush.msra.mxu0 %v3350_v4  ;;  %v3926_v23 = vld [vmem:[#allocation13 + $0x1378] sm:$0xff] }
 0x782   : > { %5495 = vmatpush.msra.mxu1 %v3478_v5  ;;  %5515 = vmatpush.msra.mxu2 %v3606_v47  ;;  %v4054_v16 = vld [vmem:[#allocation13 + $0x1778] sm:$0xff]  ;;  %v8139_v47 = vpop.f32.mrf.mxu3 }
 0x783   : > { %5535 = vmatpush.msra.mxu3 %v3734_v6  ;;  %5476 = vmatpush.msra.mxu0 %v3342_v7  ;;  %v4182_v50 = vld [vmem:[#allocation13 + $0x1b78] sm:$0xff]  ;;  %v8141_v6 = vpop.f32.mrf.mxu0 }
 0x784   : > { %5496 = vmatpush.msra.mxu1 %v3470_v8  ;;  %5516 = vmatpush.msra.mxu2 %v3598_v10  ;;  %v4310_v18 = vld [vmem:[#allocation13 + $0x1f78] sm:$0xff] }
 0x785   : > { %5536 = vmatpush.msra.mxu3 %v3726_v13  ;;  %5477 = vmatpush.msra.mxu0 %v3334_v15  ;;  %v3918_v51 = vld [vmem:[#allocation13 + $0x1338] sm:$0xff] }
 0x786   : > { %5497 = vmatpush.msra.mxu1 %v3462_v19  ;;  %5517 = vmatpush.msra.mxu2 %v3590_v21  ;;  %v4046_v52 = vld [vmem:[#allocation13 + $0x1738] sm:$0xff] }
 0x787   : > { %5537 = vmatpush.msra.mxu3 %v3718_v36  ;;  %5478 = vmatpush.msra.mxu0 %v3326_v24  ;;  %v4174_v54 = vld [vmem:[#allocation13 + $0x1b38] sm:$0xff]  ;;  %v8143_v24 = vpop.f32.mrf.mxu1 }
 0x788   : > { %5498 = vmatpush.msra.mxu1 %v3454_v59  ;;  %5518 = vmatpush.msra.mxu2 %v3582_v0  ;;  %v4302_v55 = vld [vmem:[#allocation13 + $0x1f38] sm:$0xff] }
 0x789   : > { %5538 = vmatpush.msra.mxu3 %v3710_v25  ;;  %5479 = vmatpush.msra.mxu0 %v3318_v26  ;;  %v3910_v56 = vld [vmem:[#allocation13 + $0x12f8] sm:$0xff]  ;;  %v8145_v25 = vpop.f32.mrf.mxu2 }
 0x78a   : > { %5499 = vmatpush.msra.mxu1 %v3446_v3  ;;  %5519 = vmatpush.msra.mxu2 %v3574_v27  ;;  %v4038_v57 = vld [vmem:[#allocation13 + $0x16f8] sm:$0xff] }
 0x78b   : > { %5539 = vmatpush.msra.mxu3 %v3702_v28  ;;  %5480 = vmatpush.msra.mxu0 %v3310_v29  ;;  %v4166_v62 = vld [vmem:[#allocation13 + $0x1af8] sm:$0xff] }
 0x78c   : > { %5500 = vmatpush.msra.mxu1 %v3438_v30  ;;  %5520 = vmatpush.msra.mxu2 %v3566_v32  ;;  %v4294_v41 = vld [vmem:[#allocation13 + $0x1ef8] sm:$0xff]  ;;  %v8147_v32 = vpop.f32.mrf.mxu3 }
 0x78d   : > { %5540 = vmatpush.msra.mxu3 %v3694_v33  ;;  %5545 = vmatpush.msrb.mxu0 %v3942_v11  ;;  %v3902_v40 = vld [vmem:[#allocation13 + $0x12b8] sm:$0xff] }
 0x78e   : > { %5565 = vmatpush.msrb.mxu1 %v4070_v35  ;;  %5585 = vmatpush.msrb.mxu2 %v4198_v37  ;;  %v4030_v42 = vld [vmem:[#allocation13 + $0x16b8] sm:$0xff] }
 0x78f   : > { %5605 = vmatpush.msrb.mxu3 %v4326_v38  ;;  %5546 = vmatpush.msrb.mxu0 %v3934_v60  ;;  %v4158_v46 = vld [vmem:[#allocation13 + $0x1ab8] sm:$0xff]  ;;  %v8149_v38 = vpop.f32.mrf.mxu0 }
 0x790   : > { %5566 = vmatpush.msrb.mxu1 %v4062_v20  ;;  %5586 = vmatpush.msrb.mxu2 %v4190_v48  ;;  %v4286_v2 = vld [vmem:[#allocation13 + $0x1eb8] sm:$0xff] }
 0x791   : > { %5606 = vmatpush.msrb.mxu3 %v4318_v49  ;;  %5547 = vmatpush.msrb.mxu0 %v3926_v23  ;;  %v3894_v4 = vld [vmem:[#allocation13 + $0x1278] sm:$0xff] }
 0x792   : > { %5567 = vmatpush.msrb.mxu1 %v4054_v16  ;;  %5587 = vmatpush.msrb.mxu2 %v4182_v50  ;;  %v4022_v5 = vld [vmem:[#allocation13 + $0x1678] sm:$0xff]  ;;  %v8151_v50 = vpop.f32.mrf.mxu1 }
 0x793   : > { %5607 = vmatpush.msrb.mxu3 %v4310_v18  ;;  %5548 = vmatpush.msrb.mxu0 %v3918_v51  ;;  %v4150_v7 = vld [vmem:[#allocation13 + $0x1a78] sm:$0xff]  ;;  %v6323_v18 = vld [vmem:[#allocation3 + $0x10] sm:$0xff] }
 0x794   : > { %5568 = vmatpush.msrb.mxu1 %v4046_v52  ;;  %5588 = vmatpush.msrb.mxu2 %v4174_v54  ;;  %v4278_v8 = vld [vmem:[#allocation13 + $0x1e78] sm:$0xff]  ;;  %v8153_v52 = vpop.f32.mrf.mxu2 }
 0x795   : > { %5608 = vmatpush.msrb.mxu3 %v4302_v55  ;;  %5549 = vmatpush.msrb.mxu0 %v3910_v56  ;;  %v3886_v10 = vld [vmem:[#allocation13 + $0x1238] sm:$0xff]  ;;  %v6324_v56 = vld [vmem:[#allocation3] sm:$0xff] }
 0x796   : > { %5569 = vmatpush.msrb.mxu1 %v4038_v57  ;;  %5589 = vmatpush.msrb.mxu2 %v4166_v62  ;;  %v4014_v13 = vld [vmem:[#allocation13 + $0x1638] sm:$0xff]  ;;  %v8155_v62 = vld [vmem:[#allocation15] sm:$0xff] }
 0x797   : > { %5609 = vmatpush.msrb.mxu3 %v4294_v41  ;;  %5550 = vmatpush.msrb.mxu0 %v3902_v40  ;;  %v4142_v15 = vld [vmem:[#allocation13 + $0x1a38] sm:$0xff] }
 0x798   : > { %5570 = vmatpush.msrb.mxu1 %v4030_v42  ;;  %5590 = vmatpush.msrb.mxu2 %v4158_v46  ;;  %v4270_v19 = vld [vmem:[#allocation13 + $0x1e38] sm:$0xff]  ;;  %v8157_v46 = vpop.f32.mrf.mxu3 }
 0x799   : > { %5610 = vmatpush.msrb.mxu3 %v4286_v2  ;;  %5551 = vmatpush.msrb.mxu0 %v3894_v4  ;;  %v3878_v21 = vld [vmem:[#allocation13 + $0x11f8] sm:$0xff]  ;;  %v4842_v2 = vpop.f32.mrf.mxu0 }
 0x79a   : > { %5571 = vmatpush.msrb.mxu1 %v4022_v5  ;;  %5591 = vmatpush.msrb.mxu2 %v4150_v7  ;;  %v4006_v36 = vld [vmem:[#allocation13 + $0x15f8] sm:$0xff] }
 0x79b   : > { %5611 = vmatpush.msrb.mxu3 %v4278_v8  ;;  %5552 = vmatpush.msrb.mxu0 %v3886_v10  ;;  %v4134_v59 = vld [vmem:[#allocation13 + $0x19f8] sm:$0xff]  ;;  %v4329_v10 = vperm.slane %v8155_v62, 0 }
 0x79c   : > { %5572 = vmatpush.msrb.mxu1 %v4014_v13  ;;  %v4262_v0 = vld [vmem:[#allocation13 + $0x1df8] sm:$0xff]  ;;  %5592 = vmatpush.msrb.mxu2 %v4142_v15  ;;  %v4330_v13 = vperm.slane %v8155_v62, 1 }
 0x79d   : > { %5612 = vmatpush.msrb.mxu3 %v4270_v19  ;;  %v3870_v26 = vld [vmem:[#allocation13 + $0x11b8] sm:$0xff]  ;;  %5553 = vmatpush.msrb.mxu0 %v3878_v21  ;;  %v4331_v21 = vperm.slane %v8155_v62, 2 }
 0x79e   : > { %v3998_v3 = vld [vmem:[#allocation13 + $0x15b8] sm:$0xff]  ;;  %5573 = vmatpush.msrb.mxu1 %v4006_v36  ;;  %5593 = vmatpush.msrb.mxu2 %v4134_v59  ;;  %v4332_v36 = vperm.slane %v8155_v62, 3  ;;  %v5648_v59 = vld [vmem:[#allocation16 + $0x78] sm:$0xff] }
 0x79f   : > { %v4126_v27 = vld [vmem:[#allocation13 + $0x19b8] sm:$0xff]  ;;  %5613 = vmatpush.msrb.mxu3 %v4262_v0  ;;  %5554 = vmatpush.msrb.mxu0 %v3870_v26  ;;  %v4862_v0 = vpop.f32.mrf.mxu1  ;;  %v5680_v26 = vld [vmem:[#allocation16 + $0x178] sm:$0xff] }
 0x7a0   : > { %v4254_v28 = vld [vmem:[#allocation13 + $0x1db8] sm:$0xff]  ;;  %5574 = vmatpush.msrb.mxu1 %v3998_v3  ;;  %5594 = vmatpush.msrb.mxu2 %v4126_v27  ;;  %v4882_v3 = vpop.f32.mrf.mxu2  ;;  %v5696_v27 = vld [vmem:[#allocation16 + $0x1f8] sm:$0xff] }
 0x7a1   : > { %v3862_v29 = vld [vmem:[#allocation13 + $0x1178] sm:$0xff]  ;;  %5614 = vmatpush.msrb.mxu3 %v4254_v28  ;;  %5521 = vmatmul.f32.vlgmr.msra.gmra.mxu2 %v6323_v18  ;;  %v4363_v28 = vadd.f32 %v8109_v43, %v4329_v10  ;;  %v8171_v18 = vpop.f32.mrf.mxu0 }
 0x7a2   : > { %v3990_v30 = vld [vmem:[#allocation13 + $0x1578] sm:$0xff]  ;;  %5555 = vmatpush.msrb.mxu0 %v3862_v29  ;;  %5501 = vmatmul.f32.vlgmr.msra.gmra.mxu1 %v8102_v63  ;;  %v5664_v63 = vld [vmem:[#allocation16 + $0xf8] sm:$0xff]  ;;  %v4523_v29 = vadd.f32 %v8125_v22, %v4330_v13  ;;  %v5646_v22 = vld [vmem:[#allocation16 + $0x68] sm:$0xff] }
 0x7a3   : > { %v4118_v33 = vld [vmem:[#allocation13 + $0x1978] sm:$0xff]  ;;  %5575 = vmatpush.msrb.mxu1 %v3990_v30  ;;  %5481 = vmatmul.f32.vlgmr.msra.gmra.mxu0 %v6324_v56  ;;  %v6326_v30 = vld [vmem:[#allocation3 + $0x30] sm:$0xff] }
 0x7a4   : > { %v4246_v11 = vld [vmem:[#allocation13 + $0x1d78] sm:$0xff]  ;;  %5595 = vmatpush.msrb.mxu2 %v4118_v33 }
 0x7a5   : > { %v3854_v35 = vld [vmem:[#allocation13 + $0x1138] sm:$0xff]  ;;  %5615 = vmatpush.msrb.mxu3 %v4246_v11  ;;  %v4683_v11 = vadd.f32 %v8141_v6, %v4331_v21  ;;  %v4543_v6 = vadd.f32 %v8127_v31, %v4523_v29  ;;  %v5644_v31 = vld [vmem:[#allocation16 + $0x58] sm:$0xff] }
 0x7a6   : > { %v3982_v37 = vld [vmem:[#allocation13 + $0x1538] sm:$0xff]  ;;  %5556 = vmatpush.msrb.mxu0 %v3854_v35  ;;  %v4843_v35 = vadd.f32 %v4842_v2, %v4332_v36  ;;  %v5660_v2 = vld [vmem:[#allocation16 + $0xd8] sm:$0xff] }
 0x7a7   : > { %v4110_v60 = vld [vmem:[#allocation13 + $0x1938] sm:$0xff]  ;;  %5576 = vmatpush.msrb.mxu1 %v3982_v37 }
 0x7a8   : > { %v4238_v20 = vld [vmem:[#allocation13 + $0x1d38] sm:$0xff]  ;;  %5596 = vmatpush.msrb.mxu2 %v4110_v60  ;;  %v4863_v56 = vadd.f32 %v4862_v0, %v4843_v35  ;;  %v5656_v35 = vld [vmem:[#allocation16 + $0xb8] sm:$0xff] }
 0x7a9   : > { %v3846_v48 = vld [vmem:[#allocation13 + $0x10f8] sm:$0xff]  ;;  %5616 = vmatpush.msrb.mxu3 %v4238_v20  ;;  %v8167_v20 = vpop.f32.mrf.mxu3 }
 0x7aa   : > { %v3974_v49 = vld [vmem:[#allocation13 + $0x14f8] sm:$0xff]  ;;  %5557 = vmatpush.msrb.mxu0 %v3846_v48  ;;  %v6327_v48 = vld [vmem:[#allocation3 + $0x20] sm:$0xff]  ;;  %v4883_v13 = vadd.f32 %v4882_v3, %v4863_v56  ;;  %v5674_v3 = vld [vmem:[#allocation16 + $0x148] sm:$0xff] }
 0x7ab   : > { %v4102_v23 = vld [vmem:[#allocation13 + $0x18f8] sm:$0xff]  ;;  %5577 = vmatpush.msrb.mxu1 %v3974_v49  ;;  %v5686_v56 = vld [vmem:[#allocation16 + $0x1a8] sm:$0xff] }
 0x7ac   : > { %v4230_v16 = vld [vmem:[#allocation13 + $0x1cf8] sm:$0xff]  ;;  %5597 = vmatpush.msrb.mxu2 %v4102_v23  ;;  %v5662_v23 = vld [vmem:[#allocation16 + $0xe8] sm:$0xff]  ;;  %v4903_v29 = vadd.f32 %v8167_v20, %v4883_v13  ;;  %v5688_v20 = vld [vmem:[#allocation16 + $0x1b8] sm:$0xff] }
 0x7ad   : > { %v3838_v51 = vld [vmem:[#allocation13 + $0x10b8] sm:$0xff]  ;;  %5617 = vmatpush.msrb.mxu3 %v4230_v16  ;;  %v4383_v16 = vadd.f32 %v8111_v12, %v4363_v28  ;;  %v5693_v12 = vld [vmem:[#allocation16 + $0x1e0] sm:$0xff] }
 0x7ae   : > { %v3966_v54 = vld [vmem:[#allocation13 + $0x14b8] sm:$0xff]  ;;  %5558 = vmatpush.msrb.mxu0 %v3838_v51  ;;  %v5678_v51 = vld [vmem:[#allocation16 + $0x168] sm:$0xff] }
 0x7af   : > { %v4094_v55 = vld [vmem:[#allocation13 + $0x18b8] sm:$0xff]  ;;  %5578 = vmatpush.msrb.mxu1 %v3966_v54  ;;  %v5694_v54 = vld [vmem:[#allocation16 + $0x1e8] sm:$0xff] }
 0x7b0   : > { %v4222_v57 = vld [vmem:[#allocation13 + $0x1cb8] sm:$0xff]  ;;  %5598 = vmatpush.msrb.mxu2 %v4094_v55  ;;  %v4703_v55 = vadd.f32 %v8143_v24, %v4683_v11  ;;  %v5676_v24 = vld [vmem:[#allocation16 + $0x158] sm:$0xff] }
 0x7b1   : > { %v6325_v41 = vld [vmem:[#allocation3 + $0x18] sm:$0xff]  ;;  %5618 = vmatpush.msrb.mxu3 %v4222_v57  ;;  %v6329_v57 = vld [vmem:[#allocation3 + $0x28] sm:$0xff]  ;;  %v5640_v11 = vld [vmem:[#allocation16 + $0x38] sm:$0xff] }
 0x7b2   : > { %5541 = vmatmul.f32.vlgmr.msra.gmra.mxu3 %v6325_v41  ;;  %v3830_v40 = vld [vmem:[#allocation13 + $0x1078] sm:$0xff]  ;;  %v5645_v41 = vld [vmem:[#allocation16 + $0x60] sm:$0xff]  ;;  %v4723_v10 = vadd.f32 %v8145_v25, %v4703_v55  ;;  %v8183_v25 = vpop.f32.mrf.mxu3 }
 0x7b3   : > { %v3958_v42 = vld [vmem:[#allocation13 + $0x1478] sm:$0xff]  ;;  %5559 = vmatpush.msrb.mxu0 %v3830_v40  ;;  %v5661_v40 = vld [vmem:[#allocation16 + $0xe0] sm:$0xff] }
 0x7b4   : > { %v4086_v4 = vld [vmem:[#allocation13 + $0x1878] sm:$0xff]  ;;  %5579 = vmatpush.msrb.mxu1 %v3958_v42  ;;  %v5677_v42 = vld [vmem:[#allocation16 + $0x160] sm:$0xff]  ;;  %v4743_v28 = vadd.f32 %v8147_v32, %v4723_v10  ;;  %v5672_v32 = vld [vmem:[#allocation16 + $0x138] sm:$0xff] }
 0x7b5   : > { %v4214_v5 = vld [vmem:[#allocation13 + $0x1c78] sm:$0xff]  ;;  %5599 = vmatpush.msrb.mxu2 %v4086_v4  ;;  %v4403_v4 = vadd.f32 %v8113_v53, %v4383_v16 }
 0x7b6   : > { %v3822_v7 = vld [vmem:[#allocation13 + $0x1038] sm:$0xff]  ;;  %5619 = vmatpush.msrb.mxu3 %v4214_v5  ;;  %v4563_v5 = vadd.f32 %v8129_v34, %v4543_v6  ;;  %v5642_v34 = vld [vmem:[#allocation16 + $0x48] sm:$0xff] }
 0x7b7   : > { %v3950_v8 = vld [vmem:[#allocation13 + $0x1438] sm:$0xff]  ;;  %5560 = vmatpush.msrb.mxu0 %v3822_v7  ;;  %v8176_v7 = vpop.f32.mrf.mxu1  ;;  %v4423_v0 = vadd.f32 %v8115_v1, %v4403_v4  ;;  %v5673_v1 = vld [vmem:[#allocation16 + $0x140] sm:$0xff]  ;;  %v5638_v6 = vld [vmem:[#allocation16 + $0x28] sm:$0xff] }
 0x7b8   : > { %v4078_v15 = vld [vmem:[#allocation13 + $0x1838] sm:$0xff]  ;;  %5580 = vmatpush.msrb.mxu1 %v3950_v8  ;;  %5561 = vmatmul.f32.vlgmr.msrb.gmra.mxu0 %v6327_v48  ;;  %v5692_v8 = vld [vmem:[#allocation16 + $0x1d8] sm:$0xff] }
 0x7b9   : > { %v4206_v19 = vld [vmem:[#allocation13 + $0x1c38] sm:$0xff]  ;;  %5600 = vmatpush.msrb.mxu2 %v4078_v15  ;;  %5765 = vmatpush.msra.mxu0 %v5648_v59  ;;  %v8179_v15 = vpop.f32.mrf.mxu2  ;;  %v5658_v59 = vld [vmem:[#allocation16 + $0xc8] sm:$0xff] }
 0x7ba   : > { %5620 = vmatpush.msrb.mxu3 %v4206_v19  ;;  %5601 = vmatmul.f32.vlgmr.msrb.gmra.mxu2 %v6326_v30  ;;  %v5647_v33 = vld [vmem:[#allocation16 + $0x70] sm:$0xff]  ;;  %v5641_v30 = vld [vmem:[#allocation16 + $0x40] sm:$0xff]  ;;  %v8199_v55 = vpop.f32.mrf.mxu3 }
 0x7bb   : > { %5785 = vmatpush.msra.mxu1 %v5664_v63  ;;  %5805 = vmatpush.msra.mxu2 %v5680_v26  ;;  %v5663_v37 = vld [vmem:[#allocation16 + $0xf0] sm:$0xff]  ;;  %v4583_v63 = vadd.f32 %v8131_v44, %v4563_v5  ;;  %v8185_v26 = vpop.f32.mrf.mxu0  ;;  %v5689_v44 = vld [vmem:[#allocation16 + $0x1c0] sm:$0xff]  ;;  %v5668_v5 = vld [vmem:[#allocation16 + $0x118] sm:$0xff] }
 0x7bc   : > { %v5679_v60 = vld [vmem:[#allocation16 + $0x170] sm:$0xff]  ;;  %5825 = vmatpush.msra.mxu3 %v5696_v27  ;;  %5766 = vmatpush.msra.mxu0 %v5647_v33  ;;  %v5690_v27 = vld [vmem:[#allocation16 + $0x1c8] sm:$0xff]  ;;  %v5657_v33 = vld [vmem:[#allocation16 + $0xc0] sm:$0xff] }
 0x7bd   : > { %v5695_v49 = vld [vmem:[#allocation16 + $0x1f0] sm:$0xff]  ;;  %5786 = vmatpush.msra.mxu1 %v5663_v37  ;;  %5806 = vmatpush.msra.mxu2 %v5679_v60  ;;  %v4443_v37 = vadd.f32 %v8117_v45, %v4423_v0  ;;  %v4603_v60 = vadd.f32 %v8133_v17, %v4583_v63 }
 0x7be   : > { %v6328_v43 = vld [vmem:[#allocation3 + $0x38] sm:$0xff]  ;;  %5826 = vmatpush.msra.mxu3 %v5695_v49  ;;  %5581 = vmatmul.f32.vlgmr.msrb.gmra.mxu1 %v6329_v57  ;;  %v4763_v49 = vadd.f32 %v8149_v38, %v4743_v28  ;;  %v5633_v28 = vld [vmem:[#allocation16] sm:$0xff] }
 0x7bf   : > { %5621 = vmatmul.f32.vlgmr.msrb.gmra.mxu3 %v6328_v43  ;;  %5767 = vmatpush.msra.mxu0 %v5646_v22  ;;  %v5643_v19 = vld [vmem:[#allocation16 + $0x50] sm:$0xff]  ;;  %v8191_v48 = vpop.f32.mrf.mxu1  ;;  %v4923_v43 = vadd.f32 %v8171_v18, %v4903_v29  ;;  %v4623_v38 = vadd.f32 %v8135_v61, %v4603_v60  ;;  %v5670_v18 = vld [vmem:[#allocation16 + $0x128] sm:$0xff]  ;;  %v5685_v61 = vld [vmem:[#allocation16 + $0x1a0] sm:$0xff] }
 0x7c0   : > { %5787 = vmatpush.msra.mxu1 %v5662_v23  ;;  %5807 = vmatpush.msra.mxu2 %v5678_v51  ;;  %v5659_v21 = vld [vmem:[#allocation16 + $0xd0] sm:$0xff]  ;;  %v5654_v51 = vld [vmem:[#allocation16 + $0xa8] sm:$0xff]  ;;  %v4783_v57 = vadd.f32 %v8151_v50, %v4763_v49  ;;  %v5649_v29 = vld [vmem:[#allocation16 + $0x80] sm:$0xff] }
 0x7c1   : > { %5827 = vmatpush.msra.mxu3 %v5694_v54  ;;  %5768 = vmatpush.msra.mxu0 %v5645_v41  ;;  %v5675_v53 = vld [vmem:[#allocation16 + $0x150] sm:$0xff]  ;;  %v8195_v22 = vpop.f32.mrf.mxu2  ;;  %v4463_v54 = vadd.f32 %v8119_v9, %v4443_v37  ;;  %v4943_v41 = vadd.f32 %v8176_v7, %v4923_v43  ;;  %v5669_v9 = vld [vmem:[#allocation16 + $0x120] sm:$0xff]  ;;  %v4643_v50 = vadd.f32 %v8137_v39, %v4623_v38  ;;  %v5684_v7 = vld [vmem:[#allocation16 + $0x198] sm:$0xff] }
 0x7c2   : > { %5788 = vmatpush.msra.mxu1 %v5661_v40  ;;  %5808 = vmatpush.msra.mxu2 %v5677_v42  ;;  %v5691_v36 = vld [vmem:[#allocation16 + $0x1d0] sm:$0xff]  ;;  %v5637_v40 = vld [vmem:[#allocation16 + $0x20] sm:$0xff]  ;;  %v5634_v39 = vld [vmem:[#allocation16 + $0x8] sm:$0xff] }
 0x7c3   : > { %5828 = vmatpush.msra.mxu3 %v5693_v12  ;;  %5769 = vmatpush.msra.mxu0 %v5644_v31  ;;  %v5639_v23 = vld [vmem:[#allocation16 + $0x30] sm:$0xff]  ;;  %v5653_v42 = vld [vmem:[#allocation16 + $0xa0] sm:$0xff]  ;;  %v8203_v12 = vpop.f32.mrf.mxu0  ;;  %v5636_v31 = vld [vmem:[#allocation16 + $0x18] sm:$0xff]  ;;  %v4483_v4 = vadd.f32 %v8121_v14, %v4463_v54 }
 0x7c4   : > { %5789 = vmatpush.msra.mxu1 %v5660_v2  ;;  %5809 = vmatpush.msra.mxu2 %v5676_v24  ;;  %v5655_v16 = vld [vmem:[#allocation16 + $0xb0] sm:$0xff]  ;;  %v5652_v2 = vld [vmem:[#allocation16 + $0x98] sm:$0xff]  ;;  %v4803_v24 = vadd.f32 %v8153_v52, %v4783_v57  ;;  %v5742_v54 = vld [vmem:[#allocation16 + $0x368] sm:$0xff] }
 0x7c5   : > { %5829 = vmatpush.msra.mxu3 %v5692_v8  ;;  %5770 = vmatpush.msra.mxu0 %v5643_v19  ;;  %v5671_v45 = vld [vmem:[#allocation16 + $0x130] sm:$0xff]  ;;  %v4963_v8 = vadd.f32 %v8179_v15, %v4943_v41  ;;  %v4503_v52 = vadd.f32 %v8123_v58, %v4483_v4  ;;  %v4663_v15 = vadd.f32 %v8139_v47, %v4643_v50  ;;  %v5665_v47 = vld [vmem:[#allocation16 + $0x100] sm:$0xff]  ;;  %v5712_v37 = vld [vmem:[#allocation16 + $0x278] sm:$0xff] }
 0x7c6   : > { %5790 = vmatpush.msra.mxu1 %v5659_v21  ;;  %5810 = vmatpush.msra.mxu2 %v5675_v53  ;;  %v5687_v17 = vld [vmem:[#allocation16 + $0x1b0] sm:$0xff]  ;;  %v4823_v0 = vadd.f32 %v8157_v46, %v4803_v24  ;;  %v5728_v60 = vld [vmem:[#allocation16 + $0x2f8] sm:$0xff]  ;;  %v5709_v38 = vld [vmem:[#allocation16 + $0x260] sm:$0xff] }
 0x7c7   : > { %5830 = vmatpush.msra.mxu3 %v5691_v36  ;;  %5771 = vmatpush.msra.mxu0 %v5642_v34  ;;  %v5635_v10 = vld [vmem:[#allocation16 + $0x10] sm:$0xff]  ;;  %v8209_v19 = vpop.f32.mrf.mxu1  ;;  %v5650_v36 = vld [vmem:[#allocation16 + $0x88] sm:$0xff]  ;;  %v4983_v63 = vadd.f32 %v8183_v25, %v4963_v8  ;;  %v5625_v46 = vmax.f32 %v4503_v52, 0.0  ;;  %v5741_v57 = vld [vmem:[#allocation16 + $0x360] sm:$0xff] }
 0x7c8   : > { %5791 = vmatpush.msra.mxu1 %v5658_v59  ;;  %5811 = vmatpush.msra.mxu2 %v5674_v3  ;;  %v5651_v13 = vld [vmem:[#allocation16 + $0x90] sm:$0xff]  ;;  %v5666_v34 = vld [vmem:[#allocation16 + $0x108] sm:$0xff]  ;;  %v4333_v3 = vperm.slane %v8155_v62, 4  ;;  %v5627_v25 = vmax.f32 %v4823_v0, 0.0  ;;  %v5757_v24 = vld [vmem:[#allocation16 + $0x3e0] sm:$0xff] }
 0x7c9   : > { %5831 = vmatpush.msra.mxu3 %v5690_v27  ;;  %5772 = vmatpush.msra.mxu0 %v5641_v30  ;;  %v5667_v21 = vld [vmem:[#allocation16 + $0x110] sm:$0xff]  ;;  %v8211_v53 = vpop.f32.mrf.mxu2  ;;  %v5682_v59 = vld [vmem:[#allocation16 + $0x188] sm:$0xff]  ;;  %v4334_v27 = vperm.slane %v8155_v62, 5  ;;  %v8219_v30 = vpop.f32.mrf.mxu3  ;;  %v5705_v52 = vld [vmem:[#allocation16 + $0x240] sm:$0xff] }
 0x7ca   : > { %5792 = vmatpush.msra.mxu1 %v5657_v33  ;;  %5812 = vmatpush.msra.mxu2 %v5673_v1  ;;  %v5683_v14 = vld [vmem:[#allocation16 + $0x190] sm:$0xff]  ;;  %v5681_v33 = vld [vmem:[#allocation16 + $0x180] sm:$0xff]  ;;  %v5626_v1 = vmax.f32 %v4663_v15, 0.0 }
 0x7cb   : > { %5832 = vmatpush.msra.mxu3 %v5689_v44  ;;  %5773 = vmatpush.msra.mxu0 %v5640_v11  ;;  %v5162_v58 = vpop.f32.mrf.mxu0  ;;  %v5628_v44 = vmax.f32 %v4983_v63, 0.0  ;;  %v5003_v11 = vadd.f32 %v8185_v26, %v4333_v3  ;;  %v5711_v43 = vld [vmem:[#allocation16 + $0x270] sm:$0xff]  ;;  %v5721_v15 = vld [vmem:[#allocation16 + $0x2c0] sm:$0xff]  ;;  %v5704_v3 = vld [vmem:[#allocation16 + $0x238] sm:$0xff] }
 0x7cc   : > { %5793 = vmatpush.msra.mxu1 %v5656_v35  ;;  %5813 = vmatpush.msra.mxu2 %v5672_v32  ;;  %v5163_v35 = vadd.f32 %v5162_v58, %v4334_v27  ;;  %v5759_v41 = vld [vmem:[#allocation16 + $0x3f0] sm:$0xff]  ;;  %v5720_v27 = vld [vmem:[#allocation16 + $0x2b8] sm:$0xff] }
 0x7cd   : > { %5833 = vmatpush.msra.mxu3 %v5688_v20  ;;  %5774 = vmatpush.msra.mxu0 %v5639_v23  ;;  %v5744_v20 = vld [vmem:[#allocation16 + $0x378] sm:$0xff]  ;;  %v5727_v23 = vld [vmem:[#allocation16 + $0x2f0] sm:$0xff] }
 0x7ce   : > { %5794 = vmatpush.msra.mxu1 %v5655_v16  ;;  %5814 = vmatpush.msra.mxu2 %v5671_v45  ;;  %v5743_v16 = vld [vmem:[#allocation16 + $0x370] sm:$0xff]  ;;  %v5023_v45 = vadd.f32 %v8191_v48, %v5003_v11  ;;  %v5736_v58 = vld [vmem:[#allocation16 + $0x338] sm:$0xff]  ;;  %v5718_v11 = vld [vmem:[#allocation16 + $0x2a8] sm:$0xff] }
 0x7cf   : > { %5834 = vmatpush.msra.mxu3 %v5687_v17  ;;  %5775 = vmatpush.msra.mxu0 %v5638_v6  ;;  %v5182_v32 = vpop.f32.mrf.mxu1  ;;  %v5710_v17 = vld [vmem:[#allocation16 + $0x268] sm:$0xff]  ;;  %v5707_v4 = vld [vmem:[#allocation16 + $0x250] sm:$0xff] }
 0x7d0   : > { %5795 = vmatpush.msra.mxu1 %v5654_v51  ;;  %5815 = vmatpush.msra.mxu2 %v5670_v18  ;;  %v5183_v26 = vadd.f32 %v5182_v32, %v5163_v35  ;;  %v5726_v6 = vld [vmem:[#allocation16 + $0x2e8] sm:$0xff]  ;;  %v5725_v18 = vld [vmem:[#allocation16 + $0x2e0] sm:$0xff]  ;;  %v5723_v50 = vld [vmem:[#allocation16 + $0x2d0] sm:$0xff] }
 0x7d1   : > { %5835 = vmatpush.msra.mxu3 %v5686_v56  ;;  %5776 = vmatpush.msra.mxu0 %v5637_v40  ;;  %v5202_v49 = vpop.f32.mrf.mxu2  ;;  %v5222_v51 = vpop.f32.mrf.mxu3  ;;  %v5760_v56 = vld [vmem:[#allocation16 + $0x3f8] sm:$0xff]  ;;  %v5043_v40 = vadd.f32 %v8195_v22, %v5023_v45  ;;  %v5701_v32 = vld [vmem:[#allocation16 + $0x220] sm:$0xff] }
 0x7d2   : > { %5796 = vmatpush.msra.mxu1 %v5653_v42  ;;  %5816 = vmatpush.msra.mxu2 %v5669_v9  ;;  %v5203_v42 = vadd.f32 %v5202_v49, %v5183_v26  ;;  %v5708_v9 = vld [vmem:[#allocation16 + $0x258] sm:$0xff] }
 0x7d3   : > { %5836 = vmatpush.msra.mxu3 %v5685_v61  ;;  %5777 = vmatpush.msra.mxu0 %v5636_v31  ;;  %v5242_v48 = vpop.f32.mrf.mxu0  ;;  %v5724_v61 = vld [vmem:[#allocation16 + $0x2d8] sm:$0xff]  ;;  %v5063_v22 = vadd.f32 %v8199_v55, %v5043_v40  ;;  %v5737_v55 = vld [vmem:[#allocation16 + $0x340] sm:$0xff]  ;;  %v5714_v40 = vld [vmem:[#allocation16 + $0x288] sm:$0xff] }
 0x7d4   : > { %5797 = vmatpush.msra.mxu1 %v5652_v2  ;;  %5817 = vmatpush.msra.mxu2 %v5668_v5  ;;  %v5740_v31 = vld [vmem:[#allocation16 + $0x358] sm:$0xff]  ;;  %v5758_v2 = vld [vmem:[#allocation16 + $0x3e8] sm:$0xff]  ;;  %v5223_v8 = vadd.f32 %v5222_v51, %v5203_v42  ;;  %v5699_v51 = vld [vmem:[#allocation16 + $0x210] sm:$0xff] }
 0x7d5   : > { %5837 = vmatpush.msra.mxu3 %v5684_v7  ;;  %5778 = vmatpush.msra.mxu0 %v5635_v10  ;;  %v5739_v7 = vld [vmem:[#allocation16 + $0x350] sm:$0xff]  ;;  %v5083_v0 = vadd.f32 %v8203_v12, %v5063_v22  ;;  %v5700_v45 = vld [vmem:[#allocation16 + $0x218] sm:$0xff] }
 0x7d6   : > { %5798 = vmatpush.msra.mxu1 %v5651_v13  ;;  %5818 = vmatpush.msra.mxu2 %v5667_v21  ;;  %v5706_v13 = vld [vmem:[#allocation16 + $0x248] sm:$0xff]  ;;  %v5243_v63 = vadd.f32 %v5242_v48, %v5223_v8  ;;  %v5716_v26 = vld [vmem:[#allocation16 + $0x298] sm:$0xff] }
 0x7d7   : > { %5838 = vmatpush.msra.mxu3 %v5683_v14  ;;  %5779 = vmatpush.msra.mxu0 %v5634_v39  ;;  %v5262_v5 = vpop.f32.mrf.mxu1  ;;  %v5722_v21 = vld [vmem:[#allocation16 + $0x2c8] sm:$0xff]  ;;  %v4335_v14 = vperm.slane %v8155_v62, 6  ;;  %v5103_v12 = vadd.f32 %v8209_v19, %v5083_v0 }
 0x7d8   : > { %5799 = vmatpush.msra.mxu1 %v5650_v36  ;;  %5819 = vmatpush.msra.mxu2 %v5666_v34  ;;  %v5738_v39 = vld [vmem:[#allocation16 + $0x348] sm:$0xff]  ;;  %v5756_v36 = vld [vmem:[#allocation16 + $0x3d8] sm:$0xff] }
 0x7d9   : > { %5839 = vmatpush.msra.mxu3 %v5682_v59  ;;  %5780 = vmatpush.msra.mxu0 %v5633_v28  ;;  %v5282_v10 = vpop.f32.mrf.mxu2  ;;  %v5302_v34 = vpop.f32.mrf.mxu3  ;;  %v5755_v59 = vld [vmem:[#allocation16 + $0x3d0] sm:$0xff]  ;;  %v5730_v48 = vld [vmem:[#allocation16 + $0x308] sm:$0xff] }
 0x7da   : > { %5800 = vmatpush.msra.mxu1 %v5649_v29  ;;  %5820 = vmatpush.msra.mxu2 %v5665_v47  ;;  %v5703_v47 = vld [vmem:[#allocation16 + $0x230] sm:$0xff]  ;;  %v5754_v8 = vld [vmem:[#allocation16 + $0x3c8] sm:$0xff] }
 0x7db   : > { %5840 = vmatpush.msra.mxu3 %v5681_v33  ;;  %5781 = vmatmul.f32.vlgmr.msra.gmra.mxu0 %v5625_v46  ;;  %v5322_v28 = vpop.f32.mrf.mxu0  ;;  %v5719_v33 = vld [vmem:[#allocation16 + $0x2b0] sm:$0xff] }
 0x7dc   : > { %5801 = vmatmul.f32.vlgmr.msra.gmra.mxu1 %v5626_v1  ;;  %5821 = vmatmul.f32.vlgmr.msra.gmra.mxu2 %v5627_v25  ;;  %v5323_v29 = vadd.f32 %v5322_v28, %v4335_v14  ;;  %v5735_v1 = vld [vmem:[#allocation16 + $0x330] sm:$0xff]  ;;  %v5263_v25 = vadd.f32 %v5262_v5, %v5243_v63  ;;  %v5750_v14 = vld [vmem:[#allocation16 + $0x3a8] sm:$0xff] }
 0x7dd   : > { %5841 = vmatmul.f32.vlgmr.msra.gmra.mxu3 %v5628_v44  ;;  %5845 = vmatpush.msrb.mxu0 %v5712_v37  ;;  %v5702_v44 = vld [vmem:[#allocation16 + $0x228] sm:$0xff] }
 0x7de   : > { %5865 = vmatpush.msrb.mxu1 %v5728_v60  ;;  %5885 = vmatpush.msrb.mxu2 %v5744_v20  ;;  %v5734_v60 = vld [vmem:[#allocation16 + $0x328] sm:$0xff]  ;;  %v5717_v20 = vld [vmem:[#allocation16 + $0x2a0] sm:$0xff]  ;;  %v5283_v19 = vadd.f32 %v5282_v10, %v5263_v25 }
 0x7df   : > { %5846 = vmatpush.msrb.mxu0 %v5711_v43  ;;  %5905 = vmatpush.msrb.mxu3 %v5760_v56  ;;  %v5342_v46 = vpop.f32.mrf.mxu1  ;;  %v5731_v56 = vld [vmem:[#allocation16 + $0x310] sm:$0xff]  ;;  %v5753_v10 = vld [vmem:[#allocation16 + $0x3c0] sm:$0xff] }
 0x7e0   : > { %5866 = vmatpush.msrb.mxu1 %v5727_v23  ;;  %5886 = vmatpush.msrb.mxu2 %v5743_v16  ;;  %v5343_v35 = vadd.f32 %v5342_v46, %v5323_v29  ;;  %v5733_v23 = vld [vmem:[#allocation16 + $0x320] sm:$0xff]  ;;  %v5123_v16 = vadd.f32 %v8211_v53, %v5103_v12  ;;  %v5698_v53 = vld [vmem:[#allocation16 + $0x208] sm:$0xff] }
 0x7e1   : > { %5847 = vmatpush.msrb.mxu0 %v5710_v17  ;;  %5906 = vmatpush.msrb.mxu3 %v5759_v41  ;;  %v5362_v37 = vpop.f32.mrf.mxu2  ;;  %v5382_v43 = vpop.f32.mrf.mxu3  ;;  %v5303_v41 = vadd.f32 %v5302_v34, %v5283_v19  ;;  %v5745_v34 = vld [vmem:[#allocation16 + $0x380] sm:$0xff] }
 0x7e2   : > { %5867 = vmatpush.msrb.mxu1 %v5726_v6  ;;  %5887 = vmatpush.msrb.mxu2 %v5742_v54  ;;  %v5363_v49 = vadd.f32 %v5362_v37, %v5343_v35  ;;  %v5732_v6 = vld [vmem:[#allocation16 + $0x318] sm:$0xff]  ;;  %v5715_v54 = vld [vmem:[#allocation16 + $0x290] sm:$0xff]  ;;  %v6305_v37 = vld [vmem:[#allocation18] ss:$0 sm:$0xff] }
 0x7e3   : > { %5848 = vmatpush.msrb.mxu0 %v5709_v38  ;;  %5907 = vmatpush.msrb.mxu3 %v5758_v2 }
 0x7e4   : > { %5868 = vmatpush.msrb.mxu1 %v5725_v18  ;;  %5888 = vmatpush.msrb.mxu2 %v5741_v57  ;;  %v5383_v17 = vadd.f32 %v5382_v43, %v5363_v49  ;;  %v5143_v57 = vadd.f32 %v8219_v30, %v5123_v16  ;;  %v5729_v30 = vld [vmem:[#allocation16 + $0x300] sm:$0xff] }
 0x7e5   : > { %5849 = vmatpush.msrb.mxu0 %v5708_v9  ;;  %5908 = vmatpush.msrb.mxu3 %v5757_v24  ;;  %v5697_v9 = vld [vmem:[#allocation16 + $0x200] sm:$0xff] }
 0x7e6   : > { %5869 = vmatpush.msrb.mxu1 %v5724_v61  ;;  %5889 = vmatpush.msrb.mxu2 %v5740_v31  ;;  %v5713_v61 = vld [vmem:[#allocation16 + $0x280] sm:$0xff] }
 0x7e7   : > { %5850 = vmatpush.msrb.mxu0 %v5707_v4  ;;  %5909 = vmatpush.msrb.mxu3 %v5756_v36  ;;  %v5402_v38 = vpop.f32.mrf.mxu0  ;;  %v5629_v4 = vmax.f32 %v5143_v57, 0.0  ;;  %v5748_v36 = vld [vmem:[#allocation16 + $0x398] sm:$0xff] }
 0x7e8   : > { %5870 = vmatpush.msrb.mxu1 %v5723_v50  ;;  %5890 = vmatpush.msrb.mxu2 %v5739_v7  ;;  %v5403_v18 = vadd.f32 %v5402_v38, %v5383_v17  ;;  %v5630_v50 = vmax.f32 %v5303_v41, 0.0 }
 0x7e9   : > { %5851 = vmatpush.msrb.mxu0 %v5706_v13  ;;  %5910 = vmatpush.msrb.mxu3 %v5755_v59  ;;  %v5752_v13 = vld [vmem:[#allocation16 + $0x3b8] sm:$0xff] }
 0x7ea   : > { %5871 = vmatpush.msrb.mxu1 %v5722_v21  ;;  %5891 = vmatpush.msrb.mxu2 %v5738_v39  ;;  %v5751_v21 = vld [vmem:[#allocation16 + $0x3b0] sm:$0xff]  ;;  %v5749_v39 = vld [vmem:[#allocation16 + $0x3a0] sm:$0xff] }
 0x7eb   : > { %5852 = vmatpush.msrb.mxu0 %v5705_v52  ;;  %5911 = vmatpush.msrb.mxu3 %v5754_v8  ;;  %v5747_v52 = vld [vmem:[#allocation16 + $0x390] sm:$0xff] }
 0x7ec   : > { %5872 = vmatpush.msrb.mxu1 %v5721_v15  ;;  %5892 = vmatpush.msrb.mxu2 %v5737_v55  ;;  %v5746_v15 = vld [vmem:[#allocation16 + $0x388] sm:$0xff]  ;;  %v4336_v55 = vperm.slane %v8155_v62, 7 }
 0x7ed   : > { %5853 = vmatpush.msrb.mxu0 %v5704_v3  ;;  %5912 = vmatpush.msrb.mxu3 %v5753_v10 }
 0x7ee   : > { %5873 = vmatpush.msrb.mxu1 %v5720_v27  ;;  %5893 = vmatpush.msrb.mxu2 %v5736_v58  ;;  %v5422_v42 = vpop.f32.mrf.mxu1 }
 0x7ef   : > { %5854 = vmatpush.msrb.mxu0 %v5703_v47  ;;  %v5423_v31 = vadd.f32 %v5422_v42, %v5403_v18  ;;  %v5442_v2 = vpop.f32.mrf.mxu2  ;;  %5913 = vmatpush.msrb.mxu3 %v5752_v13 }
 0x7f0   : > { %5874 = vmatpush.msrb.mxu1 %v5719_v33  ;;  %5894 = vmatpush.msrb.mxu2 %v5735_v1 }
 0x7f1   : > { %5855 = vmatpush.msrb.mxu0 %v5702_v44  ;;  %v5443_v5 = vadd.f32 %v5442_v2, %v5423_v31  ;;  %5914 = vmatpush.msrb.mxu3 %v5751_v21 }
 0x7f2   : > { %5875 = vmatpush.msrb.mxu1 %v5718_v11  ;;  %5895 = vmatpush.msrb.mxu2 %v5734_v60  ;;  %v5462_v7 = vpop.f32.mrf.mxu3 }
 0x7f3   : > { %5856 = vmatpush.msrb.mxu0 %v5701_v32  ;;  %v5463_v24 = vadd.f32 %v5462_v7, %v5443_v5  ;;  %5915 = vmatpush.msrb.mxu3 %v5750_v14 }
 0x7f4   : > { %5876 = vmatpush.msrb.mxu1 %v5717_v20  ;;  %5896 = vmatpush.msrb.mxu2 %v5733_v23 }
 0x7f5   : > { %5857 = vmatpush.msrb.mxu0 %v5700_v45  ;;  %v5631_v22 = vmax.f32 %v5463_v24, 0.0  ;;  %5916 = vmatpush.msrb.mxu3 %v5749_v39 }
 0x7f6   : > { %5877 = vmatpush.msrb.mxu1 %v5716_v26  ;;  %5897 = vmatpush.msrb.mxu2 %v5732_v6 }
 0x7f7   : > { %5858 = vmatpush.msrb.mxu0 %v5699_v51  ;;  %5917 = vmatpush.msrb.mxu3 %v5748_v36 }
 0x7f8   : > { %5878 = vmatpush.msrb.mxu1 %v5715_v54  ;;  %5898 = vmatpush.msrb.mxu2 %v5731_v56 }
 0x7f9   : > { %5859 = vmatpush.msrb.mxu0 %v5698_v53  ;;  %5918 = vmatpush.msrb.mxu3 %v5747_v52 }
 0x7fa   : > { %5879 = vmatpush.msrb.mxu1 %v5714_v40  ;;  %5899 = vmatpush.msrb.mxu2 %v5730_v48 }
 0x7fb   : > { %5860 = vmatpush.msrb.mxu0 %v5697_v9  ;;  %5919 = vmatpush.msrb.mxu3 %v5746_v15 }
 0x7fc   : > { %5880 = vmatpush.msrb.mxu1 %v5713_v61  ;;  %5861 = vmatmul.f32.vlgmr.msrb.gmra.mxu0 %v5629_v4 }
 0x7fd   : > { %5881 = vmatmul.f32.vlgmr.msrb.gmra.mxu1 %v5630_v50  ;;  %5900 = vmatpush.msrb.mxu2 %v5729_v30 }
 0x7fe   : > { %5901 = vmatmul.f32.vlgmr.msrb.gmra.mxu2 %v5631_v22  ;;  %5920 = vmatpush.msrb.mxu3 %v5745_v34 }
 0x81f   : > { %v5502_v63 = vpop.f32.mrf.mxu1 }
 0x820   : > { %v5482_v59 = vpop.f32.mrf.mxu0 }
 0x821   : > { %v5483_v0 = vadd.f32 %v5482_v59, %v4336_v55 }
 0x823   : > { %v5503_v3 = vadd.f32 %v5502_v63, %v5483_v0 }
 0x824   : > { %v5522_v27 = vpop.f32.mrf.mxu2 }
 0x825   : > { %v5523_v28 = vadd.f32 %v5522_v27, %v5503_v3 }
 0x835   : > { %v5542_v29 = vpop.f32.mrf.mxu3  ;;  %v5562_v47 = vpop.f32.mrf.mxu0 }
 0x836   : > { %v5543_v58 = vadd.f32 %v5542_v29, %v5523_v28 }
 0x838   : > { %v5563_v33 = vadd.f32 %v5562_v47, %v5543_v58 }
 0x83b   : > { %v5582_v46 = vpop.f32.mrf.mxu1 }
 0x83c   : > { %v5583_v1 = vadd.f32 %v5582_v46, %v5563_v33 }
 0x83d   : > { %v5602_v12 = vpop.f32.mrf.mxu2 }
 0x83e   : > { %v5603_v25 = vadd.f32 %v5602_v12, %v5583_v1 }
 0x842   : > { %v5622_v44 = vpop.f32.mrf.mxu3 }
 0x843   : > { %v5623_v11 = vadd.f32 %v5622_v44, %v5603_v25 }
 0x845   : > { %v5632_v35 = vmax.f32 %v5623_v11, 0.0 }
 0x847   : > { %5921 = vmatmul.f32.vlgmr.msrb.gmra.mxu3 %v5632_v35 }
 0x858   : > { %v5782_v62 = vpop.f32.mrf.mxu0 }
 0x859   : > { %v5783_v60 = vadd.f32 %v6305_v37, %v5782_v62  ;;  %v5802_v32 = vpop.f32.mrf.mxu1 }
 0x85b   : > { %v5803_v49 = vadd.f32 %v5802_v32, %v5783_v60 }
 0x85f   : > { %v5822_v20 = vpop.f32.mrf.mxu2 }
 0x860   : > { %v5823_v43 = vadd.f32 %v5822_v20, %v5803_v49  ;;  %v5842_v23 = vpop.f32.mrf.mxu3 }
 0x862   : > { %v5843_v19 = vadd.f32 %v5842_v23, %v5823_v43 }
 0x879   : > { %v5862_v16 = vpop.f32.mrf.mxu0 }
 0x87a   : > { %v5863_v45 = vadd.f32 %v5862_v16, %v5843_v19  ;;  %v5882_v26 = vpop.f32.mrf.mxu1 }
 0x87c   : > { %v5883_v6 = vadd.f32 %v5882_v26, %v5863_v45 }
 0x881   : > { %v5902_v17 = vpop.f32.mrf.mxu2 }
 0x882   : > { %v5903_v51 = vadd.f32 %v5902_v17, %v5883_v6 }
 0x8ca   : > { %v5922_v54 = vpop.f32.mrf.mxu3 }
 0x8cb   : > { %v5923_v38 = vadd.f32 %v5922_v54, %v5903_v51 }
 0x8cd   : > { %5925 = vst [vmem:[#allocation19] sm:$0xff] %v5923_v38 }
 0x8ce PF: > { %p6206_p3 = scmp.eq.s32.totalorder %s6773_s16, 1  ;;  %s6698_s0 = smov [#allocation19]  }
 0x8cf   : > { %s5932_s7 = sshll.u32 %s6698_s0, 4  ;;  %s5934_s1 = sshll.u32 %s8257_s9, 4  ;;  %s5933_s7 = int_to_ptr.vmem [resolvable:$true] %s5932_s7  ;;  %s5935_s1 = int_to_ptr.hbm [resolvable:$true] %s5934_s1 }
 0x8d0   : > { %6159 = dma.vmem_to_hbm [thread:$0]  (%p6206_p3), %s5933_s7, 128, %s5935_s1, [#allocation6]  }
 0x8d1   : > { %6665 = dma.done.wait (%p6206_p3), [#allocation6], 128  }
 0x8d2   : > { %6667 = vsyncadd (%p6206_p3), [#allocation6], 4294967168 }
 0x8d3 PF: > { %s8275_s12 = sld [smem:[#allocation26_spill]]  ;;  %p24_p4 = scmp.ge.s32.totalorder %s6806_s21, 4  }
 0x8d4   : > { %s8276_s30 = smov %s6674_s10  ;;  %s8277_s10 = smov %s6678_s11 }
 0x8d5   :  { %26 = sbr.rel (!%p24_p4) target bundleno = 13 (0xd), region = 142 }
 0x8d9   : > { %s8278_s11 = smov %s8275_s12  ;;  %s8279_s12 = smov %s6806_s21 }
 0x8da   :  { %5948 = vsyncpa [#allocation5], 1 }
 0x8db   :  { %5950 = vsyncpa [#allocation5 + $0x1], 1 }
 0x8dc   :  { %5951 = vsyncpa [#allocation8], 1 }
 0x8dd   :  { %5952 = vsyncpa [#allocation11], 1 }
 0x8de   :  { %5954 = vsyncpa [#allocation11 + $0x1], 1 }
 0x8df   :  { %5955 = vsyncpa [#allocation14], 1 }
 0x8e0   :  { %5956 = vsyncpa [#allocation17], 1 }
 0x8e1   :  { %5957 = vsyncpa [#allocation6], 1 }
 0x8e2   :  { %5959 = vsyncpa [#allocation6 + $0x1], 1 }

</bundles_post_ra>
